<compile_context>
chip_gen: v6e
topology: v6e:2x2x1
jax: 0.10.0
libtpu: 0.0.40
codegen_flags: <defaults>
</compile_context>

<pallas_src>
import jax
import jax.numpy as jnp
from jax import lax
from jax.experimental import pallas as pl
from jax.experimental.pallas import tpu as pltpu

EPS = 1e-5


def _interior_mask(Hp, Wp, H, W):
    """(Hp, Wp, 1) f32 mask: 1 on the valid interior, 0 on the 1-px halo ring.

    Built in-kernel from iotas (no mask DMA)."""
    row = lax.broadcasted_iota(jnp.int32, (Hp, Wp, 1), 0)
    col = lax.broadcasted_iota(jnp.int32, (Hp, Wp, 1), 1)
    inside = (row >= 1) & (row <= H) & (col >= 1) & (col <= W)
    return inside.astype(jnp.float32)


# --------------------------- pass 1: conv1 + bn1 partial stats ---------------------------
def _conv1_kernel_factory(H, W, Cin, Cout):
    Hp, Wp = H + 2, W + 2          # conv1 evaluated on a 1-px haloed grid so the
    M1 = Hp * Wp                   # ring later realizes conv2's zero padding

    def kernel(x_ref, w_ref, z_ref, sum_ref, sq_ref):
        x = x_ref[0]                                        # (H+4, W+4, Cin)
        xb = x if x.dtype == jnp.bfloat16 else x.astype(jnp.bfloat16)

        # 9 accumulated per-tap matmuls (no im2col materialization).
        acc = jnp.zeros((M1, Cout), jnp.float32)
        for ky in range(3):
            for kx in range(3):
                tap = xb[ky:ky + Hp, kx:kx + Wp, :].reshape(M1, Cin)
                acc = acc + jnp.dot(tap, w_ref[ky * 3 + kx],
                                    preferred_element_type=jnp.float32)
        z_ref[0] = acc.reshape(Hp, Wp, Cout)

        # bn1 partial statistics over the valid interior only (halo excluded).
        m = _interior_mask(Hp, Wp, H, W).reshape(M1, 1)
        sum_ref[0] = jnp.sum(acc * m, axis=0, keepdims=True)            # (1, Cout)
        sq_ref[0] = jnp.sum(acc * acc * m, axis=0, keepdims=True)       # (1, Cout)

    return kernel


# --------------- pass 2: bn1(folded)+relu, conv2, identity add, bn2 partial stats ---------------
def _conv2_kernel_factory(H, W, Cin, Cout, use_expand):
    Hp, Wp = H + 2, W + 2
    M = H * W

    def kernel(*refs):
        if use_expand:
            (z1_ref, x_ref, w2_ref, we_ref, s1_ref, t1_ref,
             z2_ref, sum_ref, sq_ref) = refs
        else:
            (z1_ref, x_ref, w2_ref, s1_ref, t1_ref,
             z2_ref, sum_ref, sq_ref) = refs
            we_ref = None

        # bn1 folded to scale/shift, fused with ReLU; zero the halo ring so it
        # acts as conv2's zero padding (all in registers).
        z1 = z1_ref[0]                                      # (Hp, Wp, Cout) f32
        y = jnp.maximum(z1 * s1_ref[...] + t1_ref[...], 0.0)
        y = y * _interior_mask(Hp, Wp, H, W)
        yb = y.astype(jnp.bfloat16)

        acc = jnp.zeros((M, Cout), jnp.float32)
        for ky in range(3):
            for kx in range(3):
                tap = yb[ky:ky + H, kx:kx + W, :].reshape(M, Cout)
                acc = acc + jnp.dot(tap, w2_ref[ky * 3 + kx],
                                    preferred_element_type=jnp.float32)

        # identity branch: 1x1 conv_expand (bf16 MXU) or plain f32 passthrough.
        xc = x_ref[0]                                       # (H, W, Cin)
        if use_expand:
            xcb = xc if xc.dtype == jnp.bfloat16 else xc.astype(jnp.bfloat16)
            ident = jnp.dot(xcb.reshape(M, Cin), we_ref[...],
                            preferred_element_type=jnp.float32)
        else:
            ident = xc.reshape(M, Cout).astype(jnp.float32)

        z2 = acc + ident
        z2_ref[0] = z2.reshape(H, W, Cout)
        sum_ref[0] = jnp.sum(z2, axis=0, keepdims=True)
        sq_ref[0] = jnp.sum(z2 * z2, axis=0, keepdims=True)

    return kernel


# --------------------------- pass 3: bn2(folded) + relu2 ---------------------------
def _bn2_kernel(z2_ref, s_ref, t_ref, o_ref):
    o_ref[0] = jnp.maximum(z2_ref[0] * s_ref[...] + t_ref[...], 0.0)


# --------------------------- JAX glue: finalize BN stats ---------------------------
def _fold_bn(psum, psq, gamma, beta, count):
    """Combine per-sample partial sums into a folded (scale, shift) pair."""
    total = jnp.sum(psum, axis=0)                           # (1, C)
    total_sq = jnp.sum(psq, axis=0)                         # (1, C)
    mean = total / count
    var = jnp.maximum(total_sq / count - mean * mean, 0.0)
    scale = gamma.reshape(1, -1).astype(jnp.float32) * lax.rsqrt(var + EPS)
    shift = beta.reshape(1, -1).astype(jnp.float32) - mean * scale
    return scale, shift


# --------------------------- wrapper ---------------------------
def residual_block_pallas(x_nchw, params, groups=1):
    """Forward pass of _Residual_Block.  x_nchw: (N, Cin, H, W) float32."""
    w1, w2, we, g1, b1, g2, b2 = params                    # PyTorch-layout weights
    assert groups == 1, "grouped conv (groups > 1) not implemented"  # fail loudly
    N, Cin, H, W = x_nchw.shape
    Cout = w1.shape[0]
    use_expand = we is not None
    if not use_expand:
        assert Cin == Cout, "identity path requires inc == outc when conv_expand is None"

    Hp, Wp = H + 2, W + 2
    count = float(N * H * W)
    parallel = pltpu.CompilerParams(dimension_semantics=("parallel",))

    # NCHW -> NHWC.  On the expand path x only feeds the MXU, so ship bf16
    # (halves the largest input DMA); keep f32 when the identity add needs it.
    x_dtype = jnp.bfloat16 if use_expand else jnp.float32
    x_nhwc = jnp.transpose(x_nchw, (0, 2, 3, 1)).astype(x_dtype)
    # spatial pad of 2: 1 for conv1's own padding + 1 extra ring on which conv1
    # is also evaluated so conv2's zero padding is realized by in-kernel masking.
    x_pad = jnp.pad(x_nhwc, ((0, 0), (2, 2), (2, 2), (0, 0)))

    # (Cout, Cin, 3, 3) -> (9, Cin, Cout) bf16, one slab per tap.
    def prep_w3x3(w):
        return (jnp.transpose(w, (2, 3, 1, 0))
                .reshape(9, w.shape[1], w.shape[0]).astype(jnp.bfloat16))

    w1k = prep_w3x3(w1)                                     # (9, Cin,  Cout)
    w2k = prep_w3x3(w2)                                     # (9, Cout, Cout)
    wek = (we.reshape(Cout, Cin).T.astype(jnp.bfloat16) if use_expand else None)

    # ---------------- pass 1: conv1 (haloed grid) + bn1 partial stats ----------------
    z1, sum1, sq1 = pl.pallas_call(
        _conv1_kernel_factory(H, W, Cin, Cout),
        out_shape=(jax.ShapeDtypeStruct((N, Hp, Wp, Cout), jnp.float32),
                   jax.ShapeDtypeStruct((N, 1, Cout), jnp.float32),
                   jax.ShapeDtypeStruct((N, 1, Cout), jnp.float32)),
        grid_spec=pltpu.PrefetchScalarGridSpec(
            num_scalar_prefetch=0, grid=(N,),
            in_specs=[pl.BlockSpec((1, H + 4, W + 4, Cin), lambda n: (n, 0, 0, 0)),
                      pl.BlockSpec((9, Cin, Cout), lambda n: (0, 0, 0))],
            out_specs=(pl.BlockSpec((1, Hp, Wp, Cout), lambda n: (n, 0, 0, 0)),
                       pl.BlockSpec((1, 1, Cout), lambda n: (n, 0, 0)),
                       pl.BlockSpec((1, 1, Cout), lambda n: (n, 0, 0)))),
        compiler_params=parallel,
    )(x_pad, w1k)

    s1, t1 = _fold_bn(sum1, sq1, g1, b1, count)             # (1, Cout) each

    # ---------------- pass 2: bn1+relu1, conv2, +identity, bn2 partial stats ----------------
    in2 = [z1, x_nhwc, w2k] + ([wek] if use_expand else []) + [s1, t1]
    in_specs2 = [pl.BlockSpec((1, Hp, Wp, Cout), lambda n: (n, 0, 0, 0)),
                 pl.BlockSpec((1, H, W, Cin), lambda n: (n, 0, 0, 0)),
                 pl.BlockSpec((9, Cout, Cout), lambda n: (0, 0, 0))]
    if use_expand:
        in_specs2.append(pl.BlockSpec((Cin, Cout), lambda n: (0, 0)))
    in_specs2 += [pl.BlockSpec((1, Cout), lambda n: (0, 0)),
                  pl.BlockSpec((1, Cout), lambda n: (0, 0))]

    z2, sum2, sq2 = pl.pallas_call(
        _conv2_kernel_factory(H, W, Cin, Cout, use_expand),
        out_shape=(jax.ShapeDtypeStruct((N, H, W, Cout), jnp.float32),
                   jax.ShapeDtypeStruct((N, 1, Cout), jnp.float32),
                   jax.ShapeDtypeStruct((N, 1, Cout), jnp.float32)),
        grid_spec=pltpu.PrefetchScalarGridSpec(
            num_scalar_prefetch=0, grid=(N,),
            in_specs=in_specs2,
            out_specs=(pl.BlockSpec((1, H, W, Cout), lambda n: (n, 0, 0, 0)),
                       pl.BlockSpec((1, 1, Cout), lambda n: (n, 0, 0)),
                       pl.BlockSpec((1, 1, Cout), lambda n: (n, 0, 0)))),
        compiler_params=parallel,
    )(*in2)

    s2, t2 = _fold_bn(sum2, sq2, g2, b2, count)

    # ---------------- pass 3: bn2(folded) + relu2 ----------------
    out_nhwc = pl.pallas_call(
        _bn2_kernel,
        out_shape=jax.ShapeDtypeStruct((N, H, W, Cout), jnp.float32),
        grid_spec=pltpu.PrefetchScalarGridSpec(
            num_scalar_prefetch=0, grid=(N,),
            in_specs=[pl.BlockSpec((1, H, W, Cout), lambda n: (n, 0, 0, 0)),
                      pl.BlockSpec((1, Cout), lambda n: (0, 0)),
                      pl.BlockSpec((1, Cout), lambda n: (0, 0))],
            out_specs=pl.BlockSpec((1, H, W, Cout), lambda n: (n, 0, 0, 0))),
        compiler_params=parallel,
    )(z2, s2, t2)

    return jnp.transpose(out_nhwc, (0, 3, 1, 2))            # back to NCHW


# ------------------------------ reference ------------------------------
def residual_block_ref(x, params, matmul_dtype=jnp.float32):
    """Pure-JAX reference.  matmul_dtype=bfloat16 mirrors the kernel's MXU
    input precision (f32 accumulation); float32 is the exact PyTorch math."""
    w1, w2, we, g1, b1, g2, b2 = params

    def conv(x, w, pad):
        return lax.conv_general_dilated(
            x.astype(matmul_dtype), w.astype(matmul_dtype), (1, 1),
            [(pad, pad), (pad, pad)],
            dimension_numbers=('NCHW', 'OIHW', 'NCHW'),
            preferred_element_type=jnp.float32)

    def bn(y, g, b):
        m = jnp.mean(y, axis=(0, 2, 3), keepdims=True)
        v = jnp.mean((y - m) ** 2, axis=(0, 2, 3), keepdims=True)
        return ((y - m) * lax.rsqrt(v + EPS) * g.reshape(1, -1, 1, 1)
                + b.reshape(1, -1, 1, 1))

    identity = conv(x, we, 0) if we is not None else x
    out = jnp.maximum(bn(conv(x, w1, 1), g1, b1), 0.0)
    out = conv(out, w2, 1)
    out = jnp.maximum(bn(out + identity, g2, b2), 0.0)
    return out


if __name__ == "__main__":
    key = jax.random.PRNGKey(0)

    def run_case(Cin, Cout, use_expand):
        N, H, W = 2, 16, 16
        ks = jax.random.split(jax.random.fold_in(key, Cin * 1000 + Cout), 8)
        x = jax.random.normal(ks[0], (N, Cin, H, W), jnp.float32)
        w1 = jax.random.normal(ks[1], (Cout, Cin, 3, 3), jnp.float32) * 0.1
        w2 = jax.random.normal(ks[2], (Cout, Cout, 3, 3), jnp.float32) * 0.1
        we = (jax.random.normal(ks[3], (Cout, Cin, 1, 1), jnp.float32) * 0.1
              if use_expand else None)
        g1 = jax.random.uniform(ks[4], (Cout,), jnp.float32, 0.5, 1.5)
        b1 = jax.random.normal(ks[5], (Cout,), jnp.float32) * 0.1
        g2 = jax.random.uniform(ks[6], (Cout,), jnp.float32, 0.5, 1.5)
        b2 = jax.random.normal(ks[7], (Cout,), jnp.float32) * 0.1
        params = (w1, w2, we, g1, b1, g2, b2)

        out = jax.block_until_ready(residual_block_pallas(x, params))
        assert out.shape == (N, Cout, H, W)

        # Tight check vs a reference with the same matmul-input precision (bf16).
        ref_bf16 = residual_block_ref(x, params, jnp.bfloat16)
        err_b = float(jnp.max(jnp.abs(out - ref_bf16)))
        assert jnp.allclose(out, ref_bf16, rtol=1e-2, atol=1e-2), err_b

        # Loose sanity check vs the exact f32 PyTorch math (gap is only the
        # bf16 rounding of the MXU inputs; accumulation is f32).
        ref_f32 = residual_block_ref(x, params, jnp.float32)
        err_f = float(jnp.max(jnp.abs(out - ref_f32)))
        assert jnp.allclose(out, ref_f32, rtol=1e-1, atol=1e-1), err_f

    run_case(Cin=4, Cout=8, use_expand=True)    # inc != outc -> conv_expand path
    run_case(Cin=8, Cout=8, use_expand=False)   # inc == outc -> pure identity path
    print("KERNEL_OK")
</pallas_src>

<mosaic_0001>
module attributes {stable_mosaic.version = 11 : i64} {
  func.func @kernel(%arg0: i32, %arg1: memref<1x20x20x4xbf16, #tpu.memory_space<vmem>>, %arg2: memref<9x4x8xbf16, #tpu.memory_space<vmem>>, %arg3: memref<1x18x18x8xf32, #tpu.memory_space<vmem>>, %arg4: memref<1x1x8xf32, #tpu.memory_space<vmem>>, %arg5: memref<1x1x8xf32, #tpu.memory_space<vmem>>) attributes {dimension_semantics = [#tpu.dimension_semantics<parallel>], iteration_bounds = array<i64: 2>, scalar_prefetch = 0 : i64, scratch_operands = 0 : i64, tpu.core_type = #tpu.core_type<tc>, window_params = [{transform_indices = @transform_0, window_bounds = array<i64: 1, 20, 20, 4>}, {pipeline_mode = #tpu.pipeline_mode<synchronous>, transform_indices = @transform_1, window_bounds = array<i64: 9, 4, 8>}, {transform_indices = @transform_2, window_bounds = array<i64: 1, 18, 18, 8>}, {transform_indices = @transform_3, window_bounds = array<i64: 1, 1, 8>}, {transform_indices = @transform_4, window_bounds = array<i64: 1, 1, 8>}]} {
    %c0 = arith.constant 0 : index
    %c0_0 = arith.constant 0 : index
    %c0_1 = arith.constant 0 : index
    %c0_2 = arith.constant 0 : index
    %0 = vector.load %arg1[%c0, %c0_0, %c0_1, %c0_2] : memref<1x20x20x4xbf16, #tpu.memory_space<vmem>>, vector<1x20x20x4xbf16>
    %1 = vector.shape_cast %0 : vector<1x20x20x4xbf16> to vector<20x20x4xbf16>
    %cst = arith.constant 0.000000e+00 : f32
    %2 = vector.broadcast %cst : f32 to vector<324x8xf32>
    %3 = vector.extract_strided_slice %1 {offsets = [0, 0, 0], sizes = [18, 18, 4], strides = [1, 1, 1]} : vector<20x20x4xbf16> to vector<18x18x4xbf16>
    %4 = vector.shape_cast %3 : vector<18x18x4xbf16> to vector<324x4xbf16>
    %c0_3 = arith.constant 0 : index
    %c0_4 = arith.constant 0 : index
    %c0_5 = arith.constant 0 : index
    %5 = vector.load %arg2[%c0_3, %c0_4, %c0_5] : memref<9x4x8xbf16, #tpu.memory_space<vmem>>, vector<1x4x8xbf16>
    %6 = vector.shape_cast %5 : vector<1x4x8xbf16> to vector<4x8xbf16>
    %cst_6 = arith.constant dense<0.000000e+00> : vector<324x8xf32>
    %7 = tpu.matmul %4, %6, %cst_6 {dimension_numbers = #tpu.dot_dimension_numbers<[1], [0], [0], [1], [0, 0, 1, 1], [], []>} : vector<324x4xbf16>, vector<4x8xbf16>, vector<324x8xf32> -> vector<324x8xf32>
    %8 = arith.addf %2, %7 : vector<324x8xf32>
    %9 = vector.extract_strided_slice %1 {offsets = [0, 1, 0], sizes = [18, 18, 4], strides = [1, 1, 1]} : vector<20x20x4xbf16> to vector<18x18x4xbf16>
    %10 = vector.shape_cast %9 : vector<18x18x4xbf16> to vector<324x4xbf16>
    %c1 = arith.constant 1 : index
    %c0_7 = arith.constant 0 : index
    %c0_8 = arith.constant 0 : index
    %11 = vector.load %arg2[%c1, %c0_7, %c0_8] : memref<9x4x8xbf16, #tpu.memory_space<vmem>>, vector<1x4x8xbf16>
    %12 = vector.shape_cast %11 : vector<1x4x8xbf16> to vector<4x8xbf16>
    %cst_9 = arith.constant dense<0.000000e+00> : vector<324x8xf32>
    %13 = tpu.matmul %10, %12, %cst_9 {dimension_numbers = #tpu.dot_dimension_numbers<[1], [0], [0], [1], [0, 0, 1, 1], [], []>} : vector<324x4xbf16>, vector<4x8xbf16>, vector<324x8xf32> -> vector<324x8xf32>
    %14 = arith.addf %8, %13 : vector<324x8xf32>
    %15 = vector.extract_strided_slice %1 {offsets = [0, 2, 0], sizes = [18, 18, 4], strides = [1, 1, 1]} : vector<20x20x4xbf16> to vector<18x18x4xbf16>
    %16 = vector.shape_cast %15 : vector<18x18x4xbf16> to vector<324x4xbf16>
    %c2 = arith.constant 2 : index
    %c0_10 = arith.constant 0 : index
    %c0_11 = arith.constant 0 : index
    %17 = vector.load %arg2[%c2, %c0_10, %c0_11] : memref<9x4x8xbf16, #tpu.memory_space<vmem>>, vector<1x4x8xbf16>
    %18 = vector.shape_cast %17 : vector<1x4x8xbf16> to vector<4x8xbf16>
    %cst_12 = arith.constant dense<0.000000e+00> : vector<324x8xf32>
    %19 = tpu.matmul %16, %18, %cst_12 {dimension_numbers = #tpu.dot_dimension_numbers<[1], [0], [0], [1], [0, 0, 1, 1], [], []>} : vector<324x4xbf16>, vector<4x8xbf16>, vector<324x8xf32> -> vector<324x8xf32>
    %20 = arith.addf %14, %19 : vector<324x8xf32>
    %21 = vector.extract_strided_slice %1 {offsets = [1, 0, 0], sizes = [18, 18, 4], strides = [1, 1, 1]} : vector<20x20x4xbf16> to vector<18x18x4xbf16>
    %22 = vector.shape_cast %21 : vector<18x18x4xbf16> to vector<324x4xbf16>
    %c3 = arith.constant 3 : index
    %c0_13 = arith.constant 0 : index
    %c0_14 = arith.constant 0 : index
    %23 = vector.load %arg2[%c3, %c0_13, %c0_14] : memref<9x4x8xbf16, #tpu.memory_space<vmem>>, vector<1x4x8xbf16>
    %24 = vector.shape_cast %23 : vector<1x4x8xbf16> to vector<4x8xbf16>
    %cst_15 = arith.constant dense<0.000000e+00> : vector<324x8xf32>
    %25 = tpu.matmul %22, %24, %cst_15 {dimension_numbers = #tpu.dot_dimension_numbers<[1], [0], [0], [1], [0, 0, 1, 1], [], []>} : vector<324x4xbf16>, vector<4x8xbf16>, vector<324x8xf32> -> vector<324x8xf32>
    %26 = arith.addf %20, %25 : vector<324x8xf32>
    %27 = vector.extract_strided_slice %1 {offsets = [1, 1, 0], sizes = [18, 18, 4], strides = [1, 1, 1]} : vector<20x20x4xbf16> to vector<18x18x4xbf16>
    %28 = vector.shape_cast %27 : vector<18x18x4xbf16> to vector<324x4xbf16>
    %c4 = arith.constant 4 : index
    %c0_16 = arith.constant 0 : index
    %c0_17 = arith.constant 0 : index
    %29 = vector.load %arg2[%c4, %c0_16, %c0_17] : memref<9x4x8xbf16, #tpu.memory_space<vmem>>, vector<1x4x8xbf16>
    %30 = vector.shape_cast %29 : vector<1x4x8xbf16> to vector<4x8xbf16>
    %cst_18 = arith.constant dense<0.000000e+00> : vector<324x8xf32>
    %31 = tpu.matmul %28, %30, %cst_18 {dimension_numbers = #tpu.dot_dimension_numbers<[1], [0], [0], [1], [0, 0, 1, 1], [], []>} : vector<324x4xbf16>, vector<4x8xbf16>, vector<324x8xf32> -> vector<324x8xf32>
    %32 = arith.addf %26, %31 : vector<324x8xf32>
    %33 = vector.extract_strided_slice %1 {offsets = [1, 2, 0], sizes = [18, 18, 4], strides = [1, 1, 1]} : vector<20x20x4xbf16> to vector<18x18x4xbf16>
    %34 = vector.shape_cast %33 : vector<18x18x4xbf16> to vector<324x4xbf16>
    %c5 = arith.constant 5 : index
    %c0_19 = arith.constant 0 : index
    %c0_20 = arith.constant 0 : index
    %35 = vector.load %arg2[%c5, %c0_19, %c0_20] : memref<9x4x8xbf16, #tpu.memory_space<vmem>>, vector<1x4x8xbf16>
    %36 = vector.shape_cast %35 : vector<1x4x8xbf16> to vector<4x8xbf16>
    %cst_21 = arith.constant dense<0.000000e+00> : vector<324x8xf32>
    %37 = tpu.matmul %34, %36, %cst_21 {dimension_numbers = #tpu.dot_dimension_numbers<[1], [0], [0], [1], [0, 0, 1, 1], [], []>} : vector<324x4xbf16>, vector<4x8xbf16>, vector<324x8xf32> -> vector<324x8xf32>
    %38 = arith.addf %32, %37 : vector<324x8xf32>
    %39 = vector.extract_strided_slice %1 {offsets = [2, 0, 0], sizes = [18, 18, 4], strides = [1, 1, 1]} : vector<20x20x4xbf16> to vector<18x18x4xbf16>
    %40 = vector.shape_cast %39 : vector<18x18x4xbf16> to vector<324x4xbf16>
    %c6 = arith.constant 6 : index
    %c0_22 = arith.constant 0 : index
    %c0_23 = arith.constant 0 : index
    %41 = vector.load %arg2[%c6, %c0_22, %c0_23] : memref<9x4x8xbf16, #tpu.memory_space<vmem>>, vector<1x4x8xbf16>
    %42 = vector.shape_cast %41 : vector<1x4x8xbf16> to vector<4x8xbf16>
    %cst_24 = arith.constant dense<0.000000e+00> : vector<324x8xf32>
    %43 = tpu.matmul %40, %42, %cst_24 {dimension_numbers = #tpu.dot_dimension_numbers<[1], [0], [0], [1], [0, 0, 1, 1], [], []>} : vector<324x4xbf16>, vector<4x8xbf16>, vector<324x8xf32> -> vector<324x8xf32>
    %44 = arith.addf %38, %43 : vector<324x8xf32>
    %45 = vector.extract_strided_slice %1 {offsets = [2, 1, 0], sizes = [18, 18, 4], strides = [1, 1, 1]} : vector<20x20x4xbf16> to vector<18x18x4xbf16>
    %46 = vector.shape_cast %45 : vector<18x18x4xbf16> to vector<324x4xbf16>
    %c7 = arith.constant 7 : index
    %c0_25 = arith.constant 0 : index
    %c0_26 = arith.constant 0 : index
    %47 = vector.load %arg2[%c7, %c0_25, %c0_26] : memref<9x4x8xbf16, #tpu.memory_space<vmem>>, vector<1x4x8xbf16>
    %48 = vector.shape_cast %47 : vector<1x4x8xbf16> to vector<4x8xbf16>
    %cst_27 = arith.constant dense<0.000000e+00> : vector<324x8xf32>
    %49 = tpu.matmul %46, %48, %cst_27 {dimension_numbers = #tpu.dot_dimension_numbers<[1], [0], [0], [1], [0, 0, 1, 1], [], []>} : vector<324x4xbf16>, vector<4x8xbf16>, vector<324x8xf32> -> vector<324x8xf32>
    %50 = arith.addf %44, %49 : vector<324x8xf32>
    %51 = vector.extract_strided_slice %1 {offsets = [2, 2, 0], sizes = [18, 18, 4], strides = [1, 1, 1]} : vector<20x20x4xbf16> to vector<18x18x4xbf16>
    %52 = vector.shape_cast %51 : vector<18x18x4xbf16> to vector<324x4xbf16>
    %c8 = arith.constant 8 : index
    %c0_28 = arith.constant 0 : index
    %c0_29 = arith.constant 0 : index
    %53 = vector.load %arg2[%c8, %c0_28, %c0_29] : memref<9x4x8xbf16, #tpu.memory_space<vmem>>, vector<1x4x8xbf16>
    %54 = vector.shape_cast %53 : vector<1x4x8xbf16> to vector<4x8xbf16>
    %cst_30 = arith.constant dense<0.000000e+00> : vector<324x8xf32>
    %55 = tpu.matmul %52, %54, %cst_30 {dimension_numbers = #tpu.dot_dimension_numbers<[1], [0], [0], [1], [0, 0, 1, 1], [], []>} : vector<324x4xbf16>, vector<4x8xbf16>, vector<324x8xf32> -> vector<324x8xf32>
    %56 = arith.addf %50, %55 : vector<324x8xf32>
    %57 = vector.shape_cast %56 : vector<324x8xf32> to vector<18x18x8xf32>
    %c0_31 = arith.constant 0 : index
    %c0_32 = arith.constant 0 : index
    %c0_33 = arith.constant 0 : index
    %c0_34 = arith.constant 0 : index
    %58 = vector.load %arg3[%c0_31, %c0_32, %c0_33, %c0_34] : memref<1x18x18x8xf32, #tpu.memory_space<vmem>>, vector<1x18x18x8xf32>
    %59 = vector.shape_cast %58 : vector<1x18x18x8xf32> to vector<18x18x8xf32>
    %60 = vector.shape_cast %57 : vector<18x18x8xf32> to vector<1x18x18x8xf32>
    tpu.vector_store %arg3[%c0_31, %c0_32, %c0_33, %c0_34], %60 {strides = array<i32>} : memref<1x18x18x8xf32, #tpu.memory_space<vmem>>, vector<1x18x18x8xf32>,
    %61 = tpu.iota {dimensions = array<i32: 0>} : vector<18x18x1xi32>
    %62 = tpu.iota {dimensions = array<i32: 1>} : vector<18x18x1xi32>
    %c1_i32 = arith.constant 1 : i32
    %63 = vector.broadcast %c1_i32 : i32 to vector<18x18x1xi32>
    %64 = arith.cmpi sge, %61, %63 : vector<18x18x1xi32>
    %c16_i32 = arith.constant 16 : i32
    %65 = vector.broadcast %c16_i32 : i32 to vector<18x18x1xi32>
    %66 = arith.cmpi sle, %61, %65 : vector<18x18x1xi32>
    %67 = arith.andi %64, %66 : vector<18x18x1xi1>
    %c1_i32_35 = arith.constant 1 : i32
    %68 = vector.broadcast %c1_i32_35 : i32 to vector<18x18x1xi32>
    %69 = arith.cmpi sge, %62, %68 : vector<18x18x1xi32>
    %70 = arith.andi %67, %69 : vector<18x18x1xi1>
    %c16_i32_36 = arith.constant 16 : i32
    %71 = vector.broadcast %c16_i32_36 : i32 to vector<18x18x1xi32>
    %72 = arith.cmpi sle, %62, %71 : vector<18x18x1xi32>
    %73 = arith.andi %70, %72 : vector<18x18x1xi1>
    %74 = arith.extui %73 : vector<18x18x1xi1> to vector<18x18x1xi32>
    %75 = arith.sitofp %74 : vector<18x18x1xi32> to vector<18x18x1xf32>
    %76 = vector.shape_cast %75 : vector<18x18x1xf32> to vector<324x1xf32>
    %77 = vector.broadcast %76 : vector<324x1xf32> to vector<324x8xf32>
    %78 = arith.mulf %56, %77 : vector<324x8xf32>
    %cst_37 = arith.constant dense<0.000000e+00> : vector<8xf32>
    %79 = vector.multi_reduction <add>, %78, %cst_37 [0] : vector<324x8xf32> to vector<8xf32>
    %80 = vector.shape_cast %79 : vector<8xf32> to vector<1x8xf32>
    %c0_38 = arith.constant 0 : index
    %c0_39 = arith.constant 0 : index
    %c0_40 = arith.constant 0 : index
    %81 = vector.load %arg4[%c0_38, %c0_39, %c0_40] : memref<1x1x8xf32, #tpu.memory_space<vmem>>, vector<1x1x8xf32>
    %82 = vector.shape_cast %81 : vector<1x1x8xf32> to vector<1x8xf32>
    %83 = vector.shape_cast %80 : vector<1x8xf32> to vector<1x1x8xf32>
    tpu.vector_store %arg4[%c0_38, %c0_39, %c0_40], %83 {strides = array<i32>} : memref<1x1x8xf32, #tpu.memory_space<vmem>>, vector<1x1x8xf32>,
    %84 = arith.mulf %56, %56 : vector<324x8xf32>
    %85 = vector.broadcast %76 : vector<324x1xf32> to vector<324x8xf32>
    %86 = arith.mulf %84, %85 : vector<324x8xf32>
    %cst_41 = arith.constant dense<0.000000e+00> : vector<8xf32>
    %87 = vector.multi_reduction <add>, %86, %cst_41 [0] : vector<324x8xf32> to vector<8xf32>
    %88 = vector.shape_cast %87 : vector<8xf32> to vector<1x8xf32>
    %c0_42 = arith.constant 0 : index
    %c0_43 = arith.constant 0 : index
    %c0_44 = arith.constant 0 : index
    %89 = vector.load %arg5[%c0_42, %c0_43, %c0_44] : memref<1x1x8xf32, #tpu.memory_space<vmem>>, vector<1x1x8xf32>
    %90 = vector.shape_cast %89 : vector<1x1x8xf32> to vector<1x8xf32>
    %91 = vector.shape_cast %88 : vector<1x8xf32> to vector<1x1x8xf32>
    tpu.vector_store %arg5[%c0_42, %c0_43, %c0_44], %91 {strides = array<i32>} : memref<1x1x8xf32, #tpu.memory_space<vmem>>, vector<1x1x8xf32>,
    return
  }
  func.func @transform_0(%arg0: i32) -> (i32, i32, i32, i32) {
    %c0_i32 = arith.constant 0 : i32
    %c0_i32_0 = arith.constant 0 : i32
    %c0_i32_1 = arith.constant 0 : i32
    %c0_i32_2 = arith.constant 0 : i32
    return %arg0, %c0_i32, %c0_i32_0, %c0_i32_1 : i32, i32, i32, i32
  }
  func.func @transform_1(%arg0: i32) -> (i32, i32, i32) {
    %c0_i32 = arith.constant 0 : i32
    %c0_i32_0 = arith.constant 0 : i32
    %c0_i32_1 = arith.constant 0 : i32
    %c0_i32_2 = arith.constant 0 : i32
    return %c0_i32, %c0_i32_0, %c0_i32_1 : i32, i32, i32
  }
  func.func @transform_2(%arg0: i32) -> (i32, i32, i32, i32) {
    %c0_i32 = arith.constant 0 : i32
    %c0_i32_0 = arith.constant 0 : i32
    %c0_i32_1 = arith.constant 0 : i32
    %c0_i32_2 = arith.constant 0 : i32
    return %arg0, %c0_i32, %c0_i32_0, %c0_i32_1 : i32, i32, i32, i32
  }
  func.func @transform_3(%arg0: i32) -> (i32, i32, i32) {
    %c0_i32 = arith.constant 0 : i32
    %c0_i32_0 = arith.constant 0 : i32
    %c0_i32_1 = arith.constant 0 : i32
    return %arg0, %c0_i32, %c0_i32_0 : i32, i32, i32
  }
  func.func @transform_4(%arg0: i32) -> (i32, i32, i32) {
    %c0_i32 = arith.constant 0 : i32
    %c0_i32_0 = arith.constant 0 : i32
    %c0_i32_1 = arith.constant 0 : i32
    return %arg0, %c0_i32, %c0_i32_0 : i32, i32, i32
  }
}

</mosaic_0001>

<bundles_post_ra>
// kernel: tpu_custom_call.1
= control target key start
LH: loop header
LB: loop body
LE: loop exit
PB: predicated region body
PF: predicated region fallthrough
CT: control target
= control target key end

     0   :  { %10 = vsyncpa [#allocation3], 0  ;;  %s23174_s0 = inlined_call_operand.vmem [shape: bf16[2,20,20,4], index: 0, kind: input, shape index: {}]   ;;  %s23175_s1 = inlined_call_operand.vmem [shape: bf16[9,4,8], index: 1, kind: input, shape index: {}]   ;;  %s23176_s2 = inlined_call_operand.vmem [shape: f32[2,18,18,8], index: 2, kind: output, shape index: {0}]   ;;  %s23177_s3 = inlined_call_operand.hbm [shape: f32[2,1,8], index: 3, kind: output, shape index: {1}]   ;;  %s23178_s4 = inlined_call_operand.hbm [shape: f32[2,1,8], index: 4, kind: output, shape index: {2}]  }
   0x1   :  { %12 = vsyncpa [#allocation3 + $0x1], 0 }
   0x2   :  { %13 = vsyncpa [#allocation5], 0 }
   0x3   :  { %15 = vsyncpa [#allocation5 + $0x1], 0  ;;  %s15798_s15 = smov 0   ;;  %s15800_s16 = smov 0  }
   0x4   :  { %s15802_s17 = smov 0   ;;  %s15804_s18 = smov 0  }
   0x5 LB: > { %s15819_s19 = sadd.s32 4294967295, %s15760_s18   ;;  %s14151_s20 = sadd.s32 4294967294, %s15760_s18   ;;  %s15760_s18 = sphi %s15804_s18, %s25597_s18   ;;  %s15756_s17 = sphi %s15802_s17, %s25596_s17   ;;  %s15752_s16 = sphi %s15800_s16, %s25595_s16   ;;  %s15748_s15 = sphi %s15798_s15, %s25594_s15  }
   0x6   : > { %s15823_s21 = sadd.s32 1, %s15760_s18   ;;  %s101_s22 = sadd.s32 1, %s15756_s17 }
   0x7   : > { %s98_s23 = ssub.s32 %s15760_s18, %s15823_s21  ;;  %p111_p0 = scmp.ne.s32.totalorder %s15756_s17, %s15752_s16 }
   0x8   : > { %p99_p1 = scmp.eq.s32.totalorder %s98_s23, 0  ;;  %p112_p2 = scmp.eq.s32.totalorder %s15819_s19, 1 }
   0x9   : > { %p117_p3 = scmp.ne.s32.totalorder %s15752_s16, %s15748_s15  ;;  %p118_p4 = scmp.eq.s32.totalorder %s14151_s20, 1 }
   0xa   : > { %s15834_s24 = scalar_select %p99_p1, %s15756_s17, %s101_s22  }
   0xb   : > { %p15836_p5 = por %p112_p2, %p111_p0  ;;  %p15840_p6 = por %p118_p4, %p117_p3 }
   0xc   : > { %p14154_p7 = scmp.ge.s32.totalorder %s15760_s18, 1  ;;  %p173_p8 = scmp.lt.s32.totalorder %s15760_s18, 3 }
   0xe   : > { %p174_p9 = pnand %p14154_p7, %p173_p8 }
  0x10   : > { %177 = sbr.rel (%p174_p9) target bundleno = 1306 (0x51a), region = 28 }
  0x15   : > { %v14373_v0 = vld [vmem:[%s23175_s1 + $0x2] sm:$0x3]  ;;  %vm3983_vm0 = vcmask 1041408   ;;  %p207_p10 = scmp.lt.s32.totalorder %s15819_s19, 1  ;;  %v343_v1 = vlaneseq  ;;  %v23179_v2 = vmov 0.0   ;;  %vm15764_vm4 = vmmov 0  }
  0x16   : > { %14838 = vmatprep.subr.bf16.mxu0 %v23179_v2  ;;  %15612 = vmatprep.subr.bf16.mxu1 %v23179_v2  ;;  %v3985_v3 = vsel %vm3983_vm0, %v14373_v0, 0  ;;  %vm1593_vm1 = vsmask.f32 256  ;;  %v15763_v4 = vmov 1966171168   ;;  %v23910_v26 = vmov 0 }
  0x17   : > { %14839 = vmatpush3.bf16.msra.mxu0 %v3985_v3  ;;  %15613 = vmatpush3.bf16.msra.mxu1 %v3985_v3  ;;  %s15854_s29 = scalar_select %p207_p10, %s15819_s19, 1  ;;  %v341_v5 = vunpack.c.l.s4 %v15763_v4  ;;  %v15856_v6 = vshrl.u32 %v343_v1, 7  ;;  %vm1594_vm2 = vsmask.f32 1284  ;;  %vm1596_vm3 = vsmask.f32 2312 }
  0x18   : > { %14840 = vmatprep.mubr.msk.bf16.mxu0 %vm15764_vm4, %v23179_v2  ;;  %14884 = vmatprep.mubr.msk.bf16.mxu1 %vm15764_vm4, %v23179_v2  ;;  %vm1595_vm5 = vmor %vm1593_vm1, %vm1594_vm2  ;;  %vm1598_vm6 = vsmask.f32 3340  ;;  %vm1600_vm7 = vsmask.f32 4368  ;;  %vm1602_vm9 = vsmask.f32 5396 }
  0x19   : > { %23909 = vst [vmem:[#allocation8_spill] sm:$0xff] %v15856_v6  ;;  %15010 = vmatprep.subr.bf16.mxu0 %v23179_v2  ;;  %s15614_s30 = smul.u32 240, %s15854_s29  ;;  %v342_v7 = vunpack.c.0.s8 %v341_v5  ;;  %vm1597_vm8 = vmor %vm1595_vm5, %vm1596_vm3  ;;  %14924 = vmatprep.subr.bf16.mxu1 %v23179_v2  ;;  %vm1604_vm11 = vsmask.f32 6424  ;;  %v14434_v9 = vld [vmem:[%s23175_s1 + $0x4] sm:$0x3] }
  0x1a   : > { %vm1599_vm10 = vmor %vm1597_vm8, %vm1598_vm6  ;;  %v1448_v10 = vld [vmem:[%s23175_s1] sm:$0x3]  ;;  %vm1606_vm15 = vsmask.f32 7452  ;;  %v15891_v18 = vsel %vm3983_vm0, %v14434_v9, 0  ;;  %vm3919_vm2 = vcmask 31744  }
  0x1b   : > { %s15868_s7 = scalar_lea.vmem %s23174_s0, %s15614_s30  ;;  %v15871_v8 = vsub.s32 %v342_v7, %v15856_v6  ;;  %vm1601_vm12 = vmor %vm1599_vm10, %vm1600_vm7  ;;  %v15894_v19 = vsel %vm3983_vm0, %v1448_v10, 0  ;;  %vm13304_vm5 = vcmask 58368   ;;  %vm13824_vm6 = vcmask 60416   ;;  %s23090_s11 = sand.u32 1, %s15752_s16  }
  0x1c   : > { %v14157_v11 = vld.sshfl [vmem:[%s15868_s7] sm:$0x33 pattern:$0x75316420]  ;;  %vm1603_vm13 = vmor %vm1601_vm12, %vm1602_vm9  ;;  %s14636_s12 = sshll.u32 %s15819_s19, 4  ;;  %s200_s13 = scalar_lea.vmem [#allocation2], %s23090_s11 }
  0x1d   : > { %v14158_v12 = vld.sshfl [vmem:[%s15868_s7 + $0x4] sm:$0x33 pattern:$0x75316420]  ;;  %v339_v13 = vcombine.high %v14157_v11, %v14157_v11  ;;  %v15882_v14 = vrot.slane %v14157_v11, %v15871_v8  ;;  %vm1605_vm14 = vmor %vm1603_vm13, %vm1604_vm11  ;;  %s14030_s14 = sshll.u32 %s200_s13, 4  ;;  %s206_s20 = scalar_lea.vmem [#allocation4], %s23090_s11  ;;  %s23102_s14 = int_to_ptr.vmem [resolvable:$true] %s14030_s14 }
  0x1e   : > { %v15885_v15 = vld.sshfl [vmem:[%s15868_s7 + $0x8] sm:$0x11 pattern:$0x75316420]  ;;  %v363_v16 = vcombine.high %v14158_v12, %v14158_v12  ;;  %v15888_v17 = vrot.slane %v14158_v12, %v15871_v8  ;;  %vm15915_vm1 = vmor %vm1605_vm14, %vm1606_vm15  ;;  %s14043_s22 = sshll.u32 %s206_s20, 4  ;;  %vm13833_vm7 = vcmask 57344   ;;  %s23100_s28 = scalar_lea.hbm %s23177_s3, %s14636_s12  ;;  %s23109_s22 = int_to_ptr.vmem [resolvable:$true] %s14043_s22 }
  0x1f   : > { %v15897_v20 = vrot.slane %v339_v13, %v15871_v8  ;;  %v15901_v21 = vcombine.high %v15882_v14, %v15882_v14  ;;  %v15905_v22 = vrot.slane %v15885_v15, %v15871_v8  ;;  %v1609_v23 = vshrl.u32 %v15882_v14, 16  ;;  %v14185_v41 = vld.sshfl [vmem:[%s15868_s7 + $0x70] sm:$0x33 pattern:$0x75316420]  ;;  %s23107_s5 = scalar_lea.hbm %s23178_s4, %s14636_s12  ;;  %s14011_s6 = scalar_lea.sflag [#allocation3], %s23090_s11 }
  0x20   : > { %v15909_v24 = vrot.slane %v363_v16, %v15871_v8  ;;  %v15913_v25 = vcombine.high %v15888_v17, %v15888_v17  ;;  %v23911_v26 = vsel %vm15915_vm1, 4294967295, %v23910_v26  ;;  %v1638_v27 = vshll.u32 %v15888_v17, 16  ;;  %v14186_v46 = vld.sshfl [vmem:[%s15868_s7 + $0x74] sm:$0x11 pattern:$0x75316420] }
  0x21   : > { %23912 = vst [vmem:[#allocation9_spill] sm:$0xff] %v23911_v26  ;;  %v1641_v28 = vshrl.u32 %v15888_v17, 16  ;;  %v15923_v29 = vcombine.high %v15897_v20, %v15897_v20  ;;  %v1614_v30 = vshll.u32 %v15897_v20, 16  ;;  %v1617_v31 = vshrl.u32 %v15897_v20, 16  ;;  %s15670_s8 = scalar_lea.vmem %s23102_s14, 16 }
  0x22   : > { %v1622_v32 = vshll.u32 %v15901_v21, 16  ;;  %v15930_v33 = vcombine.high %v15909_v24, %v15909_v24  ;;  %v1625_v34 = vshrl.u32 %v15901_v21, 16  ;;  %v1646_v35 = vshll.u32 %v15909_v24, 16  ;;  %p15671_p11 = scmp.ne.s32.totalorder %s23102_s14, %s15670_s8 }
  0x23   : > { %v1649_v36 = vshrl.u32 %v15909_v24, 16  ;;  %v1616_v37 = vsel %vm15915_vm1, %v1609_v23, %v1614_v30  ;;  %v1630_v39 = vshll.u32 %v15923_v29, 16  ;;  %v1633_v40 = vshrl.u32 %v15923_v29, 16 }
  0x24   : > { %v1624_v38 = vsel %vm15915_vm1, %v1617_v31, %v1622_v32  ;;  %v1648_v42 = vsel %vm15915_vm1, %v1641_v28, %v1646_v35  ;;  %v1654_v43 = vshll.u32 %v15913_v25, 16  ;;  %v1657_v44 = vshrl.u32 %v15913_v25, 16  ;;  %v14187_v51 = vld.sshfl [vmem:[%s15868_s7 + $0x78] sm:$0x33 pattern:$0x75316420]  ;;  %p15672_p12 = pnand %p15671_p11, %p15836_p5 }
  0x25   : > { %v1662_v45 = vshll.u32 %v15930_v33, 16  ;;  %v1632_v47 = vsel %vm15915_vm1, %v1625_v34, %v1630_v39  ;;  %v1640_v48 = vsel %vm15915_vm1, %v1633_v40, %v1638_v27  ;;  %v1665_v49 = vshrl.u32 %v15930_v33, 16  ;;  %v14188_v56 = vld.sshfl [vmem:[%s15868_s7 + $0x7c] sm:$0x33 pattern:$0x75316420] }
  0x26   : > { %v1670_v50 = vshll.u32 %v15905_v22, 16  ;;  %v1656_v52 = vsel %vm15915_vm1, %v1649_v36, %v1654_v43  ;;  %v2924_v54 = vcombine.low %v1616_v37, %v1624_v38  ;;  %v2925_v55 = vcombine.low %v1632_v47, %v1640_v48  ;;  %v14189_v6 = vld.sshfl [vmem:[%s15868_s7 + $0x80] sm:$0x11 pattern:$0x75316420]  ;;  %p15673_p13 = pneg %p15672_p12 }
  0x27   : > { %v1664_v53 = vsel %vm15915_vm1, %v1657_v44, %v1662_v45  ;;  %v2926_v58 = vcombine.low %v1648_v42, %v1656_v52  ;;  %v921_v59 = vcombine.high %v14185_v41, %v14185_v41  ;;  %v15963_v60 = vrot.slane %v14186_v46, %v15871_v8 }
  0x28   : > { %v1672_v57 = vsel %vm15915_vm1, %v1665_v49, %v1670_v50  ;;  %v2934_v62 = vrot.slane %v2924_v54, %v15871_v8  ;;  %v2941_v63 = vrot.slane %v2925_v55, %v15871_v8  ;;  %v959_v0 = vcombine.high %v14187_v51, %v14187_v51 }
  0x29   : > { %23913 = vst [vmem:[#allocation10_spill] sm:$0xff] %v15963_v60  ;;  %v2927_v61 = vcombine.low %v1664_v53, %v1672_v57  ;;  %v2948_v1 = vrot.slane %v2926_v58, %v15871_v8  ;;  %v15969_v3 = vrot.slane %v921_v59, %v15871_v8  ;;  %v15972_v4 = vrot.slane %v14187_v51, %v15871_v8  ;;  %v14160_v53 = vld.sshfl [vmem:[%s15868_s7 + $0xc] sm:$0x33 pattern:$0x75316420] }
  0x2a   : > { %v983_v5 = vcombine.high %v14188_v56, %v14188_v56  ;;  %v2956_v9 = vcombine.low %v2934_v62, %v2941_v63  ;;  %v15976_v10 = vrot.slane %v959_v0, %v15871_v8  ;;  %v15979_v11 = vrot.slane %v14188_v56, %v15871_v8  ;;  %v14161_v63 = vld.sshfl [vmem:[%s15868_s7 + $0x10] sm:$0x33 pattern:$0x75316420] }
  0x2b   : > { %23914 = vst [vmem:[#allocation11_spill] sm:$0xff] %v15969_v3  ;;  %23915 = vst [vmem:[#allocation12_spill] sm:$0xff] %v15972_v4  ;;  %v2955_v7 = vrot.slane %v2927_v61, %v15871_v8  ;;  %v15983_v12 = vcombine.high %v15969_v3, %v15969_v3  ;;  %v15987_v13 = vcombine.high %v15972_v4, %v15972_v4  ;;  %v2327_v35 = vshll.u32 %v15963_v60, 16 }
  0x2c   : > { %23916 = vst [vmem:[#allocation13_spill] sm:$0xff] %v15976_v10  ;;  %23917 = vst [vmem:[#allocation14_spill] sm:$0xff] %v15979_v11  ;;  %v15990_v16 = vrot.slane %v983_v5, %v15871_v8  ;;  %v1521_v23 = vcombine.high %v14186_v46, %v14186_v46  ;;  %v2964_v28 = vrot.slane %v2956_v9, %v15871_v8  ;;  %v2330_v36 = vshrl.u32 %v15963_v60, 16 }
  0x2d   : > { %23918 = vst [vmem:[#allocation15_spill] sm:$0xff] %v15983_v12  ;;  %23919 = vst [vmem:[#allocation16_spill] sm:$0xff] %v15987_v13  ;;  %v2957_v27 = vcombine.low %v2948_v1, %v2955_v7  ;;  %v15995_v30 = vcombine.high %v15976_v10, %v15976_v10  ;;  %v15999_v31 = vcombine.high %v15979_v11, %v15979_v11  ;;  %v2322_v34 = vshrl.u32 %v15983_v12, 16 }
  0x2e   : > { %23920 = vst [vmem:[#allocation17_spill] sm:$0xff] %v15990_v16  ;;  %v16002_v32 = vrot.slane %v1521_v23, %v15871_v8  ;;  %v2339_v38 = vshrl.u32 %v15972_v4, 16  ;;  %v2344_v39 = vshll.u32 %v15976_v10, 16  ;;  %v2347_v40 = vshrl.u32 %v15976_v10, 16 }
  0x2f   : > { %23921 = vst [vmem:[#allocation18_spill] sm:$0xff] %v15995_v30  ;;  %23922 = vst [vmem:[#allocation19_spill] sm:$0xff] %v15999_v31  ;;  %v2971_v37 = vrot.slane %v2957_v27, %v15871_v8  ;;  %v16013_v41 = vsel %vm15915_vm1, %v2322_v34, %v2327_v35  ;;  %v2352_v43 = vshll.u32 %v15987_v13, 16  ;;  %v2355_v44 = vshrl.u32 %v15987_v13, 16 }
  0x30   : > { %23923 = vst [vmem:[#allocation20_spill] sm:$0xff] %v16002_v32  ;;  %23924 = vst [vmem:[#allocation21_spill] sm:$0xff] %v16013_v41  ;;  %v2335_v42 = vshll.u32 %v16002_v32, 16  ;;  %v16020_v46 = vsel %vm15915_vm1, %v2339_v38, %v2344_v39  ;;  %v2360_v47 = vshll.u32 %v15995_v30, 16  ;;  %v2363_v48 = vshrl.u32 %v15995_v30, 16 }
  0x31   : > { %v2972_v45 = vcombine.low %v2964_v28, %v2971_v37  ;;  %23925 = vst [vmem:[#allocation22_spill] sm:$0xff] %v16020_v46  ;;  %v16030_v50 = vsel %vm15915_vm1, %v2347_v40, %v2352_v43  ;;  %v2368_v51 = vshll.u32 %v15979_v11, 16  ;;  %v2371_v52 = vshrl.u32 %v15979_v11, 16 }
  0x32   : > { %v16026_v49 = vsel %vm15915_vm1, %v2330_v36, %v2335_v42  ;;  %23927 = vst [vmem:[#allocation24_spill] sm:$0xff] %v16030_v50  ;;  %v16038_v54 = vsel %vm15915_vm1, %v2355_v44, %v2360_v47  ;;  %v2376_v55 = vshll.u32 %v15990_v16, 16  ;;  %v2379_v56 = vshrl.u32 %v15990_v16, 16 }
  0x33   : > { %23926 = vst [vmem:[#allocation23_spill] sm:$0xff] %v16026_v49  ;;  %14841 = vmatmul.mubr.msk.bf16.vlgmr.msra.gmra.mxu0 %vm3919_vm2, %v2972_v45  ;;  %23928 = vst [vmem:[#allocation25_spill] sm:$0xff] %v16038_v54  ;;  %v2384_v57 = vshll.u32 %v15999_v31, 16  ;;  %v16045_v58 = vsel %vm15915_vm1, %v2363_v48, %v2368_v51  ;;  %v3463_v59 = vcombine.low %v16013_v41, %v16026_v49 }
  0x34   : > { %23929 = vst [vmem:[#allocation26_spill] sm:$0xff] %v16045_v58  ;;  %v3464_v61 = vcombine.low %v16020_v46, %v16030_v50  ;;  %15011 = vmatpush3.bf16.msra.mxu0 %v15891_v18  ;;  %v16057_v0 = vsel %vm15915_vm1, %v2371_v52, %v2376_v55  ;;  %v3465_v5 = vcombine.low %v16038_v54, %v16045_v58  ;;  %v1673_v55 = vshrl.u32 %v15905_v22, 16 }
  0x35   : > { %23930 = vst [vmem:[#allocation27_spill] sm:$0xff] %v16057_v0  ;;  %v16061_v1 = vsel %vm15915_vm1, %v2379_v56, %v2384_v57  ;;  %14844 = vmatprep.mubr.msk.bf16.mxu0 %vm15764_vm4, %v23179_v2  ;;  %v16072_v9 = vrot.slane %v3463_v59, %v15871_v8  ;;  %15182 = vmatprep.subr.bf16.mxu0 %v23179_v2 }
  0x36   : > { %23931 = vst [vmem:[#allocation28_spill] sm:$0xff] %v16061_v1  ;;  %v3466_v18 = vcombine.low %v16057_v0, %v16061_v1  ;;  %v16075_v23 = vrot.slane %v3464_v61, %v15871_v8  ;;  %v16081_v28 = vrot.slane %v3465_v5, %v15871_v8  ;;  %v401_v34 = vcombine.high %v14160_v53, %v14160_v53 }
  0x37   : > { %23932 = vst [vmem:[#allocation29_spill] sm:$0xff] %v16072_v9  ;;  %v16084_v35 = vrot.slane %v14160_v53, %v15871_v8  ;;  %v425_v36 = vcombine.high %v14161_v63, %v14161_v63  ;;  %v16092_v39 = vrot.slane %v14161_v63, %v15871_v8  ;;  %v1449_v40 = vcombine.high %v15885_v15, %v15885_v15 }
  0x38   : > { %23933 = vst [vmem:[#allocation30_spill] sm:$0xff] %v16075_v23  ;;  %23934 = vst [vmem:[#allocation31_spill] sm:$0xff] %v16081_v28  ;;  %v16087_v37 = vrot.slane %v3466_v18, %v15871_v8  ;;  %v3495_v38 = vcombine.low %v16072_v9, %v16075_v23  ;;  %v16099_v43 = vrot.slane %v401_v34, %v15871_v8 }
  0x39   : > { %v16103_v44 = vcombine.high %v16084_v35, %v16084_v35  ;;  %v16106_v45 = vrot.slane %v425_v36, %v15871_v8  ;;  %v16113_v15 = vcombine.high %v16092_v39, %v16092_v39  ;;  %v16116_v51 = vrot.slane %v1449_v40, %v15871_v8 }
  0x3a   : > { %23935 = vst [vmem:[#allocation32_spill] sm:$0xff] %v16087_v37  ;;  %v3496_v47 = vcombine.low %v16081_v28, %v16087_v37  ;;  %v3503_v48 = vrot.slane %v3495_v38, %v15871_v8  ;;  %v16120_v52 = vcombine.high %v16099_v43, %v16099_v43  ;;  %v1682_v56 = vshrl.u32 %v16084_v35, 16  ;;  %v14190_v28 = vld.sshfl [vmem:[%s15868_s7 + $0x84] sm:$0x33 pattern:$0x75316420] }
  0x3b   : > { %v16124_v53 = vcombine.high %v16106_v45, %v16106_v45  ;;  %v1678_v59 = vshll.u32 %v16116_v51, 16  ;;  %v1687_v61 = vshll.u32 %v16099_v43, 16  ;;  %v1690_v63 = vshrl.u32 %v16099_v43, 16 }
  0x3c   : > { %v3510_v57 = vrot.slane %v3496_v47, %v15871_v8  ;;  %v1695_v5 = vshll.u32 %v16103_v44, 16  ;;  %v1698_v18 = vshrl.u32 %v16103_v44, 16  ;;  %v1703_v34 = vshll.u32 %v16120_v52, 16 }
  0x3d   : > { %v1706_v36 = vshrl.u32 %v16120_v52, 16  ;;  %v1680_v40 = vsel %vm15915_vm1, %v1673_v55, %v1678_v59  ;;  %v1689_v47 = vsel %vm15915_vm1, %v1682_v56, %v1687_v61  ;;  %v1711_v42 = vshll.u32 %v16092_v39, 16 }
  0x3e   : > { %v3511_v38 = vcombine.low %v3503_v48, %v3510_v57  ;;  %v1697_v27 = vsel %vm15915_vm1, %v1690_v63, %v1695_v5  ;;  %v1705_v7 = vsel %vm15915_vm1, %v1698_v18, %v1703_v34  ;;  %v1714_v62 = vshrl.u32 %v16092_v39, 16 }
  0x3f   : > { %v1719_v2 = vshll.u32 %v16106_v45, 16  ;;  %v1713_v48 = vsel %vm15915_vm1, %v1706_v36, %v1711_v42  ;;  %v1722_v55 = vshrl.u32 %v16106_v45, 16  ;;  %v1727_v56 = vshll.u32 %v16113_v15, 16 }
  0x40   : > { %14885 = vmatmul.mubr.msk.bf16.vlgmr.msra.gmra.mxu1 %vm3919_vm2, %v3511_v38  ;;  %v1730_v57 = vshrl.u32 %v16113_v15, 16  ;;  %v23936_v59 = vmov 0.0   ;;  %v1735_v63 = vshll.u32 %v16124_v53, 16  ;;  %v2973_v5 = vcombine.low %v1680_v40, %v1689_v47 }
  0x41   : > { %14925 = vmatpush3.bf16.msra.mxu1 %v15894_v19  ;;  %14888 = vmatprep.mubr.msk.bf16.mxu1 %vm15764_vm4, %v23936_v59  ;;  %v1721_v61 = vsel %vm15915_vm1, %v1714_v62, %v1719_v2  ;;  %v2974_v18 = vcombine.low %v1697_v27, %v1705_v7  ;;  %v1729_v42 = vsel %vm15915_vm1, %v1722_v55, %v1727_v56 }
  0x42   : > { %v2975_v34 = vcombine.low %v1713_v48, %v1721_v61  ;;  %v7556_v36 = vcombine.low %v1689_v47, %v1697_v27  ;;  %v7557_v38 = vcombine.low %v1705_v7, %v1713_v48  ;;  %15096 = vmatprep.subr.bf16.mxu1 %v23936_v59  ;;  %v16165_v19 = vsel %vm15915_vm1, %v1730_v57, %v1735_v63  ;;  %v14191_v47 = vld.sshfl [vmem:[%s15868_s7 + $0x88] sm:$0x33 pattern:$0x75316420] }
  0x43   : > { %v2983_v2 = vrot.slane %v2973_v5, %v15871_v8  ;;  %v2990_v62 = vrot.slane %v2974_v18, %v15871_v8  ;;  %v7558_v40 = vcombine.low %v1721_v61, %v1729_v42  ;;  %v2976_v23 = vcombine.low %v1729_v42, %v16165_v19 }
  0x44   : > { %v2997_v55 = vrot.slane %v2975_v34, %v15871_v8  ;;  %v16173_v27 = vrot.slane %v7556_v36, %v15871_v8  ;;  %v16176_v7 = vrot.slane %v7557_v38, %v15871_v8  ;;  %v16181_v56 = vcombine.high %v15990_v16, %v15990_v16 }
  0x45   : > { %v3005_v48 = vcombine.low %v2983_v2, %v2990_v62  ;;  %v16184_v57 = vrot.slane %v14189_v6, %v15871_v8  ;;  %v3004_v61 = vrot.slane %v2976_v23, %v15871_v8  ;;  %v1021_v5 = vcombine.high %v14190_v28, %v14190_v28 }
  0x46   : > { %23937 = vst [vmem:[#allocation33_spill] sm:$0xff] %v16173_v27  ;;  %23938 = vst [vmem:[#allocation34_spill] sm:$0xff] %v16176_v7  ;;  %v16190_v18 = vrot.slane %v14190_v28, %v15871_v8  ;;  %v16194_v34 = vrot.slane %v7558_v40, %v15871_v8  ;;  %v1045_v36 = vcombine.high %v14191_v47, %v14191_v47  ;;  %v2387_v40 = vshrl.u32 %v15999_v31, 16 }
  0x47   : > { %23939 = vst [vmem:[#allocation35_spill] sm:$0xff] %v16181_v56  ;;  %23940 = vst [vmem:[#allocation36_spill] sm:$0xff] %v16184_v57  ;;  %v3013_v42 = vrot.slane %v3005_v48, %v15871_v8  ;;  %v1529_v38 = vcombine.high %v14189_v6, %v14189_v6  ;;  %v3006_v2 = vcombine.low %v2997_v55, %v3004_v61  ;;  %v2392_v6 = vshll.u32 %v16181_v56, 16 }
  0x48   : > { %23941 = vst [vmem:[#allocation37_spill] sm:$0xff] %v16190_v18  ;;  %23942 = vst [vmem:[#allocation38_spill] sm:$0xff] %v16194_v34  ;;  %v16197_v62 = vrot.slane %v1021_v5, %v15871_v8  ;;  %v16201_v23 = vcombine.high %v16190_v18, %v16190_v18  ;;  %v16204_v63 = vrot.slane %v14191_v47, %v15871_v8  ;;  %v2395_v5 = vshrl.u32 %v16181_v56, 16 }
  0x49   : > { %v16207_v28 = vrot.slane %v1045_v36, %v15871_v8  ;;  %v16210_v48 = vrot.slane %v1529_v38, %v15871_v8  ;;  %v3020_v55 = vrot.slane %v3006_v2, %v15871_v8  ;;  %v2400_v47 = vshll.u32 %v16184_v57, 16  ;;  %v14164_v27 = vld.sshfl [vmem:[%s15868_s7 + $0x1c] sm:$0x33 pattern:$0x75316420] }
  0x4a   : > { %23943 = vst [vmem:[#allocation39_spill] sm:$0xff] %v16197_v62  ;;  %23944 = vst [vmem:[#allocation40_spill] sm:$0xff] %v16201_v23  ;;  %v16217_v61 = vcombine.high %v16197_v62, %v16197_v62  ;;  %v16223_v36 = vsel %vm15915_vm1, %v2387_v40, %v2392_v6  ;;  %v2403_v38 = vshrl.u32 %v16184_v57, 16  ;;  %v2412_v0 = vshrl.u32 %v16190_v18, 16 }
  0x4b   : > { %23945 = vst [vmem:[#allocation41_spill] sm:$0xff] %v16204_v63  ;;  %23946 = vst [vmem:[#allocation42_spill] sm:$0xff] %v16207_v28  ;;  %v2408_v9 = vshll.u32 %v16210_v48, 16  ;;  %v3021_v58 = vcombine.low %v3013_v42, %v3020_v55  ;;  %v16230_v2 = vsel %vm15915_vm1, %v2395_v5, %v2400_v47  ;;  %v2417_v54 = vshll.u32 %v16197_v62, 16 }
  0x4c   : > { %23947 = vst [vmem:[#allocation43_spill] sm:$0xff] %v16210_v48  ;;  %23948 = vst [vmem:[#allocation44_spill] sm:$0xff] %v16217_v61  ;;  %v2420_v50 = vshrl.u32 %v16197_v62, 16  ;;  %v2425_v40 = vshll.u32 %v16201_v23, 16  ;;  %v2428_v6 = vshrl.u32 %v16201_v23, 16  ;;  %v2433_v49 = vshll.u32 %v16217_v61, 16 }
  0x4d   : > { %23949 = vst [vmem:[#allocation45_spill] sm:$0xff] %v16223_v36  ;;  %23950 = vst [vmem:[#allocation46_spill] sm:$0xff] %v16230_v2  ;;  %v16236_v46 = vsel %vm15915_vm1, %v2403_v38, %v2408_v9  ;;  %14845 = vmatmul.mubr.msk.bf16.gmra.mxu0 %vm3919_vm2, %v3021_v58  ;;  %v16244_v42 = vsel %vm15915_vm1, %v2412_v0, %v2417_v54  ;;  %v2436_v55 = vshrl.u32 %v16217_v61, 16  ;;  %v2441_v5 = vshll.u32 %v16204_v63, 16 }
  0x4e   : > { %23951 = vst [vmem:[#allocation47_spill] sm:$0xff] %v16236_v46  ;;  %23952 = vst [vmem:[#allocation48_spill] sm:$0xff] %v16244_v42  ;;  %v2444_v9 = vshrl.u32 %v16204_v63, 16  ;;  %v16251_v47 = vsel %vm15915_vm1, %v2420_v50, %v2425_v40  ;;  %v16255_v38 = vsel %vm15915_vm1, %v2428_v6, %v2433_v49  ;;  %v2449_v58 = vshll.u32 %v16207_v28, 16  ;;  %14848 = vmatprep.mubr.msk.bf16.mxu0 %vm15764_vm4, %v23936_v59 }
  0x4f   : > { %23953 = vst [vmem:[#allocation49_spill] sm:$0xff] %v16251_v47  ;;  %23954 = vst [vmem:[#allocation50_spill] sm:$0xff] %v16255_v38  ;;  %v3512_v54 = vcombine.low %v16223_v36, %v16230_v2  ;;  %v16264_v0 = vsel %vm15915_vm1, %v2436_v55, %v2441_v5  ;;  %v3513_v50 = vcombine.low %v16236_v46, %v16244_v42  ;;  %v14163_v6 = vld.sshfl [vmem:[%s15868_s7 + $0x18] sm:$0x33 pattern:$0x75316420] }
  0x50   : > { %23955 = vst [vmem:[#allocation51_spill] sm:$0xff] %v16264_v0  ;;  %v3514_v49 = vcombine.low %v16251_v47, %v16255_v38  ;;  %v16275_v41 = vsel %vm15915_vm1, %v2444_v9, %v2449_v58  ;;  %v14162_v58 = vld.sshfl [vmem:[%s15868_s7 + $0x14] sm:$0x11 pattern:$0x75316420]  ;;  %v463_v5 = vcombine.high %v14163_v6, %v14163_v6  ;;  %v16302_v47 = vrot.slane %v14163_v6, %v15871_v8 }
  0x51   : > { %23956 = vst [vmem:[#allocation52_spill] sm:$0xff] %v16275_v41  ;;  %v16278_v7 = vrot.slane %v3512_v54, %v15871_v8  ;;  %v3515_v48 = vcombine.low %v16264_v0, %v16275_v41  ;;  %v16288_v40 = vrot.slane %v3513_v50, %v15871_v8  ;;  %v16299_v55 = vrot.slane %v14162_v58, %v15871_v8 }
  0x52   : > { %v16291_v36 = vrot.slane %v3514_v49, %v15871_v8  ;;  %v487_v0 = vcombine.high %v14164_v27, %v14164_v27  ;;  %v16312_v38 = vrot.slane %v463_v5, %v15871_v8  ;;  %v16316_v54 = vcombine.high %v16302_v47, %v16302_v47 }
  0x53   : > { %23957 = vst [vmem:[#allocation53_spill] sm:$0xff] %v16278_v7  ;;  %23958 = vst [vmem:[#allocation54_spill] sm:$0xff] %v16288_v40  ;;  %v16305_v50 = vrot.slane %v3515_v48, %v15871_v8  ;;  %v3544_v49 = vcombine.low %v16278_v7, %v16288_v40  ;;  %v16319_v6 = vrot.slane %v14164_v27, %v15871_v8  ;;  %v1738_v9 = vshrl.u32 %v16124_v53, 16 }
  0x54   : > { %23959 = vst [vmem:[#allocation55_spill] sm:$0xff] %v16291_v36  ;;  %23961 = vst [vmem:[#allocation57_spill] sm:$0xff] %v16312_v38  ;;  %v1457_v37 = vcombine.high %v14162_v58, %v14162_v58  ;;  %v16325_v42 = vrot.slane %v487_v0, %v15871_v8  ;;  %v16330_v5 = vcombine.high %v16312_v38, %v16312_v38  ;;  %v1743_v58 = vshll.u32 %v16299_v55, 16 }
  0x55   : > { %23960 = vst [vmem:[#allocation56_spill] sm:$0xff] %v16305_v50  ;;  %23962 = vst [vmem:[#allocation58_spill] sm:$0xff] %v16316_v54  ;;  %v3545_v48 = vcombine.low %v16291_v36, %v16305_v50  ;;  %v3552_v7 = vrot.slane %v3544_v49, %v15871_v8  ;;  %v16334_v40 = vcombine.high %v16319_v6, %v16319_v6  ;;  %v1746_v0 = vshrl.u32 %v16299_v55, 16 }
  0x56   : > { %23963 = vst [vmem:[#allocation59_spill] sm:$0xff] %v16330_v5  ;;  %v16337_v27 = vrot.slane %v1457_v37, %v15871_v8  ;;  %v1755_v36 = vshrl.u32 %v16302_v47, 16  ;;  %v1760_v46 = vshll.u32 %v16312_v38, 16  ;;  %v1745_v2 = vsel %vm15915_vm1, %v1738_v9, %v1743_v58 }
  0x57   : > { %23964 = vst [vmem:[#allocation60_spill] sm:$0xff] %v16334_v40  ;;  %v3559_v49 = vrot.slane %v3545_v48, %v15871_v8  ;;  %v1763_v56 = vshrl.u32 %v16312_v38, 16  ;;  %v1768_v37 = vshll.u32 %v16316_v54, 16  ;;  %v1771_v48 = vshrl.u32 %v16316_v54, 16 }
  0x58   : > { %23965 = vst [vmem:[#allocation61_spill] sm:$0xff] %v16337_v27  ;;  %v1751_v1 = vshll.u32 %v16337_v27, 16  ;;  %v16351_v30 = vsel %vm15915_vm1, %v1755_v36, %v1760_v46  ;;  %v1776_v13 = vshll.u32 %v16330_v5, 16  ;;  %v1779_v58 = vshrl.u32 %v16330_v5, 16 }
  0x59   : > { %v3560_v31 = vcombine.low %v3552_v7, %v3559_v49  ;;  %23966 = vst [vmem:[#allocation62_spill] sm:$0xff] %v16351_v30  ;;  %v16361_v9 = vsel %vm15915_vm1, %v1763_v56, %v1768_v37  ;;  %v1784_v7 = vshll.u32 %v16319_v6, 16  ;;  %v1787_v36 = vshrl.u32 %v16319_v6, 16 }
  0x5a   : > { %v16357_v32 = vsel %vm15915_vm1, %v1746_v0, %v1751_v1  ;;  %23968 = vst [vmem:[#allocation64_spill] sm:$0xff] %v16361_v9  ;;  %v16368_v46 = vsel %vm15915_vm1, %v1771_v48, %v1776_v13  ;;  %v1792_v1 = vshll.u32 %v16325_v42, 16  ;;  %v1795_v49 = vshrl.u32 %v16325_v42, 16 }
  0x5b   : > { %23967 = vst [vmem:[#allocation63_spill] sm:$0xff] %v16357_v32  ;;  %14889 = vmatmul.mubr.msk.bf16.gmra.mxu1 %vm3919_vm2, %v3560_v31  ;;  %23969 = vst [vmem:[#allocation65_spill] sm:$0xff] %v16368_v46  ;;  %v16377_v56 = vsel %vm15915_vm1, %v1779_v58, %v1784_v7  ;;  %v1800_v31 = vshll.u32 %v16334_v40, 16  ;;  %v3022_v13 = vcombine.low %v1745_v2, %v16357_v32 }
  0x5c   : > { %14892 = vmatprep.mubr.msk.bf16.mxu1 %vm15764_vm4, %v23936_v59  ;;  %23970 = vst [vmem:[#allocation66_spill] sm:$0xff] %v16377_v56  ;;  %v3023_v0 = vcombine.low %v16351_v30, %v16361_v9  ;;  %v16385_v37 = vsel %vm15915_vm1, %v1787_v36, %v1792_v1  ;;  %v3024_v48 = vcombine.low %v16368_v46, %v16377_v56  ;;  %v14193_v1 = vld.sshfl [vmem:[%s15868_s7 + $0x90] sm:$0x33 pattern:$0x75316420] }
  0x5d   : > { %23971 = vst [vmem:[#allocation67_spill] sm:$0xff] %v16385_v37  ;;  %v7559_v61 = vcombine.low %v16165_v19, %v1745_v2  ;;  %v16394_v7 = vsel %vm15915_vm1, %v1795_v49, %v1800_v31  ;;  %v3032_v62 = vrot.slane %v3022_v13, %v15871_v8  ;;  %v14192_v31 = vld.sshfl [vmem:[%s15868_s7 + $0x8c] sm:$0x11 pattern:$0x75316420]  ;;  %v16419_v36 = vcombine.high %v16207_v28, %v16207_v28 }
  0x5e   : > { %23972 = vst [vmem:[#allocation68_spill] sm:$0xff] %v16394_v7  ;;  %v3039_v23 = vrot.slane %v3023_v0, %v15871_v8  ;;  %v3025_v57 = vcombine.low %v16385_v37, %v16394_v7  ;;  %v3046_v19 = vrot.slane %v3024_v48, %v15871_v8  ;;  %v16411_v13 = vld.sshfl [vmem:[%s15868_s7 + $0x94] sm:$0x33 pattern:$0x75316420]  ;;  %v16415_v0 = vcombine.high %v16204_v63, %v16204_v63 }
  0x5f   : > { %v16405_v2 = vrot.slane %v7559_v61, %v15871_v8  ;;  %23975 = vst [vmem:[#allocation71_spill] sm:$0xff] %v16419_v36  ;;  %v1083_v49 = vcombine.high %v14193_v1, %v14193_v1  ;;  %v16428_v37 = vrot.slane %v14192_v31, %v15871_v8  ;;  %v16431_v56 = vrot.slane %v14193_v1, %v15871_v8 }
  0x60   : > { %v3054_v58 = vcombine.low %v3032_v62, %v3039_v23  ;;  %23974 = vst [vmem:[#allocation70_spill] sm:$0xff] %v16415_v0  ;;  %v16422_v48 = vrot.slane %v3025_v57, %v15871_v8  ;;  %v10358_v46 = vcombine.low %v3039_v23, %v3046_v19  ;;  %v1537_v9 = vcombine.high %v14192_v31, %v14192_v31 }
  0x61   : > { %23973 = vst [vmem:[#allocation69_spill] sm:$0xff] %v16405_v2  ;;  %23976 = vst [vmem:[#allocation72_spill] sm:$0xff] %v16428_v37  ;;  %v16438_v57 = vrot.slane %v1083_v49, %v15871_v8  ;;  %v16442_v23 = vrot.slane %v16411_v13, %v15871_v8  ;;  %v2452_v31 = vshrl.u32 %v16207_v28, 16  ;;  %v2460_v61 = vshrl.u32 %v16415_v0, 16 }
  0x62   : > { %v3062_v62 = vrot.slane %v3054_v58, %v15871_v8  ;;  %23977 = vst [vmem:[#allocation73_spill] sm:$0xff] %v16431_v56  ;;  %v3055_v30 = vcombine.low %v3046_v19, %v16422_v48  ;;  %v16435_v32 = vrot.slane %v10358_v46, %v15871_v8  ;;  %v16446_v58 = vcombine.high %v16431_v56, %v16431_v56 }
  0x63   : > { %23979 = vst [vmem:[#allocation75_spill] sm:$0xff] %v16438_v57  ;;  %23980 = vst [vmem:[#allocation76_spill] sm:$0xff] %v16442_v23  ;;  %v16449_v1 = vrot.slane %v1537_v9, %v15871_v8  ;;  %v2457_v19 = vshll.u32 %v16415_v0, 16  ;;  %v16456_v49 = vcombine.high %v16438_v57, %v16438_v57  ;;  %v2465_v2 = vshll.u32 %v16419_v36, 16 }
  0x64   : > { %23978 = vst [vmem:[#allocation74_spill] sm:$0xff] %v16435_v32  ;;  %23981 = vst [vmem:[#allocation77_spill] sm:$0xff] %v16446_v58  ;;  %v3069_v46 = vrot.slane %v3055_v30, %v15871_v8  ;;  %v2468_v9 = vshrl.u32 %v16419_v36, 16  ;;  %v2473_v28 = vshll.u32 %v16428_v37, 16  ;;  %v2476_v63 = vshrl.u32 %v16428_v37, 16 }
  0x65   : > { %23982 = vst [vmem:[#allocation78_spill] sm:$0xff] %v16449_v1  ;;  %23983 = vst [vmem:[#allocation79_spill] sm:$0xff] %v16456_v49  ;;  %v16462_v34 = vsel %vm15915_vm1, %v2452_v31, %v2457_v19  ;;  %v16469_v30 = vsel %vm15915_vm1, %v2460_v61, %v2465_v2  ;;  %v2481_v11 = vshll.u32 %v16449_v1, 16  ;;  %v2485_v0 = vshrl.u32 %v16431_v56, 16 }
  0x66   : > { %23984 = vst [vmem:[#allocation80_spill] sm:$0xff] %v16462_v34  ;;  %v3070_v18 = vcombine.low %v3062_v62, %v3069_v46  ;;  %23985 = vst [vmem:[#allocation81_spill] sm:$0xff] %v16469_v30  ;;  %v16475_v16 = vsel %vm15915_vm1, %v2468_v9, %v2473_v28  ;;  %v2490_v31 = vshll.u32 %v16438_v57, 16  ;;  %v2493_v19 = vshrl.u32 %v16438_v57, 16 }
  0x67   : > { %23986 = vst [vmem:[#allocation82_spill] sm:$0xff] %v16475_v16  ;;  %v2498_v36 = vshll.u32 %v16446_v58, 16  ;;  %v16483_v2 = vsel %vm15915_vm1, %v2476_v63, %v2481_v11  ;;  %v2501_v61 = vshrl.u32 %v16446_v58, 16  ;;  %v2506_v62 = vshll.u32 %v16456_v49, 16 }
  0x68   : > { %14849 = vmatmul.mubr.msk.bf16.gmra.mxu0 %vm3919_vm2, %v3070_v18  ;;  %23987 = vst [vmem:[#allocation83_spill] sm:$0xff] %v16483_v2  ;;  %v2509_v28 = vshrl.u32 %v16456_v49, 16  ;;  %v16490_v46 = vsel %vm15915_vm1, %v2485_v0, %v2490_v31  ;;  %v2514_v18 = vshll.u32 %v16442_v23, 16  ;;  %v3561_v11 = vcombine.low %v16462_v34, %v16469_v30 }
  0x69   : > { %23988 = vst [vmem:[#allocation84_spill] sm:$0xff] %v16490_v46  ;;  %v16494_v9 = vsel %vm15915_vm1, %v2493_v19, %v2498_v36  ;;  %14852 = vmatprep.mubr.msk.bf16.mxu0 %vm15764_vm4, %v23936_v59  ;;  %v16503_v63 = vsel %vm15915_vm1, %v2501_v61, %v2506_v62  ;;  %v3562_v0 = vcombine.low %v16475_v16, %v16483_v2  ;;  %v14166_v19 = vld.sshfl [vmem:[%s15868_s7 + $0x24] sm:$0x33 pattern:$0x75316420] }
  0x6a   : > { %23989 = vst [vmem:[#allocation85_spill] sm:$0xff] %v16494_v9  ;;  %23990 = vst [vmem:[#allocation86_spill] sm:$0xff] %v16503_v63  ;;  %v3563_v36 = vcombine.low %v16490_v46, %v16494_v9  ;;  %v16514_v49 = vsel %vm15915_vm1, %v2509_v28, %v2514_v18  ;;  %v16517_v58 = vrot.slane %v3561_v11, %v15871_v8  ;;  %v14165_v1 = vld.sshfl [vmem:[%s15868_s7 + $0x20] sm:$0x11 pattern:$0x75316420] }
  0x6b   : > { %23991 = vst [vmem:[#allocation87_spill] sm:$0xff] %v16514_v49  ;;  %v3564_v56 = vcombine.low %v16503_v63, %v16514_v49  ;;  %v16527_v31 = vrot.slane %v3562_v0, %v15871_v8  ;;  %v14167_v18 = vld.sshfl [vmem:[%s15868_s7 + $0x28] sm:$0x33 pattern:$0x75316420]  ;;  %v16539_v62 = vcombine.high %v16325_v42, %v16325_v42  ;;  %v16542_v61 = vrot.slane %v14165_v1, %v15871_v8 }
  0x6c   : > { %23992 = vst [vmem:[#allocation88_spill] sm:$0xff] %v16517_v58  ;;  %v16530_v34 = vrot.slane %v3563_v36, %v15871_v8  ;;  %v525_v46 = vcombine.high %v14166_v19, %v14166_v19  ;;  %v16552_v63 = vrot.slane %v14166_v19, %v15871_v8  ;;  %v549_v50 = vcombine.high %v14167_v18, %v14167_v18 }
  0x6d   : > { %23993 = vst [vmem:[#allocation89_spill] sm:$0xff] %v16527_v31  ;;  %23995 = vst [vmem:[#allocation91_spill] sm:$0xff] %v16539_v62  ;;  %v16545_v0 = vrot.slane %v3564_v56, %v15871_v8  ;;  %v3593_v36 = vcombine.low %v16517_v58, %v16527_v31  ;;  %v16558_v9 = vrot.slane %v14167_v18, %v15871_v8  ;;  %v1803_v19 = vshrl.u32 %v16334_v40, 16 }
  0x6e   : > { %23994 = vst [vmem:[#allocation90_spill] sm:$0xff] %v16530_v34  ;;  %23996 = vst [vmem:[#allocation92_spill] sm:$0xff] %v16542_v61  ;;  %v16555_v11 = vrot.slane %v525_v46, %v15871_v8  ;;  %v1465_v2 = vcombine.high %v14165_v1, %v14165_v1  ;;  %v16565_v58 = vcombine.high %v16552_v63, %v16552_v63  ;;  %v1808_v18 = vshll.u32 %v16539_v62, 16 }
  0x6f   : > { %23997 = vst [vmem:[#allocation93_spill] sm:$0xff] %v16545_v0  ;;  %v3594_v56 = vcombine.low %v16530_v34, %v16545_v0  ;;  %v3601_v16 = vrot.slane %v3593_v36, %v15871_v8  ;;  %v16573_v28 = vrot.slane %v549_v50, %v15871_v8  ;;  %v1811_v34 = vshrl.u32 %v16539_v62, 16 }
  0x70   : > { %v16570_v46 = vcombine.high %v16555_v11, %v16555_v11  ;;  %v16576_v1 = vrot.slane %v1465_v2, %v15871_v8  ;;  %v1816_v31 = vshll.u32 %v16542_v61, 16  ;;  %v1819_v30 = vshrl.u32 %v16542_v61, 16 }
  0x71   : > { %23998 = vst [vmem:[#allocation94_spill] sm:$0xff] %v16573_v28  ;;  %v3608_v36 = vrot.slane %v3594_v56, %v15871_v8  ;;  %v16585_v41 = vsel %vm15915_vm1, %v1803_v19, %v1808_v18  ;;  %v1828_v57 = vshrl.u32 %v16552_v63, 16  ;;  %v1833_v2 = vshll.u32 %v16555_v11, 16 }
  0x72   : > { %23999 = vst [vmem:[#allocation95_spill] sm:$0xff] %v16576_v1  ;;  %24000 = vst [vmem:[#allocation96_spill] sm:$0xff] %v16585_v41  ;;  %v1824_v50 = vshll.u32 %v16576_v1, 16  ;;  %v16592_v56 = vsel %vm15915_vm1, %v1811_v34, %v1816_v31  ;;  %v1836_v4 = vshrl.u32 %v16555_v11, 16  ;;  %v1841_v10 = vshll.u32 %v16565_v58, 16 }
  0x73   : > { %v3609_v37 = vcombine.low %v3601_v16, %v3608_v36  ;;  %24001 = vst [vmem:[#allocation97_spill] sm:$0xff] %v16592_v56  ;;  %v16602_v19 = vsel %vm15915_vm1, %v1828_v57, %v1833_v2  ;;  %v1844_v18 = vshrl.u32 %v16565_v58, 16  ;;  %v1849_v16 = vshll.u32 %v16570_v46, 16 }
  0x74   : > { %v16598_v60 = vsel %vm15915_vm1, %v1819_v30, %v1824_v50  ;;  %24003 = vst [vmem:[#allocation99_spill] sm:$0xff] %v16602_v19  ;;  %v16609_v34 = vsel %vm15915_vm1, %v1836_v4, %v1841_v10  ;;  %v1852_v31 = vshrl.u32 %v16570_v46, 16  ;;  %v1857_v30 = vshll.u32 %v16558_v9, 16 }
  0x75   : > { %24002 = vst [vmem:[#allocation98_spill] sm:$0xff] %v16598_v60  ;;  %14893 = vmatmul.mubr.msk.bf16.gmra.mxu1 %vm3919_vm2, %v3609_v37  ;;  %24004 = vst [vmem:[#allocation100_spill] sm:$0xff] %v16609_v34  ;;  %v1860_v36 = vshrl.u32 %v16558_v9, 16  ;;  %v16618_v57 = vsel %vm15915_vm1, %v1844_v18, %v1849_v16  ;;  %v1865_v37 = vshll.u32 %v16573_v28, 16  ;;  %v3071_v4 = vcombine.low %v16585_v41, %v16592_v56 }
  0x76   : > { %14896 = vmatprep.mubr.msk.bf16.mxu1 %vm15764_vm4, %v23936_v59  ;;  %24005 = vst [vmem:[#allocation101_spill] sm:$0xff] %v16618_v57  ;;  %v3072_v10 = vcombine.low %v16598_v60, %v16602_v19  ;;  %v16627_v50 = vsel %vm15915_vm1, %v1852_v31, %v1857_v30  ;;  %v3073_v2 = vcombine.low %v16609_v34, %v16618_v57  ;;  %v14196_v30 = vld.sshfl [vmem:[%s15868_s7 + $0x9c] sm:$0x33 pattern:$0x75316420]  ;;  %v2517_v16 = vshrl.u32 %v16442_v23, 16 }
  0x77   : > { %24006 = vst [vmem:[#allocation102_spill] sm:$0xff] %v16627_v50  ;;  %v16637_v1 = vsel %vm15915_vm1, %v1860_v36, %v1865_v37  ;;  %v3081_v62 = vrot.slane %v3071_v4, %v15871_v8  ;;  %v14195_v36 = vld.sshfl [vmem:[%s15868_s7 + $0x98] sm:$0x11 pattern:$0x75316420]  ;;  %v1107_v37 = vcombine.high %v16411_v13, %v16411_v13  ;;  %v16660_v31 = vcombine.high %v16442_v23, %v16442_v23 }
  0x78   : > { %24007 = vst [vmem:[#allocation103_spill] sm:$0xff] %v16637_v1  ;;  %v16641_v40 = vrot.slane %v3072_v10, %v15871_v8  ;;  %v3074_v5 = vcombine.low %v16627_v50, %v16637_v1  ;;  %v16649_v18 = vrot.slane %v3073_v2, %v15871_v8  ;;  %v16663_v34 = vrot.slane %v14195_v36, %v15871_v8 }
  0x79   : > { %v10359_v10 = vcombine.low %v16422_v48, %v3081_v62  ;;  %24010 = vst [vmem:[#allocation106_spill] sm:$0xff] %v16660_v31  ;;  %v16671_v50 = vrot.slane %v1107_v37, %v15871_v8  ;;  %v1145_v13 = vcombine.high %v14196_v30, %v14196_v30  ;;  %v1545_v19 = vcombine.high %v14195_v36, %v14195_v36 }
  0x7a   : > { %24008 = vst [vmem:[#allocation104_spill] sm:$0xff] %v16641_v40  ;;  %24009 = vst [vmem:[#allocation105_spill] sm:$0xff] %v16649_v18  ;;  %v3103_v4 = vcombine.low %v3081_v62, %v16641_v40  ;;  %v16666_v2 = vrot.slane %v3074_v5, %v15871_v8  ;;  %v16678_v62 = vrot.slane %v14196_v30, %v15871_v8  ;;  %v2530_v56 = vshll.u32 %v16660_v31, 16 }
  0x7b   : > { %24011 = vst [vmem:[#allocation107_spill] sm:$0xff] %v16663_v34  ;;  %24013 = vst [vmem:[#allocation109_spill] sm:$0xff] %v16671_v50  ;;  %v16675_v48 = vrot.slane %v10359_v10, %v15871_v8  ;;  %v16684_v60 = vcombine.high %v16671_v50, %v16671_v50  ;;  %v16687_v37 = vrot.slane %v1145_v13, %v15871_v8  ;;  %v2522_v10 = vshll.u32 %v16671_v50, 16 }
  0x7c   : > { %24012 = vst [vmem:[#allocation108_spill] sm:$0xff] %v16666_v2  ;;  %v3111_v57 = vrot.slane %v3103_v4, %v15871_v8  ;;  %24015 = vst [vmem:[#allocation111_spill] sm:$0xff] %v16678_v62  ;;  %v3104_v5 = vcombine.low %v16649_v18, %v16666_v2  ;;  %v16694_v30 = vcombine.high %v16678_v62, %v16678_v62  ;;  %v2525_v40 = vshrl.u32 %v16671_v50, 16 }
  0x7d   : > { %24014 = vst [vmem:[#allocation110_spill] sm:$0xff] %v16675_v48  ;;  %24016 = vst [vmem:[#allocation112_spill] sm:$0xff] %v16684_v60  ;;  %v16697_v36 = vrot.slane %v1545_v19, %v15871_v8  ;;  %v16703_v13 = vcombine.high %v16687_v37, %v16687_v37  ;;  %v16709_v4 = vsel %vm15915_vm1, %v2517_v16, %v2522_v10  ;;  %v2533_v48 = vshrl.u32 %v16660_v31, 16 }
  0x7e   : > { %24017 = vst [vmem:[#allocation113_spill] sm:$0xff] %v16687_v37  ;;  %24018 = vst [vmem:[#allocation114_spill] sm:$0xff] %v16694_v30  ;;  %v3118_v18 = vrot.slane %v3104_v5, %v15871_v8  ;;  %v2538_v19 = vshll.u32 %v16684_v60, 16  ;;  %v2541_v32 = vshrl.u32 %v16684_v60, 16  ;;  %v16716_v5 = vsel %vm15915_vm1, %v2525_v40, %v2530_v56 }
  0x7f   : > { %24019 = vst [vmem:[#allocation115_spill] sm:$0xff] %v16697_v36  ;;  %24020 = vst [vmem:[#allocation116_spill] sm:$0xff] %v16703_v13  ;;  %v2546_v7 = vshll.u32 %v16663_v34, 16  ;;  %v2549_v23 = vshrl.u32 %v16663_v34, 16  ;;  %v2554_v16 = vshll.u32 %v16697_v36, 16  ;;  %v2558_v10 = vshrl.u32 %v16678_v62, 16 }
  0x80   : > { %24021 = vst [vmem:[#allocation117_spill] sm:$0xff] %v16709_v4  ;;  %v3119_v41 = vcombine.low %v3111_v57, %v3118_v18  ;;  %24022 = vst [vmem:[#allocation118_spill] sm:$0xff] %v16716_v5  ;;  %v16722_v50 = vsel %vm15915_vm1, %v2533_v48, %v2538_v19  ;;  %v2563_v60 = vshll.u32 %v16687_v37, 16  ;;  %v2566_v56 = vshrl.u32 %v16687_v37, 16 }
  0x81   : > { %24023 = vst [vmem:[#allocation119_spill] sm:$0xff] %v16722_v50  ;;  %v16730_v40 = vsel %vm15915_vm1, %v2541_v32, %v2546_v7  ;;  %v2571_v57 = vshll.u32 %v16694_v30, 16  ;;  %v2574_v18 = vshrl.u32 %v16694_v30, 16  ;;  %v16737_v48 = vsel %vm15915_vm1, %v2549_v23, %v2554_v16 }
  0x82   : > { %14853 = vmatmul.mubr.msk.bf16.gmra.mxu0 %vm3919_vm2, %v3119_v41  ;;  %24024 = vst [vmem:[#allocation120_spill] sm:$0xff] %v16730_v40  ;;  %24025 = vst [vmem:[#allocation121_spill] sm:$0xff] %v16737_v48  ;;  %v16741_v19 = vsel %vm15915_vm1, %v2558_v10, %v2563_v60  ;;  %v2579_v41 = vshll.u32 %v16703_v13, 16  ;;  %v3610_v32 = vcombine.low %v16709_v4, %v16716_v5 }
  0x83   : > { %24026 = vst [vmem:[#allocation122_spill] sm:$0xff] %v16741_v19  ;;  %14856 = vmatprep.mubr.msk.bf16.mxu0 %vm15764_vm4, %v23936_v59  ;;  %v16750_v7 = vsel %vm15915_vm1, %v2566_v56, %v2571_v57  ;;  %v3611_v23 = vcombine.low %v16722_v50, %v16730_v40  ;;  %v3612_v60 = vcombine.low %v16737_v48, %v16741_v19  ;;  %v14168_v10 = vld.sshfl [vmem:[%s15868_s7 + $0x2c] sm:$0x11 pattern:$0x75316420]  ;;  %v1868_v40 = vshrl.u32 %v16573_v28, 16 }
  0x84   : > { %24027 = vst [vmem:[#allocation123_spill] sm:$0xff] %v16750_v7  ;;  %v16761_v36 = vsel %vm15915_vm1, %v2574_v18, %v2579_v41  ;;  %v16764_v31 = vrot.slane %v3610_v32, %v15871_v8  ;;  %v14169_v37 = vld.sshfl [vmem:[%s15868_s7 + $0x30] sm:$0x33 pattern:$0x75316420]  ;;  %v16788_v57 = vcombine.high %v16558_v9, %v16558_v9  ;;  %v16792_v56 = vcombine.high %v16573_v28, %v16573_v28 }
  0x85   : > { %24028 = vst [vmem:[#allocation124_spill] sm:$0xff] %v16761_v36  ;;  %v3613_v30 = vcombine.low %v16750_v7, %v16761_v36  ;;  %v16774_v16 = vrot.slane %v3611_v23, %v15871_v8  ;;  %v16777_v4 = vrot.slane %v3612_v60, %v15871_v8  ;;  %v16782_v41 = vld.sshfl [vmem:[%s15868_s7 + $0x34] sm:$0x33 pattern:$0x75316420]  ;;  %v16795_v23 = vrot.slane %v14168_v10, %v15871_v8 }
  0x86   : > { %24029 = vst [vmem:[#allocation125_spill] sm:$0xff] %v16764_v31  ;;  %24032 = vst [vmem:[#allocation128_spill] sm:$0xff] %v16788_v57  ;;  %v587_v0 = vcombine.high %v14169_v37, %v14169_v37  ;;  %v16805_v7 = vrot.slane %v14169_v37, %v15871_v8  ;;  %v16809_v19 = vrot.slane %v16782_v41, %v15871_v8  ;;  %v1873_v32 = vshll.u32 %v16788_v57, 16 }
  0x87   : > { %24030 = vst [vmem:[#allocation126_spill] sm:$0xff] %v16774_v16  ;;  %24031 = vst [vmem:[#allocation127_spill] sm:$0xff] %v16777_v4  ;;  %v16798_v60 = vrot.slane %v3613_v30, %v15871_v8  ;;  %v3642_v18 = vcombine.low %v16764_v31, %v16774_v16  ;;  %v1473_v48 = vcombine.high %v14168_v10, %v14168_v10  ;;  %v1876_v10 = vshrl.u32 %v16788_v57, 16 }
  0x88   : > { %24033 = vst [vmem:[#allocation129_spill] sm:$0xff] %v16792_v56  ;;  %24034 = vst [vmem:[#allocation130_spill] sm:$0xff] %v16795_v23  ;;  %v16816_v31 = vrot.slane %v587_v0, %v15871_v8  ;;  %v16821_v37 = vcombine.high %v16805_v7, %v16805_v7  ;;  %v1881_v5 = vshll.u32 %v16792_v56, 16  ;;  %v16835_v0 = vsel %vm15915_vm1, %v1868_v40, %v1873_v32 }
  0x89   : > { %24035 = vst [vmem:[#allocation131_spill] sm:$0xff] %v16798_v60  ;;  %24036 = vst [vmem:[#allocation132_spill] sm:$0xff] %v16805_v7  ;;  %v3643_v30 = vcombine.low %v16777_v4, %v16798_v60  ;;  %v3650_v50 = vrot.slane %v3642_v18, %v15871_v8  ;;  %v16824_v16 = vrot.slane %v1473_v48, %v15871_v8  ;;  %v1884_v49 = vshrl.u32 %v16792_v56, 16 }
  0x8a   : > { %24037 = vst [vmem:[#allocation133_spill] sm:$0xff] %v16809_v19  ;;  %24038 = vst [vmem:[#allocation134_spill] sm:$0xff] %v16816_v31  ;;  %v16831_v18 = vcombine.high %v16816_v31, %v16816_v31  ;;  %v16840_v48 = vsel %vm15915_vm1, %v1876_v10, %v1881_v5  ;;  %v1889_v34 = vshll.u32 %v16795_v23, 16  ;;  %v1892_v62 = vshrl.u32 %v16795_v23, 16 }
  0x8b   : > { %24039 = vst [vmem:[#allocation135_spill] sm:$0xff] %v16821_v37  ;;  %24040 = vst [vmem:[#allocation136_spill] sm:$0xff] %v16824_v16  ;;  %v3657_v4 = vrot.slane %v3643_v30, %v15871_v8  ;;  %v1897_v30 = vshll.u32 %v16824_v16, 16  ;;  %v1901_v57 = vshrl.u32 %v16805_v7, 16  ;;  %v1906_v54 = vshll.u32 %v16816_v31, 16 }
  0x8c   : > { %24041 = vst [vmem:[#allocation137_spill] sm:$0xff] %v16831_v18  ;;  %24042 = vst [vmem:[#allocation138_spill] sm:$0xff] %v16835_v0  ;;  %v1909_v40 = vshrl.u32 %v16816_v31, 16  ;;  %v16850_v32 = vsel %vm15915_vm1, %v1884_v49, %v1889_v34  ;;  %v1914_v10 = vshll.u32 %v16821_v37, 16  ;;  %v1917_v16 = vshrl.u32 %v16821_v37, 16 }
  0x8d   : > { %24043 = vst [vmem:[#allocation139_spill] sm:$0xff] %v16840_v48  ;;  %v3658_v28 = vcombine.low %v3650_v50, %v3657_v4  ;;  %24044 = vst [vmem:[#allocation140_spill] sm:$0xff] %v16850_v32  ;;  %v16854_v5 = vsel %vm15915_vm1, %v1892_v62, %v1897_v30  ;;  %v16861_v50 = vsel %vm15915_vm1, %v1901_v57, %v1906_v54  ;;  %v1922_v4 = vshll.u32 %v16831_v18, 16 }
  0x8e   : > { %24045 = vst [vmem:[#allocation141_spill] sm:$0xff] %v16854_v5  ;;  %24046 = vst [vmem:[#allocation142_spill] sm:$0xff] %v16861_v50  ;;  %v1925_v7 = vshrl.u32 %v16831_v18, 16  ;;  %v1930_v49 = vshll.u32 %v16809_v19, 16  ;;  %v16870_v34 = vsel %vm15915_vm1, %v1909_v40, %v1914_v10  ;;  %v3121_v54 = vcombine.low %v16850_v32, %v16854_v5 }
  0x8f   : > { %14897 = vmatmul.mubr.msk.bf16.gmra.mxu1 %vm3919_vm2, %v3658_v28  ;;  %24047 = vst [vmem:[#allocation143_spill] sm:$0xff] %v16870_v34  ;;  %v3120_v28 = vcombine.low %v16835_v0, %v16840_v48  ;;  %v14197_v57 = vld.sshfl [vmem:[%s15868_s7 + $0xa0] sm:$0x33 pattern:$0x75316420]  ;;  %v16881_v30 = vsel %vm15915_vm1, %v1917_v16, %v1922_v4  ;;  %v3122_v40 = vcombine.low %v16861_v50, %v16870_v34 }
  0x90   : > { %14900 = vmatprep.mubr.msk.bf16.mxu1 %vm15764_vm4, %v23936_v59  ;;  %24048 = vst [vmem:[#allocation144_spill] sm:$0xff] %v16881_v30  ;;  %v16885_v18 = vsel %vm15915_vm1, %v1925_v7, %v1930_v49  ;;  %v16897_v0 = vrot.slane %v3121_v54, %v15871_v8  ;;  %v14199_v7 = vld.sshfl [vmem:[%s15868_s7 + $0xa8] sm:$0x33 pattern:$0x75316420]  ;;  %v1169_v32 = vcombine.high %v14197_v57, %v14197_v57 }
  0x91   : > { %24049 = vst [vmem:[#allocation145_spill] sm:$0xff] %v16885_v18  ;;  %v3123_v37 = vcombine.low %v16881_v30, %v16885_v18  ;;  %v16894_v62 = vrot.slane %v3120_v28, %v15871_v8  ;;  %v16903_v4 = vrot.slane %v3122_v40, %v15871_v8  ;;  %v14198_v10 = vld.sshfl [vmem:[%s15868_s7 + $0xa4] sm:$0x11 pattern:$0x75316420]  ;;  %v16909_v48 = vrot.slane %v14197_v57, %v15871_v8 }
  0x92   : > { %24051 = vst [vmem:[#allocation147_spill] sm:$0xff] %v16897_v0  ;;  %v16919_v40 = vrot.slane %v14198_v10, %v15871_v8  ;;  %v16924_v30 = vrot.slane %v1169_v32, %v15871_v8  ;;  %v16934_v16 = vrot.slane %v14199_v7, %v15871_v8 }
  0x93   : > { %24050 = vst [vmem:[#allocation146_spill] sm:$0xff] %v16894_v62  ;;  %24052 = vst [vmem:[#allocation148_spill] sm:$0xff] %v16903_v4  ;;  %v16912_v28 = vrot.slane %v3123_v37, %v15871_v8  ;;  %v3152_v54 = vcombine.low %v16894_v62, %v16897_v0  ;;  %v16928_v57 = vcombine.high %v16909_v48, %v16909_v48  ;;  %v2582_v0 = vshrl.u32 %v16703_v13, 16 }
  0x94   : > { %24053 = vst [vmem:[#allocation149_spill] sm:$0xff] %v16909_v48  ;;  %24055 = vst [vmem:[#allocation151_spill] sm:$0xff] %v16919_v40  ;;  %v1207_v37 = vcombine.high %v14199_v7, %v14199_v7  ;;  %v1553_v62 = vcombine.high %v14198_v10, %v14198_v10  ;;  %v16938_v49 = vcombine.high %v16924_v30, %v16924_v30  ;;  %v2587_v2 = vshll.u32 %v16909_v48, 16 }
  0x95   : > { %24054 = vst [vmem:[#allocation150_spill] sm:$0xff] %v16912_v28  ;;  %24056 = vst [vmem:[#allocation152_spill] sm:$0xff] %v16924_v30  ;;  %v3153_v34 = vcombine.low %v16903_v4, %v16912_v28  ;;  %v3160_v50 = vrot.slane %v3152_v54, %v15871_v8  ;;  %v16948_v54 = vcombine.high %v16934_v16, %v16934_v16  ;;  %v2590_v10 = vshrl.u32 %v16909_v48, 16 }
  0x96   : > { %24057 = vst [vmem:[#allocation153_spill] sm:$0xff] %v16928_v57  ;;  %24058 = vst [vmem:[#allocation154_spill] sm:$0xff] %v16934_v16  ;;  %v16941_v32 = vrot.slane %v1207_v37, %v15871_v8  ;;  %v16951_v7 = vrot.slane %v1553_v62, %v15871_v8  ;;  %v16956_v4 = vsel %vm15915_vm1, %v2582_v0, %v2587_v2  ;;  %v2595_v37 = vshll.u32 %v16924_v30, 16 }
  0x97   : > { %24059 = vst [vmem:[#allocation155_spill] sm:$0xff] %v16938_v49  ;;  %v3167_v5 = vrot.slane %v3153_v34, %v15871_v8  ;;  %24061 = vst [vmem:[#allocation157_spill] sm:$0xff] %v16948_v54  ;;  %v2598_v1 = vshrl.u32 %v16924_v30, 16  ;;  %v2603_v13 = vshll.u32 %v16928_v57, 16  ;;  %v2606_v31 = vshrl.u32 %v16928_v57, 16 }
  0x98   : > { %24060 = vst [vmem:[#allocation156_spill] sm:$0xff] %v16941_v32  ;;  %24062 = vst [vmem:[#allocation158_spill] sm:$0xff] %v16951_v7  ;;  %v2611_v56 = vshll.u32 %v16938_v49, 16  ;;  %v2614_v62 = vshrl.u32 %v16938_v49, 16  ;;  %v16966_v48 = vsel %vm15915_vm1, %v2590_v10, %v2595_v37  ;;  %v2619_v0 = vshll.u32 %v16919_v40, 16 }
  0x99   : > { %24063 = vst [vmem:[#allocation159_spill] sm:$0xff] %v16956_v4  ;;  %v3168_v34 = vcombine.low %v3160_v50, %v3167_v5  ;;  %24064 = vst [vmem:[#allocation160_spill] sm:$0xff] %v16966_v48  ;;  %v16970_v2 = vsel %vm15915_vm1, %v2598_v1, %v2603_v13  ;;  %v2622_v30 = vshrl.u32 %v16919_v40, 16  ;;  %v2627_v50 = vshll.u32 %v16951_v7, 16 }
  0x9a   : > { %24065 = vst [vmem:[#allocation161_spill] sm:$0xff] %v16970_v2  ;;  %v16977_v5 = vsel %vm15915_vm1, %v2606_v31, %v2611_v56  ;;  %v2631_v10 = vshrl.u32 %v16934_v16, 16  ;;  %v2636_v37 = vshll.u32 %v16941_v32, 16  ;;  %v16984_v1 = vsel %vm15915_vm1, %v2614_v62, %v2619_v0 }
  0x9b   : > { %14857 = vmatmul.mubr.msk.bf16.gmra.mxu0 %vm3919_vm2, %v3168_v34  ;;  %24066 = vst [vmem:[#allocation162_spill] sm:$0xff] %v16977_v5  ;;  %24067 = vst [vmem:[#allocation163_spill] sm:$0xff] %v16984_v1  ;;  %v2639_v13 = vshrl.u32 %v16941_v32, 16  ;;  %v2644_v49 = vshll.u32 %v16948_v54, 16  ;;  %v3659_v31 = vcombine.low %v16956_v4, %v16966_v48  ;;  %v16994_v56 = vsel %vm15915_vm1, %v2622_v30, %v2627_v50 }
  0x9c   : > { %14860 = vmatprep.mubr.msk.bf16.mxu0 %vm15764_vm4, %v23936_v59  ;;  %24068 = vst [vmem:[#allocation164_spill] sm:$0xff] %v16994_v56  ;;  %v16998_v34 = vsel %vm15915_vm1, %v2631_v10, %v2636_v37  ;;  %v3660_v62 = vcombine.low %v16970_v2, %v16977_v5  ;;  %v3661_v16 = vcombine.low %v16984_v1, %v16994_v56  ;;  %v14172_v10 = vld.sshfl [vmem:[%s15868_s7 + $0x3c] sm:$0x33 pattern:$0x75316420]  ;;  %v1933_v1 = vshrl.u32 %v16809_v19, 16 }
  0x9d   : > { %24069 = vst [vmem:[#allocation165_spill] sm:$0xff] %v16998_v34  ;;  %v17006_v7 = vsel %vm15915_vm1, %v2639_v13, %v2644_v49  ;;  %v17011_v30 = vrot.slane %v3659_v31, %v15871_v8  ;;  %v14171_v0 = vld.sshfl [vmem:[%s15868_s7 + $0x38] sm:$0x11 pattern:$0x75316420]  ;;  %v611_v2 = vcombine.high %v16782_v41, %v16782_v41  ;;  %v17051_v41 = vrot.slane %v14172_v10, %v15871_v8 }
  0x9e   : > { %24070 = vst [vmem:[#allocation166_spill] sm:$0xff] %v17006_v7  ;;  %v3662_v37 = vcombine.low %v16998_v34, %v17006_v7  ;;  %v17019_v40 = vrot.slane %v3660_v62, %v15871_v8  ;;  %v17027_v31 = vrot.slane %v3661_v16, %v15871_v8  ;;  %v17035_v62 = vcombine.high %v16809_v19, %v16809_v19 }
  0x9f   : > { %24071 = vst [vmem:[#allocation167_spill] sm:$0xff] %v17011_v30  ;;  %v17043_v49 = vrot.slane %v14171_v0, %v15871_v8  ;;  %v649_v16 = vcombine.high %v14172_v10, %v14172_v10  ;;  %v17048_v60 = vrot.slane %v611_v2, %v15871_v8  ;;  %24078 = vst [vmem:[#allocation174_spill] sm:$0xff] %v17051_v41 }
  0xa0   : > { %24072 = vst [vmem:[#allocation168_spill] sm:$0xff] %v17019_v40  ;;  %24073 = vst [vmem:[#allocation169_spill] sm:$0xff] %v17027_v31  ;;  %v17038_v48 = vrot.slane %v3662_v37, %v15871_v8  ;;  %v3691_v13 = vcombine.low %v17011_v30, %v17019_v40  ;;  %v1481_v34 = vcombine.high %v14171_v0, %v14171_v0  ;;  %v1946_v40 = vshll.u32 %v17035_v62, 16 }
  0xa1   : > { %24074 = vst [vmem:[#allocation170_spill] sm:$0xff] %v17035_v62  ;;  %24076 = vst [vmem:[#allocation172_spill] sm:$0xff] %v17043_v49  ;;  %v17057_v30 = vrot.slane %v649_v16, %v15871_v8  ;;  %v17062_v50 = vcombine.high %v17048_v60, %v17048_v60  ;;  %v17066_v2 = vcombine.high %v17051_v41, %v17051_v41  ;;  %v1938_v10 = vshll.u32 %v17048_v60, 16 }
  0xa2   : > { %24075 = vst [vmem:[#allocation171_spill] sm:$0xff] %v17038_v48  ;;  %24077 = vst [vmem:[#allocation173_spill] sm:$0xff] %v17048_v60  ;;  %v3692_v37 = vcombine.low %v17027_v31, %v17038_v48  ;;  %v3699_v56 = vrot.slane %v3691_v13, %v15871_v8  ;;  %v17069_v0 = vrot.slane %v1481_v34, %v15871_v8  ;;  %v1941_v31 = vshrl.u32 %v17048_v60, 16 }
  0xa3   : > { %24079 = vst [vmem:[#allocation175_spill] sm:$0xff] %v17057_v30  ;;  %24080 = vst [vmem:[#allocation176_spill] sm:$0xff] %v17062_v50  ;;  %v17075_v16 = vcombine.high %v17057_v30, %v17057_v30  ;;  %v17081_v5 = vsel %vm15915_vm1, %v1933_v1, %v1938_v10  ;;  %v1949_v4 = vshrl.u32 %v17035_v62, 16  ;;  %v1954_v34 = vshll.u32 %v17062_v50, 16 }
  0xa4   : > { %24081 = vst [vmem:[#allocation177_spill] sm:$0xff] %v17066_v2  ;;  %24082 = vst [vmem:[#allocation178_spill] sm:$0xff] %v17069_v0  ;;  %v3706_v13 = vrot.slane %v3692_v37, %v15871_v8  ;;  %v1957_v36 = vshrl.u32 %v17062_v50, 16  ;;  %v17088_v37 = vsel %vm15915_vm1, %v1941_v31, %v1946_v40  ;;  %v1962_v19 = vshll.u32 %v17043_v49, 16 }
  0xa5   : > { %24083 = vst [vmem:[#allocation179_spill] sm:$0xff] %v17075_v16  ;;  %24084 = vst [vmem:[#allocation180_spill] sm:$0xff] %v17081_v5  ;;  %v1965_v60 = vshrl.u32 %v17043_v49, 16  ;;  %v17094_v23 = vsel %vm15915_vm1, %v1949_v4, %v1954_v34  ;;  %v1970_v1 = vshll.u32 %v17069_v0, 16  ;;  %v1974_v10 = vshrl.u32 %v17051_v41, 16 }
  0xa6   : > { %v3707_v57 = vcombine.low %v3699_v56, %v3706_v13  ;;  %24085 = vst [vmem:[#allocation181_spill] sm:$0xff] %v17088_v37  ;;  %24086 = vst [vmem:[#allocation182_spill] sm:$0xff] %v17094_v23  ;;  %v1979_v50 = vshll.u32 %v17057_v30, 16  ;;  %v17102_v40 = vsel %vm15915_vm1, %v1957_v36, %v1962_v19  ;;  %v1982_v56 = vshrl.u32 %v17057_v30, 16 }
  0xa7   : > { %24087 = vst [vmem:[#allocation183_spill] sm:$0xff] %v17102_v40  ;;  %v1987_v31 = vshll.u32 %v17066_v2, 16  ;;  %v1990_v4 = vshrl.u32 %v17066_v2, 16  ;;  %v17111_v13 = vsel %vm15915_vm1, %v1965_v60, %v1970_v1  ;;  %v1995_v36 = vshll.u32 %v17075_v16, 16 }
  0xa8   : > { %14901 = vmatmul.mubr.msk.bf16.gmra.mxu1 %vm3919_vm2, %v3707_v57  ;;  %24088 = vst [vmem:[#allocation184_spill] sm:$0xff] %v17111_v13  ;;  %v17115_v57 = vsel %vm15915_vm1, %v1974_v10, %v1979_v50  ;;  %v3169_v19 = vcombine.low %v17081_v5, %v17088_v37  ;;  %v3170_v0 = vcombine.low %v17094_v23, %v17102_v40  ;;  %v14200_v1 = vld.sshfl [vmem:[%s15868_s7 + $0xac] sm:$0x33 pattern:$0x75316420] }
  0xa9   : > { %14904 = vmatprep.mubr.msk.bf16.mxu1 %vm15764_vm4, %v23936_v59  ;;  %24089 = vst [vmem:[#allocation185_spill] sm:$0xff] %v17115_v57  ;;  %v17122_v34 = vsel %vm15915_vm1, %v1982_v56, %v1987_v31  ;;  %v3171_v60 = vcombine.low %v17111_v13, %v17115_v57  ;;  %v17133_v10 = vsel %vm15915_vm1, %v1990_v4, %v1995_v36  ;;  %v14202_v36 = vld.sshfl [vmem:[%s15868_s7 + $0xb4] sm:$0x33 pattern:$0x75316420] }
  0xaa   : > { %24090 = vst [vmem:[#allocation186_spill] sm:$0xff] %v17122_v34  ;;  %24091 = vst [vmem:[#allocation187_spill] sm:$0xff] %v17133_v10  ;;  %v17136_v62 = vrot.slane %v3169_v19, %v15871_v8  ;;  %v3172_v30 = vcombine.low %v17122_v34, %v17133_v10  ;;  %v17145_v2 = vrot.slane %v3170_v0, %v15871_v8  ;;  %v14201_v56 = vld.sshfl [vmem:[%s15868_s7 + $0xb0] sm:$0x11 pattern:$0x75316420] }
  0xab   : > { %v17148_v50 = vrot.slane %v3171_v60, %v15871_v8  ;;  %v17158_v31 = vcombine.high %v16941_v32, %v16941_v32  ;;  %v1231_v13 = vcombine.high %v14200_v1, %v14200_v1  ;;  %v17161_v40 = vrot.slane %v14200_v1, %v15871_v8 }
  0xac   : > { %24092 = vst [vmem:[#allocation188_spill] sm:$0xff] %v17136_v62  ;;  %24093 = vst [vmem:[#allocation189_spill] sm:$0xff] %v17145_v2  ;;  %v17164_v0 = vrot.slane %v3172_v30, %v15871_v8  ;;  %v3201_v60 = vcombine.low %v17136_v62, %v17145_v2  ;;  %v17171_v19 = vrot.slane %v14201_v56, %v15871_v8  ;;  %v2647_v2 = vshrl.u32 %v16948_v54, 16 }
  0xad   : > { %24094 = vst [vmem:[#allocation190_spill] sm:$0xff] %v17148_v50  ;;  %24095 = vst [vmem:[#allocation191_spill] sm:$0xff] %v17158_v31  ;;  %v17174_v28 = vrot.slane %v1231_v13, %v15871_v8  ;;  %v17178_v34 = vcombine.high %v17161_v40, %v17161_v40  ;;  %v1269_v1 = vcombine.high %v14202_v36, %v14202_v36  ;;  %v2652_v37 = vshll.u32 %v17158_v31, 16 }
  0xae   : > { %24096 = vst [vmem:[#allocation192_spill] sm:$0xff] %v17161_v40  ;;  %24097 = vst [vmem:[#allocation193_spill] sm:$0xff] %v17164_v0  ;;  %v17181_v30 = vrot.slane %v14202_v36, %v15871_v8  ;;  %v3202_v62 = vcombine.low %v17148_v50, %v17164_v0  ;;  %v3209_v57 = vrot.slane %v3201_v60, %v15871_v8  ;;  %v2655_v36 = vshrl.u32 %v17158_v31, 16 }
  0xaf   : > { %24098 = vst [vmem:[#allocation194_spill] sm:$0xff] %v17171_v19  ;;  %24099 = vst [vmem:[#allocation195_spill] sm:$0xff] %v17174_v28  ;;  %v1561_v4 = vcombine.high %v14201_v56, %v14201_v56  ;;  %v17189_v13 = vcombine.high %v17174_v28, %v17174_v28  ;;  %v17192_v23 = vrot.slane %v1269_v1, %v15871_v8  ;;  %v2660_v56 = vshll.u32 %v17161_v40, 16 }
  0xb0   : > { %24100 = vst [vmem:[#allocation196_spill] sm:$0xff] %v17178_v34  ;;  %24101 = vst [vmem:[#allocation197_spill] sm:$0xff] %v17181_v30  ;;  %v3216_v5 = vrot.slane %v3202_v62, %v15871_v8  ;;  %v2663_v60 = vshrl.u32 %v17161_v40, 16  ;;  %v17204_v18 = vsel %vm15915_vm1, %v2647_v2, %v2652_v37  ;;  %v2668_v1 = vshll.u32 %v17174_v28, 16 }
  0xb1   : > { %24102 = vst [vmem:[#allocation198_spill] sm:$0xff] %v17189_v13  ;;  %24103 = vst [vmem:[#allocation199_spill] sm:$0xff] %v17192_v23  ;;  %v17198_v50 = vrot.slane %v1561_v4, %v15871_v8  ;;  %v2671_v54 = vshrl.u32 %v17174_v28, 16  ;;  %v2676_v32 = vshll.u32 %v17178_v34, 16  ;;  %v17211_v62 = vsel %vm15915_vm1, %v2655_v36, %v2660_v56 }
  0xb2   : > { %24105 = vst [vmem:[#allocation201_spill] sm:$0xff] %v17204_v18  ;;  %v3217_v31 = vcombine.low %v3209_v57, %v3216_v5  ;;  %24106 = vst [vmem:[#allocation202_spill] sm:$0xff] %v17211_v62  ;;  %v2679_v4 = vshrl.u32 %v17178_v34, 16  ;;  %v2684_v40 = vshll.u32 %v17189_v13, 16  ;;  %v17217_v2 = vsel %vm15915_vm1, %v2663_v60, %v2668_v1 }
  0xb3   : > { %24104 = vst [vmem:[#allocation200_spill] sm:$0xff] %v17198_v50  ;;  %24107 = vst [vmem:[#allocation203_spill] sm:$0xff] %v17217_v2  ;;  %v17221_v37 = vsel %vm15915_vm1, %v2671_v54, %v2676_v32  ;;  %v2687_v28 = vshrl.u32 %v17189_v13, 16  ;;  %v2692_v5 = vshll.u32 %v17171_v19, 16  ;;  %v2695_v36 = vshrl.u32 %v17171_v19, 16 }
  0xb4   : > { %24108 = vst [vmem:[#allocation204_spill] sm:$0xff] %v17221_v37  ;;  %14861 = vmatmul.mubr.msk.bf16.gmra.mxu0 %vm3919_vm2, %v3217_v31  ;;  %v17228_v57 = vsel %vm15915_vm1, %v2679_v4, %v2684_v40  ;;  %v2700_v56 = vshll.u32 %v17198_v50, 16  ;;  %v2704_v60 = vshrl.u32 %v17181_v30, 16  ;;  %v2709_v54 = vshll.u32 %v17192_v23, 16 }
  0xb5   : > { %24109 = vst [vmem:[#allocation205_spill] sm:$0xff] %v17228_v57  ;;  %v17235_v32 = vsel %vm15915_vm1, %v2687_v28, %v2692_v5  ;;  %v3708_v31 = vcombine.low %v17204_v18, %v17211_v62  ;;  %v3709_v40 = vcombine.low %v17217_v2, %v17221_v37  ;;  %14864 = vmatprep.mubr.msk.bf16.mxu0 %vm15764_vm4, %v23936_v59  ;;  %v14173_v1 = vld.sshfl [vmem:[%s15868_s7 + $0x40] sm:$0x33 pattern:$0x75316420] }
  0xb6   : > { %24110 = vst [vmem:[#allocation206_spill] sm:$0xff] %v17235_v32  ;;  %v17247_v4 = vsel %vm15915_vm1, %v2695_v36, %v2700_v56  ;;  %v3710_v28 = vcombine.low %v17228_v57, %v17235_v32  ;;  %v17257_v13 = vsel %vm15915_vm1, %v2704_v60, %v2709_v54  ;;  %v14175_v56 = vld.sshfl [vmem:[%s15868_s7 + $0x48] sm:$0x33 pattern:$0x75316420]  ;;  %v673_v50 = vcombine.high %v14173_v1, %v14173_v1 }
  0xb7   : > { %24111 = vst [vmem:[#allocation207_spill] sm:$0xff] %v17247_v4  ;;  %24112 = vst [vmem:[#allocation208_spill] sm:$0xff] %v17257_v13  ;;  %v17260_v34 = vrot.slane %v3708_v31, %v15871_v8  ;;  %v17263_v19 = vrot.slane %v3709_v40, %v15871_v8  ;;  %v3711_v5 = vcombine.low %v17247_v4, %v17257_v13  ;;  %v14174_v54 = vld.sshfl [vmem:[%s15868_s7 + $0x44] sm:$0x11 pattern:$0x75316420] }
  0xb8   : > { %v17271_v18 = vrot.slane %v3710_v28, %v15871_v8  ;;  %v17281_v36 = vrot.slane %v14173_v1, %v15871_v8  ;;  %v17284_v57 = vrot.slane %v14174_v54, %v15871_v8  ;;  %v17292_v4 = vrot.slane %v673_v50, %v15871_v8 }
  0xb9   : > { %24113 = vst [vmem:[#allocation209_spill] sm:$0xff] %v17260_v34  ;;  %24114 = vst [vmem:[#allocation210_spill] sm:$0xff] %v17263_v19  ;;  %v3740_v31 = vcombine.low %v17260_v34, %v17263_v19  ;;  %v17287_v28 = vrot.slane %v3711_v5, %v15871_v8  ;;  %v711_v32 = vcombine.high %v14175_v56, %v14175_v56 }
  0xba   : > { %24115 = vst [vmem:[#allocation211_spill] sm:$0xff] %v17271_v18  ;;  %24116 = vst [vmem:[#allocation212_spill] sm:$0xff] %v17281_v36  ;;  %v17297_v40 = vcombine.high %v17281_v36, %v17281_v36  ;;  %v17300_v1 = vrot.slane %v14175_v56, %v15871_v8  ;;  %v1489_v34 = vcombine.high %v14174_v54, %v14174_v54  ;;  %v2003_v54 = vshll.u32 %v17281_v36, 16 }
  0xbb   : > { %24117 = vst [vmem:[#allocation213_spill] sm:$0xff] %v17284_v57  ;;  %24118 = vst [vmem:[#allocation214_spill] sm:$0xff] %v17287_v28  ;;  %v3748_v37 = vrot.slane %v3740_v31, %v15871_v8  ;;  %v3741_v5 = vcombine.low %v17271_v18, %v17287_v28  ;;  %v17306_v60 = vcombine.high %v17292_v4, %v17292_v4  ;;  %v1998_v31 = vshrl.u32 %v17075_v16, 16 }
  0xbc   : > { %24119 = vst [vmem:[#allocation215_spill] sm:$0xff] %v17292_v4  ;;  %24120 = vst [vmem:[#allocation216_spill] sm:$0xff] %v17297_v40  ;;  %v17309_v50 = vrot.slane %v711_v32, %v15871_v8  ;;  %v17314_v19 = vcombine.high %v17300_v1, %v17300_v1  ;;  %v17317_v56 = vrot.slane %v1489_v34, %v15871_v8  ;;  %v2006_v18 = vshrl.u32 %v17281_v36, 16 }
  0xbd   : > { %24121 = vst [vmem:[#allocation217_spill] sm:$0xff] %v17300_v1  ;;  %24122 = vst [vmem:[#allocation218_spill] sm:$0xff] %v17306_v60  ;;  %v3755_v48 = vrot.slane %v3741_v5, %v15871_v8  ;;  %v2011_v2 = vshll.u32 %v17292_v4, 16  ;;  %v2014_v32 = vshrl.u32 %v17292_v4, 16  ;;  %v2019_v62 = vshll.u32 %v17297_v40, 16 }
  0xbe   : > { %24123 = vst [vmem:[#allocation219_spill] sm:$0xff] %v17309_v50  ;;  %24124 = vst [vmem:[#allocation220_spill] sm:$0xff] %v17314_v19  ;;  %v17327_v7 = vsel %vm15915_vm1, %v1998_v31, %v2003_v54  ;;  %v2022_v16 = vshrl.u32 %v17297_v40, 16  ;;  %v2027_v34 = vshll.u32 %v17306_v60, 16  ;;  %v2030_v49 = vshrl.u32 %v17306_v60, 16 }
  0xbf   : > { %24125 = vst [vmem:[#allocation221_spill] sm:$0xff] %v17317_v56  ;;  %24126 = vst [vmem:[#allocation222_spill] sm:$0xff] %v17327_v7  ;;  %v3756_v41 = vcombine.low %v3748_v37, %v3755_v48  ;;  %v17334_v5 = vsel %vm15915_vm1, %v2006_v18, %v2011_v2  ;;  %v17338_v4 = vsel %vm15915_vm1, %v2014_v32, %v2019_v62  ;;  %v2035_v36 = vshll.u32 %v17284_v57, 16 }
  0xc0   : > { %24127 = vst [vmem:[#allocation223_spill] sm:$0xff] %v17334_v5  ;;  %24128 = vst [vmem:[#allocation224_spill] sm:$0xff] %v17338_v4  ;;  %v17343_v31 = vsel %vm15915_vm1, %v2022_v16, %v2027_v34  ;;  %v2038_v54 = vshrl.u32 %v17284_v57, 16  ;;  %v2043_v40 = vshll.u32 %v17317_v56, 16  ;;  %v2047_v48 = vshrl.u32 %v17300_v1, 16 }
  0xc1   : > { %24129 = vst [vmem:[#allocation225_spill] sm:$0xff] %v17343_v31  ;;  %14905 = vmatmul.mubr.msk.bf16.gmra.mxu1 %vm3919_vm2, %v3756_v41  ;;  %v17351_v18 = vsel %vm15915_vm1, %v2030_v49, %v2035_v36  ;;  %v2052_v62 = vshll.u32 %v17309_v50, 16  ;;  %v2055_v2 = vshrl.u32 %v17309_v50, 16  ;;  %v2060_v16 = vshll.u32 %v17314_v19, 16 }
  0xc2   : > { %24130 = vst [vmem:[#allocation226_spill] sm:$0xff] %v17351_v18  ;;  %14908 = vmatprep.mubr.msk.bf16.mxu1 %vm15764_vm4, %v23936_v59  ;;  %v17360_v37 = vsel %vm15915_vm1, %v2038_v54, %v2043_v40  ;;  %v3218_v41 = vcombine.low %v17327_v7, %v17334_v5  ;;  %v3219_v49 = vcombine.low %v17338_v4, %v17343_v31  ;;  %v14203_v56 = vld.sshfl [vmem:[%s15868_s7 + $0xb8] sm:$0x33 pattern:$0x75316420] }
  0xc3   : > { %24131 = vst [vmem:[#allocation227_spill] sm:$0xff] %v17360_v37  ;;  %v17370_v32 = vsel %vm15915_vm1, %v2047_v48, %v2052_v62  ;;  %v17374_v34 = vsel %vm15915_vm1, %v2055_v2, %v2060_v16  ;;  %v3220_v40 = vcombine.low %v17351_v18, %v17360_v37  ;;  %v14204_v2 = vld.sshfl [vmem:[%s15868_s7 + $0xbc] sm:$0x11 pattern:$0x75316420]  ;;  %v17399_v4 = vcombine.high %v17181_v30, %v17181_v30 }
  0xc4   : > { %24132 = vst [vmem:[#allocation228_spill] sm:$0xff] %v17370_v32  ;;  %24133 = vst [vmem:[#allocation229_spill] sm:$0xff] %v17374_v34  ;;  %v3221_v1 = vcombine.low %v17370_v32, %v17374_v34  ;;  %v17384_v36 = vrot.slane %v3218_v41, %v15871_v8  ;;  %v17387_v48 = vrot.slane %v3219_v49, %v15871_v8 }
  0xc5   : > { %v17393_v16 = vrot.slane %v3220_v40, %v15871_v8  ;;  %24137 = vst [vmem:[#allocation233_spill] sm:$0xff] %v17399_v4  ;;  %v17403_v41 = vcombine.high %v17192_v23, %v17192_v23  ;;  %v1293_v18 = vcombine.high %v14203_v56, %v14203_v56  ;;  %v17415_v32 = vrot.slane %v14203_v56, %v15871_v8 }
  0xc6   : > { %24134 = vst [vmem:[#allocation230_spill] sm:$0xff] %v17384_v36  ;;  %24135 = vst [vmem:[#allocation231_spill] sm:$0xff] %v17387_v48  ;;  %v17406_v49 = vrot.slane %v3221_v1, %v15871_v8  ;;  %v3250_v62 = vcombine.low %v17384_v36, %v17387_v48  ;;  %v17418_v37 = vrot.slane %v14204_v2, %v15871_v8  ;;  %v2712_v40 = vshrl.u32 %v17192_v23, 16 }
  0xc7   : > { %24136 = vst [vmem:[#allocation232_spill] sm:$0xff] %v17393_v16  ;;  %24138 = vst [vmem:[#allocation234_spill] sm:$0xff] %v17403_v41  ;;  %v1569_v31 = vcombine.high %v14204_v2, %v14204_v2  ;;  %v17424_v7 = vrot.slane %v1293_v18, %v15871_v8  ;;  %v17429_v54 = vcombine.high %v17415_v32, %v17415_v32  ;;  %v2717_v48 = vshll.u32 %v17399_v4, 16 }
  0xc8   : > { %24139 = vst [vmem:[#allocation235_spill] sm:$0xff] %v17406_v49  ;;  %24140 = vst [vmem:[#allocation236_spill] sm:$0xff] %v17415_v32  ;;  %v3251_v1 = vcombine.low %v17393_v16, %v17406_v49  ;;  %v3258_v5 = vrot.slane %v3250_v62, %v15871_v8  ;;  %v2720_v2 = vshrl.u32 %v17399_v4, 16  ;;  %v2725_v18 = vshll.u32 %v17403_v41, 16 }
  0xc9   : > { %24141 = vst [vmem:[#allocation237_spill] sm:$0xff] %v17418_v37  ;;  %24142 = vst [vmem:[#allocation238_spill] sm:$0xff] %v17424_v7  ;;  %v17432_v56 = vrot.slane %v1569_v31, %v15871_v8  ;;  %v17439_v62 = vcombine.high %v17424_v7, %v17424_v7  ;;  %v2728_v36 = vshrl.u32 %v17403_v41, 16  ;;  %v17445_v0 = vsel %vm15915_vm1, %v2712_v40, %v2717_v48 }
  0xca   : > { %24143 = vst [vmem:[#allocation239_spill] sm:$0xff] %v17429_v54  ;;  %v3265_v16 = vrot.slane %v3251_v1, %v15871_v8  ;;  %24146 = vst [vmem:[#allocation242_spill] sm:$0xff] %v17445_v0  ;;  %v2733_v31 = vshll.u32 %v17415_v32, 16  ;;  %v2736_v10 = vshrl.u32 %v17415_v32, 16  ;;  %v2741_v23 = vshll.u32 %v17424_v7, 16 }
  0xcb   : > { %24144 = vst [vmem:[#allocation240_spill] sm:$0xff] %v17432_v56  ;;  %24145 = vst [vmem:[#allocation241_spill] sm:$0xff] %v17439_v62  ;;  %v17452_v1 = vsel %vm15915_vm1, %v2720_v2, %v2725_v18  ;;  %v2744_v30 = vshrl.u32 %v17424_v7, 16  ;;  %v2749_v60 = vshll.u32 %v17429_v54, 16  ;;  %v2752_v40 = vshrl.u32 %v17429_v54, 16 }
  0xcc   : > { %v3266_v4 = vcombine.low %v3258_v5, %v3265_v16  ;;  %24147 = vst [vmem:[#allocation243_spill] sm:$0xff] %v17452_v1  ;;  %v17458_v41 = vsel %vm15915_vm1, %v2728_v36, %v2733_v31  ;;  %v17462_v48 = vsel %vm15915_vm1, %v2736_v10, %v2741_v23  ;;  %v2757_v5 = vshll.u32 %v17439_v62, 16  ;;  %v14178_v7 = vld.sshfl [vmem:[%s15868_s7 + $0x54] sm:$0x33 pattern:$0x75316420] }
  0xcd   : > { %24148 = vst [vmem:[#allocation244_spill] sm:$0xff] %v17458_v41  ;;  %24149 = vst [vmem:[#allocation245_spill] sm:$0xff] %v17462_v48  ;;  %v17469_v16 = vsel %vm15915_vm1, %v2744_v30, %v2749_v60  ;;  %v2760_v2 = vshrl.u32 %v17439_v62, 16  ;;  %v2765_v36 = vshll.u32 %v17418_v37, 16  ;;  %v2768_v18 = vshrl.u32 %v17418_v37, 16 }
  0xce   : > { %14865 = vmatmul.mubr.msk.bf16.gmra.mxu0 %vm3919_vm2, %v3266_v4  ;;  %24150 = vst [vmem:[#allocation246_spill] sm:$0xff] %v17469_v16  ;;  %v17476_v23 = vsel %vm15915_vm1, %v2752_v40, %v2757_v5  ;;  %v2773_v10 = vshll.u32 %v17432_v56, 16  ;;  %v3757_v4 = vcombine.low %v17445_v0, %v17452_v1  ;;  %v3758_v30 = vcombine.low %v17458_v41, %v17462_v48  ;;  %v14176_v56 = vld.sshfl [vmem:[%s15868_s7 + $0x4c] sm:$0x33 pattern:$0x75316420] }
  0xcf   : > { %24151 = vst [vmem:[#allocation247_spill] sm:$0xff] %v17476_v23  ;;  %14868 = vmatprep.mubr.msk.bf16.mxu0 %vm15764_vm4, %v23936_v59  ;;  %v17487_v60 = vsel %vm15915_vm1, %v2760_v2, %v2765_v36  ;;  %v3759_v31 = vcombine.low %v17469_v16, %v17476_v23  ;;  %v14177_v36 = vld.sshfl [vmem:[%s15868_s7 + $0x50] sm:$0x11 pattern:$0x75316420]  ;;  %v735_v16 = vcombine.high %v14176_v56, %v14176_v56 }
  0xd0   : > { %24152 = vst [vmem:[#allocation248_spill] sm:$0xff] %v17487_v60  ;;  %v17498_v62 = vsel %vm15915_vm1, %v2768_v18, %v2773_v10  ;;  %v17501_v37 = vrot.slane %v3757_v4, %v15871_v8  ;;  %v17504_v2 = vrot.slane %v3758_v30, %v15871_v8  ;;  %v17518_v10 = vcombine.high %v17309_v50, %v17309_v50 }
  0xd1   : > { %24153 = vst [vmem:[#allocation249_spill] sm:$0xff] %v17498_v62  ;;  %v3760_v40 = vcombine.low %v17487_v60, %v17498_v62  ;;  %v17512_v5 = vrot.slane %v3759_v31, %v15871_v8  ;;  %v17526_v48 = vrot.slane %v14176_v56, %v15871_v8  ;;  %v17534_v60 = vrot.slane %v14177_v36, %v15871_v8 }
  0xd2   : > { %24154 = vst [vmem:[#allocation250_spill] sm:$0xff] %v17501_v37  ;;  %24155 = vst [vmem:[#allocation251_spill] sm:$0xff] %v17504_v2  ;;  %v3789_v4 = vcombine.low %v17501_v37, %v17504_v2  ;;  %v773_v23 = vcombine.high %v14178_v7, %v14178_v7  ;;  %v17538_v1 = vrot.slane %v735_v16, %v15871_v8  ;;  %v2063_v37 = vshrl.u32 %v17314_v19, 16 }
  0xd3   : > { %24156 = vst [vmem:[#allocation252_spill] sm:$0xff] %v17512_v5  ;;  %24157 = vst [vmem:[#allocation253_spill] sm:$0xff] %v17518_v10  ;;  %v17529_v31 = vrot.slane %v3760_v40, %v15871_v8  ;;  %v17542_v30 = vcombine.high %v17526_v48, %v17526_v48  ;;  %v17545_v56 = vrot.slane %v14178_v7, %v15871_v8  ;;  %v2071_v28 = vshrl.u32 %v17518_v10, 16 }
  0xd4   : > { %24158 = vst [vmem:[#allocation254_spill] sm:$0xff] %v17526_v48  ;;  %24160 = vst [vmem:[#allocation256_spill] sm:$0xff] %v17534_v60  ;;  %v3797_v41 = vrot.slane %v3789_v4, %v15871_v8  ;;  %v17550_v18 = vrot.slane %v773_v23, %v15871_v8  ;;  %v1497_v2 = vcombine.high %v14177_v36, %v14177_v36  ;;  %v2068_v4 = vshll.u32 %v17518_v10, 16 }
  0xd5   : > { %24159 = vst [vmem:[#allocation255_spill] sm:$0xff] %v17529_v31  ;;  %24161 = vst [vmem:[#allocation257_spill] sm:$0xff] %v17538_v1  ;;  %v3790_v40 = vcombine.low %v17512_v5, %v17529_v31  ;;  %v17555_v16 = vcombine.high %v17538_v1, %v17538_v1  ;;  %v2076_v7 = vshll.u32 %v17526_v48, 16  ;;  %v2079_v23 = vshrl.u32 %v17526_v48, 16 }
  0xd6   : > { %24162 = vst [vmem:[#allocation258_spill] sm:$0xff] %v17542_v30  ;;  %24163 = vst [vmem:[#allocation259_spill] sm:$0xff] %v17550_v18  ;;  %v17562_v5 = vrot.slane %v1497_v2, %v15871_v8  ;;  %v2084_v36 = vshll.u32 %v17538_v1, 16  ;;  %v17568_v13 = vsel %vm15915_vm1, %v2063_v37, %v2068_v4  ;;  %v2087_v32 = vshrl.u32 %v17538_v1, 16 }
  0xd7   : > { %24164 = vst [vmem:[#allocation260_spill] sm:$0xff] %v17555_v16  ;;  %v3804_v0 = vrot.slane %v3790_v40, %v15871_v8  ;;  %24166 = vst [vmem:[#allocation262_spill] sm:$0xff] %v17568_v13  ;;  %v17572_v54 = vsel %vm15915_vm1, %v2071_v28, %v2076_v7  ;;  %v2092_v10 = vshll.u32 %v17542_v30, 16  ;;  %v2095_v19 = vshrl.u32 %v17542_v30, 16 }
  0xd8   : > { %24165 = vst [vmem:[#allocation261_spill] sm:$0xff] %v17562_v5  ;;  %24167 = vst [vmem:[#allocation263_spill] sm:$0xff] %v17572_v54  ;;  %v17578_v2 = vsel %vm15915_vm1, %v2079_v23, %v2084_v36  ;;  %v2100_v48 = vshll.u32 %v17555_v16, 16  ;;  %v2103_v28 = vshrl.u32 %v17555_v16, 16  ;;  %v2108_v4 = vshll.u32 %v17534_v60, 16 }
  0xd9   : > { %v3805_v40 = vcombine.low %v3797_v41, %v3804_v0  ;;  %24168 = vst [vmem:[#allocation264_spill] sm:$0xff] %v17578_v2  ;;  %v17584_v37 = vsel %vm15915_vm1, %v2087_v32, %v2092_v10  ;;  %v2111_v7 = vshrl.u32 %v17534_v60, 16  ;;  %v2116_v41 = vshll.u32 %v17562_v5, 16 }
  0xda   : > { %24169 = vst [vmem:[#allocation265_spill] sm:$0xff] %v17584_v37  ;;  %v17592_v0 = vsel %vm15915_vm1, %v2095_v19, %v2100_v48  ;;  %v2120_v23 = vshrl.u32 %v17545_v56, 16  ;;  %v2125_v32 = vshll.u32 %v17550_v18, 16  ;;  %v17601_v10 = vsel %vm15915_vm1, %v2103_v28, %v2108_v4 }
  0xdb   : > { %14909 = vmatmul.mubr.msk.bf16.gmra.mxu1 %vm3919_vm2, %v3805_v40  ;;  %24170 = vst [vmem:[#allocation266_spill] sm:$0xff] %v17592_v0  ;;  %24171 = vst [vmem:[#allocation267_spill] sm:$0xff] %v17601_v10  ;;  %v3267_v36 = vcombine.low %v17568_v13, %v17572_v54  ;;  %v3268_v19 = vcombine.low %v17578_v2, %v17584_v37  ;;  %v14205_v40 = vld.sshfl [vmem:[%s15868_s7 + $0xc0] sm:$0x33 pattern:$0x75316420]  ;;  %v17612_v5 = vsel %vm15915_vm1, %v2111_v7, %v2116_v41 }
  0xdc   : > { %14912 = vmatprep.mubr.msk.bf16.mxu1 %vm15764_vm4, %v23936_v59  ;;  %24172 = vst [vmem:[#allocation268_spill] sm:$0xff] %v17612_v5  ;;  %v17616_v16 = vsel %vm15915_vm1, %v2120_v23, %v2125_v32  ;;  %v3269_v28 = vcombine.low %v17592_v0, %v17601_v10  ;;  %v14206_v30 = vld.sshfl [vmem:[%s15868_s7 + $0xc4] sm:$0x33 pattern:$0x75316420]  ;;  %v1331_v2 = vcombine.high %v14205_v40, %v14205_v40 }
  0xdd   : > { %24173 = vst [vmem:[#allocation269_spill] sm:$0xff] %v17616_v16  ;;  %v3270_v60 = vcombine.low %v17612_v5, %v17616_v16  ;;  %v17626_v48 = vrot.slane %v3267_v36, %v15871_v8  ;;  %v17629_v7 = vrot.slane %v3268_v19, %v15871_v8  ;;  %v17639_v4 = vld.sshfl [vmem:[%s15868_s7 + $0xc8] sm:$0x11 pattern:$0x75316420]  ;;  %v17642_v54 = vrot.slane %v14205_v40, %v15871_v8 }
  0xde   : > { %v17634_v23 = vrot.slane %v3269_v28, %v15871_v8  ;;  %v1355_v28 = vcombine.high %v14206_v30, %v14206_v30  ;;  %v17654_v32 = vrot.slane %v1331_v2, %v15871_v8  ;;  %v17671_v0 = vrot.slane %v17639_v4, %v15871_v8 }
  0xdf   : > { %24174 = vst [vmem:[#allocation270_spill] sm:$0xff] %v17626_v48  ;;  %24175 = vst [vmem:[#allocation271_spill] sm:$0xff] %v17629_v7  ;;  %v17645_v36 = vrot.slane %v3270_v60, %v15871_v8  ;;  %v3299_v19 = vcombine.low %v17626_v48, %v17629_v7  ;;  %v17658_v40 = vcombine.high %v17642_v54, %v17642_v54  ;;  %v2777_v7 = vshrl.u32 %v17642_v54, 16 }
  0xe0   : > { %24176 = vst [vmem:[#allocation272_spill] sm:$0xff] %v17634_v23  ;;  %24177 = vst [vmem:[#allocation273_spill] sm:$0xff] %v17642_v54  ;;  %v17661_v60 = vrot.slane %v14206_v30, %v15871_v8  ;;  %v17667_v41 = vrot.slane %v1355_v28, %v15871_v8  ;;  %v17675_v2 = vcombine.high %v17654_v32, %v17654_v32  ;;  %v2785_v48 = vshrl.u32 %v17654_v32, 16 }
  0xe1   : > { %24178 = vst [vmem:[#allocation274_spill] sm:$0xff] %v17645_v36  ;;  %24179 = vst [vmem:[#allocation275_spill] sm:$0xff] %v17654_v32  ;;  %v3300_v5 = vcombine.low %v17634_v23, %v17645_v36  ;;  %v3307_v10 = vrot.slane %v3299_v19, %v15871_v8  ;;  %v2782_v23 = vshll.u32 %v17654_v32, 16  ;;  %v2790_v49 = vshll.u32 %v17658_v40, 16 }
  0xe2   : > { %24180 = vst [vmem:[#allocation276_spill] sm:$0xff] %v17658_v40  ;;  %24181 = vst [vmem:[#allocation277_spill] sm:$0xff] %v17661_v60  ;;  %v17679_v30 = vcombine.high %v17661_v60, %v17661_v60  ;;  %v17686_v28 = vcombine.high %v17667_v41, %v17667_v41  ;;  %v2793_v13 = vshrl.u32 %v17658_v40, 16  ;;  %v2798_v34 = vshll.u32 %v17675_v2, 16 }
  0xe3   : > { %24182 = vst [vmem:[#allocation278_spill] sm:$0xff] %v17667_v41  ;;  %24183 = vst [vmem:[#allocation279_spill] sm:$0xff] %v17671_v0  ;;  %v3314_v19 = vrot.slane %v3300_v5, %v15871_v8  ;;  %v17692_v37 = vsel %vm15915_vm1, %v2777_v7, %v2782_v23  ;;  %v2801_v54 = vshrl.u32 %v17675_v2, 16  ;;  %v17699_v5 = vsel %vm15915_vm1, %v2785_v48, %v2790_v49 }
  0xe4   : > { %24184 = vst [vmem:[#allocation280_spill] sm:$0xff] %v17675_v2  ;;  %24185 = vst [vmem:[#allocation281_spill] sm:$0xff] %v17679_v30  ;;  %v2806_v50 = vshll.u32 %v17661_v60, 16  ;;  %v2809_v32 = vshrl.u32 %v17661_v60, 16  ;;  %v17705_v57 = vsel %vm15915_vm1, %v2793_v13, %v2798_v34  ;;  %v2814_v7 = vshll.u32 %v17667_v41, 16 }
  0xe5   : > { %24186 = vst [vmem:[#allocation282_spill] sm:$0xff] %v17686_v28  ;;  %24187 = vst [vmem:[#allocation283_spill] sm:$0xff] %v17692_v37  ;;  %v3315_v1 = vcombine.low %v3307_v10, %v3314_v19  ;;  %v2817_v23 = vshrl.u32 %v17667_v41, 16  ;;  %v2822_v2 = vshll.u32 %v17679_v30, 16  ;;  %v2825_v10 = vshrl.u32 %v17679_v30, 16 }
  0xe6   : > { %24188 = vst [vmem:[#allocation284_spill] sm:$0xff] %v17699_v5  ;;  %24189 = vst [vmem:[#allocation285_spill] sm:$0xff] %v17705_v57  ;;  %v17713_v49 = vsel %vm15915_vm1, %v2801_v54, %v2806_v50  ;;  %v2830_v48 = vshll.u32 %v17686_v28, 16  ;;  %v2833_v13 = vshrl.u32 %v17686_v28, 16  ;;  %v17720_v34 = vsel %vm15915_vm1, %v2809_v32, %v2814_v7 }
  0xe7   : > { %14869 = vmatmul.mubr.msk.bf16.gmra.mxu0 %vm3919_vm2, %v3315_v1  ;;  %24190 = vst [vmem:[#allocation286_spill] sm:$0xff] %v17713_v49  ;;  %24191 = vst [vmem:[#allocation287_spill] sm:$0xff] %v17720_v34  ;;  %v17724_v19 = vsel %vm15915_vm1, %v2817_v23, %v2822_v2  ;;  %v2838_v1 = vshll.u32 %v17671_v0, 16  ;;  %v3806_v50 = vcombine.low %v17692_v37, %v17699_v5 }
  0xe8   : > { %24192 = vst [vmem:[#allocation288_spill] sm:$0xff] %v17724_v19  ;;  %14872 = vmatprep.mubr.msk.bf16.mxu0 %vm15764_vm4, %v23936_v59  ;;  %v17733_v54 = vsel %vm15915_vm1, %v2825_v10, %v2830_v48  ;;  %v3807_v32 = vcombine.low %v17705_v57, %v17713_v49  ;;  %v3808_v2 = vcombine.low %v17720_v34, %v17724_v19  ;;  %v14179_v23 = vld.sshfl [vmem:[%s15868_s7 + $0x58] sm:$0x33 pattern:$0x75316420]  ;;  %v2128_v49 = vshrl.u32 %v17550_v18, 16 }
  0xe9   : > { %24193 = vst [vmem:[#allocation289_spill] sm:$0xff] %v17733_v54  ;;  %v17744_v28 = vsel %vm15915_vm1, %v2833_v13, %v2838_v1  ;;  %v17747_v30 = vrot.slane %v3806_v50, %v15871_v8  ;;  %v14180_v1 = vld.sshfl [vmem:[%s15868_s7 + $0x5c] sm:$0x11 pattern:$0x75316420]  ;;  %v17768_v10 = vcombine.high %v17545_v56, %v17545_v56  ;;  %v17772_v48 = vcombine.high %v17550_v18, %v17550_v18 }
  0xea   : > { %24194 = vst [vmem:[#allocation290_spill] sm:$0xff] %v17744_v28  ;;  %v3809_v40 = vcombine.low %v17733_v54, %v17744_v28  ;;  %v17756_v60 = vrot.slane %v3807_v32, %v15871_v8  ;;  %v17759_v7 = vrot.slane %v3808_v2, %v15871_v8  ;;  %v797_v32 = vcombine.high %v14179_v23, %v14179_v23 }
  0xeb   : > { %24195 = vst [vmem:[#allocation291_spill] sm:$0xff] %v17747_v30  ;;  %24198 = vst [vmem:[#allocation294_spill] sm:$0xff] %v17768_v10  ;;  %v17782_v50 = vrot.slane %v14179_v23, %v15871_v8  ;;  %v17788_v54 = vrot.slane %v14180_v1, %v15871_v8  ;;  %v1505_v19 = vcombine.high %v14180_v1, %v14180_v1  ;;  %v2133_v23 = vshll.u32 %v17768_v10, 16 }
  0xec   : > { %24196 = vst [vmem:[#allocation292_spill] sm:$0xff] %v17756_v60  ;;  %24197 = vst [vmem:[#allocation293_spill] sm:$0xff] %v17759_v7  ;;  %v17775_v34 = vrot.slane %v3809_v40, %v15871_v8  ;;  %v3838_v2 = vcombine.low %v17747_v30, %v17756_v60  ;;  %v17785_v31 = vrot.slane %v797_v32, %v15871_v8  ;;  %v2136_v1 = vshrl.u32 %v17768_v10, 16 }
  0xed   : > { %24199 = vst [vmem:[#allocation295_spill] sm:$0xff] %v17772_v48  ;;  %24201 = vst [vmem:[#allocation297_spill] sm:$0xff] %v17782_v50  ;;  %v17796_v13 = vcombine.high %v17782_v50, %v17782_v50  ;;  %v17804_v60 = vrot.slane %v1505_v19, %v15871_v8  ;;  %v2141_v57 = vshll.u32 %v17772_v48, 16  ;;  %v2144_v5 = vshrl.u32 %v17772_v48, 16 }
  0xee   : > { %24200 = vst [vmem:[#allocation296_spill] sm:$0xff] %v17775_v34  ;;  %24202 = vst [vmem:[#allocation298_spill] sm:$0xff] %v17785_v31  ;;  %v3839_v40 = vcombine.low %v17759_v7, %v17775_v34  ;;  %v3846_v30 = vrot.slane %v3838_v2, %v15871_v8  ;;  %v17801_v32 = vcombine.high %v17785_v31, %v17785_v31  ;;  %v2149_v37 = vshll.u32 %v17782_v50, 16 }
  0xef   : > { %24203 = vst [vmem:[#allocation299_spill] sm:$0xff] %v17788_v54  ;;  %24204 = vst [vmem:[#allocation300_spill] sm:$0xff] %v17796_v13  ;;  %v17811_v2 = vsel %vm15915_vm1, %v2128_v49, %v2133_v23  ;;  %v17817_v62 = vsel %vm15915_vm1, %v2136_v1, %v2141_v57  ;;  %v2152_v19 = vshrl.u32 %v17782_v50, 16  ;;  %v2157_v41 = vshll.u32 %v17785_v31, 16 }
  0xf0   : > { %24205 = vst [vmem:[#allocation301_spill] sm:$0xff] %v17801_v32  ;;  %24206 = vst [vmem:[#allocation302_spill] sm:$0xff] %v17804_v60  ;;  %v3853_v7 = vrot.slane %v3839_v40, %v15871_v8  ;;  %v2160_v18 = vshrl.u32 %v17785_v31, 16  ;;  %v17824_v40 = vsel %vm15915_vm1, %v2144_v5, %v2149_v37  ;;  %v2165_v49 = vshll.u32 %v17796_v13, 16 }
  0xf1   : > { %24207 = vst [vmem:[#allocation303_spill] sm:$0xff] %v17811_v2  ;;  %24208 = vst [vmem:[#allocation304_spill] sm:$0xff] %v17817_v62  ;;  %v2168_v23 = vshrl.u32 %v17796_v13, 16  ;;  %v17830_v57 = vsel %vm15915_vm1, %v2152_v19, %v2157_v41  ;;  %v2173_v1 = vshll.u32 %v17801_v32, 16  ;;  %v2176_v48 = vshrl.u32 %v17801_v32, 16 }
  0xf2   : > { %v3854_v10 = vcombine.low %v3846_v30, %v3853_v7  ;;  %24209 = vst [vmem:[#allocation305_spill] sm:$0xff] %v17824_v40  ;;  %24210 = vst [vmem:[#allocation306_spill] sm:$0xff] %v17830_v57  ;;  %v2181_v31 = vshll.u32 %v17788_v54, 16  ;;  %v17838_v37 = vsel %vm15915_vm1, %v2160_v18, %v2165_v49  ;;  %v2184_v30 = vshrl.u32 %v17788_v54, 16 }
  0xf3   : > { %24211 = vst [vmem:[#allocation307_spill] sm:$0xff] %v17838_v37  ;;  %v2189_v5 = vshll.u32 %v17804_v60, 16  ;;  %v3316_v41 = vcombine.low %v17811_v2, %v17817_v62  ;;  %v17848_v7 = vsel %vm15915_vm1, %v2168_v23, %v2173_v1  ;;  %v3317_v18 = vcombine.low %v17824_v40, %v17830_v57  ;;  %v14208_v49 = vld.sshfl [vmem:[%s15868_s7 + $0xcc] sm:$0x33 pattern:$0x75316420] }
  0xf4   : > { %14913 = vmatmul.mubr.msk.bf16.gmra.mxu1 %vm3919_vm2, %v3854_v10  ;;  %24212 = vst [vmem:[#allocation308_spill] sm:$0xff] %v17848_v7  ;;  %v17852_v10 = vsel %vm15915_vm1, %v2176_v48, %v2181_v31  ;;  %v3318_v32 = vcombine.low %v17838_v37, %v17848_v7  ;;  %v14209_v48 = vld.sshfl [vmem:[%s15868_s7 + $0xd0] sm:$0x33 pattern:$0x75316420]  ;;  %v1393_v31 = vcombine.high %v14208_v49, %v14208_v49 }
  0xf5   : > { %14916 = vmatprep.mubr.msk.bf16.mxu1 %vm15764_vm4, %v23936_v59  ;;  %24213 = vst [vmem:[#allocation309_spill] sm:$0xff] %v17852_v10  ;;  %v17861_v60 = vsel %vm15915_vm1, %v2184_v30, %v2189_v5  ;;  %v17866_v23 = vrot.slane %v3316_v41, %v15871_v8  ;;  %v17874_v19 = vrot.slane %v3317_v18, %v15871_v8 }
  0xf6   : > { %24214 = vst [vmem:[#allocation310_spill] sm:$0xff] %v17861_v60  ;;  %v3319_v1 = vcombine.low %v17852_v10, %v17861_v60  ;;  %v17881_v2 = vrot.slane %v3318_v32, %v15871_v8  ;;  %v17886_v40 = vrot.slane %v14208_v49, %v15871_v8  ;;  %v1417_v30 = vcombine.high %v14209_v48, %v14209_v48 }
  0xf7   : > { %24215 = vst [vmem:[#allocation311_spill] sm:$0xff] %v17866_v23  ;;  %24216 = vst [vmem:[#allocation312_spill] sm:$0xff] %v17874_v19  ;;  %v3348_v18 = vcombine.low %v17866_v23, %v17874_v19  ;;  %v17894_v37 = vrot.slane %v14209_v48, %v15871_v8  ;;  %v17899_v5 = vrot.slane %v1393_v31, %v15871_v8 }
  0xf8   : > { %24217 = vst [vmem:[#allocation313_spill] sm:$0xff] %v17881_v2  ;;  %24218 = vst [vmem:[#allocation314_spill] sm:$0xff] %v17886_v40  ;;  %v17889_v62 = vrot.slane %v3319_v1, %v15871_v8  ;;  %v17903_v49 = vcombine.high %v17886_v40, %v17886_v40  ;;  %v1577_v1 = vcombine.high %v17639_v4, %v17639_v4  ;;  %v2841_v4 = vshrl.u32 %v17671_v0, 16 }
  0xf9   : > { %24220 = vst [vmem:[#allocation316_spill] sm:$0xff] %v17894_v37  ;;  %24221 = vst [vmem:[#allocation317_spill] sm:$0xff] %v17899_v5  ;;  %v3356_v23 = vrot.slane %v3348_v18, %v15871_v8  ;;  %v17911_v48 = vrot.slane %v1417_v30, %v15871_v8  ;;  %v17915_v32 = vcombine.high %v17894_v37, %v17894_v37  ;;  %v2855_v36 = vshll.u32 %v17899_v5, 16 }
  0xfa   : > { %24219 = vst [vmem:[#allocation315_spill] sm:$0xff] %v17889_v62  ;;  %24222 = vst [vmem:[#allocation318_spill] sm:$0xff] %v17903_v49  ;;  %v3349_v41 = vcombine.low %v17881_v2, %v17889_v62  ;;  %v17919_v31 = vcombine.high %v17899_v5, %v17899_v5  ;;  %v17922_v19 = vrot.slane %v1577_v1, %v15871_v8  ;;  %v2850_v2 = vshrl.u32 %v17886_v40, 16 }
  0xfb   : > { %24223 = vst [vmem:[#allocation319_spill] sm:$0xff] %v17911_v48  ;;  %24224 = vst [vmem:[#allocation320_spill] sm:$0xff] %v17915_v32  ;;  %v17929_v30 = vcombine.high %v17911_v48, %v17911_v48  ;;  %v2858_v10 = vshrl.u32 %v17899_v5, 16  ;;  %v2863_v57 = vshll.u32 %v17903_v49, 16  ;;  %v2866_v1 = vshrl.u32 %v17903_v49, 16 }
  0xfc   : > { %24225 = vst [vmem:[#allocation321_spill] sm:$0xff] %v17919_v31  ;;  %24226 = vst [vmem:[#allocation322_spill] sm:$0xff] %v17922_v19  ;;  %v3363_v18 = vrot.slane %v3349_v41, %v15871_v8  ;;  %v2846_v7 = vshll.u32 %v17922_v19, 16  ;;  %v2871_v16 = vshll.u32 %v17919_v31, 16  ;;  %v17939_v41 = vsel %vm15915_vm1, %v2850_v2, %v2855_v36 }
  0xfd   : > { %24227 = vst [vmem:[#allocation323_spill] sm:$0xff] %v17929_v30  ;;  %24228 = vst [vmem:[#allocation324_spill] sm:$0xff] %v17939_v41  ;;  %v2874_v40 = vshrl.u32 %v17919_v31, 16  ;;  %v2879_v54 = vshll.u32 %v17894_v37, 16  ;;  %v17949_v19 = vsel %vm15915_vm1, %v2858_v10, %v2863_v57  ;;  %v2882_v36 = vshrl.u32 %v17894_v37, 16 }
  0xfe   : > { %v3364_v0 = vcombine.low %v3356_v23, %v3363_v18  ;;  %v17945_v5 = vsel %vm15915_vm1, %v2841_v4, %v2846_v7  ;;  %24230 = vst [vmem:[#allocation326_spill] sm:$0xff] %v17949_v19  ;;  %v17953_v23 = vsel %vm15915_vm1, %v2866_v1, %v2871_v16  ;;  %v2887_v18 = vshll.u32 %v17911_v48, 16 }
  0xff   : > { %24229 = vst [vmem:[#allocation325_spill] sm:$0xff] %v17945_v5  ;;  %24231 = vst [vmem:[#allocation327_spill] sm:$0xff] %v17953_v23  ;;  %v17959_v2 = vsel %vm15915_vm1, %v2874_v40, %v2879_v54  ;;  %v2890_v7 = vshrl.u32 %v17911_v48, 16  ;;  %v2895_v57 = vshll.u32 %v17915_v32, 16  ;;  %v2898_v10 = vshrl.u32 %v17915_v32, 16 }
 0x100   : > { %14873 = vmatmul.mubr.msk.bf16.gmra.mxu0 %vm3919_vm2, %v3364_v0  ;;  %24232 = vst [vmem:[#allocation328_spill] sm:$0xff] %v17959_v2  ;;  %v2903_v16 = vshll.u32 %v17929_v30, 16  ;;  %v3855_v4 = vcombine.low %v17945_v5, %v17939_v41  ;;  %v3856_v0 = vcombine.low %v17949_v19, %v17953_v23  ;;  %v14181_v54 = vld.sshfl [vmem:[%s15868_s7 + $0x60] sm:$0x33 pattern:$0x75316420]  ;;  %v17975_v40 = vsel %vm15915_vm1, %v2882_v36, %v2887_v18 }
 0x101   : > { %14876 = vmatprep.mubr.msk.bf16.mxu0 %vm15764_vm4, %v23936_v59  ;;  %24233 = vst [vmem:[#allocation329_spill] sm:$0xff] %v17975_v40  ;;  %v17979_v1 = vsel %vm15915_vm1, %v2890_v7, %v2895_v57  ;;  %v3857_v37 = vcombine.low %v17959_v2, %v17975_v40  ;;  %v14182_v7 = vld.sshfl [vmem:[%s15868_s7 + $0x64] sm:$0x33 pattern:$0x75316420]  ;;  %v835_v48 = vcombine.high %v14181_v54, %v14181_v54 }
 0x102   : > { %24234 = vst [vmem:[#allocation330_spill] sm:$0xff] %v17979_v1  ;;  %v17987_v31 = vsel %vm15915_vm1, %v2898_v10, %v2903_v16  ;;  %v17992_v36 = vrot.slane %v3855_v4, %v15871_v8  ;;  %v17995_v18 = vrot.slane %v3856_v0, %v15871_v8  ;;  %v18005_v16 = vld.sshfl [vmem:[%s15868_s7 + $0x68] sm:$0x11 pattern:$0x75316420]  ;;  %v18015_v41 = vrot.slane %v14181_v54, %v15871_v8 }
 0x103   : > { %24235 = vst [vmem:[#allocation331_spill] sm:$0xff] %v17987_v31  ;;  %v3858_v57 = vcombine.low %v17979_v1, %v17987_v31  ;;  %v18008_v19 = vrot.slane %v3857_v37, %v15871_v8  ;;  %v18021_v10 = vrot.slane %v835_v48, %v15871_v8  ;;  %v859_v1 = vcombine.high %v14182_v7, %v14182_v7 }
 0x104   : > { %24236 = vst [vmem:[#allocation332_spill] sm:$0xff] %v17992_v36  ;;  %24237 = vst [vmem:[#allocation333_spill] sm:$0xff] %v17995_v18  ;;  %v3887_v4 = vcombine.low %v17992_v36, %v17995_v18  ;;  %v18024_v40 = vrot.slane %v14182_v7, %v15871_v8  ;;  %v18031_v0 = vcombine.high %v18015_v41, %v18015_v41  ;;  %v2193_v2 = vshrl.u32 %v18015_v41, 16 }
 0x105   : > { %24238 = vst [vmem:[#allocation334_spill] sm:$0xff] %v18008_v19  ;;  %24239 = vst [vmem:[#allocation335_spill] sm:$0xff] %v18015_v41  ;;  %v18018_v32 = vrot.slane %v3858_v57, %v15871_v8  ;;  %v18035_v54 = vrot.slane %v18005_v16, %v15871_v8  ;;  %v18041_v7 = vcombine.high %v18021_v10, %v18021_v10  ;;  %v2198_v18 = vshll.u32 %v18021_v10, 16 }
 0x106   : > { %24241 = vst [vmem:[#allocation337_spill] sm:$0xff] %v18021_v10  ;;  %v3895_v37 = vrot.slane %v3887_v4, %v15871_v8  ;;  %24242 = vst [vmem:[#allocation338_spill] sm:$0xff] %v18031_v0  ;;  %v18044_v57 = vrot.slane %v859_v1, %v15871_v8  ;;  %v18048_v4 = vcombine.high %v18024_v40, %v18024_v40  ;;  %v2201_v36 = vshrl.u32 %v18021_v10, 16 }
 0x107   : > { %24240 = vst [vmem:[#allocation336_spill] sm:$0xff] %v18018_v32  ;;  %24243 = vst [vmem:[#allocation339_spill] sm:$0xff] %v18035_v54  ;;  %v3888_v48 = vcombine.low %v18008_v19, %v18018_v32  ;;  %v2206_v34 = vshll.u32 %v18031_v0, 16  ;;  %v2209_v1 = vshrl.u32 %v18031_v0, 16  ;;  %v2214_v5 = vshll.u32 %v18041_v7, 16 }
 0x108   : > { %24244 = vst [vmem:[#allocation340_spill] sm:$0xff] %v18041_v7  ;;  %24245 = vst [vmem:[#allocation341_spill] sm:$0xff] %v18048_v4  ;;  %v18057_v23 = vcombine.high %v18044_v57, %v18044_v57  ;;  %v18063_v28 = vsel %vm15915_vm1, %v2193_v2, %v2198_v18  ;;  %v2217_v41 = vshrl.u32 %v18041_v7, 16  ;;  %v2225_v0 = vshrl.u32 %v18024_v40, 16 }
 0x109   : > { %v3902_v19 = vrot.slane %v3888_v48, %v15871_v8  ;;  %24247 = vst [vmem:[#allocation343_spill] sm:$0xff] %v18063_v28  ;;  %v18067_v49 = vsel %vm15915_vm1, %v2201_v36, %v2206_v34  ;;  %v2222_v48 = vshll.u32 %v18024_v40, 16  ;;  %v18073_v13 = vsel %vm15915_vm1, %v2209_v1, %v2214_v5 }
 0x10a   : > { %24246 = vst [vmem:[#allocation342_spill] sm:$0xff] %v18057_v23  ;;  %24248 = vst [vmem:[#allocation344_spill] sm:$0xff] %v18067_v49  ;;  %v2230_v50 = vshll.u32 %v18044_v57, 16  ;;  %v2233_v34 = vshrl.u32 %v18044_v57, 16  ;;  %v2238_v36 = vshll.u32 %v18048_v4, 16  ;;  %v2241_v18 = vshrl.u32 %v18048_v4, 16 }
 0x10b   : > { %v3903_v10 = vcombine.low %v3895_v37, %v3902_v19  ;;  %24249 = vst [vmem:[#allocation345_spill] sm:$0xff] %v18073_v13  ;;  %v18079_v2 = vsel %vm15915_vm1, %v2217_v41, %v2222_v48  ;;  %v2246_v5 = vshll.u32 %v18057_v23, 16  ;;  %v2249_v37 = vshrl.u32 %v18057_v23, 16 }
 0x10c   : > { %24250 = vst [vmem:[#allocation346_spill] sm:$0xff] %v18079_v2  ;;  %v18087_v19 = vsel %vm15915_vm1, %v2225_v0, %v2230_v50  ;;  %v2254_v1 = vshll.u32 %v18035_v54, 16  ;;  %v18096_v41 = vsel %vm15915_vm1, %v2233_v34, %v2238_v36  ;;  %v3366_v50 = vcombine.low %v18073_v13, %v18079_v2  ;;  %v14210_v48 = vld.sshfl [vmem:[%s15868_s7 + $0xd4] sm:$0x11 pattern:$0x75316420] }
 0x10d   : > { %14917 = vmatmul.mubr.msk.bf16.gmra.mxu1 %vm3919_vm2, %v3903_v10  ;;  %24251 = vst [vmem:[#allocation347_spill] sm:$0xff] %v18087_v19  ;;  %24252 = vst [vmem:[#allocation348_spill] sm:$0xff] %v18096_v41  ;;  %v3365_v10 = vcombine.low %v18063_v28, %v18067_v49  ;;  %v18107_v23 = vsel %vm15915_vm1, %v2241_v18, %v2246_v5  ;;  %v3367_v34 = vcombine.low %v18087_v19, %v18096_v41  ;;  %v14474_v36 = vld.sshfl [vmem:[%s15868_s7 + $0xd8] sm:$0x33 pattern:$0x75316420] }
 0x10e   : > { %14920 = vmatprep.mubr.msk.bf16.mxu1 %vm15764_vm4, %v23936_v59  ;;  %24253 = vst [vmem:[#allocation349_spill] sm:$0xff] %v18107_v23  ;;  %v18111_v4 = vsel %vm15915_vm1, %v2249_v37, %v2254_v1  ;;  %v18123_v18 = vrot.slane %v3366_v50, %v15871_v8  ;;  %v18134_v13 = vrot.slane %v14210_v48, %v15871_v8 }
 0x10f   : > { %v3368_v7 = vcombine.low %v18107_v23, %v18111_v4  ;;  %v18120_v0 = vrot.slane %v3365_v10, %v15871_v8  ;;  %v18128_v37 = vrot.slane %v3367_v34, %v15871_v8  ;;  %v1585_v49 = vcombine.high %v14210_v48, %v14210_v48 }
 0x110   : > { %24255 = vst [vmem:[#allocation351_spill] sm:$0xff] %v18123_v18  ;;  %24257 = vst [vmem:[#allocation353_spill] sm:$0xff] %v18134_v13  ;;  %v2906_v34 = vshrl.u32 %v17929_v30, 16  ;;  %v2911_v23 = vshll.u32 %v18134_v13, 16  ;;  %v2914_v48 = vshrl.u32 %v18134_v13, 16  ;;  %v6762_v28 = vcombine.high %v14474_v36, %v14474_v36 }
 0x111   : > { %24254 = vst [vmem:[#allocation350_spill] sm:$0xff] %v18120_v0  ;;  %24256 = vst [vmem:[#allocation352_spill] sm:$0xff] %v18128_v37  ;;  %v18137_v10 = vrot.slane %v3368_v7, %v15871_v8  ;;  %v3397_v50 = vcombine.low %v18120_v0, %v18123_v18  ;;  %v18147_v1 = vrot.slane %v1585_v49, %v15871_v8  ;;  %v14184_v7 = vld.sshfl [vmem:[%s15868_s7 + $0x6c] sm:$0x33 pattern:$0x75316420] }
 0x112   : > { %v18156_v5 = vrot.slane %v14474_v36, %v15871_v8  ;;  %v18160_v19 = vsel %vm15915_vm1, %v2906_v34, %v2911_v23  ;;  %v18165_v0 = vrot.slane %v6762_v28, %v15871_v8  ;;  %v897_v62 = vcombine.high %v14184_v7, %v14184_v7 }
 0x113   : > { %24258 = vst [vmem:[#allocation354_spill] sm:$0xff] %v18137_v10  ;;  %24259 = vst [vmem:[#allocation355_spill] sm:$0xff] %v18147_v1  ;;  %v3398_v41 = vcombine.low %v18128_v37, %v18137_v10  ;;  %v3405_v2 = vrot.slane %v3397_v50, %v15871_v8  ;;  %v2919_v49 = vshll.u32 %v18147_v1, 16  ;;  %v18182_v60 = vrot.slane %v14184_v7, %v15871_v8 }
 0x114   : > { %24260 = vst [vmem:[#allocation356_spill] sm:$0xff] %v18156_v5  ;;  %24261 = vst [vmem:[#allocation357_spill] sm:$0xff] %v18160_v19  ;;  %v18173_v36 = vcombine.high %v18156_v5, %v18156_v5  ;;  %v7482_v50 = vshrl.u32 %v18156_v5, 16  ;;  %v7487_v28 = vshll.u32 %v18165_v0, 16  ;;  %v2306_v1 = vshrl.u32 %v15969_v3, 16 }
 0x115   : > { %v3412_v18 = vrot.slane %v3398_v41, %v15871_v8  ;;  %24262 = vst [vmem:[#allocation358_spill] sm:$0xff] %v18165_v0  ;;  %v18169_v37 = vsel %vm15915_vm1, %v2914_v48, %v2919_v49  ;;  %v7490_v48 = vshrl.u32 %v18165_v0, 16 }
 0x116   : > { %24263 = vst [vmem:[#allocation359_spill] sm:$0xff] %v18169_v37  ;;  %24264 = vst [vmem:[#allocation360_spill] sm:$0xff] %v18173_v36  ;;  %v3904_v41 = vcombine.low %v18160_v19, %v18169_v37  ;;  %v7495_v49 = vshll.u32 %v18173_v36, 16 }
 0x117   : > { %v3413_v34 = vcombine.low %v3405_v2, %v3412_v18  ;;  %v18192_v2 = vsel %vm15915_vm1, %v7482_v50, %v7487_v28  ;;  %v18197_v18 = vrot.slane %v897_v62, %v15871_v8  ;;  %v18209_v50 = vcombine.high %v18182_v60, %v18182_v60  ;;  %v15669_v28 = vld.sshfl [vmem:[%s15868_s7 + $0x70] sm:$0x33 pattern:$0x75316420] }
 0x118   : > { %v18188_v5 = vrot.slane %v3904_v41, %v15871_v8  ;;  %24266 = vst [vmem:[#allocation362_spill] sm:$0xff] %v18192_v2  ;;  %v18203_v23 = vsel %vm15915_vm1, %v7490_v48, %v7495_v49  ;;  %v18220_v48 = vrot.slane %v15669_v28, %v15871_v8  ;;  %v1513_v49 = vcombine.high %v18005_v16, %v18005_v16 }
 0x119   : > { %14877 = vmatmul.mubr.msk.bf16.gmra.mxu0 %vm3919_vm2, %v3413_v34  ;;  %24267 = vst [vmem:[#allocation363_spill] sm:$0xff] %v18203_v23  ;;  %v18216_v62 = vcombine.high %v18197_v18, %v18197_v18  ;;  %v2257_v34 = vshrl.u32 %v18035_v54, 16  ;;  %v2266_v41 = vshrl.u32 %v18182_v60, 16  ;;  %v2274_v28 = vshrl.u32 %v18197_v18, 16 }
 0x11a   : > { %24265 = vst [vmem:[#allocation361_spill] sm:$0xff] %v18188_v5  ;;  %14880 = vmatprep.mubr.msk.bf16.mxu0 %vm15764_vm4, %v23936_v59  ;;  %v3918_v7 = vrot.slane %v18188_v5, %v15871_v8  ;;  %v18231_v5 = vcombine.high %v18220_v48, %v18220_v48  ;;  %v18234_v32 = vrot.slane %v1513_v49, %v15871_v8  ;;  %v2279_v16 = vshll.u32 %v18209_v50, 16 }
 0x11b   : > { %v2282_v37 = vshrl.u32 %v18209_v50, 16  ;;  %v2287_v2 = vshll.u32 %v18216_v62, 16  ;;  %v2290_v36 = vshrl.u32 %v18216_v62, 16  ;;  %v2295_v19 = vshll.u32 %v18220_v48, 16 }
 0x11c   : > { %14921 = vmatmul.mubr.msk.bf16.gmra.mxu1 %vm3919_vm2, %v3918_v7  ;;  %v2271_v7 = vshll.u32 %v18197_v18, 16  ;;  %24268 = vst [vmem:[#allocation364_spill] sm:$0xff] %v18234_v32  ;;  %v2262_v0 = vshll.u32 %v18234_v32, 16  ;;  %v18248_v49 = vsel %vm15915_vm1, %v2274_v28, %v2279_v16  ;;  %v2298_v31 = vshrl.u32 %v18220_v48, 16 }
 0x11d   : > { %14926 = vmatprep.mubr.msk.bf16.mxu1 %vm15764_vm4, %v23936_v59  ;;  %v2311_v30 = vshll.u32 %v18231_v5, 16  ;;  %v18265_v28 = vsel %vm15915_vm1, %v2290_v36, %v2295_v19  ;;  %v2314_v16 = vshrl.u32 %v18231_v5, 16  ;;  %v2319_v32 = vshll.u32 %v15983_v12, 16  ;;  %v18281_v19 = vpop.f32.mrf.mxu0  ;;  %v18283_v36 = vpop.f32.mrf.mxu1 }
 0x11e   : > { %v18240_v23 = vsel %vm15915_vm1, %v2266_v41, %v2271_v7  ;;  %v18254_v41 = vsel %vm15915_vm1, %v2282_v37, %v2287_v2  ;;  %v2303_v7 = vshll.u32 %v15969_v3, 16  ;;  %v18261_v13 = vsel %vm15915_vm1, %v2257_v34, %v2262_v0  ;;  %24270 = vst [vmem:[#allocation366_spill] sm:$0xff] %v18265_v28  ;;  %24273 = vst [vmem:[#allocation369_spill] sm:$0xff] %v18281_v19 }
 0x11f   : > { %24269 = vst [vmem:[#allocation365_spill] sm:$0xff] %v18254_v41  ;;  %v18275_v2 = vsel %vm15915_vm1, %v2306_v1, %v2311_v30  ;;  %v3414_v0 = vcombine.low %v18261_v13, %v18240_v23  ;;  %v3415_v34 = vcombine.low %v18248_v49, %v18254_v41  ;;  %24274 = vst [vmem:[#allocation370_spill] sm:$0xff] %v18283_v36  ;;  %v14886_v26 = vpop.f32.mrf.mxu1 }
 0x120   : > { %v18271_v37 = vsel %vm15915_vm1, %v2298_v31, %v2303_v7  ;;  %24272 = vst [vmem:[#allocation368_spill] sm:$0xff] %v18275_v2  ;;  %v18287_v12 = vsel %vm15915_vm1, %v2314_v16, %v2319_v32  ;;  %v14842_v16 = vpop.f32.mrf.mxu0  ;;  %v4187_v30 = vcombine.low %v15882_v14, %v15897_v20  ;;  %v14395_v26 = vcombine.high %v15882_v14, %v15897_v20 }
 0x121   : > { %24271 = vst [vmem:[#allocation367_spill] sm:$0xff] %v18271_v37  ;;  %v3416_v31 = vcombine.low %v18265_v28, %v18271_v37  ;;  %v3417_v7 = vcombine.low %v18275_v2, %v18287_v12  ;;  %v18298_v19 = vrot.slane %v3414_v0, %v15871_v8  ;;  %v18301_v36 = vrot.slane %v3415_v34, %v15871_v8 }
 0x122   : > { %v14396_v1 = vcombine.high %v15888_v17, %v15909_v24  ;;  %v4197_v2 = vrot.slane %v4187_v30, %v15871_v8  ;;  %v4237_v30 = vcombine.low %v16099_v43, %v16103_v44 }
 0x123   : > { %24275 = vst [vmem:[#allocation371_spill] sm:$0xff] %v18298_v19  ;;  %24276 = vst [vmem:[#allocation372_spill] sm:$0xff] %v18301_v36  ;;  %v18306_v3 = vrot.slane %v3416_v31, %v15871_v8  ;;  %v18313_v0 = vrot.slane %v3417_v7, %v15871_v8  ;;  %v3446_v34 = vcombine.low %v18298_v19, %v18301_v36  ;;  %v14477_v31 = vld [vmem:[%s23175_s1 + $0x6] sm:$0x3] }
 0x124   : > { %v4189_v7 = vcombine.low %v15888_v17, %v15909_v24  ;;  %v4204_v19 = vrot.slane %v14395_v26, %v15871_v8  ;;  %v4218_v37 = vrot.slane %v14396_v1, %v15871_v8  ;;  %v7230_v16 = vsel %vm3983_vm0, %v14477_v31, 0  ;;  %v18347_v26 = vpop.f32.mrf.mxu1 }
 0x125   : > { %24277 = vst [vmem:[#allocation373_spill] sm:$0xff] %v18306_v3  ;;  %24278 = vst [vmem:[#allocation374_spill] sm:$0xff] %v18313_v0  ;;  %v3447_v32 = vcombine.low %v18306_v3, %v18313_v0  ;;  %v3454_v14 = vrot.slane %v3446_v34, %v15871_v8  ;;  %v4236_v36 = vcombine.low %v15905_v22, %v16084_v35  ;;  %v18345_v3 = vpop.f32.mrf.mxu0 }
 0x126   : > { %v4211_v10 = vrot.slane %v4189_v7, %v15871_v8  ;;  %v4219_v41 = vcombine.low %v4197_v2, %v4204_v19  ;;  %v4238_v34 = vcombine.low %v16120_v52, %v16092_v39  ;;  %24279 = vst [vmem:[#allocation375_spill] sm:$0xff] %v18345_v3  ;;  %24280 = vst [vmem:[#allocation376_spill] sm:$0xff] %v18347_v26  ;;  %v14887_v3 = vpop.f32.mrf.mxu1 }
 0x127   : > { %v3461_v28 = vrot.slane %v3447_v32, %v15871_v8  ;;  %v4239_v1 = vcombine.low %v16106_v45, %v16113_v15  ;;  %v4246_v31 = vrot.slane %v4236_v36, %v15871_v8  ;;  %v5450_v32 = vcombine.low %v15897_v20, %v15901_v21  ;;  %v14843_v0 = vpop.f32.mrf.mxu0 }
 0x128   : > { %v4220_v7 = vcombine.low %v4211_v10, %v4218_v37  ;;  %v4227_v19 = vrot.slane %v4219_v41, %v15871_v8  ;;  %v4253_v44 = vrot.slane %v4237_v30, %v15871_v8  ;;  %v4260_v52 = vrot.slane %v4238_v34, %v15871_v8  ;;  %v18369_v36 = vpop.f32.mrf.mxu1 }
 0x129   : > { %v3462_v2 = vcombine.low %v3454_v14, %v3461_v28  ;;  %v4267_v10 = vrot.slane %v4239_v1, %v15871_v8  ;;  %v5451_v15 = vcombine.low %v15923_v29, %v15888_v17  ;;  %v5452_v37 = vcombine.low %v15909_v24, %v15913_v25  ;;  %v18367_v3 = vpop.f32.mrf.mxu0  ;;  %24281 = vst [vmem:[#allocation377_spill] sm:$0xff] %v18369_v36  ;;  %v24320_v36 = vld [vmem:[#allocation175_spill] sm:$0xff] }
 0x12a   : > { %v4234_v26 = vrot.slane %v4220_v7, %v15871_v8  ;;  %v4268_v20 = vcombine.low %v4246_v31, %v4253_v44  ;;  %v8860_v21 = vcombine.low %v4253_v44, %v4260_v52  ;;  %v5453_v41 = vcombine.low %v15930_v33, %v15905_v22  ;;  %v14890_v30 = vpop.f32.mrf.mxu1 }
 0x12b   : > { %14881 = vmatmul.mubr.msk.bf16.gmra.mxu0 %vm3919_vm2, %v3462_v2  ;;  %v5460_v28 = vrot.slane %v5450_v32, %v15871_v8  ;;  %v4269_v17 = vcombine.low %v4260_v52, %v4267_v10  ;;  %v5467_v24 = vrot.slane %v5451_v15, %v15871_v8  ;;  %v5474_v25 = vrot.slane %v5452_v37, %v15871_v8  ;;  %v14846_v33 = vpop.f32.mrf.mxu0 }
 0x12c   : > { %v4235_v0 = vcombine.low %v4227_v19, %v4234_v26  ;;  %15012 = vmatprep.mubr.msk.bf16.mxu0 %vm15764_vm4, %v23936_v59  ;;  %v4276_v29 = vrot.slane %v4268_v20, %v15871_v8  ;;  %v18377_v14 = vrot.slane %v8860_v21, %v15871_v8  ;;  %v5481_v22 = vrot.slane %v5453_v41, %v15871_v8 }
 0x12d   : > { %v4283_v34 = vrot.slane %v4269_v17, %v15871_v8  ;;  %v5482_v26 = vcombine.low %v5460_v28, %v5467_v24  ;;  %v4285_v7 = vcombine.low %v16124_v53, %v16299_v55  ;;  %v4286_v1 = vcombine.low %v16302_v47, %v16312_v38  ;;  %v14508_v53 = vld [vmem:[%s23175_s1 + $0x8] sm:$0x3]  ;;  %v18410_v41 = vpop.f32.mrf.mxu0  ;;  %v18412_v28 = vpop.f32.mrf.mxu1 }
 0x12e   : > { %24282 = vst [vmem:[#allocation378_spill] sm:$0xff] %v18377_v14  ;;  %14927 = vmatmul.mubr.msk.bf16.vlgmr.msra.gmra.mxu1 %vm3919_vm2, %v4235_v0  ;;  %v5483_v31 = vcombine.low %v5474_v25, %v5481_v22  ;;  %v14397_v32 = vcombine.high %v16302_v47, %v16312_v38  ;;  %v4288_v2 = vcombine.low %v16319_v6, %v16325_v42  ;;  %24283 = vst [vmem:[#allocation379_spill] sm:$0xff] %v18412_v28  ;;  %v24319_v28 = vld [vmem:[#allocation177_spill] sm:$0xff] }
 0x12f   : > { %15097 = vmatpush3.bf16.msra.mxu1 %v7230_v16  ;;  %14930 = vmatprep.mubr.msk.bf16.mxu1 %vm15764_vm4, %v23936_v59  ;;  %v4284_v19 = vcombine.low %v4276_v29, %v4283_v34  ;;  %v5490_v44 = vrot.slane %v5482_v26, %v15871_v8  ;;  %v4295_v52 = vrot.slane %v4285_v7, %v15871_v8  ;;  %v8615_v22 = vsel %vm3983_vm0, %v14508_v53, 0  ;;  %v14847_v30 = vpop.f32.mrf.mxu0  ;;  %v14891_v34 = vpop.f32.mrf.mxu1 }
 0x130   : > { %v18398_v16 = vrot.slane %v4286_v1, %v15871_v8  ;;  %15268 = vmatprep.subr.bf16.mxu1 %v23936_v59  ;;  %v5497_v15 = vrot.slane %v5483_v31, %v15871_v8  ;;  %v18403_v37 = vrot.slane %v14397_v32, %v15871_v8  ;;  %v18406_v20 = vrot.slane %v4288_v2, %v15871_v8 }
 0x131   : > { %v5499_v21 = vcombine.low %v16116_v51, %v16099_v43  ;;  %v8861_v17 = vcombine.low %v4267_v10, %v4295_v52  ;;  %v14435_v24 = vcombine.high %v16084_v35, %v16099_v43  ;;  %v5501_v25 = vcombine.low %v16092_v39, %v16106_v45 }
 0x132   : > { %v4317_v0 = vcombine.low %v4295_v52, %v18398_v16  ;;  %v5498_v29 = vcombine.low %v5490_v44, %v5497_v15  ;;  %v4318_v33 = vcombine.low %v18403_v37, %v18406_v20  ;;  %v14436_v51 = vcombine.high %v16092_v39, %v16106_v45  ;;  %v18434_v39 = vpop.f32.mrf.mxu0 }
 0x133   : > { %v18426_v10 = vrot.slane %v8861_v17, %v15871_v8  ;;  %v5509_v7 = vrot.slane %v5499_v21, %v15871_v8  ;;  %v5516_v1 = vrot.slane %v14435_v24, %v15871_v8  ;;  %v5523_v32 = vrot.slane %v5501_v25, %v15871_v8 }
 0x134   : > { %v4325_v26 = vrot.slane %v4317_v0, %v15871_v8  ;;  %15013 = vmatmul.mubr.msk.bf16.vlgmr.msra.gmra.mxu0 %vm3919_vm2, %v5498_v29  ;;  %v4332_v31 = vrot.slane %v4318_v33, %v15871_v8  ;;  %v5530_v2 = vrot.slane %v14436_v51, %v15871_v8  ;;  %v6819_v52 = vcombine.low %v16084_v35, %v16099_v43 }
 0x135   : > { %24284 = vst [vmem:[#allocation380_spill] sm:$0xff] %v18426_v10  ;;  %v18436_v45 = vpop.f32.mrf.mxu1  ;;  %15183 = vmatpush3.bf16.msra.mxu0 %v8615_v22  ;;  %v5531_v53 = vcombine.low %v5509_v7, %v5516_v1  ;;  %15016 = vmatprep.mubr.msk.bf16.mxu0 %vm15764_vm4, %v23936_v59  ;;  %v14398_v0 = vcombine.high %v16319_v6, %v16325_v42  ;;  %v24299_v10 = vld [vmem:[#allocation129_spill] sm:$0xff] }
 0x136   : > { %24285 = vst [vmem:[#allocation381_spill] sm:$0xff] %v18436_v45  ;;  %14931 = vmatmul.mubr.msk.bf16.gmra.mxu1 %vm3919_vm2, %v4284_v19  ;;  %v4333_v15 = vcombine.low %v4325_v26, %v4332_v31  ;;  %v5532_v21 = vcombine.low %v5523_v32, %v5530_v2  ;;  %v14850_v19 = vpop.f32.mrf.mxu0  ;;  %v6826_v25 = vrot.slane %v6819_v52, %v15871_v8  ;;  %v24289_v31 = vld [vmem:[#allocation58_spill] sm:$0xff]  ;;  %v24291_v52 = vld [vmem:[#allocation59_spill] sm:$0xff] }
 0x137   : > { %14934 = vmatprep.mubr.msk.bf16.mxu1 %vm15764_vm4, %v23936_v59  ;;  %v14894_v17 = vpop.f32.mrf.mxu1  ;;  %v5539_v24 = vrot.slane %v5531_v53, %v15871_v8  ;;  %v4335_v35 = vcombine.low %v16542_v61, %v16552_v63  ;;  %v4336_v43 = vcombine.low %v16555_v11, %v16565_v58  ;;  %15354 = vmatprep.subr.bf16.mxu0 %v23936_v59  ;;  %v24297_v53 = vld [vmem:[#allocation94_spill] sm:$0xff] }
 0x138   : > { %v18457_v29 = vrot.slane %v5532_v21, %v15871_v8  ;;  %v4337_v22 = vcombine.low %v16570_v46, %v16558_v9  ;;  %v18462_v33 = vrot.slane %v14398_v0, %v15871_v8  ;;  %v5548_v51 = vcombine.low %v16299_v55, %v16337_v27  ;;  %v18466_v30 = vpop.f32.mrf.mxu0 }
 0x139   : > { %v18468_v34 = vpop.f32.mrf.mxu1  ;;  %v6827_v26 = vcombine.low %v6826_v25, %v5516_v1  ;;  %v18471_v58 = vrot.slane %v4335_v35, %v15871_v8  ;;  %v18474_v7 = vrot.slane %v4336_v43, %v15871_v8  ;;  %v5549_v46 = vcombine.low %v16312_v38, %v24289_v31  ;;  %v24292_v25 = vld [vmem:[#allocation60_spill] sm:$0xff] }
 0x13a   : > { %24286 = vst [vmem:[#allocation382_spill] sm:$0xff] %v18468_v34  ;;  %v5547_v32 = vcombine.low %v5539_v24, %v18457_v29  ;;  %v18480_v2 = vrot.slane %v4337_v22, %v15871_v8  ;;  %v5550_v1 = vcombine.low %v24291_v52, %v16319_v6  ;;  %v14851_v21 = vpop.f32.mrf.mxu0  ;;  %v5551_v24 = vcombine.low %v16325_v42, %v24292_v25  ;;  %v24294_v52 = vld [vmem:[#allocation91_spill] sm:$0xff] }
 0x13b   : > { %24287 = vst [vmem:[#allocation383_spill] sm:$0xff] %v18471_v58  ;;  %24288 = vst [vmem:[#allocation384_spill] sm:$0xff] %v18474_v7  ;;  %v14895_v0 = vpop.f32.mrf.mxu1  ;;  %v18487_v19 = vrot.slane %v6827_v26, %v15871_v8  ;;  %v4366_v17 = vcombine.low %v18462_v33, %v18471_v58  ;;  %v5558_v43 = vrot.slane %v5548_v51, %v15871_v8  ;;  %v24298_v26 = vld [vmem:[#allocation130_spill] sm:$0xff] }
 0x13c   : > { %24290 = vst [vmem:[#allocation58_spill] sm:$0xff] %v18480_v2  ;;  %15017 = vmatmul.mubr.msk.bf16.gmra.mxu0 %vm3919_vm2, %v5547_v32  ;;  %v4367_v35 = vcombine.low %v18474_v7, %v18480_v2  ;;  %v5565_v6 = vrot.slane %v5549_v46, %v15871_v8  ;;  %v5572_v22 = vrot.slane %v5550_v1, %v15871_v8 }
 0x13d   : > { %15020 = vmatprep.mubr.msk.bf16.mxu0 %vm15764_vm4, %v23936_v59  ;;  %v4374_v42 = vrot.slane %v4366_v17, %v15871_v8  ;;  %v5579_v32 = vrot.slane %v5551_v24, %v15871_v8  ;;  %v5597_v1 = vcombine.low %v24294_v52, %v16542_v61  ;;  %v24296_v17 = vld [vmem:[#allocation128_spill] sm:$0xff]  ;;  %v4384_v14 = vcombine.low %v24299_v10, %v24298_v26 }
 0x13e   : > { %14935 = vmatmul.mubr.msk.bf16.gmra.mxu1 %vm3919_vm2, %v4333_v15  ;;  %v4381_v51 = vrot.slane %v4367_v35, %v15871_v8  ;;  %v5580_v46 = vcombine.low %v5558_v43, %v5565_v6  ;;  %v6836_v15 = vcombine.low %v16299_v55, %v16302_v47  ;;  %v11086_v44 = vcombine.low %v5565_v6, %v5572_v22  ;;  %v24303_v61 = vld [vmem:[#allocation132_spill] sm:$0xff] }
 0x13f   : > { %14938 = vmatprep.mubr.msk.bf16.mxu1 %vm15764_vm4, %v23936_v59  ;;  %v5581_v25 = vcombine.low %v5572_v22, %v5579_v32  ;;  %v4383_v24 = vcombine.low %v24297_v53, %v24296_v17  ;;  %v18523_v43 = vrot.slane %v5597_v1, %v15871_v8  ;;  %v24302_v17 = vld [vmem:[#allocation134_spill] sm:$0xff] }
 0x140   : > { %v4382_v27 = vcombine.low %v4374_v42, %v4381_v51  ;;  %v5588_v35 = vrot.slane %v5580_v46, %v15871_v8  ;;  %v6843_v52 = vrot.slane %v6836_v15, %v15871_v8  ;;  %v18532_v22 = vrot.slane %v11086_v44, %v15871_v8 }
 0x141   : > { %v4385_v10 = vcombine.low %v24303_v61, %v24302_v17  ;;  %v14399_v42 = vcombine.high %v24303_v61, %v24302_v17  ;;  %v11087_v46 = vcombine.low %v5579_v32, %v18523_v43  ;;  %v18540_v1 = vrot.slane %v4383_v24, %v15871_v8 }
 0x142   : > { %v18499_v31 = vpop.f32.mrf.mxu0  ;;  %24301 = vst [vmem:[#allocation128_spill] sm:$0xff] %v18532_v22  ;;  %v6844_v51 = vcombine.low %v6843_v52, %v5565_v6  ;;  %v18543_v15 = vrot.slane %v4384_v14, %v15871_v8  ;;  %v24309_v6 = vld [vmem:[#allocation95_spill] sm:$0xff]  ;;  %v24313_v22 = vld [vmem:[#allocation173_spill] sm:$0xff] }
 0x143   : > { %24293 = vst [vmem:[#allocation59_spill] sm:$0xff] %v18499_v31  ;;  %24304 = vst [vmem:[#allocation94_spill] sm:$0xff] %v18540_v1  ;;  %v18549_v38 = vrot.slane %v4385_v10, %v15871_v8  ;;  %v5598_v32 = vcombine.low %v24309_v6, %v16555_v11  ;;  %v18560_v14 = vrot.slane %v11087_v46, %v15871_v8  ;;  %v24314_v6 = vld [vmem:[#allocation133_spill] sm:$0xff] }
 0x144   : > { %v14854_v0 = vpop.f32.mrf.mxu0  ;;  %24305 = vst [vmem:[#allocation130_spill] sm:$0xff] %v18543_v15  ;;  %v18557_v24 = vrot.slane %v6844_v51, %v15871_v8  ;;  %v4415_v52 = vcombine.low %v18540_v1, %v18543_v15  ;;  %v14437_v51 = vcombine.high %v16552_v63, %v16555_v11  ;;  %v24339_v1 = vld [vmem:[#allocation219_spill] sm:$0xff] }
 0x145   : > { %v18529_v0 = vrot.slane %v5581_v25, %v15871_v8  ;;  %24307 = vst [vmem:[#allocation132_spill] sm:$0xff] %v18549_v38  ;;  %24310 = vst [vmem:[#allocation386_spill] sm:$0xff] %v18560_v14  ;;  %v6853_v14 = vcombine.low %v16552_v63, %v16555_v11  ;;  %v24317_v11 = vld [vmem:[#allocation174_spill] sm:$0xff] }
 0x146   : > { %v18526_v55 = vpop.f32.mrf.mxu0  ;;  %14939 = vmatmul.mubr.msk.bf16.gmra.mxu1 %vm3919_vm2, %v4382_v27  ;;  %v4423_v27 = vrot.slane %v4415_v52, %v15871_v8  ;;  %v18588_v46 = vrot.slane %v14437_v51, %v15871_v8  ;;  %v4432_v52 = vcombine.low %v24314_v6, %v24313_v22 }
 0x147   : > { %24300 = vst [vmem:[#allocation91_spill] sm:$0xff] %v18526_v55  ;;  %v5596_v44 = vcombine.low %v5588_v35, %v18529_v0  ;;  %14942 = vmatprep.mubr.msk.bf16.mxu1 %vm15764_vm4, %v23936_v59  ;;  %v18585_v35 = vrot.slane %v5598_v32, %v15871_v8  ;;  %v6860_v63 = vrot.slane %v6853_v14, %v15871_v8 }
 0x148   : > { %24312 = vst [vmem:[#allocation388_spill] sm:$0xff] %v18588_v46  ;;  %v18617_v15 = vrot.slane %v4432_v52, %v15871_v8 }
 0x149   : > { %15021 = vmatmul.mubr.msk.bf16.gmra.mxu0 %vm3919_vm2, %v5596_v44  ;;  %24311 = vst [vmem:[#allocation387_spill] sm:$0xff] %v18585_v35  ;;  %v5629_v32 = vcombine.low %v18523_v43, %v18585_v35  ;;  %v6861_v14 = vcombine.low %v18523_v43, %v6860_v63 }
 0x14a   : > { %15024 = vmatprep.mubr.msk.bf16.mxu0 %vm15764_vm4, %v23936_v59  ;;  %24321 = vst [vmem:[#allocation174_spill] sm:$0xff] %v18617_v15 }
 0x14f   : > { %v18515_v21 = vpop.f32.mrf.mxu1 }
 0x150   : > { %24295 = vst [vmem:[#allocation60_spill] sm:$0xff] %v18515_v21  ;;  %v18552_v21 = vrot.slane %v14399_v42, %v15871_v8 }
 0x151   : > { %v14898_v47 = vpop.f32.mrf.mxu1 }
 0x152   : > { %v14855_v47 = vpop.f32.mrf.mxu0  ;;  %24308 = vst [vmem:[#allocation385_spill] sm:$0xff] %v18552_v21  ;;  %v4416_v42 = vcombine.low %v18549_v38, %v18552_v21 }
 0x153   : > { %v18545_v25 = vpop.f32.mrf.mxu1  ;;  %v14438_v47 = vcombine.high %v16558_v9, %v24297_v53 }
 0x154   : > { %24306 = vst [vmem:[#allocation129_spill] sm:$0xff] %v18545_v25  ;;  %v4430_v44 = vrot.slane %v4416_v42, %v15871_v8  ;;  %v14400_v42 = vcombine.high %v24314_v6, %v24313_v22 }
 0x155   : > { %v14899_v10 = vpop.f32.mrf.mxu1 }
 0x156   : > { %v5600_v10 = vcombine.low %v16558_v9, %v24297_v53  ;;  %v4431_v25 = vcombine.low %v4423_v27, %v4430_v44  ;;  %v18606_v9 = vrot.slane %v14438_v47, %v15871_v8  ;;  %v24318_v53 = vld [vmem:[#allocation172_spill] sm:$0xff]  ;;  %v4435_v27 = vcombine.low %v24320_v36, %v24319_v28 }
 0x157   : > { %v4434_v45 = vcombine.low %v24318_v53, %v24317_v11  ;;  %v18620_v51 = vrot.slane %v14400_v42, %v15871_v8 }
 0x158   : > { %v18599_v34 = vrot.slane %v5600_v10, %v15871_v8  ;;  %24316 = vst [vmem:[#allocation133_spill] sm:$0xff] %v18606_v9  ;;  %v5637_v10 = vrot.slane %v5629_v32, %v15871_v8  ;;  %14943 = vmatmul.mubr.msk.bf16.gmra.mxu1 %vm3919_vm2, %v4431_v25  ;;  %v24326_v32 = vld [vmem:[#allocation136_spill] sm:$0xff] }
 0x159   : > { %24322 = vst [vmem:[#allocation177_spill] sm:$0xff] %v18620_v51  ;;  %v18628_v28 = vrot.slane %v4434_v45, %v15871_v8  ;;  %v4464_v42 = vcombine.low %v18617_v15, %v18620_v51  ;;  %v5647_v63 = vcombine.low %v24298_v26, %v24326_v32  ;;  %v18644_v45 = vrot.slane %v6861_v14, %v15871_v8  ;;  %v24328_v51 = vld [vmem:[#allocation137_spill] sm:$0xff]  ;;  %v24335_v15 = vld [vmem:[#allocation216_spill] sm:$0xff] }
 0x15a   : > { %24315 = vst [vmem:[#allocation173_spill] sm:$0xff] %v18599_v34  ;;  %v5630_v44 = vcombine.low %v18588_v46, %v18599_v34  ;;  %v18631_v46 = vrot.slane %v4435_v27, %v15871_v8  ;;  %14946 = vmatprep.mubr.msk.bf16.mxu1 %vm15764_vm4, %v23936_v59  ;;  %v24327_v27 = vld [vmem:[#allocation135_spill] sm:$0xff]  ;;  %v5649_v32 = vcombine.low %v24328_v51, %v24314_v6 }
 0x15b   : > { %v18622_v47 = vpop.f32.mrf.mxu0  ;;  %24324 = vst [vmem:[#allocation389_spill] sm:$0xff] %v18628_v28  ;;  %v4472_v43 = vrot.slane %v4464_v42, %v15871_v8  ;;  %v24333_v42 = vld [vmem:[#allocation212_spill] sm:$0xff] }
 0x15c   : > { %24323 = vst [vmem:[#allocation175_spill] sm:$0xff] %v18622_v47  ;;  %24325 = vst [vmem:[#allocation390_spill] sm:$0xff] %v18631_v46  ;;  %v18635_v52 = vrot.slane %v5630_v44, %v15871_v8  ;;  %v4465_v25 = vcombine.low %v18628_v28, %v18631_v46  ;;  %v5648_v44 = vcombine.low %v24302_v17, %v24327_v27  ;;  %v24336_v17 = vld [vmem:[#allocation215_spill] sm:$0xff] }
 0x15d   : > { %v14858_v35 = vpop.f32.mrf.mxu0  ;;  %v18671_v6 = vrot.slane %v5649_v32, %v15871_v8  ;;  %v24338_v32 = vld [vmem:[#allocation218_spill] sm:$0xff] }
 0x15e   : > { %v5645_v34 = vcombine.low %v5637_v10, %v18635_v52  ;;  %v18657_v35 = vrot.slane %v5647_v63, %v15871_v8  ;;  %v4479_v28 = vrot.slane %v4465_v25, %v15871_v8  ;;  %v18665_v21 = vrot.slane %v5648_v44, %v15871_v8  ;;  %v24334_v63 = vld [vmem:[#allocation179_spill] sm:$0xff] }
 0x15f   : > { %v18659_v14 = vpop.f32.mrf.mxu0  ;;  %v6870_v10 = vcombine.low %v24298_v26, %v24303_v61  ;;  %24332 = vst [vmem:[#allocation392_spill] sm:$0xff] %v18671_v6  ;;  %v4481_v27 = vcombine.low %v24334_v63, %v24333_v42  ;;  %v4482_v25 = vcombine.low %v24336_v17, %v24335_v15  ;;  %v24337_v26 = vld [vmem:[#allocation213_spill] sm:$0xff] }
 0x160   : > { %24329 = vst [vmem:[#allocation135_spill] sm:$0xff] %v18657_v35  ;;  %24330 = vst [vmem:[#allocation137_spill] sm:$0xff] %v18659_v14  ;;  %15025 = vmatmul.mubr.msk.bf16.gmra.mxu0 %vm3919_vm2, %v5645_v34  ;;  %v5678_v51 = vcombine.low %v18606_v9, %v18657_v35  ;;  %v4480_v44 = vcombine.low %v4472_v43, %v4479_v28  ;;  %v4483_v47 = vcombine.low %v24338_v32, %v24337_v26  ;;  %v24340_v15 = vld [vmem:[#allocation217_spill] sm:$0xff] }
 0x161   : > { %24331 = vst [vmem:[#allocation391_spill] sm:$0xff] %v18665_v21  ;;  %v14859_v14 = vpop.f32.mrf.mxu0  ;;  %15028 = vmatprep.mubr.msk.bf16.mxu0 %vm15764_vm4, %v23936_v59  ;;  %v6877_v61 = vrot.slane %v6870_v10, %v15871_v8  ;;  %v5679_v38 = vcombine.low %v18665_v21, %v18671_v6  ;;  %v18692_v2 = vrot.slane %v4481_v27, %v15871_v8  ;;  %v24346_v21 = vld [vmem:[#allocation176_spill] sm:$0xff]  ;;  %v24363_v6 = vld [vmem:[#allocation221_spill] sm:$0xff] }
 0x162   : > { %v5686_v63 = vrot.slane %v5678_v51, %v15871_v8  ;;  %v4484_v14 = vcombine.low %v24340_v15, %v24339_v1  ;;  %v18696_v43 = vrot.slane %v4482_v25, %v15871_v8  ;;  %v18699_v10 = vrot.slane %v4483_v47, %v15871_v8  ;;  %14947 = vmatmul.mubr.msk.bf16.gmra.mxu1 %vm3919_vm2, %v4480_v44 }
 0x163   : > { %24341 = vst [vmem:[#allocation212_spill] sm:$0xff] %v18692_v2  ;;  %v6878_v28 = vcombine.low %v18606_v9, %v6877_v61  ;;  %v14401_v32 = vcombine.high %v24340_v15, %v24339_v1  ;;  %v18705_v51 = vrot.slane %v5679_v38, %v15871_v8  ;;  %v24345_v61 = vld [vmem:[#allocation170_spill] sm:$0xff]  ;;  %14950 = vmatprep.mubr.msk.bf16.mxu1 %vm15764_vm4, %v23936_v59 }
 0x164   : > { %24342 = vst [vmem:[#allocation179_spill] sm:$0xff] %v18696_v43  ;;  %24343 = vst [vmem:[#allocation216_spill] sm:$0xff] %v18699_v10  ;;  %v18708_v34 = vrot.slane %v4484_v14, %v15871_v8  ;;  %v5695_v25 = vcombine.low %v24313_v22, %v24345_v61  ;;  %v4513_v44 = vcombine.low %v18692_v2, %v18696_v43 }
 0x165   : > { %v18715_v47 = vrot.slane %v6878_v28, %v15871_v8  ;;  %v5694_v14 = vcombine.low %v5686_v63, %v18705_v51  ;;  %v5696_v22 = vcombine.low %v24346_v21, %v24318_v53  ;;  %v24347_v28 = vld [vmem:[#allocation178_spill] sm:$0xff]  ;;  %v18734_v2 = vrot.slane %v14401_v32, %v15871_v8 }
 0x166   : > { %24344 = vst [vmem:[#allocation215_spill] sm:$0xff] %v18708_v34  ;;  %v4514_v27 = vcombine.low %v18699_v10, %v18708_v34  ;;  %v5697_v61 = vcombine.low %v24347_v28, %v24320_v36  ;;  %v4521_v9 = vrot.slane %v4513_v44, %v15871_v8  ;;  %v14439_v63 = vcombine.high %v24317_v11, %v24320_v36  ;;  %v24356_v34 = vld [vmem:[#allocation256_spill] sm:$0xff] }
 0x167   : > { %24348 = vst [vmem:[#allocation213_spill] sm:$0xff] %v18734_v2  ;;  %v18741_v21 = vrot.slane %v5695_v25, %v15871_v8  ;;  %v18744_v53 = vrot.slane %v5696_v22, %v15871_v8  ;;  %v24355_v25 = vld [vmem:[#allocation254_spill] sm:$0xff]  ;;  %v4533_v46 = vcombine.low %v24356_v34, %v17545_v56 }
 0x168   : > { %15029 = vmatmul.mubr.msk.bf16.gmra.mxu0 %vm3919_vm2, %v5694_v14  ;;  %v4528_v38 = vrot.slane %v4514_v27, %v15871_v8  ;;  %v18747_v35 = vrot.slane %v5697_v61, %v15871_v8  ;;  %v18749_v44 = vpop.f32.mrf.mxu1  ;;  %v18754_v32 = vrot.slane %v14439_v63, %v15871_v8  ;;  %v6887_v27 = vcombine.low %v24317_v11, %v24320_v36  ;;  %v24354_v14 = vld [vmem:[#allocation257_spill] sm:$0xff]  ;;  %v24360_v63 = vld [vmem:[#allocation259_spill] sm:$0xff] }
 0x169   : > { %24349 = vst [vmem:[#allocation218_spill] sm:$0xff] %v18741_v21  ;;  %24350 = vst [vmem:[#allocation217_spill] sm:$0xff] %v18744_v53  ;;  %15032 = vmatprep.mubr.msk.bf16.mxu0 %vm15764_vm4, %v23936_v59  ;;  %v4531_v28 = vcombine.low %v24355_v25, %v24354_v14  ;;  %v14402_v22 = vcombine.high %v24355_v25, %v24354_v14  ;;  %v5727_v61 = vcombine.low %v18741_v21, %v18744_v53 }
 0x16a   : > { %24351 = vst [vmem:[#allocation170_spill] sm:$0xff] %v18747_v35  ;;  %24352 = vst [vmem:[#allocation176_spill] sm:$0xff] %v18749_v44  ;;  %v4529_v10 = vcombine.low %v4521_v9, %v4528_v38  ;;  %v14902_v43 = vpop.f32.mrf.mxu1  ;;  %v5728_v36 = vcombine.low %v18747_v35, %v18754_v32  ;;  %v6894_v11 = vrot.slane %v6887_v27, %v15871_v8 }
 0x16b   : > { %24353 = vst [vmem:[#allocation393_spill] sm:$0xff] %v18754_v32  ;;  %v18774_v9 = vrot.slane %v4531_v28, %v15871_v8  ;;  %v18778_v38 = vrot.slane %v5727_v61, %v15871_v8  ;;  %v18781_v44 = vrot.slane %v14402_v22, %v15871_v8  ;;  %v24359_v43 = vld [vmem:[#allocation294_spill] sm:$0xff]  ;;  %v5744_v27 = vcombine.low %v24333_v42, %v24336_v17  ;;  %v24365_v61 = vld [vmem:[#allocation220_spill] sm:$0xff] }
 0x16c   : > { %14951 = vmatmul.mubr.msk.bf16.gmra.mxu1 %vm3919_vm2, %v4529_v10  ;;  %v4579_v53 = vcombine.low %v24360_v63, %v24359_v43  ;;  %v18787_v35 = vpop.f32.mrf.mxu1  ;;  %v5742_v21 = vrot.slane %v5728_v36, %v15871_v8  ;;  %v6895_v28 = vcombine.low %v6894_v11, %v18754_v32  ;;  %v18794_v10 = vrot.slane %v4533_v46, %v15871_v8 }
 0x16d   : > { %24357 = vst [vmem:[#allocation257_spill] sm:$0xff] %v18774_v9  ;;  %24358 = vst [vmem:[#allocation254_spill] sm:$0xff] %v18781_v44  ;;  %14954 = vmatprep.mubr.msk.bf16.mxu1 %vm15764_vm4, %v23936_v59  ;;  %v4562_v22 = vcombine.low %v18734_v2, %v18774_v9  ;;  %v14440_v43 = vcombine.high %v24333_v42, %v24336_v17  ;;  %v5746_v36 = vcombine.low %v24337_v26, %v24363_v6 }
 0x16e   : > { %24361 = vst [vmem:[#allocation294_spill] sm:$0xff] %v18787_v35  ;;  %24362 = vst [vmem:[#allocation259_spill] sm:$0xff] %v18794_v10  ;;  %v14903_v35 = vpop.f32.mrf.mxu1  ;;  %v5743_v11 = vcombine.low %v18778_v38, %v5742_v21  ;;  %v18806_v55 = vrot.slane %v6895_v28, %v15871_v8  ;;  %v4563_v46 = vcombine.low %v18781_v44, %v18794_v10  ;;  %v24374_v10 = vld [vmem:[#allocation299_spill] sm:$0xff] }
 0x16f   : > { %v4570_v2 = vrot.slane %v4562_v22, %v15871_v8  ;;  %v18812_v31 = vrot.slane %v4579_v53, %v15871_v8  ;;  %v5747_v17 = vcombine.low %v24339_v1, %v24365_v61  ;;  %v18817_v42 = vrot.slane %v5744_v27, %v15871_v8  ;;  %v24373_v1 = vld [vmem:[#allocation298_spill] sm:$0xff] }
 0x170   : > { %v18820_v35 = vrot.slane %v14440_v43, %v15871_v8  ;;  %15033 = vmatmul.mubr.msk.bf16.gmra.mxu0 %vm3919_vm2, %v5743_v11  ;;  %v4577_v28 = vrot.slane %v4563_v46, %v15871_v8  ;;  %v18827_v22 = vrot.slane %v5746_v36, %v15871_v8  ;;  %v6904_v53 = vcombine.low %v24337_v26, %v24340_v15  ;;  %v24370_v11 = vld [vmem:[#allocation297_spill] sm:$0xff]  ;;  %v24371_v46 = vld [vmem:[#allocation295_spill] sm:$0xff]  ;;  %v24372_v15 = vld [vmem:[#allocation300_spill] sm:$0xff] }
 0x171   : > { %24364 = vst [vmem:[#allocation394_spill] sm:$0xff] %v18812_v31  ;;  %24366 = vst [vmem:[#allocation220_spill] sm:$0xff] %v18817_v42  ;;  %15036 = vmatprep.mubr.msk.bf16.mxu0 %vm15764_vm4, %v23936_v59  ;;  %v18834_v27 = vrot.slane %v5747_v17, %v15871_v8  ;;  %v4580_v21 = vcombine.low %v24371_v46, %v24370_v11  ;;  %v4581_v44 = vcombine.low %v24373_v1, %v24372_v15  ;;  %v24375_v43 = vld [vmem:[#allocation301_spill] sm:$0xff]  ;;  %v24379_v26 = vld [vmem:[#allocation258_spill] sm:$0xff] }
 0x172   : > { %24367 = vst [vmem:[#allocation395_spill] sm:$0xff] %v18820_v35  ;;  %24368 = vst [vmem:[#allocation396_spill] sm:$0xff] %v18827_v22  ;;  %v5776_v61 = vcombine.low %v18817_v42, %v18820_v35  ;;  %v4578_v36 = vcombine.low %v4570_v2, %v4577_v28  ;;  %v6911_v6 = vrot.slane %v6904_v53, %v15871_v8  ;;  %v24378_v53 = vld [vmem:[#allocation253_spill] sm:$0xff] }
 0x173   : > { %24369 = vst [vmem:[#allocation397_spill] sm:$0xff] %v18834_v27  ;;  %v5777_v17 = vcombine.low %v18827_v22, %v18834_v27  ;;  %v4582_v42 = vcombine.low %v24375_v43, %v24374_v10  ;;  %v18855_v46 = vrot.slane %v4580_v21, %v15871_v8  ;;  %v18860_v28 = vrot.slane %v4581_v44, %v15871_v8  ;;  %v24381_v44 = vld [vmem:[#allocation260_spill] sm:$0xff] }
 0x174   : > { %v18850_v9 = vrot.slane %v5776_v61, %v15871_v8  ;;  %14955 = vmatmul.mubr.msk.bf16.gmra.mxu1 %vm3919_vm2, %v4578_v36  ;;  %v6912_v2 = vcombine.low %v6911_v6, %v18834_v27  ;;  %v5793_v15 = vcombine.low %v24378_v53, %v24355_v25  ;;  %v5794_v61 = vcombine.low %v24354_v14, %v24379_v26  ;;  %v18876_v36 = vpop.f32.mrf.mxu0  ;;  %v24383_v26 = vld [vmem:[#allocation261_spill] sm:$0xff] }
 0x175   : > { %24376 = vst [vmem:[#allocation297_spill] sm:$0xff] %v18855_v46  ;;  %24377 = vst [vmem:[#allocation295_spill] sm:$0xff] %v18860_v28  ;;  %v5791_v22 = vrot.slane %v5777_v17, %v15871_v8  ;;  %14958 = vmatprep.mubr.msk.bf16.mxu1 %vm15764_vm4, %v23936_v59  ;;  %v18870_v21 = vrot.slane %v4582_v42, %v15871_v8  ;;  %v4611_v6 = vcombine.low %v18812_v31, %v18855_v46  ;;  %v24388_v14 = vld [vmem:[#allocation337_spill] sm:$0xff] }
 0x176   : > { %v5795_v43 = vcombine.low %v24381_v44, %v24356_v34  ;;  %24382 = vst [vmem:[#allocation298_spill] sm:$0xff] %v18876_v36  ;;  %v18879_v25 = vrot.slane %v6912_v2, %v15871_v8  ;;  %v5796_v17 = vcombine.low %v24383_v26, %v24360_v63  ;;  %v18886_v42 = vrot.slane %v5793_v15, %v15871_v8  ;;  %v14862_v2 = vpop.f32.mrf.mxu0  ;;  %v24389_v26 = vld [vmem:[#allocation335_spill] sm:$0xff] }
 0x177   : > { %24380 = vst [vmem:[#allocation300_spill] sm:$0xff] %v18870_v21  ;;  %v5792_v53 = vcombine.low %v18850_v9, %v5791_v22  ;;  %v4612_v35 = vcombine.low %v18860_v28, %v18870_v21  ;;  %v4619_v44 = vrot.slane %v4611_v6, %v15871_v8  ;;  %v18893_v32 = vrot.slane %v5794_v61, %v15871_v8 }
 0x178   : > { %24384 = vst [vmem:[#allocation299_spill] sm:$0xff] %v18886_v42  ;;  %v18898_v34 = vrot.slane %v5795_v43, %v15871_v8  ;;  %v18901_v15 = vrot.slane %v5796_v17, %v15871_v8  ;;  %v6921_v22 = vcombine.low %v17545_v56, %v24360_v63  ;;  %v4628_v43 = vcombine.low %v24389_v26, %v24388_v14  ;;  %v18913_v28 = vpop.f32.mrf.mxu0 }
 0x179   : > { %24385 = vst [vmem:[#allocation301_spill] sm:$0xff] %v18893_v32  ;;  %15037 = vmatmul.mubr.msk.bf16.gmra.mxu0 %vm3919_vm2, %v5792_v53  ;;  %v4626_v6 = vrot.slane %v4612_v35, %v15871_v8  ;;  %v5825_v61 = vcombine.low %v18886_v42, %v18893_v32  ;;  %24390 = vst [vmem:[#allocation260_spill] sm:$0xff] %v18913_v28  ;;  %v14403_v46 = vcombine.high %v24389_v26, %v24388_v14 }
 0x17a   : > { %24386 = vst [vmem:[#allocation253_spill] sm:$0xff] %v18898_v34  ;;  %24387 = vst [vmem:[#allocation258_spill] sm:$0xff] %v18901_v15  ;;  %15040 = vmatprep.mubr.msk.bf16.mxu0 %vm15764_vm4, %v23936_v59  ;;  %v5826_v17 = vcombine.low %v18898_v34, %v18901_v15  ;;  %v6928_v53 = vrot.slane %v6921_v22, %v15871_v8  ;;  %v4630_v27 = vcombine.low %v18024_v40, %v18044_v57  ;;  %v14863_v31 = vpop.f32.mrf.mxu0 }
 0x17b   : > { %v4627_v2 = vcombine.low %v4619_v44, %v4626_v6  ;;  %v18925_v42 = vrot.slane %v5825_v61, %v15871_v8  ;;  %v14404_v21 = vcombine.high %v18024_v40, %v18044_v57  ;;  %v18934_v35 = vrot.slane %v4628_v43, %v15871_v8 }
 0x17c   : > { %v5840_v28 = vrot.slane %v5826_v17, %v15871_v8  ;;  %v6929_v22 = vcombine.low %v18898_v34, %v6928_v53  ;;  %v18937_v32 = vrot.slane %v14403_v46, %v15871_v8  ;;  %v18941_v44 = vrot.slane %v4630_v27, %v15871_v8 }
 0x17d   : > { %24391 = vst [vmem:[#allocation335_spill] sm:$0xff] %v18925_v42  ;;  %24392 = vst [vmem:[#allocation398_spill] sm:$0xff] %v18934_v35  ;;  %14959 = vmatmul.mubr.msk.bf16.gmra.mxu1 %vm3919_vm2, %v4627_v2  ;;  %v18944_v6 = vrot.slane %v14404_v21, %v15871_v8  ;;  %v14441_v31 = vcombine.high %v17545_v56, %v24360_v63  ;;  %v5843_v61 = vcombine.low %v24370_v11, %v24373_v1  ;;  %v24397_v21 = vld [vmem:[#allocation302_spill] sm:$0xff] }
 0x17e   : > { %24393 = vst [vmem:[#allocation399_spill] sm:$0xff] %v18937_v32  ;;  %24394 = vst [vmem:[#allocation400_spill] sm:$0xff] %v18941_v44  ;;  %v5841_v43 = vcombine.low %v18925_v42, %v5840_v28  ;;  %v18952_v17 = vrot.slane %v6929_v22, %v15871_v8  ;;  %14962 = vmatprep.mubr.msk.bf16.mxu1 %vm15764_vm4, %v23936_v59  ;;  %v4660_v27 = vcombine.low %v18934_v35, %v18937_v32 }
 0x17f   : > { %24395 = vst [vmem:[#allocation401_spill] sm:$0xff] %v18944_v6  ;;  %v4661_v46 = vcombine.low %v18941_v44, %v18944_v6  ;;  %v14442_v63 = vcombine.high %v24370_v11, %v24373_v1  ;;  %v5845_v28 = vcombine.low %v24374_v10, %v24397_v21  ;;  %v18970_v22 = vrot.slane %v14441_v31, %v15871_v8  ;;  %v24428_v44 = vld [vmem:[#allocation364_spill] sm:$0xff]  ;;  %v24440_v6 = vld [vmem:[#allocation41_spill] sm:$0xff] }
 0x180   : > { %24396 = vst [vmem:[#allocation402_spill] sm:$0xff] %v18952_v17  ;;  %v4668_v53 = vrot.slane %v4660_v27, %v15871_v8  ;;  %v18973_v34 = vrot.slane %v5843_v61, %v15871_v8  ;;  %v6938_v2 = vcombine.low %v24374_v10, %v24389_v26  ;;  %v4678_v27 = vcombine.low %v18197_v18, %v18209_v50 }
 0x181   : > { %24398 = vst [vmem:[#allocation403_spill] sm:$0xff] %v18970_v22  ;;  %15041 = vmatmul.mubr.msk.bf16.gmra.mxu0 %vm3919_vm2, %v5841_v43  ;;  %v4675_v56 = vrot.slane %v4661_v46, %v15871_v8  ;;  %v18978_v1 = vrot.slane %v14442_v63, %v15871_v8  ;;  %v18981_v11 = vrot.slane %v5845_v28, %v15871_v8  ;;  %v19000_v28 = vpop.f32.mrf.mxu1 }
 0x182   : > { %24399 = vst [vmem:[#allocation404_spill] sm:$0xff] %v18973_v34  ;;  %15044 = vmatprep.mubr.msk.bf16.mxu0 %vm15764_vm4, %v23936_v59  ;;  %v5874_v31 = vcombine.low %v18970_v22, %v18973_v34  ;;  %v4677_v43 = vcombine.low %v18035_v54, %v18182_v60  ;;  %v6945_v10 = vrot.slane %v6938_v2, %v15871_v8  ;;  %24402 = vst [vmem:[#allocation407_spill] sm:$0xff] %v19000_v28  ;;  %v24404_v22 = vld [vmem:[#allocation11_spill] sm:$0xff] }
 0x183   : > { %24400 = vst [vmem:[#allocation405_spill] sm:$0xff] %v18978_v1  ;;  %24401 = vst [vmem:[#allocation406_spill] sm:$0xff] %v18981_v11  ;;  %v4676_v46 = vcombine.low %v4668_v53, %v4675_v56  ;;  %v5875_v63 = vcombine.low %v18978_v1, %v18981_v11  ;;  %v4679_v61 = vcombine.low %v18216_v62, %v18220_v48  ;;  %v14906_v15 = vpop.f32.mrf.mxu1  ;;  %v24424_v11 = vld [vmem:[#allocation14_spill] sm:$0xff] }
 0x184   : > { %v19003_v21 = vrot.slane %v5874_v31, %v15871_v8  ;;  %v4680_v50 = vcombine.low %v24404_v22, %v18231_v5  ;;  %v19010_v56 = vrot.slane %v4677_v43, %v15871_v8  ;;  %v6946_v53 = vcombine.low %v18978_v1, %v6945_v10  ;;  %v24407_v31 = vld [vmem:[#allocation338_spill] sm:$0xff]  ;;  %v24410_v43 = vld [vmem:[#allocation340_spill] sm:$0xff]  ;;  %v24412_v10 = vld [vmem:[#allocation341_spill] sm:$0xff] }
 0x185   : > { %14963 = vmatmul.mubr.msk.bf16.gmra.mxu1 %vm3919_vm2, %v4676_v46  ;;  %v5889_v2 = vrot.slane %v5875_v63, %v15871_v8  ;;  %v19016_v26 = vrot.slane %v4678_v27, %v15871_v8  ;;  %v5891_v34 = vcombine.low %v24388_v14, %v24407_v31  ;;  %v19023_v5 = vrot.slane %v4679_v61, %v15871_v8  ;;  %v19038_v1 = vpop.f32.mrf.mxu1 }
 0x186   : > { %24403 = vst [vmem:[#allocation408_spill] sm:$0xff] %v19003_v21  ;;  %24405 = vst [vmem:[#allocation11_spill] sm:$0xff] %v19010_v56  ;;  %14966 = vmatprep.mubr.msk.bf16.mxu1 %vm15764_vm4, %v23936_v59  ;;  %v19026_v62 = vrot.slane %v4680_v50, %v15871_v8  ;;  %v5892_v46 = vcombine.low %v24410_v43, %v18024_v40  ;;  %v19032_v27 = vrot.slane %v6946_v53, %v15871_v8  ;;  %v24414_v40 = vld [vmem:[#allocation342_spill] sm:$0xff] }
 0x187   : > { %24406 = vst [vmem:[#allocation409_spill] sm:$0xff] %v19016_v26  ;;  %24408 = vst [vmem:[#allocation338_spill] sm:$0xff] %v19023_v5  ;;  %v5890_v63 = vcombine.low %v19003_v21, %v5889_v2  ;;  %v4709_v15 = vcombine.low %v19010_v56, %v19016_v26  ;;  %v5893_v31 = vcombine.low %v18044_v57, %v24412_v10  ;;  %v14907_v50 = vpop.f32.mrf.mxu1  ;;  %v24419_v43 = vld [vmem:[#allocation10_spill] sm:$0xff]  ;;  %v24441_v56 = vld [vmem:[#allocation44_spill] sm:$0xff] }
 0x188   : > { %24409 = vst [vmem:[#allocation410_spill] sm:$0xff] %v19026_v62  ;;  %24411 = vst [vmem:[#allocation340_spill] sm:$0xff] %v19032_v27  ;;  %v4710_v61 = vcombine.low %v19023_v5, %v19026_v62  ;;  %v5894_v2 = vcombine.low %v24414_v40, %v18035_v54  ;;  %v19047_v53 = vrot.slane %v5891_v34, %v15871_v8  ;;  %v24421_v50 = vld [vmem:[#allocation13_spill] sm:$0xff] }
 0x189   : > { %24413 = vst [vmem:[#allocation341_spill] sm:$0xff] %v19038_v1  ;;  %15045 = vmatmul.mubr.msk.bf16.gmra.mxu0 %vm3919_vm2, %v5890_v63  ;;  %v4717_v57 = vrot.slane %v4709_v15, %v15871_v8  ;;  %v19054_v10 = vrot.slane %v5892_v46, %v15871_v8  ;;  %v19057_v14 = vrot.slane %v5893_v31, %v15871_v8  ;;  %v24420_v15 = vld [vmem:[#allocation15_spill] sm:$0xff]  ;;  %v24422_v1 = vld [vmem:[#allocation12_spill] sm:$0xff]  ;;  %v24423_v63 = vld [vmem:[#allocation17_spill] sm:$0xff] }
 0x18a   : > { %24415 = vst [vmem:[#allocation342_spill] sm:$0xff] %v19047_v53  ;;  %15048 = vmatprep.mubr.msk.bf16.mxu0 %vm15764_vm4, %v23936_v59  ;;  %v4724_v34 = vrot.slane %v4710_v61, %v15871_v8  ;;  %v19063_v40 = vrot.slane %v5894_v2, %v15871_v8  ;;  %v4726_v54 = vcombine.low %v24420_v15, %v24419_v43 }
 0x18b   : > { %24416 = vst [vmem:[#allocation411_spill] sm:$0xff] %v19054_v10  ;;  %24417 = vst [vmem:[#allocation412_spill] sm:$0xff] %v19057_v14  ;;  %v5923_v46 = vcombine.low %v19047_v53, %v19054_v10  ;;  %v4727_v28 = vcombine.low %v24422_v1, %v24421_v50  ;;  %v14405_v61 = vcombine.high %v24422_v1, %v24421_v50 }
 0x18c   : > { %24418 = vst [vmem:[#allocation413_spill] sm:$0xff] %v19063_v40  ;;  %v4725_v2 = vcombine.low %v4717_v57, %v4724_v34  ;;  %v5924_v5 = vcombine.low %v19057_v14, %v19063_v40  ;;  %v4729_v26 = vcombine.low %v24424_v11, %v24423_v63  ;;  %v19082_v15 = vrot.slane %v4726_v54, %v15871_v8  ;;  %v24439_v40 = vld [vmem:[#allocation39_spill] sm:$0xff] }
 0x18d   : > { %v5931_v53 = vrot.slane %v5923_v46, %v15871_v8  ;;  %v19086_v31 = vrot.slane %v4727_v28, %v15871_v8  ;;  %v19089_v10 = vrot.slane %v14405_v61, %v15871_v8  ;;  %v5940_v57 = vcombine.low %v24428_v44, %v18197_v18 }
 0x18e   : > { %24425 = vst [vmem:[#allocation10_spill] sm:$0xff] %v19082_v15  ;;  %14967 = vmatmul.mubr.msk.bf16.gmra.mxu1 %vm3919_vm2, %v4725_v2  ;;  %v5938_v34 = vrot.slane %v5924_v5, %v15871_v8  ;;  %v19096_v14 = vrot.slane %v4729_v26, %v15871_v8  ;;  %v14443_v28 = vcombine.high %v18182_v60, %v18197_v18  ;;  %v19120_v62 = vpop.f32.mrf.mxu0 }
 0x18f   : > { %24426 = vst [vmem:[#allocation15_spill] sm:$0xff] %v19086_v31  ;;  %24427 = vst [vmem:[#allocation12_spill] sm:$0xff] %v19089_v10  ;;  %14970 = vmatprep.mubr.msk.bf16.mxu1 %vm15764_vm4, %v23936_v59  ;;  %v4758_v46 = vcombine.low %v19082_v15, %v19086_v31  ;;  %v5942_v61 = vcombine.low %v18220_v48, %v24404_v22  ;;  %v14444_v5 = vcombine.high %v18220_v48, %v24404_v22 }
 0x190   : > { %24429 = vst [vmem:[#allocation17_spill] sm:$0xff] %v19096_v14  ;;  %v19110_v26 = vcombine.low %v5931_v53, %v5938_v34  ;;  %v4759_v2 = vcombine.low %v19089_v10, %v19096_v14  ;;  %v19115_v54 = vrot.slane %v5940_v57, %v15871_v8  ;;  %v19118_v44 = vrot.slane %v14443_v28, %v15871_v8  ;;  %v24480_v14 = vld [vmem:[#allocation111_spill] sm:$0xff] }
 0x191   : > { %24433 = vst [vmem:[#allocation416_spill] sm:$0xff] %v19120_v62  ;;  %v4766_v31 = vrot.slane %v4758_v46, %v15871_v8  ;;  %v19124_v15 = vrot.slane %v5942_v61, %v15871_v8  ;;  %v19127_v48 = vrot.slane %v14444_v5, %v15871_v8  ;;  %v6955_v22 = vcombine.low %v18182_v60, %v18197_v18  ;;  %v14866_v46 = vpop.f32.mrf.mxu0  ;;  %v24436_v5 = vld [vmem:[#allocation37_spill] sm:$0xff] }
 0x192   : > { %24430 = vst [vmem:[#allocation14_spill] sm:$0xff] %v19110_v26  ;;  %24431 = vst [vmem:[#allocation414_spill] sm:$0xff] %v19115_v54  ;;  %15049 = vmatmul.mubr.msk.bf16.gmra.mxu0 %vm3919_vm2, %v19110_v26  ;;  %v4773_v53 = vrot.slane %v4759_v2, %v15871_v8  ;;  %v5972_v57 = vcombine.low %v19115_v54, %v19118_v44  ;;  %v14406_v28 = vcombine.high %v24424_v11, %v24423_v63  ;;  %v24437_v2 = vld [vmem:[#allocation36_spill] sm:$0xff] }
 0x193   : > { %24432 = vst [vmem:[#allocation415_spill] sm:$0xff] %v19118_v44  ;;  %24434 = vst [vmem:[#allocation417_spill] sm:$0xff] %v19124_v15  ;;  %15052 = vmatprep.mubr.msk.bf16.mxu0 %vm15764_vm4, %v23936_v59  ;;  %v5973_v60 = vcombine.low %v19124_v15, %v19127_v48  ;;  %v6962_v18 = vrot.slane %v6955_v22, %v15871_v8  ;;  %v4776_v10 = vcombine.low %v24437_v2, %v24436_v5  ;;  %v24438_v54 = vld [vmem:[#allocation40_spill] sm:$0xff]  ;;  %v19154_v62 = vpop.f32.mrf.mxu0 }
 0x194   : > { %24435 = vst [vmem:[#allocation418_spill] sm:$0xff] %v19127_v48  ;;  %v4774_v32 = vcombine.low %v4766_v31, %v4773_v53  ;;  %v5980_v34 = vrot.slane %v5972_v57, %v15871_v8  ;;  %v4777_v46 = vcombine.low %v24439_v40, %v24438_v54  ;;  %v4778_v35 = vcombine.low %v24441_v56, %v24440_v6  ;;  %v24448_v53 = vld [vmem:[#allocation20_spill] sm:$0xff]  ;;  %v24464_v48 = vld [vmem:[#allocation73_spill] sm:$0xff] }
 0x195   : > { %24442 = vst [vmem:[#allocation37_spill] sm:$0xff] %v19154_v62  ;;  %v19157_v36 = vrot.slane %v5973_v60, %v15871_v8  ;;  %v6963_v22 = vcombine.low %v6962_v18, %v19118_v44  ;;  %v19161_v61 = vrot.slane %v14406_v28, %v15871_v8  ;;  %v19164_v31 = vrot.slane %v4776_v10, %v15871_v8  ;;  %v24449_v60 = vld [vmem:[#allocation16_spill] sm:$0xff]  ;;  %v14867_v15 = vpop.f32.mrf.mxu0  ;;  %v24452_v44 = vld [vmem:[#allocation19_spill] sm:$0xff] }
 0x196   : > { %14971 = vmatmul.mubr.msk.bf16.gmra.mxu1 %vm3919_vm2, %v4774_v32  ;;  %v19168_v54 = vrot.slane %v4777_v46, %v15871_v8  ;;  %v19171_v56 = vrot.slane %v4778_v35, %v15871_v8  ;;  %v5989_v57 = vcombine.low %v24419_v43, %v24448_v53  ;;  %v5990_v18 = vcombine.low %v24421_v50, %v24449_v60  ;;  %v24451_v60 = vld [vmem:[#allocation18_spill] sm:$0xff] }
 0x197   : > { %24443 = vst [vmem:[#allocation40_spill] sm:$0xff] %v19157_v36  ;;  %24444 = vst [vmem:[#allocation39_spill] sm:$0xff] %v19161_v61  ;;  %v5988_v28 = vcombine.low %v5980_v34, %v19157_v36  ;;  %v19179_v10 = vrot.slane %v6963_v22, %v15871_v8  ;;  %14974 = vmatprep.mubr.msk.bf16.mxu1 %vm15764_vm4, %v23936_v59  ;;  %v4807_v32 = vcombine.low %v19161_v61, %v19164_v31  ;;  %v24462_v61 = vld [vmem:[#allocation71_spill] sm:$0xff]  ;;  %v24504_v36 = vld [vmem:[#allocation154_spill] sm:$0xff] }
 0x198   : > { %24445 = vst [vmem:[#allocation41_spill] sm:$0xff] %v19164_v31  ;;  %24446 = vst [vmem:[#allocation44_spill] sm:$0xff] %v19168_v54  ;;  %v4808_v46 = vcombine.low %v19168_v54, %v19171_v56  ;;  %v5991_v15 = vcombine.low %v24451_v60, %v24424_v11  ;;  %v5992_v34 = vcombine.low %v24423_v63, %v24452_v44  ;;  %v24457_v63 = vld [vmem:[#allocation35_spill] sm:$0xff] }
 0x199   : > { %24447 = vst [vmem:[#allocation419_spill] sm:$0xff] %v19171_v56  ;;  %24450 = vst [vmem:[#allocation16_spill] sm:$0xff] %v19179_v10  ;;  %v4815_v53 = vrot.slane %v4807_v32, %v15871_v8  ;;  %v19197_v50 = vrot.slane %v5989_v57, %v15871_v8  ;;  %v19200_v31 = vrot.slane %v5990_v18, %v15871_v8  ;;  %v24458_v32 = vld [vmem:[#allocation70_spill] sm:$0xff] }
 0x19a   : > { %15053 = vmatmul.mubr.msk.bf16.gmra.mxu0 %vm3919_vm2, %v5988_v28  ;;  %v4822_v35 = vrot.slane %v4808_v46, %v15871_v8  ;;  %v19205_v11 = vrot.slane %v5991_v15, %v15871_v8  ;;  %v19208_v44 = vrot.slane %v5992_v34, %v15871_v8  ;;  %v6038_v60 = vcombine.low %v24457_v63, %v24437_v2  ;;  %v24459_v46 = vld [vmem:[#allocation42_spill] sm:$0xff] }
 0x19b   : > { %24453 = vst [vmem:[#allocation18_spill] sm:$0xff] %v19197_v50  ;;  %24454 = vst [vmem:[#allocation19_spill] sm:$0xff] %v19200_v31  ;;  %15056 = vmatprep.mubr.msk.bf16.mxu0 %vm15764_vm4, %v23936_v59  ;;  %v6021_v57 = vcombine.low %v19197_v50, %v19200_v31  ;;  %v6972_v18 = vcombine.low %v24419_v43, %v24422_v1  ;;  %v4824_v15 = vcombine.low %v24459_v46, %v24458_v32  ;;  %v24461_v43 = vld [vmem:[#allocation72_spill] sm:$0xff]  ;;  %v24463_v50 = vld [vmem:[#allocation75_spill] sm:$0xff] }
 0x19c   : > { %24455 = vst [vmem:[#allocation420_spill] sm:$0xff] %v19205_v11  ;;  %24456 = vst [vmem:[#allocation421_spill] sm:$0xff] %v19208_v44  ;;  %v4823_v34 = vcombine.low %v4815_v53, %v4822_v35  ;;  %v6022_v22 = vcombine.low %v19205_v11, %v19208_v44  ;;  %v19225_v63 = vrot.slane %v6038_v60, %v15871_v8  ;;  %v24470_v35 = vld [vmem:[#allocation43_spill] sm:$0xff] }
 0x19d   : > { %v6029_v54 = vrot.slane %v6021_v57, %v15871_v8  ;;  %v6979_v1 = vrot.slane %v6972_v18, %v15871_v8  ;;  %v4825_v28 = vcombine.low %v24462_v61, %v24461_v43  ;;  %v4826_v32 = vcombine.low %v24464_v48, %v24463_v50  ;;  %v19246_v18 = vpop.f32.mrf.mxu1 }
 0x19e   : > { %24460 = vst [vmem:[#allocation35_spill] sm:$0xff] %v19225_v63  ;;  %14975 = vmatmul.mubr.msk.bf16.gmra.mxu1 %vm3919_vm2, %v4823_v34  ;;  %v19237_v53 = vrot.slane %v6022_v22, %v15871_v8  ;;  %v14407_v60 = vcombine.high %v24464_v48, %v24463_v50  ;;  %v19244_v57 = vrot.slane %v4824_v15, %v15871_v8  ;;  %24467 = vst [vmem:[#allocation72_spill] sm:$0xff] %v19246_v18  ;;  %v24481_v18 = vld [vmem:[#allocation107_spill] sm:$0xff] }
 0x19f   : > { %v6980_v61 = vcombine.low %v6979_v1, %v19200_v31  ;;  %14978 = vmatprep.mubr.msk.bf16.mxu1 %vm15764_vm4, %v23936_v59  ;;  %v19252_v34 = vrot.slane %v4825_v28, %v15871_v8  ;;  %v19255_v22 = vrot.slane %v4826_v32, %v15871_v8  ;;  %v6039_v2 = vcombine.low %v24470_v35, %v24439_v40  ;;  %v14910_v31 = vpop.f32.mrf.mxu1 }
 0x1a0   : > { %24465 = vst [vmem:[#allocation70_spill] sm:$0xff] %v19237_v53  ;;  %24466 = vst [vmem:[#allocation42_spill] sm:$0xff] %v19244_v57  ;;  %v6037_v44 = vcombine.low %v6029_v54, %v19237_v53  ;;  %v19261_v15 = vrot.slane %v14407_v60, %v15871_v8  ;;  %v14445_v11 = vcombine.high %v24436_v5, %v24439_v40  ;;  %v24484_v53 = vld [vmem:[#allocation113_spill] sm:$0xff] }
 0x1a1   : > { %24468 = vst [vmem:[#allocation71_spill] sm:$0xff] %v19252_v34  ;;  %24469 = vst [vmem:[#allocation73_spill] sm:$0xff] %v19255_v22  ;;  %v19268_v28 = vrot.slane %v6980_v61, %v15871_v8  ;;  %v4856_v32 = vcombine.low %v19244_v57, %v19252_v34  ;;  %v6041_v35 = vcombine.low %v24440_v6, %v24459_v46  ;;  %v19285_v61 = vpop.f32.mrf.mxu1  ;;  %v24479_v57 = vld [vmem:[#allocation76_spill] sm:$0xff] }
 0x1a2   : > { %24471 = vst [vmem:[#allocation422_spill] sm:$0xff] %v19261_v15  ;;  %15057 = vmatmul.mubr.msk.bf16.gmra.mxu0 %vm3919_vm2, %v6037_v44  ;;  %v4857_v54 = vcombine.low %v19255_v22, %v19261_v15  ;;  %v19278_v60 = vrot.slane %v6039_v2, %v15871_v8  ;;  %v19281_v1 = vrot.slane %v14445_v11, %v15871_v8  ;;  %24475 = vst [vmem:[#allocation426_spill] sm:$0xff] %v19285_v61  ;;  %v24478_v22 = vld [vmem:[#allocation109_spill] sm:$0xff] }
 0x1a3   : > { %24472 = vst [vmem:[#allocation423_spill] sm:$0xff] %v19268_v28  ;;  %v14446_v31 = vcombine.high %v24440_v6, %v24459_v46  ;;  %15060 = vmatprep.mubr.msk.bf16.mxu0 %vm15764_vm4, %v23936_v59  ;;  %v4864_v44 = vrot.slane %v4856_v32, %v15871_v8  ;;  %v19293_v34 = vrot.slane %v6041_v35, %v15871_v8  ;;  %v14911_v61 = vpop.f32.mrf.mxu1 }
 0x1a4   : > { %24473 = vst [vmem:[#allocation424_spill] sm:$0xff] %v19278_v60  ;;  %24474 = vst [vmem:[#allocation425_spill] sm:$0xff] %v19281_v1  ;;  %v6989_v2 = vcombine.low %v24436_v5, %v24439_v40  ;;  %v4871_v11 = vrot.slane %v4857_v54, %v15871_v8  ;;  %v6070_v6 = vcombine.low %v19225_v63, %v19278_v60 }
 0x1a5   : > { %24476 = vst [vmem:[#allocation427_spill] sm:$0xff] %v19293_v34  ;;  %v19301_v46 = vrot.slane %v14446_v31, %v15871_v8  ;;  %v6071_v32 = vcombine.low %v19281_v1, %v19293_v34  ;;  %v4873_v40 = vcombine.low %v24479_v57, %v24478_v22  ;;  %v14408_v5 = vcombine.high %v24479_v57, %v24478_v22  ;;  %v24483_v1 = vld [vmem:[#allocation114_spill] sm:$0xff]  ;;  %v24489_v31 = vld [vmem:[#allocation77_spill] sm:$0xff] }
 0x1a6   : > { %v6996_v35 = vrot.slane %v6989_v2, %v15871_v8  ;;  %v4872_v54 = vcombine.low %v4864_v44, %v4871_v11  ;;  %v6078_v56 = vrot.slane %v6070_v6, %v15871_v8  ;;  %v4875_v61 = vcombine.low %v24481_v18, %v24480_v14  ;;  %v24488_v6 = vld [vmem:[#allocation78_spill] sm:$0xff] }
 0x1a7   : > { %24477 = vst [vmem:[#allocation428_spill] sm:$0xff] %v19301_v46  ;;  %v19318_v60 = vrot.slane %v6071_v32, %v15871_v8  ;;  %v4876_v28 = vcombine.low %v24484_v53, %v24483_v1  ;;  %v19324_v62 = vrot.slane %v4873_v40, %v15871_v8  ;;  %v19328_v44 = vrot.slane %v14408_v5, %v15871_v8 }
 0x1a8   : > { %v6997_v2 = vcombine.low %v19225_v63, %v6996_v35  ;;  %14979 = vmatmul.mubr.msk.bf16.gmra.mxu1 %vm3919_vm2, %v4872_v54  ;;  %v19331_v11 = vrot.slane %v4875_v61, %v15871_v8  ;;  %v6088_v32 = vcombine.low %v24461_v43, %v24488_v6  ;;  %v6089_v35 = vcombine.low %v24463_v50, %v24489_v31  ;;  %v24492_v61 = vld [vmem:[#allocation79_spill] sm:$0xff]  ;;  %v19365_v6 = vpop.f32.mrf.mxu0 }
 0x1a9   : > { %24482 = vst [vmem:[#allocation109_spill] sm:$0xff] %v19318_v60  ;;  %24485 = vst [vmem:[#allocation76_spill] sm:$0xff] %v19324_v62  ;;  %v6086_v34 = vcombine.low %v6078_v56, %v19318_v60  ;;  %14982 = vmatprep.mubr.msk.bf16.mxu1 %vm15764_vm4, %v23936_v59  ;;  %v19344_v40 = vrot.slane %v4876_v28, %v15871_v8  ;;  %v4905_v54 = vcombine.low %v19324_v62, %v19328_v44  ;;  %v24501_v60 = vld [vmem:[#allocation151_spill] sm:$0xff] }
 0x1aa   : > { %24486 = vst [vmem:[#allocation111_spill] sm:$0xff] %v19328_v44  ;;  %24487 = vst [vmem:[#allocation114_spill] sm:$0xff] %v19331_v11  ;;  %v19339_v1 = vrot.slane %v6997_v2, %v15871_v8  ;;  %v6090_v31 = vcombine.low %v24492_v61, %v24479_v57  ;;  %v19353_v56 = vrot.slane %v6088_v32, %v15871_v8  ;;  %v24497_v61 = vld [vmem:[#allocation149_spill] sm:$0xff]  ;;  %v24498_v2 = vld [vmem:[#allocation116_spill] sm:$0xff] }
 0x1ab   : > { %24491 = vst [vmem:[#allocation77_spill] sm:$0xff] %v19344_v40  ;;  %15061 = vmatmul.mubr.msk.bf16.gmra.mxu0 %vm3919_vm2, %v6086_v34  ;;  %v4906_v28 = vcombine.low %v19331_v11, %v19344_v40  ;;  %v19361_v63 = vrot.slane %v6089_v35, %v15871_v8  ;;  %v7006_v5 = vcombine.low %v24461_v43, %v24464_v48  ;;  %24495 = vst [vmem:[#allocation430_spill] sm:$0xff] %v19365_v6  ;;  %v24499_v44 = vld [vmem:[#allocation153_spill] sm:$0xff]  ;;  %v24500_v11 = vld [vmem:[#allocation152_spill] sm:$0xff] }
 0x1ac   : > { %24490 = vst [vmem:[#allocation113_spill] sm:$0xff] %v19339_v1  ;;  %24493 = vst [vmem:[#allocation79_spill] sm:$0xff] %v19353_v56  ;;  %15064 = vmatprep.mubr.msk.bf16.mxu0 %vm15764_vm4, %v23936_v59  ;;  %v4913_v57 = vrot.slane %v4905_v54, %v15871_v8  ;;  %v19371_v34 = vrot.slane %v6090_v31, %v15871_v8  ;;  %v6119_v32 = vcombine.low %v19301_v46, %v19353_v56  ;;  %v14870_v54 = vpop.f32.mrf.mxu0  ;;  %v24502_v1 = vld [vmem:[#allocation155_spill] sm:$0xff]  ;;  %v24514_v56 = vld [vmem:[#allocation34_spill] sm:$0xff] }
 0x1ad   : > { %24494 = vst [vmem:[#allocation429_spill] sm:$0xff] %v19361_v63  ;;  %v4922_v35 = vcombine.low %v24498_v2, %v24497_v61  ;;  %v4920_v50 = vrot.slane %v4906_v28, %v15871_v8  ;;  %v7013_v48 = vrot.slane %v7006_v5, %v15871_v8  ;;  %v4923_v62 = vcombine.low %v24500_v11, %v24499_v44  ;;  %v24503_v2 = vld [vmem:[#allocation156_spill] sm:$0xff]  ;;  %v24530_v40 = vld [vmem:[#allocation199_spill] sm:$0xff] }
 0x1ae   : > { %24496 = vst [vmem:[#allocation431_spill] sm:$0xff] %v19371_v34  ;;  %v6120_v31 = vcombine.low %v19361_v63, %v19371_v34  ;;  %v6127_v15 = vrot.slane %v6119_v32, %v15871_v8  ;;  %v4924_v6 = vcombine.low %v24502_v1, %v24501_v60  ;;  %v4925_v28 = vcombine.low %v24504_v36, %v24503_v2  ;;  %v19397_v54 = vpop.f32.mrf.mxu0  ;;  %v24529_v34 = vld [vmem:[#allocation233_spill] sm:$0xff] }
 0x1af   : > { %v4921_v10 = vcombine.low %v4913_v57, %v4920_v50  ;;  %v7014_v5 = vcombine.low %v19301_v46, %v7013_v48  ;;  %v19392_v43 = vrot.slane %v4922_v35, %v15871_v8  ;;  %v19395_v44 = vrot.slane %v4923_v62, %v15871_v8  ;;  %24507 = vst [vmem:[#allocation153_spill] sm:$0xff] %v19397_v54  ;;  %v24512_v48 = vld [vmem:[#allocation106_spill] sm:$0xff] }
 0x1b0   : > { %v19400_v63 = vrot.slane %v6120_v31, %v15871_v8  ;;  %v19403_v32 = vrot.slane %v4924_v6, %v15871_v8  ;;  %v19406_v1 = vrot.slane %v4925_v28, %v15871_v8  ;;  %v14409_v50 = vcombine.high %v24504_v36, %v24503_v2  ;;  %v14871_v31 = vpop.f32.mrf.mxu0  ;;  %v24513_v28 = vld [vmem:[#allocation33_spill] sm:$0xff] }
 0x1b1   : > { %24505 = vst [vmem:[#allocation149_spill] sm:$0xff] %v19392_v43  ;;  %24506 = vst [vmem:[#allocation116_spill] sm:$0xff] %v19395_v44  ;;  %14983 = vmatmul.mubr.msk.bf16.gmra.mxu1 %vm3919_vm2, %v4921_v10  ;;  %v19412_v57 = vrot.slane %v7014_v5, %v15871_v8  ;;  %v4954_v62 = vcombine.low %v19392_v43, %v19395_v44  ;;  %v6136_v6 = vcombine.low %v24478_v22, %v24512_v48  ;;  %v24517_v31 = vld [vmem:[#allocation115_spill] sm:$0xff]  ;;  %v24526_v43 = vld [vmem:[#allocation194_spill] sm:$0xff] }
 0x1b2   : > { %24508 = vst [vmem:[#allocation152_spill] sm:$0xff] %v19400_v63  ;;  %24509 = vst [vmem:[#allocation151_spill] sm:$0xff] %v19403_v32  ;;  %v24515_v46 = vcombine.low %v24513_v28, %v24514_v56  ;;  %v6135_v10 = vcombine.low %v6127_v15, %v19400_v63  ;;  %14986 = vmatprep.mubr.msk.bf16.mxu1 %vm15764_vm4, %v23936_v59  ;;  %v4955_v5 = vcombine.low %v19403_v32, %v19406_v1  ;;  %v24516_v56 = vld [vmem:[#allocation112_spill] sm:$0xff]  ;;  %v24535_v63 = vld [vmem:[#allocation69_spill] sm:$0xff] }
 0x1b3   : > { %24510 = vst [vmem:[#allocation155_spill] sm:$0xff] %v19406_v1  ;;  %24511 = vst [vmem:[#allocation154_spill] sm:$0xff] %v19412_v57  ;;  %v4962_v48 = vrot.slane %v4954_v62, %v15871_v8  ;;  %v6138_v15 = vcombine.low %v24517_v31, %v24484_v53  ;;  %v19443_v1 = vrot.slane %v14409_v50, %v15871_v8  ;;  %v24522_v50 = vld [vmem:[#allocation195_spill] sm:$0xff] }
 0x1b4   : > { %v19424_v54 = vrot.slane %v24515_v46, %v15871_v8  ;;  %v6137_v46 = vcombine.low %v24516_v56, %v24481_v18  ;;  %15065 = vmatmul.mubr.msk.bf16.gmra.mxu0 %vm3919_vm2, %v6135_v10  ;;  %v4969_v28 = vrot.slane %v4955_v5, %v15871_v8  ;;  %v14447_v35 = vcombine.high %v24480_v14, %v24484_v53  ;;  %v24523_v5 = vld [vmem:[#allocation192_spill] sm:$0xff] }
 0x1b5   : > { %24518 = vst [vmem:[#allocation106_spill] sm:$0xff] %v19443_v1  ;;  %v19448_v22 = vrot.slane %v6136_v6, %v15871_v8  ;;  %15068 = vmatprep.mubr.msk.bf16.mxu0 %vm15764_vm4, %v23936_v59  ;;  %v19456_v56 = vrot.slane %v6138_v15, %v15871_v8  ;;  %v7023_v10 = vcombine.low %v24480_v14, %v24484_v53  ;;  %v24525_v53 = vld [vmem:[#allocation197_spill] sm:$0xff] }
 0x1b6   : > { %v19453_v62 = vrot.slane %v6137_v46, %v15871_v8  ;;  %v4972_v18 = vcombine.low %v24523_v5, %v24522_v50  ;;  %v4970_v31 = vcombine.low %v4962_v48, %v4969_v28  ;;  %v19463_v32 = vrot.slane %v14447_v35, %v15871_v8 }
 0x1b7   : > { %24519 = vst [vmem:[#allocation33_spill] sm:$0xff] %v19448_v22  ;;  %24521 = vst [vmem:[#allocation112_spill] sm:$0xff] %v19456_v56  ;;  %v14410_v46 = vcombine.high %v24523_v5, %v24522_v50  ;;  %v7030_v44 = vrot.slane %v7023_v10, %v15871_v8  ;;  %v4974_v48 = vcombine.low %v24526_v43, %v24525_v53 }
 0x1b8   : > { %24520 = vst [vmem:[#allocation34_spill] sm:$0xff] %v19453_v62  ;;  %24524 = vst [vmem:[#allocation195_spill] sm:$0xff] %v19463_v32  ;;  %v6168_v15 = vcombine.low %v19448_v22, %v19453_v62  ;;  %v6169_v35 = vcombine.low %v19456_v56, %v19463_v32  ;;  %v19479_v28 = vrot.slane %v4972_v18, %v15871_v8  ;;  %v19496_v56 = vpop.f32.mrf.mxu1 }
 0x1b9   : > { %v19482_v6 = vrot.slane %v14410_v46, %v15871_v8  ;;  %v5020_v22 = vcombine.low %v24530_v40, %v24529_v34  ;;  %14987 = vmatmul.mubr.msk.bf16.gmra.mxu1 %vm3919_vm2, %v4970_v31  ;;  %v7031_v14 = vcombine.low %v7030_v44, %v19463_v32  ;;  %v19492_v62 = vrot.slane %v4974_v48, %v15871_v8  ;;  %v24534_v46 = vld [vmem:[#allocation38_spill] sm:$0xff] }
 0x1ba   : > { %24527 = vst [vmem:[#allocation192_spill] sm:$0xff] %v19479_v28  ;;  %v19488_v10 = vrot.slane %v6168_v15, %v15871_v8  ;;  %v6185_v18 = vcombine.low %v24497_v61, %v24500_v11  ;;  %24533 = vst [vmem:[#allocation432_spill] sm:$0xff] %v19496_v56  ;;  %v24536_v57 = vcombine.low %v24534_v46, %v24535_v63  ;;  %14990 = vmatprep.mubr.msk.bf16.mxu1 %vm15764_vm4, %v23936_v59  ;;  %v14914_v46 = vpop.f32.mrf.mxu1  ;;  %v24540_v15 = vld [vmem:[#allocation157_spill] sm:$0xff] }
 0x1bb   : > { %24528 = vst [vmem:[#allocation197_spill] sm:$0xff] %v19482_v6  ;;  %24532 = vst [vmem:[#allocation199_spill] sm:$0xff] %v19492_v62  ;;  %v6183_v31 = vrot.slane %v6169_v35, %v15871_v8  ;;  %v5003_v44 = vcombine.low %v19443_v1, %v19479_v28  ;;  %v19512_v48 = vrot.slane %v7031_v14, %v15871_v8  ;;  %v24547_v46 = vld [vmem:[#allocation234_spill] sm:$0xff] }
 0x1bc   : > { %24531 = vst [vmem:[#allocation233_spill] sm:$0xff] %v19488_v10  ;;  %v19502_v34 = vrot.slane %v24536_v57, %v15871_v8  ;;  %v5004_v56 = vcombine.low %v19482_v6, %v19492_v62  ;;  %v14448_v63 = vcombine.high %v24497_v61, %v24500_v11  ;;  %v24538_v57 = vld [vmem:[#allocation158_spill] sm:$0xff]  ;;  %v19523_v27 = vrot.slane %v5020_v22, %v15871_v8 }
 0x1bd   : > { %24537 = vst [vmem:[#allocation38_spill] sm:$0xff] %v19512_v48  ;;  %v6187_v35 = vcombine.low %v24501_v60, %v24538_v57  ;;  %v6184_v26 = vcombine.low %v19488_v10, %v6183_v31  ;;  %v5011_v1 = vrot.slane %v5003_v44, %v15871_v8  ;;  %v6188_v14 = vcombine.low %v24503_v2, %v24540_v15  ;;  %v19536_v31 = vpop.f32.mrf.mxu1  ;;  %v24549_v57 = vld [vmem:[#allocation238_spill] sm:$0xff]  ;;  %v24583_v48 = vld [vmem:[#allocation317_spill] sm:$0xff] }
 0x1be   : > { %24539 = vst [vmem:[#allocation69_spill] sm:$0xff] %v19523_v27  ;;  %v5018_v28 = vrot.slane %v5004_v56, %v15871_v8  ;;  %v19531_v11 = vrot.slane %v6185_v18, %v15871_v8  ;;  %v19534_v61 = vrot.slane %v14448_v63, %v15871_v8  ;;  %24543 = vst [vmem:[#allocation434_spill] sm:$0xff] %v19536_v31  ;;  %v24546_v56 = vld [vmem:[#allocation236_spill] sm:$0xff]  ;;  %v24550_v31 = vld [vmem:[#allocation237_spill] sm:$0xff] }
 0x1bf   : > { %15069 = vmatmul.mubr.msk.bf16.gmra.mxu0 %vm3919_vm2, %v6184_v26  ;;  %v19540_v22 = vrot.slane %v6187_v35, %v15871_v8  ;;  %v19543_v44 = vrot.slane %v6188_v14, %v15871_v8  ;;  %v7040_v15 = vcombine.low %v24501_v60, %v24504_v36  ;;  %v5021_v18 = vcombine.low %v24547_v46, %v24546_v56  ;;  %v24548_v35 = vld [vmem:[#allocation239_spill] sm:$0xff]  ;;  %v14915_v2 = vpop.f32.mrf.mxu1 }
 0x1c0   : > { %24541 = vst [vmem:[#allocation157_spill] sm:$0xff] %v19531_v11  ;;  %24542 = vst [vmem:[#allocation433_spill] sm:$0xff] %v19534_v61  ;;  %15072 = vmatprep.mubr.msk.bf16.mxu0 %vm15764_vm4, %v23936_v59  ;;  %v5019_v63 = vcombine.low %v5011_v1, %v5018_v28  ;;  %v6217_v6 = vcombine.low %v19531_v11, %v19534_v61  ;;  %v5022_v14 = vcombine.low %v24549_v57, %v24548_v35  ;;  %v24551_v1 = vld [vmem:[#allocation241_spill] sm:$0xff]  ;;  %v24555_v35 = vld [vmem:[#allocation191_spill] sm:$0xff] }
 0x1c1   : > { %24544 = vst [vmem:[#allocation435_spill] sm:$0xff] %v19540_v22  ;;  %24545 = vst [vmem:[#allocation436_spill] sm:$0xff] %v19543_v44  ;;  %v6218_v36 = vcombine.low %v19540_v22, %v19543_v44  ;;  %v7047_v60 = vrot.slane %v7040_v15, %v15871_v8  ;;  %v5023_v28 = vcombine.low %v24551_v1, %v24550_v31 }
 0x1c2   : > { %14991 = vmatmul.mubr.msk.bf16.gmra.mxu1 %vm3919_vm2, %v5019_v63  ;;  %v19566_v62 = vrot.slane %v6217_v6, %v15871_v8  ;;  %v19569_v26 = vrot.slane %v5021_v18, %v15871_v8  ;;  %v19572_v2 = vrot.slane %v5022_v14, %v15871_v8  ;;  %v6234_v15 = vcombine.low %v24555_v35, %v24523_v5  ;;  %v24557_v6 = vld [vmem:[#allocation196_spill] sm:$0xff]  ;;  %v24558_v5 = vld [vmem:[#allocation198_spill] sm:$0xff] }
 0x1c3   : > { %v6232_v11 = vrot.slane %v6218_v36, %v15871_v8  ;;  %v7048_v46 = vcombine.low %v7047_v60, %v19543_v44  ;;  %14994 = vmatprep.mubr.msk.bf16.mxu1 %vm15764_vm4, %v23936_v59  ;;  %v19581_v63 = vrot.slane %v5023_v28, %v15871_v8  ;;  %v6235_v18 = vcombine.low %v24522_v50, %v24557_v6  ;;  %v24559_v60 = vld [vmem:[#allocation200_spill] sm:$0xff] }
 0x1c4   : > { %24552 = vst [vmem:[#allocation236_spill] sm:$0xff] %v19566_v62  ;;  %24553 = vst [vmem:[#allocation234_spill] sm:$0xff] %v19569_v26  ;;  %v5052_v14 = vcombine.low %v19523_v27, %v19569_v26  ;;  %v6236_v36 = vcombine.low %v24558_v5, %v24526_v43  ;;  %v6237_v35 = vcombine.low %v24559_v60, %v24530_v40  ;;  %v24568_v26 = vld [vmem:[#allocation273_spill] sm:$0xff] }
 0x1c5   : > { %24554 = vst [vmem:[#allocation239_spill] sm:$0xff] %v19572_v2  ;;  %24556 = vst [vmem:[#allocation238_spill] sm:$0xff] %v19581_v63  ;;  %v6233_v22 = vcombine.low %v19566_v62, %v6232_v11  ;;  %v19595_v28 = vrot.slane %v7048_v46, %v15871_v8  ;;  %v5053_v50 = vcombine.low %v19572_v2, %v19581_v63  ;;  %v24567_v2 = vld [vmem:[#allocation275_spill] sm:$0xff] }
 0x1c6   : > { %v19600_v6 = vrot.slane %v6234_v15, %v15871_v8  ;;  %v5060_v61 = vrot.slane %v5052_v14, %v15871_v8  ;;  %v19604_v1 = vrot.slane %v6235_v18, %v15871_v8  ;;  %v19607_v5 = vrot.slane %v6236_v36, %v15871_v8  ;;  %v19620_v14 = vpop.f32.mrf.mxu0  ;;  %v24581_v62 = vld [vmem:[#allocation279_spill] sm:$0xff] }
 0x1c7   : > { %24560 = vst [vmem:[#allocation241_spill] sm:$0xff] %v19595_v28  ;;  %v19610_v32 = vrot.slane %v6237_v35, %v15871_v8  ;;  %15073 = vmatmul.mubr.msk.bf16.gmra.mxu0 %vm3919_vm2, %v6233_v22  ;;  %v5067_v46 = vrot.slane %v5053_v50, %v15871_v8  ;;  %v14449_v15 = vcombine.high %v24525_v53, %v24530_v40  ;;  %24565 = vst [vmem:[#allocation438_spill] sm:$0xff] %v19620_v14  ;;  %v24571_v50 = vld [vmem:[#allocation277_spill] sm:$0xff]  ;;  %v24580_v28 = vld [vmem:[#allocation314_spill] sm:$0xff] }
 0x1c8   : > { %24561 = vst [vmem:[#allocation191_spill] sm:$0xff] %v19600_v6  ;;  %24562 = vst [vmem:[#allocation196_spill] sm:$0xff] %v19604_v1  ;;  %v7057_v18 = vcombine.low %v24525_v53, %v24530_v40  ;;  %15076 = vmatprep.mubr.msk.bf16.mxu0 %vm15764_vm4, %v23936_v59  ;;  %v6266_v36 = vcombine.low %v19600_v6, %v19604_v1  ;;  %v5069_v63 = vcombine.low %v24568_v26, %v24567_v2  ;;  %v14874_v43 = vpop.f32.mrf.mxu0  ;;  %v24570_v6 = vld [vmem:[#allocation278_spill] sm:$0xff]  ;;  %v24687_v14 = vld [vmem:[#allocation267_spill] sm:$0xff] }
 0x1c9   : > { %24563 = vst [vmem:[#allocation198_spill] sm:$0xff] %v19607_v5  ;;  %24564 = vst [vmem:[#allocation437_spill] sm:$0xff] %v19610_v32  ;;  %v6267_v22 = vcombine.low %v19607_v5, %v19610_v32  ;;  %v5068_v11 = vcombine.low %v5060_v61, %v5067_v46  ;;  %v19633_v40 = vrot.slane %v14449_v15, %v15871_v8 }
 0x1ca   : > { %v7064_v53 = vrot.slane %v7057_v18, %v15871_v8  ;;  %v19639_v60 = vrot.slane %v6266_v36, %v15871_v8  ;;  %v14411_v35 = vcombine.high %v24568_v26, %v24567_v2  ;;  %v5071_v61 = vcombine.low %v24571_v50, %v24570_v6  ;;  %v19655_v36 = vpop.f32.mrf.mxu0  ;;  %v24582_v26 = vld [vmem:[#allocation318_spill] sm:$0xff] }
 0x1cb   : > { %24566 = vst [vmem:[#allocation439_spill] sm:$0xff] %v19633_v40  ;;  %v6281_v27 = vrot.slane %v6267_v22, %v15871_v8  ;;  %14995 = vmatmul.mubr.msk.bf16.gmra.mxu1 %vm3919_vm2, %v5068_v11  ;;  %v14412_v43 = vcombine.high %v24571_v50, %v24570_v6  ;;  %v19653_v18 = vrot.slane %v5069_v63, %v15871_v8  ;;  %24573 = vst [vmem:[#allocation277_spill] sm:$0xff] %v19655_v36 }
 0x1cc   : > { %24569 = vst [vmem:[#allocation440_spill] sm:$0xff] %v19639_v60  ;;  %v7065_v46 = vcombine.low %v19607_v5, %v7064_v53  ;;  %14998 = vmatprep.mubr.msk.bf16.mxu1 %vm15764_vm4, %v23936_v59  ;;  %v19661_v11 = vrot.slane %v14411_v35, %v15871_v8  ;;  %v19664_v53 = vrot.slane %v5071_v61, %v15871_v8  ;;  %v24578_v5 = vld [vmem:[#allocation240_spill] sm:$0xff]  ;;  %v14875_v35 = vpop.f32.mrf.mxu0 }
 0x1cd   : > { %24572 = vst [vmem:[#allocation278_spill] sm:$0xff] %v19653_v18  ;;  %v6282_v22 = vcombine.low %v19639_v60, %v6281_v27  ;;  %v6284_v15 = vcombine.low %v24546_v56, %v24549_v57  ;;  %v19672_v63 = vrot.slane %v14412_v43, %v15871_v8  ;;  %v14450_v27 = vcombine.high %v24546_v56, %v24549_v57 }
 0x1ce   : > { %24574 = vst [vmem:[#allocation441_spill] sm:$0xff] %v19661_v11  ;;  %24575 = vst [vmem:[#allocation442_spill] sm:$0xff] %v19664_v53  ;;  %v19669_v32 = vrot.slane %v7065_v46, %v15871_v8  ;;  %v6286_v1 = vcombine.low %v24550_v31, %v24578_v5  ;;  %v5101_v61 = vcombine.low %v19653_v18, %v19661_v11  ;;  %v24587_v18 = vld [vmem:[#allocation321_spill] sm:$0xff]  ;;  %v24588_v5 = vld [vmem:[#allocation320_spill] sm:$0xff] }
 0x1cf   : > { %24577 = vst [vmem:[#allocation444_spill] sm:$0xff] %v19672_v63  ;;  %v19681_v44 = vrot.slane %v6284_v15, %v15871_v8  ;;  %v5118_v46 = vcombine.low %v24581_v62, %v24580_v28  ;;  %v5119_v43 = vcombine.low %v24583_v48, %v24582_v26  ;;  %15077 = vmatmul.mubr.msk.bf16.gmra.mxu0 %vm3919_vm2, %v6282_v22  ;;  %v24586_v22 = vld [vmem:[#allocation316_spill] sm:$0xff] }
 0x1d0   : > { %24576 = vst [vmem:[#allocation443_spill] sm:$0xff] %v19669_v32  ;;  %v5102_v56 = vcombine.low %v19664_v53, %v19672_v63  ;;  %v19693_v35 = vrot.slane %v14450_v27, %v15871_v8  ;;  %v19696_v15 = vrot.slane %v6286_v1, %v15871_v8  ;;  %15080 = vmatprep.mubr.msk.bf16.mxu0 %vm15764_vm4, %v23936_v59  ;;  %v24589_v32 = vld [vmem:[#allocation319_spill] sm:$0xff] }
 0x1d1   : > { %24579 = vst [vmem:[#allocation445_spill] sm:$0xff] %v19681_v44  ;;  %v5109_v11 = vrot.slane %v5101_v61, %v15871_v8  ;;  %v6315_v26 = vcombine.low %v19633_v40, %v19681_v44  ;;  %v5120_v57 = vcombine.low %v24587_v18, %v24586_v22  ;;  %v5121_v63 = vcombine.low %v24589_v32, %v24588_v5  ;;  %v24595_v5 = vld [vmem:[#allocation276_spill] sm:$0xff] }
 0x1d2   : > { %24584 = vst [vmem:[#allocation318_spill] sm:$0xff] %v19693_v35  ;;  %24585 = vst [vmem:[#allocation446_spill] sm:$0xff] %v19696_v15  ;;  %v5116_v27 = vrot.slane %v5102_v56, %v15871_v8  ;;  %v6316_v1 = vcombine.low %v19693_v35, %v19696_v15  ;;  %v19711_v53 = vrot.slane %v5118_v46, %v15871_v8 }
 0x1d3   : > { %v19714_v60 = vrot.slane %v5119_v43, %v15871_v8  ;;  %v19717_v61 = vrot.slane %v6315_v26, %v15871_v8  ;;  %v19720_v44 = vrot.slane %v5120_v57, %v15871_v8  ;;  %v19723_v18 = vrot.slane %v5121_v63, %v15871_v8  ;;  %v24596_v43 = vld [vmem:[#allocation280_spill] sm:$0xff]  ;;  %v24597_v57 = vld [vmem:[#allocation281_spill] sm:$0xff]  ;;  %v24598_v63 = vld [vmem:[#allocation282_spill] sm:$0xff] }
 0x1d4   : > { %24590 = vst [vmem:[#allocation316_spill] sm:$0xff] %v19711_v53  ;;  %v6332_v56 = vcombine.low %v24567_v2, %v24595_v5  ;;  %v5117_v40 = vcombine.low %v5109_v11, %v5116_v27  ;;  %v6330_v15 = vrot.slane %v6316_v1, %v15871_v8  ;;  %v6333_v35 = vcombine.low %v24596_v43, %v24571_v50  ;;  %v24601_v1 = vld [vmem:[#allocation353_spill] sm:$0xff]  ;;  %v24602_v43 = vld [vmem:[#allocation323_spill] sm:$0xff] }
 0x1d5   : > { %24591 = vst [vmem:[#allocation321_spill] sm:$0xff] %v19714_v60  ;;  %24592 = vst [vmem:[#allocation320_spill] sm:$0xff] %v19717_v61  ;;  %v5150_v46 = vcombine.low %v19711_v53, %v19714_v60  ;;  %v5151_v26 = vcombine.low %v19720_v44, %v19723_v18  ;;  %v6334_v31 = vcombine.low %v24570_v6, %v24597_v57  ;;  %v19749_v60 = vpop.f32.mrf.mxu1 }
 0x1d6   : > { %24593 = vst [vmem:[#allocation319_spill] sm:$0xff] %v19720_v44  ;;  %24594 = vst [vmem:[#allocation447_spill] sm:$0xff] %v19723_v18  ;;  %v6335_v10 = vcombine.low %v24598_v63, %v24581_v62  ;;  %v19739_v5 = vrot.slane %v6332_v56, %v15871_v8  ;;  %14999 = vmatmul.mubr.msk.bf16.gmra.mxu1 %vm3919_vm2, %v5117_v40  ;;  %v6331_v11 = vcombine.low %v19717_v61, %v6330_v15  ;;  %v24606_v15 = vld [vmem:[#allocation322_spill] sm:$0xff] }
 0x1d7   : > { %v5158_v27 = vrot.slane %v5150_v46, %v15871_v8  ;;  %v19745_v50 = vrot.slane %v6333_v35, %v15871_v8  ;;  %v5167_v18 = vcombine.low %v24602_v43, %v24601_v1  ;;  %24603 = vst [vmem:[#allocation281_spill] sm:$0xff] %v19749_v60  ;;  %15002 = vmatprep.mubr.msk.bf16.mxu1 %vm15764_vm4, %v23936_v59  ;;  %v14918_v63 = vpop.f32.mrf.mxu1  ;;  %v24616_v62 = vld [vmem:[#allocation62_spill] sm:$0xff] }
 0x1d8   : > { %24599 = vst [vmem:[#allocation276_spill] sm:$0xff] %v19739_v5  ;;  %v5165_v6 = vrot.slane %v5151_v26, %v15871_v8  ;;  %v19755_v56 = vrot.slane %v6334_v31, %v15871_v8  ;;  %v19758_v40 = vrot.slane %v6335_v10, %v15871_v8  ;;  %v6381_v35 = vcombine.low %v24606_v15, %v24583_v48  ;;  %v24608_v10 = vld [vmem:[#allocation21_spill] sm:$0xff] }
 0x1d9   : > { %24600 = vst [vmem:[#allocation280_spill] sm:$0xff] %v19745_v50  ;;  %15081 = vmatmul.mubr.msk.bf16.gmra.mxu0 %vm3919_vm2, %v6331_v11  ;;  %v6364_v46 = vcombine.low %v19739_v5, %v19745_v50  ;;  %v19766_v57 = vrot.slane %v5167_v18, %v15871_v8  ;;  %v14451_v26 = vcombine.high %v24580_v28, %v24583_v48  ;;  %v14530_v5 = vld [vmem:[%s23175_s1 + $0xa] sm:$0x3] }
 0x1da   : > { %24604 = vst [vmem:[#allocation282_spill] sm:$0xff] %v19755_v56  ;;  %24605 = vst [vmem:[#allocation323_spill] sm:$0xff] %v19758_v40  ;;  %v6383_v31 = vcombine.low %v24586_v22, %v24589_v32  ;;  %15084 = vmatprep.mubr.msk.bf16.mxu0 %vm15764_vm4, %v23936_v59  ;;  %v6365_v11 = vcombine.low %v19755_v56, %v19758_v40  ;;  %v14452_v18 = vcombine.high %v24586_v22, %v24589_v32  ;;  %v19793_v40 = vpop.f32.mrf.mxu1  ;;  %v24614_v56 = vld [vmem:[#allocation355_spill] sm:$0xff] }
 0x1db   : > { %24607 = vst [vmem:[#allocation448_spill] sm:$0xff] %v19766_v57  ;;  %v19781_v50 = vrot.slane %v6381_v35, %v15871_v8  ;;  %v5166_v63 = vcombine.low %v5158_v27, %v5165_v6  ;;  %v6372_v44 = vrot.slane %v6364_v46, %v15871_v8  ;;  %v19788_v43 = vrot.slane %v14451_v26, %v15871_v8  ;;  %v24627_v26 = vld [vmem:[#allocation96_spill] sm:$0xff] }
 0x1dc   : > { %v19791_v53 = vrot.slane %v6383_v31, %v15871_v8  ;;  %24612 = vst [vmem:[#allocation451_spill] sm:$0xff] %v19793_v40  ;;  %v6379_v32 = vrot.slane %v6365_v11, %v15871_v8  ;;  %v5181_v22 = vrot.slane %v19766_v57, %v15871_v8  ;;  %v19799_v35 = vrot.slane %v14452_v18, %v15871_v8  ;;  %v14919_v31 = vpop.f32.mrf.mxu1  ;;  %v24615_v11 = vld [vmem:[#allocation63_spill] sm:$0xff] }
 0x1dd   : > { %24609 = vst [vmem:[#allocation21_spill] sm:$0xff] %v19781_v50  ;;  %24610 = vst [vmem:[#allocation449_spill] sm:$0xff] %v19788_v43  ;;  %v6430_v27 = vcombine.low %v24601_v1, %v24614_v56  ;;  %v6413_v6 = vcombine.low %v19781_v50, %v19788_v43  ;;  %v19806_v46 = vsel %vm3983_vm0, %v14530_v5, 0  ;;  %v24617_v57 = vcombine.low %v24615_v11, %v24616_v62  ;;  %v24620_v5 = vld [vmem:[#allocation64_spill] sm:$0xff]  ;;  %v24621_v50 = vld [vmem:[#allocation65_spill] sm:$0xff] }
 0x1de   : > { %24611 = vst [vmem:[#allocation450_spill] sm:$0xff] %v19791_v53  ;;  %24613 = vst [vmem:[#allocation452_spill] sm:$0xff] %v19799_v35  ;;  %v19814_v18 = vcombine.low %v6372_v44, %v6379_v32  ;;  %v6414_v56 = vcombine.low %v19791_v53, %v19799_v35  ;;  %v24622_v40 = vcombine.low %v24620_v5, %v24621_v50  ;;  %15003 = vmatmul.mubr.msk.bf16.gmra.mxu1 %vm3919_vm2, %v5166_v63  ;;  %v24623_v62 = vld [vmem:[#allocation66_spill] sm:$0xff]  ;;  %v24626_v11 = vld [vmem:[#allocation68_spill] sm:$0xff] }
 0x1df   : > { %v7615_v15 = vrot.slane %v24617_v57, %v15871_v8  ;;  %v19819_v2 = vrot.slane %v6430_v27, %v15871_v8  ;;  %v6421_v31 = vrot.slane %v6413_v6, %v15871_v8  ;;  %v24624_v57 = vld [vmem:[#allocation67_spill] sm:$0xff]  ;;  %v24628_v35 = vcombine.low %v24626_v11, %v24627_v26  ;;  %v24629_v53 = vld [vmem:[#allocation97_spill] sm:$0xff]  ;;  %v24630_v1 = vld [vmem:[#allocation98_spill] sm:$0xff]  ;;  %15006 = vmatprep.mubr.msk.bf16.mxu1 %vm15764_vm4, %v23936_v59 }
 0x1e0   : > { %24618 = vst [vmem:[#allocation63_spill] sm:$0xff] %v19814_v18  ;;  %v7622_v60 = vrot.slane %v24622_v40, %v15871_v8  ;;  %v24625_v44 = vcombine.low %v24623_v62, %v24624_v57  ;;  %v24631_v43 = vcombine.low %v24629_v53, %v24630_v1  ;;  %v19842_v40 = vrot.slane %v6414_v56, %v15871_v8  ;;  %v24633_v5 = vld [vmem:[#allocation99_spill] sm:$0xff]  ;;  %v24634_v62 = vld [vmem:[#allocation100_spill] sm:$0xff]  ;;  %v24636_v1 = vld [vmem:[#allocation101_spill] sm:$0xff] }
 0x1e1   : > { %24619 = vst [vmem:[#allocation62_spill] sm:$0xff] %v19819_v2  ;;  %v7636_v27 = vrot.slane %v24628_v35, %v15871_v8  ;;  %v24635_v26 = vcombine.low %v24633_v5, %v24634_v62  ;;  %15085 = vmatmul.mubr.msk.bf16.gmra.mxu0 %vm3919_vm2, %v19814_v18  ;;  %v24639_v56 = vld [vmem:[#allocation103_spill] sm:$0xff]  ;;  %v24640_v11 = vld [vmem:[#allocation138_spill] sm:$0xff] }
 0x1e2   : > { %v7629_v32 = vrot.slane %v24625_v44, %v15871_v8  ;;  %v7664_v50 = vrot.slane %v24631_v43, %v15871_v8  ;;  %24632 = vst [vmem:[#allocation64_spill] sm:$0xff] %v19842_v40  ;;  %v7637_v6 = vcombine.low %v7615_v15, %v7622_v60  ;;  %v24637_v43 = vld [vmem:[#allocation102_spill] sm:$0xff]  ;;  %v24641_v61 = vcombine.low %v24639_v56, %v24640_v11  ;;  %v24642_v60 = vld [vmem:[#allocation139_spill] sm:$0xff]  ;;  %v24643_v15 = vld [vmem:[#allocation140_spill] sm:$0xff] }
 0x1e3   : > { %v7671_v35 = vrot.slane %v24635_v26, %v15871_v8  ;;  %v24638_v57 = vcombine.low %v24636_v1, %v24637_v43  ;;  %v24644_v28 = vcombine.low %v24642_v60, %v24643_v15  ;;  %15088 = vmatprep.mubr.msk.bf16.mxu0 %vm15764_vm4, %v23936_v59  ;;  %v24645_v26 = vld [vmem:[#allocation141_spill] sm:$0xff]  ;;  %v24646_v1 = vld [vmem:[#allocation142_spill] sm:$0xff]  ;;  %v24649_v11 = vld [vmem:[#allocation144_spill] sm:$0xff] }
 0x1e4   : > { %v7638_v53 = vcombine.low %v7629_v32, %v7636_v27  ;;  %v7685_v63 = vrot.slane %v24641_v61, %v15871_v8  ;;  %v6429_v32 = vcombine.low %v6421_v31, %v19842_v40  ;;  %v19868_v27 = vrot.slane %v7637_v6, %v15871_v8  ;;  %v24651_v31 = vld [vmem:[#allocation145_spill] sm:$0xff]  ;;  %v24652_v40 = vld [vmem:[#allocation180_spill] sm:$0xff] }
 0x1e5   : > { %v7678_v44 = vrot.slane %v24638_v57, %v15871_v8  ;;  %v7713_v5 = vrot.slane %v24644_v28, %v15871_v8  ;;  %v7686_v62 = vcombine.low %v7664_v50, %v7671_v35  ;;  %v24647_v43 = vcombine.low %v24645_v26, %v24646_v1  ;;  %v24648_v28 = vld [vmem:[#allocation143_spill] sm:$0xff]  ;;  %v19885_v50 = vpop.f32.mrf.mxu0  ;;  %v24656_v1 = vld [vmem:[#allocation182_spill] sm:$0xff] }
 0x1e6   : > { %v19875_v61 = vrot.slane %v7638_v53, %v15871_v8  ;;  %v24650_v60 = vcombine.low %v24648_v28, %v24649_v11  ;;  %v24653_v6 = vcombine.low %v24651_v31, %v24652_v40  ;;  %24654 = vst [vmem:[#allocation65_spill] sm:$0xff] %v19885_v50  ;;  %v24655_v53 = vld [vmem:[#allocation181_spill] sm:$0xff]  ;;  %v24659_v28 = vld [vmem:[#allocation184_spill] sm:$0xff]  ;;  %v24667_v40 = vld [vmem:[#allocation223_spill] sm:$0xff]  ;;  %15007 = vmatmul.mubr.msk.bf16.gmra.mxu1 %vm3919_vm2, %v5181_v22 }
 0x1e7   : > { %v7720_v57 = vrot.slane %v24647_v43, %v15871_v8  ;;  %v7687_v56 = vcombine.low %v7678_v44, %v7685_v63  ;;  %v19888_v35 = vrot.slane %v7686_v62, %v15871_v8  ;;  %v24657_v63 = vcombine.low %v24655_v53, %v24656_v1  ;;  %v24658_v43 = vld [vmem:[#allocation183_spill] sm:$0xff]  ;;  %v24661_v62 = vld [vmem:[#allocation185_spill] sm:$0xff]  ;;  %v14878_v50 = vpop.f32.mrf.mxu0  ;;  %15098 = vmatprep.mubr.msk.bf16.mxu1 %vm15764_vm4, %v23936_v59 }
 0x1e8   : > { %v7727_v15 = vrot.slane %v24650_v60, %v15871_v8  ;;  %v7734_v18 = vrot.slane %v24653_v6, %v15871_v8  ;;  %v24660_v11 = vcombine.low %v24658_v43, %v24659_v28  ;;  %v24664_v1 = vld [vmem:[#allocation187_spill] sm:$0xff] }
 0x1e9   : > { %v7735_v26 = vcombine.low %v7713_v5, %v7720_v57  ;;  %v7762_v44 = vrot.slane %v24657_v63, %v15871_v8  ;;  %v19901_v31 = vrot.slane %v7687_v56, %v15871_v8  ;;  %v24662_v5 = vld [vmem:[#allocation186_spill] sm:$0xff]  ;;  %v24668_v56 = vld [vmem:[#allocation224_spill] sm:$0xff]  ;;  %v19936_v22 = vpop.f32.mrf.mxu0  ;;  %15089 = vmatmul.mubr.msk.bf16.gmra.mxu0 %vm3919_vm2, %v6429_v32 }
 0x1ea   : > { %v7769_v60 = vrot.slane %v24660_v11, %v15871_v8  ;;  %v7736_v6 = vcombine.low %v7727_v15, %v7734_v18  ;;  %v24663_v57 = vcombine.low %v24661_v62, %v24662_v5  ;;  %v24665_v63 = vld [vmem:[#allocation222_spill] sm:$0xff]  ;;  %v24669_v36 = vcombine.low %v24667_v40, %v24668_v56  ;;  %24677 = vst [vmem:[#allocation67_spill] sm:$0xff] %v19936_v22 }
 0x1eb   : > { %v19908_v53 = vrot.slane %v7735_v26, %v15871_v8  ;;  %v24666_v43 = vcombine.low %v24664_v1, %v24665_v63  ;;  %v24670_v26 = vld [vmem:[#allocation225_spill] sm:$0xff]  ;;  %v24671_v62 = vld [vmem:[#allocation226_spill] sm:$0xff]  ;;  %15092 = vmatprep.mubr.msk.bf16.mxu0 %vm15764_vm4, %v23936_v59 }
 0x1ec   : > { %v7776_v48 = vrot.slane %v24663_v57, %v15871_v8  ;;  %v7784_v11 = vcombine.low %v7762_v44, %v7769_v60  ;;  %v7811_v18 = vrot.slane %v24669_v36, %v15871_v8  ;;  %v19922_v50 = vrot.slane %v7736_v6, %v15871_v8  ;;  %v24673_v44 = vld [vmem:[#allocation227_spill] sm:$0xff]  ;;  %v24674_v60 = vld [vmem:[#allocation228_spill] sm:$0xff]  ;;  %v19934_v36 = vpop.f32.mrf.mxu1  ;;  %v24679_v56 = vld [vmem:[#allocation262_spill] sm:$0xff] }
 0x1ed   : > { %v7783_v28 = vrot.slane %v24666_v43, %v15871_v8  ;;  %v24672_v5 = vcombine.low %v24670_v26, %v24671_v62  ;;  %v24675_v1 = vcombine.low %v24673_v44, %v24674_v60  ;;  %24676 = vst [vmem:[#allocation66_spill] sm:$0xff] %v19934_v36  ;;  %v24678_v43 = vld [vmem:[#allocation229_spill] sm:$0xff]  ;;  %v24682_v44 = vld [vmem:[#allocation264_spill] sm:$0xff] }
 0x1ee   : > { %v19939_v6 = vrot.slane %v7784_v11, %v15871_v8  ;;  %v24680_v26 = vcombine.low %v24678_v43, %v24679_v56  ;;  %v24688_v43 = vld [vmem:[#allocation268_spill] sm:$0xff] }
 0x1ef   : > { %v7818_v57 = vrot.slane %v24672_v5, %v15871_v8  ;;  %v7825_v63 = vrot.slane %v24675_v1, %v15871_v8  ;;  %v7785_v40 = vcombine.low %v7776_v48, %v7783_v28  ;;  %v24681_v5 = vld [vmem:[#allocation263_spill] sm:$0xff]  ;;  %v24684_v48 = vld [vmem:[#allocation265_spill] sm:$0xff]  ;;  %v24685_v28 = vld [vmem:[#allocation266_spill] sm:$0xff]  ;;  %v24689_v56 = vcombine.low %v24687_v14, %v24688_v43 }
 0x1f0   : > { %v7832_v62 = vrot.slane %v24680_v26, %v15871_v8  ;;  %v24683_v60 = vcombine.low %v24681_v5, %v24682_v44  ;;  %v24686_v11 = vcombine.low %v24684_v48, %v24685_v28  ;;  %v14922_v5 = vpop.f32.mrf.mxu1  ;;  %v14879_v44 = vpop.f32.mrf.mxu0  ;;  %v24693_v28 = vld [vmem:[#allocation304_spill] sm:$0xff] }
 0x1f1   : > { %v7833_v36 = vcombine.low %v7811_v18, %v7818_v57  ;;  %v7874_v26 = vrot.slane %v24689_v56, %v15871_v8  ;;  %v19963_v32 = vrot.slane %v7785_v40, %v15871_v8  ;;  %v24690_v18 = vld [vmem:[#allocation269_spill] sm:$0xff]  ;;  %v24691_v57 = vld [vmem:[#allocation303_spill] sm:$0xff]  ;;  %v24696_v5 = vld [vmem:[#allocation306_spill] sm:$0xff] }
 0x1f2   : > { %v7860_v1 = vrot.slane %v24683_v60, %v15871_v8  ;;  %v7867_v22 = vrot.slane %v24686_v11, %v15871_v8  ;;  %v7834_v60 = vcombine.low %v7825_v63, %v7832_v62  ;;  %v24692_v15 = vcombine.low %v24690_v18, %v24691_v57  ;;  %v24694_v11 = vld [vmem:[#allocation305_spill] sm:$0xff]  ;;  %v24697_v44 = vld [vmem:[#allocation307_spill] sm:$0xff]  ;;  %v24699_v63 = vld [vmem:[#allocation308_spill] sm:$0xff] }
 0x1f3   : > { %v24695_v21 = vcombine.low %v24693_v28, %v24694_v11  ;;  %v19974_v43 = vrot.slane %v7833_v36, %v15871_v8  ;;  %v24698_v40 = vcombine.low %v24696_v5, %v24697_v44  ;;  %v24700_v62 = vld [vmem:[#allocation309_spill] sm:$0xff] }
 0x1f4   : > { %v7881_v48 = vrot.slane %v24692_v15, %v15871_v8  ;;  %v7882_v56 = vcombine.low %v7860_v1, %v7867_v22  ;;  %v24701_v7 = vcombine.low %v24699_v63, %v24700_v62  ;;  %v4184_v15 = vpop.f32.mrf.mxu1  ;;  %v24702_v22 = vld [vmem:[#allocation310_spill] sm:$0xff]  ;;  %v24703_v1 = vld [vmem:[#allocation343_spill] sm:$0xff]  ;;  %v14557_v5 = vld [vmem:[%s23175_s1 + $0xc] sm:$0x3] }
 0x1f5   : > { %v7909_v14 = vrot.slane %v24695_v21, %v15871_v8  ;;  %v7916_v58 = vrot.slane %v24698_v40, %v15871_v8  ;;  %v19987_v21 = vrot.slane %v7834_v60, %v15871_v8  ;;  %v24704_v28 = vcombine.low %v24702_v22, %v24703_v1  ;;  %v24705_v40 = vld [vmem:[#allocation344_spill] sm:$0xff]  ;;  %v24706_v63 = vld [vmem:[#allocation345_spill] sm:$0xff] }
 0x1f6   : > { %v7923_v18 = vrot.slane %v24701_v7, %v15871_v8  ;;  %v7883_v36 = vcombine.low %v7874_v26, %v7881_v48  ;;  %v19997_v44 = vrot.slane %v7882_v56, %v15871_v8  ;;  %v24707_v62 = vcombine.low %v24705_v40, %v24706_v63  ;;  %v24708_v26 = vld [vmem:[#allocation346_spill] sm:$0xff]  ;;  %v24709_v48 = vld [vmem:[#allocation347_spill] sm:$0xff]  ;;  %v14923_v22 = vpop.f32.mrf.mxu1 }
 0x1f7   : > { %v7930_v11 = vrot.slane %v24704_v28, %v15871_v8  ;;  %v7931_v7 = vcombine.low %v7909_v14, %v7916_v58  ;;  %v24710_v15 = vcombine.low %v24708_v26, %v24709_v48  ;;  %v24711_v58 = vld [vmem:[#allocation348_spill] sm:$0xff]  ;;  %v24712_v14 = vld [vmem:[#allocation349_spill] sm:$0xff]  ;;  %v24714_v40 = vcombine.low %v18487_v19, %v18457_v29 }
 0x1f8   : > { %v7958_v60 = vrot.slane %v24707_v62, %v15871_v8  ;;  %v20010_v28 = vrot.slane %v7883_v36, %v15871_v8  ;;  %v24713_v17 = vcombine.low %v24711_v58, %v24712_v14  ;;  %v24715_v62 = vcombine.low %v18111_v4, %v18261_v13  ;;  %v24717_v13 = vld [vmem:[#allocation365_spill] sm:$0xff]  ;;  %v24718_v4 = vld [vmem:[#allocation366_spill] sm:$0xff]  ;;  %v24725_v14 = vld [vmem:[#allocation23_spill] sm:$0xff] }
 0x1f9   : > { %v7965_v57 = vrot.slane %v24710_v15, %v15871_v8  ;;  %v7932_v56 = vcombine.low %v7923_v18, %v7930_v11  ;;  %15099 = vmatmul.mubr.msk.bf16.vlgmr.msra.gmra.mxu1 %vm3919_vm2, %v24714_v40  ;;  %v20021_v63 = vrot.slane %v7931_v7, %v15871_v8  ;;  %v24716_v18 = vcombine.low %v18240_v23, %v18248_v49  ;;  %v24726_v40 = vld [vmem:[#allocation22_spill] sm:$0xff] }
 0x1fa   : > { %v7972_v42 = vrot.slane %v24713_v17, %v15871_v8  ;;  %v7979_v36 = vrot.slane %v24715_v62, %v15871_v8  ;;  %15269 = vmatpush3.bf16.msra.mxu1 %v19806_v46  ;;  %15102 = vmatprep.mubr.msk.bf16.mxu1 %vm15764_vm4, %v23936_v59  ;;  %v10032_v29 = vsel %vm3983_vm0, %v14557_v5, 0  ;;  %v24720_v23 = vrot.slane %v19819_v2, %v15871_v8  ;;  %v24721_v5 = vld [vmem:[#allocation367_spill] sm:$0xff] }
 0x1fb   : > { %v7980_v26 = vcombine.low %v7958_v60, %v7965_v57  ;;  %v8007_v11 = vrot.slane %v24716_v18, %v15871_v8  ;;  %v20038_v17 = vrot.slane %v7932_v56, %v15871_v8  ;;  %v24719_v57 = vcombine.low %v24717_v13, %v24718_v4  ;;  %v24722_v60 = vld [vmem:[#allocation368_spill] sm:$0xff]  ;;  %v24729_v18 = vld [vmem:[#allocation25_spill] sm:$0xff]  ;;  %15440 = vmatprep.subr.bf16.mxu1 %v23936_v59 }
 0x1fc   : > { %15093 = vmatmul.mubr.msk.bf16.gmra.mxu0 %vm3919_vm2, %v24720_v23  ;;  %v7981_v49 = vcombine.low %v7972_v42, %v7979_v36  ;;  %v24723_v48 = vcombine.low %v24721_v5, %v24722_v60  ;;  %v24724_v22 = vcombine.low %v18287_v12, %v24608_v10  ;;  %v24727_v62 = vcombine.low %v24725_v14, %v24726_v40  ;;  %v24732_v23 = vld [vmem:[#allocation27_spill] sm:$0xff] }
 0x1fd   : > { %v8014_v7 = vrot.slane %v24719_v57, %v15871_v8  ;;  %v20049_v46 = vrot.slane %v7980_v26, %v15871_v8  ;;  %15184 = vmatprep.mubr.msk.bf16.mxu0 %vm15764_vm4, %v23936_v59  ;;  %v24728_v26 = vld [vmem:[#allocation24_spill] sm:$0xff]  ;;  %v24731_v57 = vld [vmem:[#allocation26_spill] sm:$0xff] }
 0x1fe   : > { %v8021_v15 = vrot.slane %v24723_v48, %v15871_v8  ;;  %v8028_v56 = vrot.slane %v24724_v22, %v15871_v8  ;;  %v8056_v36 = vrot.slane %v24727_v62, %v15871_v8  ;;  %v24730_v13 = vcombine.low %v24728_v26, %v24729_v18  ;;  %v24738_v62 = vld [vmem:[#allocation47_spill] sm:$0xff]  ;;  %v24740_v26 = vld [vmem:[#allocation48_spill] sm:$0xff]  ;;  %v24741_v18 = vld [vmem:[#allocation49_spill] sm:$0xff] }
 0x1ff   : > { %v8029_v42 = vcombine.low %v8007_v11, %v8014_v7  ;;  %v20072_v12 = vrot.slane %v7981_v49, %v15871_v8  ;;  %v24733_v5 = vcombine.low %v24731_v57, %v24732_v23  ;;  %v24734_v11 = vld [vmem:[#allocation28_spill] sm:$0xff]  ;;  %v24735_v7 = vld [vmem:[#allocation45_spill] sm:$0xff]  ;;  %v24737_v49 = vld [vmem:[#allocation46_spill] sm:$0xff] }
 0x200   : > { %v8063_v4 = vrot.slane %v24730_v13, %v15871_v8  ;;  %v8030_v10 = vcombine.low %v8021_v15, %v8028_v56  ;;  %v24736_v48 = vcombine.low %v24734_v11, %v24735_v7  ;;  %v24739_v15 = vcombine.low %v24737_v49, %v24738_v62  ;;  %v24746_v49 = vld [vmem:[#allocation52_spill] sm:$0xff]  ;;  %v24750_v23 = vld [vmem:[#allocation82_spill] sm:$0xff] }
 0x201   : > { %v8070_v60 = vrot.slane %v24733_v5, %v15871_v8  ;;  %v20084_v14 = vrot.slane %v8029_v42, %v15871_v8  ;;  %v24742_v13 = vcombine.low %v24740_v26, %v24741_v18  ;;  %v24743_v42 = vld [vmem:[#allocation50_spill] sm:$0xff]  ;;  %v24747_v62 = vld [vmem:[#allocation80_spill] sm:$0xff] }
 0x202   : > { %v8077_v22 = vrot.slane %v24736_v48, %v15871_v8  ;;  %v8078_v40 = vcombine.low %v8056_v36, %v8063_v4  ;;  %v8105_v56 = vrot.slane %v24739_v15, %v15871_v8  ;;  %v20097_v5 = vrot.slane %v8030_v10, %v15871_v8  ;;  %v24744_v36 = vld [vmem:[#allocation51_spill] sm:$0xff] }
 0x203   : > { %v8112_v57 = vrot.slane %v24742_v13, %v15871_v8  ;;  %v24745_v4 = vcombine.low %v24743_v42, %v24744_v36  ;;  %v24748_v15 = vcombine.low %v24746_v49, %v24747_v62  ;;  %v24749_v13 = vld [vmem:[#allocation81_spill] sm:$0xff]  ;;  %v24753_v42 = vld [vmem:[#allocation83_spill] sm:$0xff]  ;;  %v24754_v36 = vld [vmem:[#allocation84_spill] sm:$0xff] }
 0x204   : > { %v8079_v11 = vcombine.low %v8070_v60, %v8077_v22  ;;  %v20104_v48 = vrot.slane %v8078_v40, %v15871_v8  ;;  %v24751_v10 = vcombine.low %v24749_v13, %v24750_v23  ;;  %v24752_v60 = vcombine.low %v18557_v24, %v18529_v0  ;;  %v24757_v23 = vld [vmem:[#allocation86_spill] sm:$0xff] }
 0x205   : > { %v8119_v7 = vrot.slane %v24745_v4, %v15871_v8  ;;  %v8126_v26 = vrot.slane %v24748_v15, %v15871_v8  ;;  %v8127_v18 = vcombine.low %v8105_v56, %v8112_v57  ;;  %v24755_v56 = vcombine.low %v24753_v42, %v24754_v36  ;;  %v24756_v4 = vld [vmem:[#allocation85_spill] sm:$0xff]  ;;  %v24763_v42 = vld [vmem:[#allocation119_spill] sm:$0xff] }
 0x206   : > { %v8154_v58 = vrot.slane %v24751_v10, %v15871_v8  ;;  %15103 = vmatmul.mubr.msk.bf16.gmra.mxu1 %vm3919_vm2, %v24752_v60  ;;  %v20121_v40 = vrot.slane %v8079_v11, %v15871_v8  ;;  %v24758_v49 = vcombine.low %v24756_v4, %v24757_v23  ;;  %v24759_v11 = vld [vmem:[#allocation87_spill] sm:$0xff]  ;;  %v24760_v15 = vld [vmem:[#allocation117_spill] sm:$0xff]  ;;  %v24762_v60 = vld [vmem:[#allocation118_spill] sm:$0xff]  ;;  %v24765_v4 = vcombine.low %v19424_v54, %v19502_v34 }
 0x207   : > { %v8161_v57 = vrot.slane %v24755_v56, %v15871_v8  ;;  %15106 = vmatprep.mubr.msk.bf16.mxu1 %vm15764_vm4, %v23936_v59  ;;  %v8128_v0 = vcombine.low %v8119_v7, %v8126_v26  ;;  %v20134_v24 = vrot.slane %v8127_v18, %v15871_v8  ;;  %v24761_v13 = vcombine.low %v24759_v11, %v24760_v15  ;;  %v24766_v18 = vld [vmem:[#allocation120_spill] sm:$0xff]  ;;  %v24767_v23 = vld [vmem:[#allocation121_spill] sm:$0xff]  ;;  %v24769_v15 = vld [vmem:[#allocation122_spill] sm:$0xff] }
 0x208   : > { %v8168_v62 = vrot.slane %v24758_v49, %v15871_v8  ;;  %v24764_v36 = vcombine.low %v24762_v60, %v24763_v42  ;;  %15185 = vmatmul.mubr.msk.bf16.vlgmr.msra.gmra.mxu0 %vm3919_vm2, %v24765_v4  ;;  %v24768_v49 = vcombine.low %v24766_v18, %v24767_v23  ;;  %v20167_v4 = vpop.f32.mrf.mxu0 }
 0x209   : > { %v8175_v10 = vrot.slane %v24761_v13, %v15871_v8  ;;  %v8176_v26 = vcombine.low %v8154_v58, %v8161_v57  ;;  %v24770_v13 = vld [vmem:[#allocation123_spill] sm:$0xff]  ;;  %15355 = vmatpush3.bf16.msra.mxu0 %v10032_v29  ;;  %15188 = vmatprep.mubr.msk.bf16.mxu0 %vm15764_vm4, %v23936_v59  ;;  %v20161_v54 = vrot.slane %v8128_v0, %v15871_v8  ;;  %v24772_v58 = vld [vmem:[#allocation124_spill] sm:$0xff]  ;;  %v24778_v0 = vld [vmem:[#allocation162_spill] sm:$0xff] }
 0x20a   : > { %v8203_v56 = vrot.slane %v24764_v36, %v15871_v8  ;;  %v8210_v11 = vrot.slane %v24768_v49, %v15871_v8  ;;  %v24771_v22 = vcombine.low %v24769_v15, %v24770_v13  ;;  %v24773_v57 = vld [vmem:[#allocation159_spill] sm:$0xff]  ;;  %v24775_v29 = vld [vmem:[#allocation160_spill] sm:$0xff]  ;;  %15526 = vmatprep.subr.bf16.mxu0 %v23936_v59 }
 0x20b   : > { %v8177_v34 = vcombine.low %v8168_v62, %v8175_v10  ;;  %v24774_v42 = vcombine.low %v24772_v58, %v24773_v57  ;;  %v20170_v18 = vrot.slane %v8176_v26, %v15871_v8  ;;  %v24779_v13 = vld [vmem:[#allocation163_spill] sm:$0xff]  ;;  %v5282_v58 = vpop.f32.mrf.mxu1 }
 0x20c   : > { %v8217_v60 = vrot.slane %v24771_v22, %v15871_v8  ;;  %v8225_v23 = vcombine.low %v8203_v56, %v8210_v11  ;;  %v24776_v22 = vld [vmem:[#allocation161_spill] sm:$0xff]  ;;  %v24780_v62 = vcombine.low %v24778_v0, %v24779_v13  ;;  %v24781_v56 = vld [vmem:[#allocation164_spill] sm:$0xff]  ;;  %v24785_v0 = vld [vmem:[#allocation166_spill] sm:$0xff] }
 0x20d   : > { %v8224_v36 = vrot.slane %v24774_v42, %v15871_v8  ;;  %v24777_v49 = vcombine.low %v24775_v29, %v24776_v22  ;;  %v20184_v57 = vrot.slane %v8177_v34, %v15871_v8  ;;  %v24782_v11 = vld [vmem:[#allocation165_spill] sm:$0xff]  ;;  %v14882_v22 = vpop.f32.mrf.mxu0  ;;  %v24808_v34 = vld [vmem:[#allocation246_spill] sm:$0xff] }
 0x20e   : > { %v8259_v10 = vrot.slane %v24780_v62, %v15871_v8  ;;  %v24783_v42 = vcombine.low %v24781_v56, %v24782_v11  ;;  %v24786_v13 = vld [vmem:[#allocation201_spill] sm:$0xff]  ;;  %v24790_v56 = vld [vmem:[#allocation203_spill] sm:$0xff] }
 0x20f   : > { %v8252_v15 = vrot.slane %v24777_v49, %v15871_v8  ;;  %v8226_v26 = vcombine.low %v8217_v60, %v8224_v36  ;;  %v20191_v49 = vrot.slane %v8225_v23, %v15871_v8  ;;  %v24787_v62 = vcombine.low %v24785_v0, %v24786_v13  ;;  %v24789_v36 = vld [vmem:[#allocation202_spill] sm:$0xff]  ;;  %v24792_v23 = vld [vmem:[#allocation204_spill] sm:$0xff]  ;;  %v24793_v22 = vld [vmem:[#allocation205_spill] sm:$0xff]  ;;  %v14928_v13 = vpop.f32.mrf.mxu1 }
 0x210   : > { %v8266_v29 = vrot.slane %v24783_v42, %v15871_v8  ;;  %v24791_v11 = vcombine.low %v24789_v36, %v24790_v56  ;;  %v24794_v1 = vcombine.low %v24792_v23, %v24793_v22  ;;  %v24798_v36 = vld [vmem:[#allocation207_spill] sm:$0xff] }
 0x211   : > { %24784 = vst [vmem:[#allocation68_spill] sm:$0xff] %v20191_v49  ;;  %v8273_v7 = vrot.slane %v24787_v62, %v15871_v8  ;;  %v8274_v19 = vcombine.low %v8252_v15, %v8259_v10  ;;  %v20200_v60 = vrot.slane %v8226_v26, %v15871_v8  ;;  %v24795_v15 = vcombine.low %v18644_v45, %v18635_v52  ;;  %v20214_v10 = vpop.f32.mrf.mxu0  ;;  %v24800_v45 = vld [vmem:[#allocation208_spill] sm:$0xff]  ;;  %v24804_v13 = vld [vmem:[#allocation243_spill] sm:$0xff] }
 0x212   : > { %v8301_v42 = vrot.slane %v24791_v11, %v15871_v8  ;;  %v8308_v2 = vrot.slane %v24794_v1, %v15871_v8  ;;  %24796 = vst [vmem:[#allocation97_spill] sm:$0xff] %v20214_v10  ;;  %v24797_v1 = vld [vmem:[#allocation206_spill] sm:$0xff]  ;;  %v24805_v62 = vld [vmem:[#allocation244_spill] sm:$0xff] }
 0x213   : > { %24788 = vst [vmem:[#allocation96_spill] sm:$0xff] %v20200_v60  ;;  %15107 = vmatmul.mubr.msk.bf16.gmra.mxu1 %vm3919_vm2, %v24795_v15  ;;  %v8275_v0 = vcombine.low %v8266_v29, %v8273_v7  ;;  %v20217_v26 = vrot.slane %v8274_v19, %v15871_v8  ;;  %v24799_v56 = vcombine.low %v24797_v1, %v24798_v36  ;;  %v24801_v11 = vld [vmem:[#allocation242_spill] sm:$0xff]  ;;  %v14883_v22 = vpop.f32.mrf.mxu0 }
 0x214   : > { %15110 = vmatprep.mubr.msk.bf16.mxu1 %vm15764_vm4, %v23936_v59  ;;  %v24802_v23 = vcombine.low %v24800_v45, %v24801_v11  ;;  %v8323_v29 = vcombine.low %v8301_v42, %v8308_v2  ;;  %v24803_v19 = vcombine.low %v19868_v27, %v19875_v61  ;;  %v24806_v1 = vcombine.low %v24804_v13, %v24805_v62  ;;  %v5285_v2 = vpop.f32.mrf.mxu1  ;;  %v24810_v42 = vld [vmem:[#allocation247_spill] sm:$0xff]  ;;  %v24813_v62 = vld [vmem:[#allocation249_spill] sm:$0xff] }
 0x215   : > { %v8315_v52 = vrot.slane %v24799_v56, %v15871_v8  ;;  %v20236_v15 = vrot.slane %v8275_v0, %v15871_v8  ;;  %v24807_v56 = vld [vmem:[#allocation245_spill] sm:$0xff]  ;;  %v24811_v0 = vld [vmem:[#allocation248_spill] sm:$0xff]  ;;  %v24814_v22 = vld [vmem:[#allocation283_spill] sm:$0xff]  ;;  %v6545_v10 = vpop.f32.mrf.mxu0 }
 0x216   : > { %v8322_v7 = vrot.slane %v24802_v23, %v15871_v8  ;;  %15189 = vmatmul.mubr.msk.bf16.gmra.mxu0 %vm3919_vm2, %v24803_v19  ;;  %v8350_v36 = vrot.slane %v24806_v1, %v15871_v8  ;;  %v24809_v45 = vcombine.low %v24807_v56, %v24808_v34  ;;  %v20249_v61 = vrot.slane %v8323_v29, %v15871_v8 }
 0x217   : > { %15192 = vmatprep.mubr.msk.bf16.mxu0 %vm15764_vm4, %v23936_v59  ;;  %v24812_v23 = vcombine.low %v24810_v42, %v24811_v0  ;;  %v24815_v13 = vcombine.low %v24813_v62, %v24814_v22  ;;  %v24817_v42 = vld [vmem:[#allocation284_spill] sm:$0xff]  ;;  %v24818_v0 = vld [vmem:[#allocation285_spill] sm:$0xff]  ;;  %v24820_v22 = vld [vmem:[#allocation286_spill] sm:$0xff] }
 0x218   : > { %v8357_v11 = vrot.slane %v24809_v45, %v15871_v8  ;;  %v8324_v27 = vcombine.low %v8315_v52, %v8322_v7  ;;  %v24816_v45 = vld [vmem:[#allocation369_spill] sm:$0xff]  ;;  %v14929_v52 = vpop.f32.mrf.mxu1 }
 0x219   : > { %v8364_v19 = vrot.slane %v24812_v23, %v15871_v8  ;;  %v8371_v1 = vrot.slane %v24815_v13, %v15871_v8  ;;  %v5283_v60 = vadd.f32 %v5282_v58, %v24816_v45  ;;  %v24819_v23 = vcombine.low %v24817_v42, %v24818_v0  ;;  %v24823_v13 = vld [vmem:[#allocation288_spill] sm:$0xff]  ;;  %v24824_v45 = vld [vmem:[#allocation289_spill] sm:$0xff] }
 0x21a   : > { %v8372_v56 = vcombine.low %v8350_v36, %v8357_v11  ;;  %v20263_v7 = vrot.slane %v8324_v27, %v15871_v8  ;;  %v24821_v36 = vld [vmem:[#allocation287_spill] sm:$0xff]  ;;  %v24825_v27 = vcombine.low %v24823_v13, %v24824_v45 }
 0x21b   : > { %v8373_v29 = vcombine.low %v8364_v19, %v8371_v1  ;;  %v8399_v49 = vrot.slane %v24819_v23, %v15871_v8  ;;  %v24822_v11 = vcombine.low %v24820_v22, %v24821_v36  ;;  %v5290_v19 = vpop.f32.mrf.mxu1  ;;  %v20280_v1 = vadd.f32 %v6545_v10, %v5283_v60  ;;  %v15014_v23 = vpop.f32.mrf.mxu0  ;;  %v24827_v22 = vld [vmem:[#allocation290_spill] sm:$0xff]  ;;  %v24828_v36 = vld [vmem:[#allocation325_spill] sm:$0xff]  ;;  %v14475_v60 = vld.sshfl [vmem:[%s15868_s7 + $0xdc] sm:$0x33 pattern:$0x75316420] }
 0x21c   : > { %v20270_v62 = vrot.slane %v8372_v56, %v15871_v8  ;;  %v8413_v52 = vrot.slane %v24825_v27, %v15871_v8  ;;  %v24826_v56 = vcombine.low %v18715_v47, %v18705_v51  ;;  %v24830_v10 = vld [vmem:[#allocation375_spill] sm:$0xff]  ;;  %v24831_v51 = vcombine.low %v19888_v35, %v19901_v31 }
 0x21d   : > { %v8406_v58 = vrot.slane %v24822_v11, %v15871_v8  ;;  %v20285_v0 = vrot.slane %v8373_v29, %v15871_v8  ;;  %v24829_v11 = vcombine.low %v24827_v22, %v24828_v36  ;;  %v5286_v27 = vadd.f32 %v5285_v2, %v24830_v10  ;;  %v14932_v29 = vpop.f32.mrf.mxu1  ;;  %v6548_v47 = vpop.f32.mrf.mxu0  ;;  %v24834_v22 = vld [vmem:[#allocation357_spill] sm:$0xff] }
 0x21e   : > { %15111 = vmatmul.mubr.msk.bf16.gmra.mxu1 %vm3919_vm2, %v24826_v56  ;;  %15193 = vmatmul.mubr.msk.bf16.gmra.mxu0 %vm3919_vm2, %v24831_v51  ;;  %v6786_v31 = vcombine.high %v14475_v60, %v14475_v60  ;;  %v24837_v29 = vld [vmem:[#allocation326_spill] sm:$0xff] }
 0x21f   : > { %v8420_v13 = vrot.slane %v24829_v11, %v15871_v8  ;;  %v8421_v45 = vcombine.low %v8399_v49, %v8406_v58  ;;  %15114 = vmatprep.mubr.msk.bf16.mxu1 %vm15764_vm4, %v23936_v59  ;;  %15196 = vmatprep.mubr.msk.bf16.mxu0 %vm15764_vm4, %v23936_v59  ;;  %v5293_v49 = vpop.f32.mrf.mxu1  ;;  %v20310_v2 = vadd.f32 %v6548_v47, %v5286_v27  ;;  %v24833_v58 = vld [vmem:[#allocation331_spill] sm:$0xff]  ;;  %v15015_v10 = vpop.f32.mrf.mxu0  ;;  %v24840_v47 = vld [vmem:[#allocation328_spill] sm:$0xff] }
 0x220   : > { %v24835_v36 = vcombine.low %v24833_v58, %v24834_v22  ;;  %v24839_v27 = vld [vmem:[#allocation327_spill] sm:$0xff]  ;;  %v24870_v22 = vld [vmem:[#allocation408_spill] sm:$0xff] }
 0x221   : > { %v8422_v56 = vcombine.low %v8413_v52, %v8420_v13  ;;  %v20306_v23 = vrot.slane %v8421_v45, %v15871_v8  ;;  %24832 = vst [vmem:[#allocation98_spill] sm:$0xff] %v20310_v2  ;;  %v5291_v52 = vadd.f32 %v5290_v19, %v18367_v3  ;;  %v14933_v13 = vpop.f32.mrf.mxu1  ;;  %v24836_v45 = vld [vmem:[#allocation324_spill] sm:$0xff]  ;;  %v24841_v34 = vcombine.low %v24839_v27, %v24840_v47  ;;  %v6553_v58 = vpop.f32.mrf.mxu0 }
 0x222   : > { %v8469_v11 = vrot.slane %v24835_v36, %v15871_v8  ;;  %v24838_v51 = vcombine.low %v24836_v45, %v24837_v29  ;;  %v24843_v36 = vld [vmem:[#allocation330_spill] sm:$0xff]  ;;  %v20337_v29 = vrot.slane %v14475_v60, %v15871_v8  ;;  %v20344_v27 = vrot.slane %v6786_v31, %v15871_v8 }
 0x223   : > { %v20317_v35 = vrot.slane %v8422_v56, %v15871_v8  ;;  %v8455_v2 = vrot.slane %v24841_v34, %v15871_v8  ;;  %v24842_v56 = vld [vmem:[#allocation329_spill] sm:$0xff]  ;;  %v5298_v19 = vpop.f32.mrf.mxu1  ;;  %v20334_v13 = vadd.f32 %v6553_v58, %v5291_v52  ;;  %v24846_v34 = vcombine.low %v18778_v38, %v18806_v55 }
 0x224   : > { %v8448_v42 = vrot.slane %v24838_v51, %v15871_v8  ;;  %v24844_v10 = vcombine.low %v24842_v56, %v24843_v36  ;;  %24845 = vst [vmem:[#allocation99_spill] sm:$0xff] %v20337_v29  ;;  %v15018_v51 = vpop.f32.mrf.mxu0  ;;  %24847 = vst [vmem:[#allocation100_spill] sm:$0xff] %v20344_v27  ;;  %v5294_v56 = vadd.f32 %v5293_v49, %v18410_v41 }
 0x225   : > { %v14936_v52 = vpop.f32.mrf.mxu1  ;;  %v24848_v60 = vcombine.low %v19908_v53, %v19922_v50  ;;  %v20364_v41 = vcombine.high %v20344_v27, %v20344_v27  ;;  %v20372_v53 = vcombine.high %v20337_v29, %v20337_v29 }
 0x226   : > { %v8462_v3 = vrot.slane %v24844_v10, %v15871_v8  ;;  %v8470_v45 = vcombine.low %v8448_v42, %v8455_v2  ;;  %15115 = vmatmul.mubr.msk.bf16.gmra.mxu1 %vm3919_vm2, %v24846_v34  ;;  %v6556_v55 = vpop.f32.mrf.mxu0  ;;  %v20360_v2 = vld.sshfl [vmem:[%s15868_s7 + $0xe0] sm:$0x11 pattern:$0x75316420]  ;;  %v5299_v10 = vadd.f32 %v5298_v19, %v18434_v39  ;;  %v9749_v52 = vcombine.low %v18398_v16, %v18403_v37  ;;  %v25055_v16 = vld [vmem:[#allocation197_spill] sm:$0xff] }
 0x227   : > { %15118 = vmatprep.mubr.msk.bf16.mxu1 %vm15764_vm4, %v23936_v59  ;;  %15197 = vmatmul.mubr.msk.bf16.gmra.mxu0 %vm3919_vm2, %v24848_v60  ;;  %v5301_v49 = vpop.f32.mrf.mxu1  ;;  %v20378_v36 = vrot.slane %v20360_v2, %v15871_v8  ;;  %v7538_v34 = vshrl.u32 %v20364_v41, 16  ;;  %v24850_v60 = vcombine.low %v18850_v9, %v18879_v25 }
 0x228   : > { %v8471_v47 = vcombine.low %v8462_v3, %v8469_v11  ;;  %v20350_v42 = vrot.slane %v8470_v45, %v15871_v8  ;;  %15200 = vmatprep.mubr.msk.bf16.mxu0 %vm15764_vm4, %v23936_v59  ;;  %v20368_v11 = vadd.f32 %v6556_v55, %v5294_v56  ;;  %v15019_v31 = vpop.f32.mrf.mxu0  ;;  %v7535_v3 = vshll.u32 %v20364_v41, 16 }
 0x229   : > { %v14937_v58 = vpop.f32.mrf.mxu1  ;;  %v7530_v45 = vshrl.u32 %v20372_v53, 16  ;;  %v7543_v56 = vshll.u32 %v20378_v36, 16  ;;  %v24852_v31 = vcombine.low %v19939_v6, %v19963_v32  ;;  %v20413_v32 = vrot.slane %v9749_v52, %v15871_v8  ;;  %v24868_v52 = vld [vmem:[#allocation94_spill] sm:$0xff] }
 0x22a   : > { %v20357_v38 = vrot.slane %v8471_v47, %v15871_v8  ;;  %24849 = vst [vmem:[#allocation101_spill] sm:$0xff] %v20368_v11  ;;  %v6561_v47 = vpop.f32.mrf.mxu0  ;;  %v5302_v58 = vadd.f32 %v5301_v49, %v18466_v30 }
 0x22b   : > { %v5306_v51 = vpop.f32.mrf.mxu1  ;;  %v20391_v55 = vadd.f32 %v6561_v47, %v5299_v10  ;;  %v20402_v50 = vsel %vm15915_vm1, %v7530_v45, %v7535_v3  ;;  %v20406_v9 = vsel %vm15915_vm1, %v7538_v34, %v7543_v56  ;;  %v24857_v45 = vcombine.low %v18406_v20, %v18462_v33  ;;  %v24858_v56 = vld [vmem:[#allocation335_spill] sm:$0xff] }
 0x22c   : > { %v15022_v19 = vpop.f32.mrf.mxu0  ;;  %24854 = vst [vmem:[#allocation103_spill] sm:$0xff] %v20402_v50  ;;  %24855 = vst [vmem:[#allocation138_spill] sm:$0xff] %v20406_v9  ;;  %v24864_v33 = vcombine.low %v19974_v43, %v19987_v21 }
 0x22d   : > { %24851 = vst [vmem:[#allocation102_spill] sm:$0xff] %v20391_v55  ;;  %v14940_v39 = vpop.f32.mrf.mxu1  ;;  %v20421_v34 = vrot.slane %v24857_v45, %v15871_v8 }
 0x22e   : > { %15119 = vmatmul.mubr.msk.bf16.gmra.mxu1 %vm3919_vm2, %v24850_v60  ;;  %v6564_v10 = vpop.f32.mrf.mxu0  ;;  %v24859_v60 = vld [vmem:[#allocation402_spill] sm:$0xff] }
 0x22f   : > { %15122 = vmatprep.mubr.msk.bf16.mxu1 %vm15764_vm4, %v23936_v59  ;;  %15201 = vmatmul.mubr.msk.bf16.gmra.mxu0 %vm3919_vm2, %v24852_v31  ;;  %v5309_v25 = vpop.f32.mrf.mxu1  ;;  %v20415_v30 = vadd.f32 %v6564_v10, %v5302_v58  ;;  %v24860_v39 = vcombine.low %v24858_v56, %v24859_v60  ;;  %v24861_v31 = vld [vmem:[#allocation384_spill] sm:$0xff]  ;;  %v24862_v58 = vld [vmem:[#allocation383_spill] sm:$0xff] }
 0x230   : > { %15204 = vmatprep.mubr.msk.bf16.mxu0 %vm15764_vm4, %v23936_v59  ;;  %v15023_v3 = vpop.f32.mrf.mxu0  ;;  %v9758_v10 = vcombine.low %v24862_v58, %v24861_v31  ;;  %v24867_v58 = vld [vmem:[#allocation58_spill] sm:$0xff] }
 0x231   : > { %24856 = vst [vmem:[#allocation139_spill] sm:$0xff] %v20415_v30  ;;  %v14941_v49 = vpop.f32.mrf.mxu1  ;;  %v24871_v30 = vld [vmem:[#allocation340_spill] sm:$0xff] }
 0x232   : > { %v24863_v49 = vld [vmem:[#allocation59_spill] sm:$0xff]  ;;  %v6569_v3 = vpop.f32.mrf.mxu0  ;;  %v20450_v43 = vrot.slane %v9758_v10, %v15871_v8  ;;  %v24872_v55 = vcombine.low %v24870_v22, %v24871_v30  ;;  %v24875_v10 = vld [vmem:[#allocation130_spill] sm:$0xff]  ;;  %v24877_v22 = vcombine.low %v19997_v44, %v20010_v28 }
 0x233   : > { %v5314_v47 = vpop.f32.mrf.mxu1  ;;  %v5307_v20 = vadd.f32 %v5306_v51, %v24863_v49  ;;  %v24869_v51 = vcombine.low %v24867_v58, %v24868_v52 }
 0x234   : > { %v15026_v60 = vpop.f32.mrf.mxu0 }
 0x235   : > { %v14944_v19 = vpop.f32.mrf.mxu1  ;;  %v20440_v56 = vadd.f32 %v6569_v3, %v5307_v20  ;;  %v20447_v49 = vrot.slane %v24869_v51, %v15871_v8  ;;  %v24874_v60 = vld [vmem:[#allocation132_spill] sm:$0xff] }
 0x236   : > { %15123 = vmatmul.mubr.msk.bf16.gmra.mxu1 %vm3919_vm2, %v24860_v39  ;;  %v24866_v19 = vld [vmem:[#allocation91_spill] sm:$0xff]  ;;  %v6572_v21 = vpop.f32.mrf.mxu0 }
 0x237   : > { %15126 = vmatprep.mubr.msk.bf16.mxu1 %vm15764_vm4, %v23936_v59  ;;  %15205 = vmatmul.mubr.msk.bf16.gmra.mxu0 %vm3919_vm2, %v24864_v33  ;;  %v5317_v45 = vpop.f32.mrf.mxu1  ;;  %24865 = vst [vmem:[#allocation140_spill] sm:$0xff] %v20440_v56  ;;  %v5310_v6 = vadd.f32 %v5309_v25, %v24866_v19  ;;  %v24876_v19 = vld [vmem:[#allocation175_spill] sm:$0xff]  ;;  %v24881_v25 = vld [vmem:[#allocation174_spill] sm:$0xff] }
 0x238   : > { %15208 = vmatprep.mubr.msk.bf16.mxu0 %vm15764_vm4, %v23936_v59  ;;  %v15027_v3 = vpop.f32.mrf.mxu0  ;;  %v5315_v58 = vadd.f32 %v5314_v47, %v24876_v19 }
 0x239   : > { %v14945_v39 = vpop.f32.mrf.mxu1  ;;  %v20456_v20 = vadd.f32 %v6572_v21, %v5310_v6  ;;  %v24879_v3 = vld [vmem:[#allocation137_spill] sm:$0xff] }
 0x23a   : > { %v9767_v39 = vcombine.low %v24875_v10, %v24874_v60  ;;  %v24880_v60 = vld [vmem:[#allocation385_spill] sm:$0xff] }
 0x23b   : > { %v5322_v33 = vpop.f32.mrf.mxu1  ;;  %24873 = vst [vmem:[#allocation141_spill] sm:$0xff] %v20456_v20  ;;  %v24882_v47 = vcombine.low %v24880_v60, %v24881_v25  ;;  %v24883_v20 = vld [vmem:[#allocation14_spill] sm:$0xff] }
 0x23c   : > { %v20481_v44 = vrot.slane %v9767_v39, %v15871_v8  ;;  %v24887_v39 = vcombine.low %v20021_v63, %v20038_v17  ;;  %v24888_v60 = vld [vmem:[#allocation298_spill] sm:$0xff]  ;;  %v24894_v17 = vld [vmem:[#allocation260_spill] sm:$0xff] }
 0x23d   : > { %v14948_v52 = vpop.f32.mrf.mxu1  ;;  %v20478_v19 = vrot.slane %v24882_v47, %v15871_v8 }
 0x23e   : > { %15127 = vmatmul.mubr.msk.bf16.gmra.mxu1 %vm3919_vm2, %v24872_v55  ;;  %v6577_v55 = vpop.f32.mrf.mxu0  ;;  %v5318_v52 = vadd.f32 %v5317_v45, %v24879_v3 }
 0x23f   : > { %15130 = vmatprep.mubr.msk.bf16.mxu1 %vm15764_vm4, %v23936_v59  ;;  %15209 = vmatmul.mubr.msk.bf16.gmra.mxu0 %vm3919_vm2, %v24877_v22  ;;  %v5325_v6 = vpop.f32.mrf.mxu1  ;;  %v20471_v30 = vadd.f32 %v6577_v55, %v5315_v58 }
 0x240   : > { %15212 = vmatprep.mubr.msk.bf16.mxu0 %vm15764_vm4, %v23936_v59  ;;  %v15030_v51 = vpop.f32.mrf.mxu0 }
 0x241   : > { %24878 = vst [vmem:[#allocation142_spill] sm:$0xff] %v20471_v30  ;;  %v14949_v21 = vpop.f32.mrf.mxu1  ;;  %v24885_v51 = vld [vmem:[#allocation389_spill] sm:$0xff] }
 0x242   : > { %v6580_v28 = vpop.f32.mrf.mxu0  ;;  %v24886_v21 = vld [vmem:[#allocation177_spill] sm:$0xff] }
 0x243   : > { %v5330_v22 = vpop.f32.mrf.mxu1  ;;  %v20485_v58 = vadd.f32 %v6580_v28, %v5318_v52  ;;  %v9776_v3 = vcombine.low %v24886_v21, %v24885_v51 }
 0x244   : > { %v15031_v45 = vpop.f32.mrf.mxu0 }
 0x245   : > { %24884 = vst [vmem:[#allocation143_spill] sm:$0xff] %v20485_v58  ;;  %v14952_v25 = vpop.f32.mrf.mxu1  ;;  %v24891_v58 = vld [vmem:[#allocation212_spill] sm:$0xff]  ;;  %v20509_v63 = vrot.slane %v9776_v3, %v15871_v8  ;;  %v24900_v3 = vld [vmem:[#allocation215_spill] sm:$0xff] }
 0x246   : > { %15131 = vmatmul.mubr.msk.bf16.gmra.mxu1 %vm3919_vm2, %v24883_v20  ;;  %v5323_v20 = vadd.f32 %v5322_v33, %v24888_v60  ;;  %v6585_v47 = vpop.f32.mrf.mxu0  ;;  %v24890_v25 = vld [vmem:[#allocation390_spill] sm:$0xff]  ;;  %v5326_v33 = vadd.f32 %v5325_v6, %v24894_v17  ;;  %v24896_v60 = vld [vmem:[#allocation40_spill] sm:$0xff]  ;;  %v24901_v6 = vcombine.low %v20049_v46, %v20072_v12 }
 0x247   : > { %15134 = vmatprep.mubr.msk.bf16.mxu1 %vm15764_vm4, %v23936_v59  ;;  %15213 = vmatmul.mubr.msk.bf16.gmra.mxu0 %vm3919_vm2, %v24887_v39  ;;  %v5333_v52 = vpop.f32.mrf.mxu1  ;;  %v24892_v51 = vcombine.low %v24890_v25, %v24891_v58  ;;  %24893 = vst [vmem:[#allocation145_spill] sm:$0xff] %v20509_v63  ;;  %v24895_v39 = vld [vmem:[#allocation16_spill] sm:$0xff]  ;;  %v24899_v58 = vld [vmem:[#allocation213_spill] sm:$0xff]  ;;  %v24910_v63 = vld [vmem:[#allocation70_spill] sm:$0xff] }
 0x248   : > { %15216 = vmatprep.mubr.msk.bf16.mxu0 %vm15764_vm4, %v23936_v59  ;;  %v20500_v28 = vadd.f32 %v6585_v47, %v5323_v20  ;;  %v15034_v55 = vpop.f32.mrf.mxu0  ;;  %v24897_v56 = vcombine.low %v24895_v39, %v24896_v60  ;;  %v9785_v25 = vcombine.low %v24900_v3, %v24899_v58  ;;  %v24902_v17 = vld [vmem:[#allocation416_spill] sm:$0xff] }
 0x249   : > { %v14953_v45 = vpop.f32.mrf.mxu1  ;;  %v20506_v30 = vrot.slane %v24892_v51, %v15871_v8  ;;  %v5331_v39 = vadd.f32 %v5330_v22, %v24902_v17  ;;  %v24905_v3 = vld [vmem:[#allocation216_spill] sm:$0xff] }
 0x24a   : > { %24889 = vst [vmem:[#allocation144_spill] sm:$0xff] %v20500_v28  ;;  %v6588_v20 = vpop.f32.mrf.mxu0  ;;  %v20540_v46 = vrot.slane %v9785_v25, %v15871_v8 }
 0x24b   : > { %v5338_v47 = vpop.f32.mrf.mxu1  ;;  %v20518_v45 = vadd.f32 %v6588_v20, %v5326_v33 }
 0x24c   : > { %v15035_v51 = vpop.f32.mrf.mxu0  ;;  %24907 = vst [vmem:[#allocation182_spill] sm:$0xff] %v20540_v46  ;;  %v24924_v46 = vld [vmem:[#allocation109_spill] sm:$0xff] }
 0x24d   : > { %24898 = vst [vmem:[#allocation180_spill] sm:$0xff] %v20518_v45  ;;  %v24904_v45 = vld [vmem:[#allocation179_spill] sm:$0xff] }
 0x24e   : > { %15135 = vmatmul.mubr.msk.bf16.gmra.mxu1 %vm3919_vm2, %v24897_v56  ;;  %v14956_v56 = vpop.f32.mrf.mxu1  ;;  %v6593_v60 = vpop.f32.mrf.mxu0  ;;  %v24906_v28 = vcombine.low %v24904_v45, %v24905_v3  ;;  %v24912_v45 = vcombine.low %v20084_v14, %v20097_v5  ;;  %v24918_v14 = vld [vmem:[#allocation257_spill] sm:$0xff]  ;;  %v24919_v5 = vld [vmem:[#allocation254_spill] sm:$0xff] }
 0x24f   : > { %15138 = vmatprep.mubr.msk.bf16.mxu1 %vm15764_vm4, %v23936_v59  ;;  %15217 = vmatmul.mubr.msk.bf16.gmra.mxu0 %vm3919_vm2, %v24901_v6  ;;  %v20531_v20 = vadd.f32 %v6593_v60, %v5331_v39  ;;  %v24908_v6 = vld [vmem:[#allocation37_spill] sm:$0xff]  ;;  %v24909_v56 = vld [vmem:[#allocation423_spill] sm:$0xff] }
 0x250   : > { %15220 = vmatprep.mubr.msk.bf16.mxu0 %vm15764_vm4, %v23936_v59  ;;  %v5341_v33 = vpop.f32.mrf.mxu1  ;;  %v20537_v11 = vrot.slane %v24906_v28, %v15871_v8  ;;  %v15038_v12 = vpop.f32.mrf.mxu0  ;;  %v5334_v51 = vadd.f32 %v5333_v52, %v24908_v6  ;;  %v24911_v22 = vcombine.low %v24909_v56, %v24910_v63  ;;  %v24914_v52 = vld [vmem:[#allocation394_spill] sm:$0xff]  ;;  %v24915_v39 = vld [vmem:[#allocation259_spill] sm:$0xff] }
 0x251   : > { %24903 = vst [vmem:[#allocation181_spill] sm:$0xff] %v20531_v20  ;;  %v9794_v63 = vcombine.low %v24915_v39, %v24914_v52  ;;  %v24916_v12 = vld [vmem:[#allocation430_spill] sm:$0xff] }
 0x252   : > { %v14957_v55 = vpop.f32.mrf.mxu1  ;;  %v6596_v17 = vpop.f32.mrf.mxu0  ;;  %v5339_v6 = vadd.f32 %v5338_v47, %v24916_v12 }
 0x253   : > { %v20555_v25 = vadd.f32 %v6596_v17, %v5334_v51  ;;  %v20571_v39 = vrot.slane %v9794_v63, %v15871_v8 }
 0x254   : > { %v5346_v28 = vpop.f32.mrf.mxu1  ;;  %v15039_v60 = vpop.f32.mrf.mxu0 }
 0x255   : > { %24913 = vst [vmem:[#allocation183_spill] sm:$0xff] %v20555_v25  ;;  %24921 = vst [vmem:[#allocation185_spill] sm:$0xff] %v20571_v39  ;;  %v24922_v60 = vld [vmem:[#allocation153_spill] sm:$0xff]  ;;  %v24938_v39 = vld [vmem:[#allocation152_spill] sm:$0xff] }
 0x256   : > { %15139 = vmatmul.mubr.msk.bf16.gmra.mxu1 %vm3919_vm2, %v24911_v22  ;;  %v14960_v3 = vpop.f32.mrf.mxu1  ;;  %v6601_v56 = vpop.f32.mrf.mxu0  ;;  %v5342_v20 = vadd.f32 %v5341_v33, %v24922_v60  ;;  %v24928_v33 = vld [vmem:[#allocation398_spill] sm:$0xff] }
 0x257   : > { %15142 = vmatprep.mubr.msk.bf16.mxu1 %vm15764_vm4, %v23936_v59  ;;  %15221 = vmatmul.mubr.msk.bf16.gmra.mxu0 %vm3919_vm2, %v24912_v45  ;;  %v20562_v55 = vadd.f32 %v6601_v56, %v5339_v6  ;;  %v24920_v45 = vcombine.low %v24918_v14, %v24919_v5  ;;  %v24923_v3 = vld [vmem:[#allocation113_spill] sm:$0xff]  ;;  %v24929_v14 = vld [vmem:[#allocation300_spill] sm:$0xff] }
 0x258   : > { %15224 = vmatprep.mubr.msk.bf16.mxu0 %vm15764_vm4, %v23936_v59  ;;  %v5349_v22 = vpop.f32.mrf.mxu1  ;;  %v15042_v17 = vpop.f32.mrf.mxu0  ;;  %v24925_v47 = vcombine.low %v24923_v3, %v24924_v46  ;;  %v9803_v46 = vcombine.low %v24929_v14, %v24928_v33 }
 0x259   : > { %24917 = vst [vmem:[#allocation184_spill] sm:$0xff] %v20562_v55  ;;  %v20568_v51 = vrot.slane %v24920_v45, %v15871_v8  ;;  %v24930_v17 = vld [vmem:[#allocation438_spill] sm:$0xff] }
 0x25a   : > { %v14961_v25 = vpop.f32.mrf.mxu1  ;;  %v6604_v12 = vpop.f32.mrf.mxu0  ;;  %v5347_v60 = vadd.f32 %v5346_v28, %v24930_v17  ;;  %v20602_v33 = vrot.slane %v9803_v46, %v15871_v8  ;;  %v24942_v46 = vcombine.low %v20134_v24, %v20161_v54 }
 0x25b   : > { %v24926_v25 = vcombine.low %v20104_v48, %v20121_v40  ;;  %v20586_v63 = vadd.f32 %v6604_v12, %v5342_v20  ;;  %v24932_v48 = vld [vmem:[#allocation297_spill] sm:$0xff]  ;;  %v24933_v40 = vld [vmem:[#allocation295_spill] sm:$0xff] }
 0x25c   : > { %v5354_v6 = vpop.f32.mrf.mxu1  ;;  %v15043_v5 = vpop.f32.mrf.mxu0  ;;  %24935 = vst [vmem:[#allocation222_spill] sm:$0xff] %v20602_v33 }
 0x25d   : > { %24927 = vst [vmem:[#allocation186_spill] sm:$0xff] %v20586_v63  ;;  %v24936_v5 = vld [vmem:[#allocation277_spill] sm:$0xff] }
 0x25e   : > { %15143 = vmatmul.mubr.msk.bf16.gmra.mxu1 %vm3919_vm2, %v24925_v47  ;;  %v14964_v45 = vpop.f32.mrf.mxu1  ;;  %v6609_v3 = vpop.f32.mrf.mxu0  ;;  %v5350_v55 = vadd.f32 %v5349_v22, %v24936_v5 }
 0x25f   : > { %15146 = vmatprep.mubr.msk.bf16.mxu1 %vm15764_vm4, %v23936_v59  ;;  %15225 = vmatmul.mubr.msk.bf16.gmra.mxu0 %vm3919_vm2, %v24926_v25  ;;  %v20593_v56 = vadd.f32 %v6609_v3, %v5347_v60  ;;  %v24934_v25 = vcombine.low %v24932_v48, %v24933_v40  ;;  %v24937_v45 = vld [vmem:[#allocation154_spill] sm:$0xff]  ;;  %v24940_v3 = vld [vmem:[#allocation11_spill] sm:$0xff]  ;;  %v24941_v48 = vld [vmem:[#allocation401_spill] sm:$0xff] }
 0x260   : > { %15228 = vmatprep.mubr.msk.bf16.mxu0 %vm15764_vm4, %v23936_v59  ;;  %v5357_v47 = vpop.f32.mrf.mxu1  ;;  %v15046_v12 = vpop.f32.mrf.mxu0  ;;  %v24939_v28 = vcombine.low %v24937_v45, %v24938_v39  ;;  %v24945_v60 = vld [vmem:[#allocation399_spill] sm:$0xff] }
 0x261   : > { %24931 = vst [vmem:[#allocation187_spill] sm:$0xff] %v20593_v56  ;;  %v20599_v20 = vrot.slane %v24934_v25, %v15871_v8  ;;  %v24944_v12 = vld [vmem:[#allocation65_spill] sm:$0xff] }
 0x262   : > { %v14965_v63 = vpop.f32.mrf.mxu1  ;;  %v6612_v17 = vpop.f32.mrf.mxu0  ;;  %v5355_v5 = vadd.f32 %v5354_v6, %v24944_v12  ;;  %v24953_v12 = vld [vmem:[#allocation67_spill] sm:$0xff] }
 0x263   : > { %v9812_v63 = vcombine.low %v24941_v48, %v24940_v3  ;;  %v20619_v22 = vadd.f32 %v6612_v17, %v5350_v55  ;;  %v24946_v3 = vld [vmem:[#allocation400_spill] sm:$0xff]  ;;  %v24950_v55 = vld [vmem:[#allocation233_spill] sm:$0xff]  ;;  %v24951_v17 = vld [vmem:[#allocation38_spill] sm:$0xff] }
 0x264   : > { %v5362_v39 = vpop.f32.mrf.mxu1  ;;  %v15047_v40 = vpop.f32.mrf.mxu0  ;;  %v24947_v56 = vcombine.low %v24945_v60, %v24946_v3 }
 0x265   : > { %24943 = vst [vmem:[#allocation223_spill] sm:$0xff] %v20619_v22  ;;  %v20631_v24 = vrot.slane %v9812_v63, %v15871_v8  ;;  %v5358_v22 = vadd.f32 %v5357_v47, %v24953_v12 }
 0x266   : > { %15147 = vmatmul.mubr.msk.bf16.gmra.mxu1 %vm3919_vm2, %v24939_v28  ;;  %v14968_v25 = vpop.f32.mrf.mxu1  ;;  %v6617_v45 = vpop.f32.mrf.mxu0  ;;  %v20628_v33 = vrot.slane %v24947_v56, %v15871_v8  ;;  %v24954_v56 = vcombine.low %v20170_v18, %v20184_v57  ;;  %v24958_v18 = vld [vmem:[#allocation409_spill] sm:$0xff]  ;;  %v24959_v57 = vld [vmem:[#allocation338_spill] sm:$0xff] }
 0x267   : > { %15150 = vmatprep.mubr.msk.bf16.mxu1 %vm15764_vm4, %v23936_v59  ;;  %15229 = vmatmul.mubr.msk.bf16.gmra.mxu0 %vm3919_vm2, %v24942_v46  ;;  %24948 = vst [vmem:[#allocation224_spill] sm:$0xff] %v20631_v24  ;;  %v20633_v54 = vadd.f32 %v6617_v45, %v5355_v5  ;;  %v24952_v46 = vcombine.low %v24950_v55, %v24951_v17  ;;  %v24956_v55 = vld [vmem:[#allocation273_spill] sm:$0xff] }
 0x268   : > { %15232 = vmatprep.mubr.msk.bf16.mxu0 %vm15764_vm4, %v23936_v59  ;;  %v5365_v28 = vpop.f32.mrf.mxu1  ;;  %v15050_v40 = vpop.f32.mrf.mxu0  ;;  %v24957_v17 = vld [vmem:[#allocation237_spill] sm:$0xff]  ;;  %v24960_v12 = vcombine.low %v24958_v18, %v24959_v57 }
 0x269   : > { %24949 = vst [vmem:[#allocation225_spill] sm:$0xff] %v20633_v54  ;;  %v7074_v47 = vcombine.low %v24957_v17, %v24956_v55  ;;  %v24969_v18 = vld [vmem:[#allocation97_spill] sm:$0xff] }
 0x26a   : > { %v14969_v6 = vpop.f32.mrf.mxu1  ;;  %v6620_v60 = vpop.f32.mrf.mxu0  ;;  %v5366_v57 = vadd.f32 %v5365_v28, %v24969_v18 }
 0x26b   : > { %v20648_v5 = vadd.f32 %v6620_v60, %v5358_v22  ;;  %v24961_v22 = vld [vmem:[#allocation410_spill] sm:$0xff]  ;;  %v7081_v55 = vrot.slane %v7074_v47, %v15871_v8 }
 0x26c   : > { %v5370_v63 = vpop.f32.mrf.mxu1  ;;  %v15051_v45 = vpop.f32.mrf.mxu0  ;;  %v24962_v60 = vld [vmem:[#allocation10_spill] sm:$0xff] }
 0x26d   : > { %24955 = vst [vmem:[#allocation226_spill] sm:$0xff] %v20648_v5  ;;  %v24963_v25 = vcombine.low %v24961_v22, %v24962_v60  ;;  %v24965_v45 = vld [vmem:[#allocation236_spill] sm:$0xff]  ;;  %v24976_v47 = vld [vmem:[#allocation318_spill] sm:$0xff] }
 0x26e   : > { %15151 = vmatmul.mubr.msk.bf16.gmra.mxu1 %vm3919_vm2, %v24952_v46  ;;  %v14972_v3 = vpop.f32.mrf.mxu1  ;;  %v5363_v46 = vadd.f32 %v5362_v39, %v20167_v4  ;;  %v6625_v40 = vpop.f32.mrf.mxu0  ;;  %v24973_v22 = vld [vmem:[#allocation96_spill] sm:$0xff] }
 0x26f   : > { %15154 = vmatprep.mubr.msk.bf16.mxu1 %vm15764_vm4, %v23936_v59  ;;  %15233 = vmatmul.mubr.msk.bf16.gmra.mxu0 %vm3919_vm2, %v24954_v56  ;;  %v9085_v56 = vrot.slane %v24960_v12, %v15871_v8  ;;  %v9092_v5 = vrot.slane %v24963_v25, %v15871_v8  ;;  %v24966_v3 = vld [vmem:[#allocation241_spill] sm:$0xff]  ;;  %v24970_v12 = vld [vmem:[#allocation12_spill] sm:$0xff]  ;;  %v24971_v25 = vld [vmem:[#allocation15_spill] sm:$0xff] }
 0x270   : > { %15236 = vmatprep.mubr.msk.bf16.mxu0 %vm15764_vm4, %v23936_v59  ;;  %v5373_v6 = vpop.f32.mrf.mxu1  ;;  %v20663_v54 = vadd.f32 %v6625_v40, %v5363_v46  ;;  %v24967_v24 = vcombine.low %v24965_v45, %v24966_v3  ;;  %v15054_v4 = vpop.f32.mrf.mxu0  ;;  %v9821_v46 = vcombine.low %v24971_v25, %v24970_v12  ;;  %v24972_v40 = vld [vmem:[#allocation68_spill] sm:$0xff] }
 0x271   : > { %v20670_v17 = vcombine.low %v9085_v56, %v9092_v5  ;;  %v24974_v60 = vcombine.low %v24972_v40, %v24973_v22  ;;  %v7082_v56 = vcombine.low %v24976_v47, %v7081_v55  ;;  %v24977_v4 = vld [vmem:[#allocation370_spill] sm:$0xff]  ;;  %v24979_v40 = vld [vmem:[#allocation39_spill] sm:$0xff] }
 0x272   : > { %24964 = vst [vmem:[#allocation227_spill] sm:$0xff] %v20663_v54  ;;  %v14973_v39 = vpop.f32.mrf.mxu1  ;;  %v24978_v54 = vld [vmem:[#allocation17_spill] sm:$0xff] }
 0x273   : > { %24968 = vst [vmem:[#allocation228_spill] sm:$0xff] %v20670_v17  ;;  %v5371_v39 = vadd.f32 %v5370_v63, %v24977_v4  ;;  %v24980_v22 = vcombine.low %v24978_v54, %v24979_v40  ;;  %v7089_v4 = vrot.slane %v7082_v56, %v15871_v8  ;;  %v24987_v54 = vld [vmem:[#allocation376_spill] sm:$0xff] }
 0x274   : > { %v5378_v45 = vpop.f32.mrf.mxu1  ;;  %v5374_v40 = vadd.f32 %v5373_v6, %v24987_v54 }
 0x276   : > { %15155 = vmatmul.mubr.msk.bf16.gmra.mxu1 %vm3919_vm2, %v24967_v24  ;;  %v6628_v24 = vpop.f32.mrf.mxu0  ;;  %v14976_v28 = vpop.f32.mrf.mxu1 }
 0x277   : > { %15158 = vmatprep.mubr.msk.bf16.mxu1 %vm15764_vm4, %v23936_v59  ;;  %15237 = vmatmul.mubr.msk.bf16.gmra.mxu0 %vm3919_vm2, %v24974_v60  ;;  %v20681_v3 = vadd.f32 %v6628_v24, %v5366_v57  ;;  %v20691_v60 = vrot.slane %v24980_v22, %v15871_v8  ;;  %v20694_v57 = vrot.slane %v9821_v46, %v15871_v8  ;;  %v24988_v46 = vld [vmem:[#allocation317_spill] sm:$0xff]  ;;  %v24990_v22 = vld [vmem:[#allocation44_spill] sm:$0xff] }
 0x278   : > { %15240 = vmatprep.mubr.msk.bf16.mxu0 %vm15764_vm4, %v23936_v59  ;;  %v15055_v5 = vpop.f32.mrf.mxu0  ;;  %v5381_v25 = vpop.f32.mrf.mxu1 }
 0x279   : > { %24975 = vst [vmem:[#allocation229_spill] sm:$0xff] %v20681_v3  ;;  %24981 = vst [vmem:[#allocation262_spill] sm:$0xff] %v20691_v60  ;;  %v24984_v3 = vld [vmem:[#allocation440_spill] sm:$0xff]  ;;  %v24985_v5 = vld [vmem:[#allocation443_spill] sm:$0xff] }
 0x27a   : > { %v6633_v18 = vpop.f32.mrf.mxu0  ;;  %24982 = vst [vmem:[#allocation263_spill] sm:$0xff] %v20694_v57  ;;  %v24986_v28 = vcombine.low %v24984_v3, %v24985_v5  ;;  %v14977_v63 = vpop.f32.mrf.mxu1  ;;  %v24992_v5 = vcombine.low %v20217_v26, %v20236_v15  ;;  %v24996_v57 = vld [vmem:[#allocation419_spill] sm:$0xff]  ;;  %v24997_v26 = vld [vmem:[#allocation42_spill] sm:$0xff] }
 0x27b   : > { %v20696_v24 = vadd.f32 %v6633_v18, %v5371_v39  ;;  %v24989_v39 = vld [vmem:[#allocation314_spill] sm:$0xff]  ;;  %v24994_v63 = vld [vmem:[#allocation320_spill] sm:$0xff]  ;;  %v24998_v15 = vcombine.low %v24996_v57, %v24997_v26  ;;  %v25003_v57 = vld [vmem:[#allocation449_spill] sm:$0xff] }
 0x27c   : > { %v15058_v55 = vpop.f32.mrf.mxu0  ;;  %v7091_v18 = vcombine.low %v24989_v39, %v24988_v46  ;;  %v7090_v54 = vcombine.low %v24994_v63, %v7089_v4  ;;  %v24995_v39 = vld [vmem:[#allocation377_spill] sm:$0xff]  ;;  %v25006_v26 = vld [vmem:[#allocation379_spill] sm:$0xff] }
 0x27d   : > { %24983 = vst [vmem:[#allocation264_spill] sm:$0xff] %v20696_v24  ;;  %v24991_v24 = vld [vmem:[#allocation41_spill] sm:$0xff]  ;;  %v5386_v55 = vpop.f32.mrf.mxu1  ;;  %v5379_v47 = vadd.f32 %v5378_v45, %v24995_v39  ;;  %v25005_v39 = vld [vmem:[#allocation71_spill] sm:$0xff] }
 0x27e   : > { %15159 = vmatmul.mubr.msk.bf16.gmra.mxu1 %vm3919_vm2, %v24986_v28  ;;  %v9830_v3 = vcombine.low %v24991_v24, %v24990_v22  ;;  %v6636_v56 = vpop.f32.mrf.mxu0  ;;  %v7098_v46 = vrot.slane %v7091_v18, %v15871_v8 }
 0x27f   : > { %15162 = vmatprep.mubr.msk.bf16.mxu1 %vm15764_vm4, %v23936_v59  ;;  %15241 = vmatmul.mubr.msk.bf16.gmra.mxu0 %vm3919_vm2, %v24992_v5  ;;  %v20716_v28 = vadd.f32 %v6636_v56, %v5374_v40  ;;  %v14980_v24 = vpop.f32.mrf.mxu1  ;;  %v20727_v5 = vrot.slane %v24998_v15, %v15871_v8  ;;  %v5382_v15 = vadd.f32 %v5381_v25, %v25006_v26 }
 0x280   : > { %15244 = vmatprep.mubr.msk.bf16.mxu0 %vm15764_vm4, %v23936_v59  ;;  %v15059_v6 = vpop.f32.mrf.mxu0  ;;  %v20730_v40 = vrot.slane %v9830_v3, %v15871_v8  ;;  %v7099_v63 = vcombine.low %v7098_v46, %v25003_v57  ;;  %v25004_v3 = vld [vmem:[#allocation73_spill] sm:$0xff] }
 0x281   : > { %24993 = vst [vmem:[#allocation265_spill] sm:$0xff] %v20716_v28  ;;  %24999 = vst [vmem:[#allocation266_spill] sm:$0xff] %v20727_v5  ;;  %v25001_v28 = vld [vmem:[#allocation358_spill] sm:$0xff]  ;;  %v5389_v4 = vpop.f32.mrf.mxu1  ;;  %v9839_v24 = vcombine.low %v25005_v39, %v25004_v3  ;;  %v25011_v3 = vld [vmem:[#allocation360_spill] sm:$0xff] }
 0x282   : > { %25000 = vst [vmem:[#allocation267_spill] sm:$0xff] %v20730_v40  ;;  %v6641_v56 = vpop.f32.mrf.mxu0  ;;  %v6778_v6 = vcombine.high %v25001_v28, %v25001_v28  ;;  %v7109_v25 = vcombine.low %v25001_v28, %v25011_v3  ;;  %v25013_v28 = vld [vmem:[#allocation76_spill] sm:$0xff] }
 0x283   : > { %v20734_v22 = vadd.f32 %v6641_v56, %v5379_v47  ;;  %v25007_v47 = vcombine.low %v20249_v61, %v20263_v7  ;;  %v25008_v56 = vld [vmem:[#allocation356_spill] sm:$0xff]  ;;  %v7111_v61 = vcombine.low %v20344_v27, %v20372_v53  ;;  %v7498_v7 = vshrl.u32 %v25011_v3, 16  ;;  %v25015_v3 = vld [vmem:[#allocation381_spill] sm:$0xff] }
 0x284   : > { %v15062_v18 = vpop.f32.mrf.mxu0  ;;  %v7110_v26 = vcombine.low %v6778_v6, %v20337_v29  ;;  %v20772_v60 = vrot.slane %v9839_v24, %v15871_v8  ;;  %v5387_v17 = vadd.f32 %v5386_v55, %v25015_v3 }
 0x285   : > { %25002 = vst [vmem:[#allocation268_spill] sm:$0xff] %v20734_v22  ;;  %v25009_v22 = vld [vmem:[#allocation353_spill] sm:$0xff]  ;;  %v7511_v18 = vshll.u32 %v20337_v29, 16  ;;  %v20787_v24 = vrot.slane %v7111_v61, %v15871_v8  ;;  %v25024_v61 = vcombine.low %v20270_v62, %v20285_v0 }
 0x286   : > { %15163 = vmatmul.mubr.msk.bf16.gmra.mxu1 %vm3919_vm2, %v7090_v54  ;;  %v14981_v54 = vpop.f32.mrf.mxu1  ;;  %v7108_v45 = vcombine.low %v25009_v22, %v25008_v56  ;;  %v6644_v40 = vpop.f32.mrf.mxu0  ;;  %v7506_v22 = vshrl.u32 %v6778_v6, 16  ;;  %v7106_v56 = vrot.slane %v7099_v63, %v15871_v8  ;;  %v7522_v63 = vshrl.u32 %v20344_v27, 16 }
 0x287   : > { %15166 = vmatprep.mubr.msk.bf16.mxu1 %vm15764_vm4, %v23936_v59  ;;  %15245 = vmatmul.mubr.msk.bf16.gmra.mxu0 %vm3919_vm2, %v25007_v47  ;;  %v20754_v46 = vadd.f32 %v6644_v40, %v5382_v15  ;;  %v7503_v47 = vshll.u32 %v6778_v6, 16  ;;  %v7514_v40 = vshrl.u32 %v20337_v29, 16  ;;  %v25012_v15 = vld [vmem:[#allocation422_spill] sm:$0xff]  ;;  %v25016_v29 = vld [vmem:[#allocation63_spill] sm:$0xff]  ;;  %25019 = vst [vmem:[#allocation305_spill] sm:$0xff] %v20787_v24 }
 0x288   : > { %15248 = vmatprep.mubr.msk.bf16.mxu0 %vm15764_vm4, %v23936_v59  ;;  %v15063_v54 = vpop.f32.mrf.mxu0  ;;  %v5394_v57 = vpop.f32.mrf.mxu1  ;;  %v7118_v39 = vrot.slane %v7108_v45, %v15871_v8  ;;  %v7527_v45 = vshll.u32 %v20372_v53, 16  ;;  %v25022_v53 = vld [vmem:[#allocation114_spill] sm:$0xff] }
 0x289   : > { %25010 = vst [vmem:[#allocation269_spill] sm:$0xff] %v20754_v46  ;;  %v25014_v46 = vcombine.low %v25012_v15, %v25013_v28  ;;  %v7519_v54 = vshll.u32 %v20344_v27, 16  ;;  %v20781_v28 = vrot.slane %v7109_v25, %v15871_v8  ;;  %v25023_v25 = vld [vmem:[#allocation111_spill] sm:$0xff] }
 0x28a   : > { %v14984_v6 = vpop.f32.mrf.mxu1  ;;  %v6649_v12 = vpop.f32.mrf.mxu0  ;;  %v20818_v62 = vsel %vm15915_vm1, %v7522_v63, %v7527_v45  ;;  %v25034_v45 = vld [vmem:[#allocation149_spill] sm:$0xff] }
 0x28b   : > { %v20769_v5 = vrot.slane %v25014_v46, %v15871_v8  ;;  %25017 = vst [vmem:[#allocation303_spill] sm:$0xff] %v20781_v28  ;;  %v20784_v46 = vrot.slane %v7110_v26, %v15871_v8  ;;  %v20791_v15 = vadd.f32 %v6649_v12, %v5387_v17  ;;  %v9848_v26 = vcombine.low %v25023_v25, %v25022_v53  ;;  %v25026_v12 = vld [vmem:[#allocation382_spill] sm:$0xff] }
 0x28c   : > { %v5397_v3 = vpop.f32.mrf.mxu1  ;;  %v15066_v6 = vpop.f32.mrf.mxu0  ;;  %v20807_v17 = vsel %vm15915_vm1, %v7506_v22, %v7511_v18  ;;  %v5390_v55 = vadd.f32 %v5389_v4, %v25026_v12  ;;  %25028 = vst [vmem:[#allocation310_spill] sm:$0xff] %v20818_v62  ;;  %v7140_v18 = vcombine.low %v7118_v39, %v20781_v28  ;;  %v25031_v22 = vld [vmem:[#allocation359_spill] sm:$0xff]  ;;  %v25033_v39 = vld [vmem:[#allocation77_spill] sm:$0xff] }
 0x28d   : > { %25018 = vst [vmem:[#allocation304_spill] sm:$0xff] %v20784_v46  ;;  %25020 = vst [vmem:[#allocation306_spill] sm:$0xff] %v20791_v15  ;;  %v7141_v4 = vcombine.low %v20784_v46, %v20787_v24  ;;  %v25032_v6 = vld [vmem:[#allocation363_spill] sm:$0xff] }
 0x28e   : > { %15167 = vmatmul.mubr.msk.bf16.gmra.mxu1 %vm3919_vm2, %v25016_v29  ;;  %v20797_v29 = vsel %vm15915_vm1, %v7498_v7, %v7503_v47  ;;  %25025 = vst [vmem:[#allocation308_spill] sm:$0xff] %v20807_v17  ;;  %v14985_v27 = vpop.f32.mrf.mxu1  ;;  %v20814_v7 = vsel %vm15915_vm1, %v7514_v40, %v7519_v54  ;;  %v6652_v0 = vpop.f32.mrf.mxu0  ;;  %v25029_v47 = vld [vmem:[#allocation64_spill] sm:$0xff] }
 0x28f   : > { %15170 = vmatprep.mubr.msk.bf16.mxu1 %vm15764_vm4, %v23936_v59  ;;  %25021 = vst [vmem:[#allocation307_spill] sm:$0xff] %v20797_v29  ;;  %15249 = vmatmul.mubr.msk.bf16.gmra.mxu0 %vm3919_vm2, %v25024_v61  ;;  %25027 = vst [vmem:[#allocation309_spill] sm:$0xff] %v20814_v7  ;;  %v7107_v53 = vcombine.low %v7106_v56, %v25029_v47  ;;  %v25030_v27 = vld [vmem:[#allocation362_spill] sm:$0xff]  ;;  %v8488_v12 = vcombine.low %v25032_v6, %v20797_v29 }
 0x290   : > { %15252 = vmatprep.mubr.msk.bf16.mxu0 %vm15764_vm4, %v23936_v59  ;;  %v8487_v61 = vcombine.low %v25031_v22, %v25030_v27  ;;  %v20828_v40 = vadd.f32 %v6652_v0, %v5390_v55  ;;  %v5402_v54 = vpop.f32.mrf.mxu1  ;;  %v15067_v15 = vpop.f32.mrf.mxu0  ;;  %v8489_v63 = vcombine.low %v20807_v17, %v20814_v7  ;;  %v8490_v56 = vcombine.low %v20818_v62, %v20402_v50  ;;  %v25061_v29 = vld [vmem:[#allocation378_spill] sm:$0xff]  ;;  %v25062_v17 = vld [vmem:[#allocation380_spill] sm:$0xff] }
 0x291   : > { %v25035_v47 = vcombine.low %v25033_v39, %v25034_v45  ;;  %v20841_v22 = vrot.slane %v9848_v26, %v15871_v8  ;;  %v7473_v55 = vcombine.high %v20360_v2, %v20360_v2  ;;  %v7148_v15 = vrot.slane %v7140_v18, %v15871_v8  ;;  %v25036_v45 = vld [vmem:[#allocation60_spill] sm:$0xff]  ;;  %v25038_v26 = vld [vmem:[#allocation155_spill] sm:$0xff] }
 0x292   : > { %v14988_v28 = vpop.f32.mrf.mxu1  ;;  %v7155_v0 = vrot.slane %v7141_v4, %v15871_v8  ;;  %v8497_v39 = vrot.slane %v8487_v61, %v15871_v8  ;;  %v6657_v7 = vpop.f32.mrf.mxu0  ;;  %v8504_v18 = vrot.slane %v8488_v12, %v15871_v8  ;;  %v8511_v4 = vrot.slane %v8489_v63, %v15871_v8 }
 0x293   : > { %v20838_v24 = vrot.slane %v25035_v47, %v15871_v8  ;;  %v5395_v47 = vadd.f32 %v5394_v57, %v25036_v45  ;;  %v25037_v28 = vld [vmem:[#allocation106_spill] sm:$0xff]  ;;  %v8518_v61 = vrot.slane %v8490_v56, %v15871_v8 }
 0x294   : > { %v5405_v50 = vpop.f32.mrf.mxu1  ;;  %v9857_v2 = vcombine.low %v25038_v26, %v25037_v28  ;;  %v20868_v26 = vrot.slane %v7473_v55, %v15871_v8  ;;  %v15070_v46 = vpop.f32.mrf.mxu0  ;;  %v7156_v62 = vcombine.low %v7148_v15, %v7155_v0  ;;  %v8519_v6 = vcombine.low %v8497_v39, %v8504_v18  ;;  %v25054_v18 = vld [vmem:[#allocation192_spill] sm:$0xff] }
 0x295   : > { %v20863_v57 = vadd.f32 %v6657_v7, %v5395_v47  ;;  %v8520_v56 = vcombine.low %v8511_v4, %v8518_v61  ;;  %v25042_v7 = vld [vmem:[#allocation116_spill] sm:$0xff]  ;;  %v25043_v47 = vld [vmem:[#allocation151_spill] sm:$0xff] }
 0x296   : > { %15171 = vmatmul.mubr.msk.bf16.gmra.mxu1 %vm3919_vm2, %v7107_v53  ;;  %v25039_v53 = vcombine.low %v20306_v23, %v20317_v35  ;;  %v14989_v45 = vpop.f32.mrf.mxu1  ;;  %25040 = vst [vmem:[#allocation343_spill] sm:$0xff] %v20868_v26  ;;  %v7157_v23 = vcombine.low %v20364_v41, %v20378_v36  ;;  %v25041_v35 = vld [vmem:[#allocation129_spill] sm:$0xff]  ;;  %v6660_v63 = vpop.f32.mrf.mxu0  ;;  %v20880_v55 = vrot.slane %v9857_v2, %v15871_v8  ;;  %v7546_v41 = vshrl.u32 %v20378_v36, 16  ;;  %v25046_v4 = vld [vmem:[#allocation176_spill] sm:$0xff] }
 0x297   : > { %15174 = vmatprep.mubr.msk.bf16.mxu1 %vm15764_vm4, %v23936_v59  ;;  %v5398_v12 = vadd.f32 %v5397_v3, %v25041_v35  ;;  %v25044_v45 = vcombine.low %v25042_v7, %v25043_v47  ;;  %v7551_v3 = vshll.u32 %v20868_v26, 16  ;;  %v5403_v61 = vadd.f32 %v5402_v54, %v25046_v4  ;;  %v25047_v35 = vld [vmem:[#allocation69_spill] sm:$0xff] }
 0x298   : > { %15253 = vmatmul.mubr.msk.bf16.gmra.mxu0 %vm3919_vm2, %v25039_v53  ;;  %v5410_v53 = vpop.f32.mrf.mxu1  ;;  %v15071_v0 = vpop.f32.mrf.mxu0  ;;  %v20888_v39 = vrot.slane %v7157_v23, %v15871_v8  ;;  %v25049_v47 = vcombine.low %v20350_v42, %v20357_v38  ;;  %v8534_v23 = vrot.slane %v8520_v56, %v15871_v8  ;;  %v25051_v38 = vld [vmem:[#allocation57_spill] sm:$0xff] }
 0x299   : > { %15256 = vmatprep.mubr.msk.bf16.mxu0 %vm15764_vm4, %v23936_v59  ;;  %v20877_v27 = vrot.slane %v25044_v45, %v15871_v8  ;;  %v20882_v46 = vadd.f32 %v6660_v63, %v5398_v12  ;;  %v25048_v12 = vld [vmem:[#allocation199_spill] sm:$0xff]  ;;  %v25052_v4 = vld [vmem:[#allocation61_spill] sm:$0xff] }
 0x29a   : > { %v14992_v15 = vpop.f32.mrf.mxu1  ;;  %25045 = vst [vmem:[#allocation344_spill] sm:$0xff] %v20888_v39  ;;  %v9866_v63 = vcombine.low %v25048_v12, %v25047_v35  ;;  %v6665_v7 = vpop.f32.mrf.mxu0  ;;  %v7171_v42 = vrot.slane %v20888_v39, %v15871_v8  ;;  %v8877_v12 = vcombine.low %v25052_v4, %v25051_v38  ;;  %v25057_v4 = vld [vmem:[#allocation407_spill] sm:$0xff] }
 0x29b   : > { %v20903_v45 = vadd.f32 %v6665_v7, %v5403_v61  ;;  %v20909_v15 = vsel %vm15915_vm1, %v7546_v41, %v7551_v3  ;;  %v25056_v41 = vcombine.low %v25054_v18, %v25055_v16 }
 0x29c   : > { %v5413_v2 = vpop.f32.mrf.mxu1  ;;  %25050 = vst [vmem:[#allocation345_spill] sm:$0xff] %v20909_v15  ;;  %v15074_v0 = vpop.f32.mrf.mxu0 }
 0x29d   : > { %v20922_v3 = vrot.slane %v25056_v41, %v15871_v8  ;;  %v20925_v0 = vrot.slane %v9866_v63, %v15871_v8  ;;  %v25058_v41 = vld [vmem:[#allocation95_spill] sm:$0xff] }
 0x29e   : > { %15175 = vmatmul.mubr.msk.bf16.gmra.mxu1 %vm3919_vm2, %v7156_v62  ;;  %v8527_v62 = vrot.slane %v8519_v6, %v15871_v8  ;;  %v14993_v54 = vpop.f32.mrf.mxu1  ;;  %v25053_v6 = vld [vmem:[#allocation294_spill] sm:$0xff]  ;;  %v6668_v56 = vpop.f32.mrf.mxu0 }
 0x29f   : > { %15178 = vmatprep.mubr.msk.bf16.mxu1 %vm15764_vm4, %v23936_v59  ;;  %v8536_v54 = vcombine.low %v20406_v9, %v20909_v15 }
 0x2a0   : > { %15257 = vmatmul.mubr.msk.bf16.gmra.mxu0 %vm3919_vm2, %v25049_v47  ;;  %v5406_v47 = vadd.f32 %v5405_v50, %v25053_v6  ;;  %v5418_v61 = vpop.f32.mrf.mxu1  ;;  %v8535_v7 = vcombine.low %v8527_v62, %v8534_v23  ;;  %v15075_v38 = vpop.f32.mrf.mxu0  ;;  %v8884_v62 = vrot.slane %v8877_v12, %v15871_v8  ;;  %v5411_v6 = vadd.f32 %v5410_v53, %v25057_v4 }
 0x2a1   : > { %15260 = vmatprep.mubr.msk.bf16.mxu0 %vm15764_vm4, %v23936_v59  ;;  %v8543_v63 = vrot.slane %v8536_v54, %v15871_v8  ;;  %v25059_v38 = vld [vmem:[#allocation92_spill] sm:$0xff] }
 0x2a2   : > { %v20927_v39 = vadd.f32 %v6668_v56, %v5406_v47  ;;  %v14996_v50 = vpop.f32.mrf.mxu1  ;;  %v6673_v16 = vpop.f32.mrf.mxu0  ;;  %v8885_v56 = vcombine.low %v8884_v62, %v18403_v37 }
 0x2a3   : > { %v20938_v47 = vadd.f32 %v6673_v16, %v5411_v6  ;;  %v8902_v50 = vcombine.low %v25059_v38, %v25058_v41  ;;  %v8550_v54 = vrot.slane %v8543_v63, %v15871_v8  ;;  %v25066_v41 = vld [vmem:[#allocation136_spill] sm:$0xff] }
 0x2a4   : > { %v5421_v18 = vpop.f32.mrf.mxu1  ;;  %v15078_v12 = vpop.f32.mrf.mxu0  ;;  %v8893_v37 = vrot.slane %v8885_v56, %v15871_v8 }
 0x2a5   : > { %v25063_v12 = vcombine.low %v25061_v29, %v25062_v17  ;;  %v8909_v62 = vrot.slane %v8902_v50, %v15871_v8  ;;  %v25067_v50 = vld [vmem:[#allocation426_spill] sm:$0xff] }
 0x2a6   : > { %15179 = vmatmul.mubr.msk.bf16.gmra.mxu1 %vm3919_vm2, %v7171_v42  ;;  %v14588_v42 = vld [vmem:[%s23175_s1 + $0xe] sm:$0x3]  ;;  %v14997_v53 = vpop.f32.mrf.mxu1  ;;  %v6676_v23 = vpop.f32.mrf.mxu0 }
 0x2a7   : > { %15270 = vmatprep.mubr.msk.bf16.mxu1 %vm15764_vm4, %v23936_v59  ;;  %v10841_v6 = vsel %vm3983_vm0, %v14588_v42, 0  ;;  %v25064_v53 = vld [vmem:[#allocation72_spill] sm:$0xff]  ;;  %v8901_v42 = vcombine.low %v8893_v37, %v20421_v34  ;;  %v8910_v56 = vcombine.low %v8909_v62, %v24861_v31 }
 0x2a8   : > { %15261 = vmatmul.mubr.msk.bf16.gmra.mxu0 %vm3919_vm2, %v8535_v7  ;;  %v25060_v7 = vld [vmem:[#allocation341_spill] sm:$0xff]  ;;  %v15079_v15 = vpop.f32.mrf.mxu0  ;;  %v5426_v9 = vpop.f32.mrf.mxu1 }
 0x2a9   : > { %15264 = vmatprep.mubr.msk.bf16.mxu0 %vm15764_vm4, %v23936_v59  ;;  %v5414_v4 = vadd.f32 %v5413_v2, %v25060_v7  ;;  %v5419_v2 = vadd.f32 %v5418_v61, %v25064_v53  ;;  %v25065_v61 = vld [vmem:[#allocation134_spill] sm:$0xff]  ;;  %v5422_v7 = vadd.f32 %v5421_v18, %v25067_v50  ;;  %v8918_v31 = vrot.slane %v8910_v56, %v15871_v8 }
 0x2aa   : > { %v6681_v63 = vpop.f32.mrf.mxu0  ;;  %v15000_v15 = vpop.f32.mrf.mxu1  ;;  %v8927_v38 = vcombine.low %v25066_v41, %v25065_v61  ;;  %v25070_v50 = vld [vmem:[#allocation178_spill] sm:$0xff] }
 0x2ab   : > { %v20951_v16 = vadd.f32 %v6676_v23, %v5414_v4  ;;  %v20963_v23 = vadd.f32 %v6681_v63, %v5419_v2  ;;  %v14610_v4 = vld [vmem:[%s23175_s1 + $0x10] sm:$0x3]  ;;  %v25068_v63 = vld [vmem:[#allocation432_spill] sm:$0xff] }
 0x2ac   : > { %v15082_v29 = vpop.f32.mrf.mxu0  ;;  %v5429_v17 = vpop.f32.mrf.mxu1  ;;  %v11537_v37 = vsel %vm3983_vm0, %v14610_v4, 0  ;;  %v8934_v62 = vrot.slane %v8927_v38, %v15871_v8  ;;  %v5427_v18 = vadd.f32 %v5426_v9, %v25068_v63  ;;  %v8926_v9 = vcombine.low %v8918_v31, %v20447_v49  ;;  %v25073_v31 = vld [vmem:[#allocation281_spill] sm:$0xff] }
 0x2ad   : > { %v25069_v29 = vcombine.low %v20413_v32, %v20421_v34 }
 0x2ae   : > { %15271 = vmatmul.mubr.msk.bf16.vlgmr.msra.gmra.mxu1 %vm3919_vm2, %v25063_v12  ;;  %v8935_v38 = vcombine.low %v24875_v10, %v8934_v62 }
 0x2af   : > { %15441 = vmatpush3.bf16.msra.mxu1 %v10841_v6  ;;  %15274 = vmatprep.mubr.msk.bf16.mxu1 %vm15764_vm4, %v23936_v59  ;;  %v15001_v6 = vpop.f32.mrf.mxu1 }
 0x2b0   : > { %15265 = vmatmul.mubr.msk.bf16.gmra.mxu0 %vm3919_vm2, %v8550_v54  ;;  %v6684_v54 = vpop.f32.mrf.mxu0 }
 0x2b1   : > { %15356 = vmatprep.mubr.msk.bf16.mxu0 %vm15764_vm4, %v23936_v59  ;;  %v20975_v12 = vadd.f32 %v6684_v54, %v5422_v7  ;;  %v5434_v2 = vpop.f32.mrf.mxu1  ;;  %v25071_v7 = vld [vmem:[#allocation172_spill] sm:$0xff]  ;;  %v25072_v54 = vld [vmem:[#allocation434_spill] sm:$0xff] }
 0x2b2   : > { %v15083_v53 = vpop.f32.mrf.mxu0  ;;  %v8952_v4 = vcombine.low %v25071_v7, %v25070_v50  ;;  %v5430_v32 = vadd.f32 %v5429_v17, %v25072_v54  ;;  %v25074_v17 = vcombine.low %v20450_v43, %v20447_v49  ;;  %v25075_v50 = vld [vmem:[#allocation219_spill] sm:$0xff]  ;;  %v25076_v7 = vld [vmem:[#allocation221_spill] sm:$0xff] }
 0x2b3   : > { %v15004_v61 = vpop.f32.mrf.mxu1  ;;  %v25077_v54 = vld [vmem:[#allocation451_spill] sm:$0xff] }
 0x2b4   : > { %v6689_v15 = vpop.f32.mrf.mxu0 }
 0x2b5   : > { %v20988_v41 = vadd.f32 %v6689_v15, %v5427_v18  ;;  %v5437_v56 = vpop.f32.mrf.mxu1  ;;  %v8943_v18 = vrot.slane %v8935_v38, %v15871_v8  ;;  %v8959_v15 = vrot.slane %v8952_v4, %v15871_v8  ;;  %v8977_v4 = vcombine.low %v25076_v7, %v25075_v50  ;;  %v25082_v7 = vld [vmem:[#allocation98_spill] sm:$0xff] }
 0x2b6   : > { %15275 = vmatmul.mubr.msk.bf16.gmra.mxu1 %vm3919_vm2, %v8901_v42  ;;  %v15086_v42 = vpop.f32.mrf.mxu0 }
 0x2b7   : > { %15278 = vmatprep.mubr.msk.bf16.mxu1 %vm15764_vm4, %v23936_v59  ;;  %v15005_v6 = vpop.f32.mrf.mxu1  ;;  %v8951_v38 = vcombine.low %v8943_v18, %v20478_v19  ;;  %v25078_v18 = vld [vmem:[#allocation66_spill] sm:$0xff] }
 0x2b8   : > { %15357 = vmatmul.mubr.msk.bf16.vlgmr.msra.gmra.mxu0 %vm3919_vm2, %v25069_v29  ;;  %v6692_v34 = vpop.f32.mrf.mxu0  ;;  %v5435_v29 = vadd.f32 %v5434_v2, %v25073_v31  ;;  %v8960_v2 = vcombine.low %v24886_v21, %v8959_v15  ;;  %v25079_v15 = vcombine.low %v20481_v44, %v20478_v19 }
 0x2b9   : > { %15527 = vmatpush3.bf16.msra.mxu0 %v11537_v37  ;;  %15360 = vmatprep.mubr.msk.bf16.mxu0 %vm15764_vm4, %v23936_v59  ;;  %v20997_v53 = vadd.f32 %v6692_v34, %v5430_v32  ;;  %v5442_v37 = vpop.f32.mrf.mxu1  ;;  %v5438_v32 = vadd.f32 %v5437_v56, %v25077_v54 }
 0x2ba   : > { %v15087_v63 = vpop.f32.mrf.mxu0  ;;  %v8968_v31 = vrot.slane %v8960_v2, %v15871_v8  ;;  %v25081_v2 = vld [vmem:[#allocation256_spill] sm:$0xff] }
 0x2bb   : > { %v15008_v62 = vpop.f32.mrf.mxu1 }
 0x2bc   : > { %v6697_v10 = vpop.f32.mrf.mxu0 }
 0x2bd   : > { %v21009_v61 = vadd.f32 %v6697_v10, %v5435_v29  ;;  %v8984_v29 = vrot.slane %v8977_v4, %v15871_v8  ;;  %v5443_v10 = vadd.f32 %v5442_v37, %v25078_v18  ;;  %v8976_v37 = vcombine.low %v8968_v31, %v20506_v30 }
 0x2be   : > { %15279 = vmatmul.mubr.msk.bf16.gmra.mxu1 %vm3919_vm2, %v8926_v9  ;;  %v15090_v42 = vpop.f32.mrf.mxu0  ;;  %v5445_v9 = vpop.f32.mrf.mxu1 }
 0x2bf   : > { %15282 = vmatprep.mubr.msk.bf16.mxu1 %vm15764_vm4, %v23936_v59 }
 0x2c0   : > { %15361 = vmatmul.mubr.msk.bf16.gmra.mxu0 %vm3919_vm2, %v25074_v17  ;;  %v6700_v49 = vpop.f32.mrf.mxu0  ;;  %v15009_v43 = vpop.f32.mrf.mxu1 }
 0x2c1   : > { %15364 = vmatprep.mubr.msk.bf16.mxu0 %vm15764_vm4, %v23936_v59  ;;  %v21018_v34 = vadd.f32 %v6700_v49, %v5438_v32 }
 0x2c2   : > { %v15091_v6 = vpop.f32.mrf.mxu0  ;;  %v7266_v63 = vpop.f32.mrf.mxu1 }
 0x2c3   : > { %v7432_v21 = vadd.f32 %v7266_v63, %v20280_v1  ;;  %v8986_v1 = vcombine.low %v8984_v29, %v24899_v58  ;;  %v25083_v63 = vld [vmem:[#allocation145_spill] sm:$0xff] }
 0x2c4   : > { %v6705_v56 = vpop.f32.mrf.mxu0  ;;  %v15100_v17 = vpop.f32.mrf.mxu1  ;;  %v25084_v31 = vcombine.low %v25083_v63, %v20506_v30 }
 0x2c5   : > { %v21031_v62 = vadd.f32 %v6705_v56, %v5443_v10  ;;  %v9000_v49 = vrot.slane %v8986_v1, %v15871_v8  ;;  %v25085_v17 = vld [vmem:[#allocation337_spill] sm:$0xff] }
 0x2c6   : > { %15283 = vmatmul.mubr.msk.bf16.gmra.mxu1 %vm3919_vm2, %v8951_v38  ;;  %v15094_v42 = vpop.f32.mrf.mxu0  ;;  %v7269_v9 = vpop.f32.mrf.mxu1  ;;  %v25080_v38 = vld [vmem:[#allocation261_spill] sm:$0xff] }
 0x2c7   : > { %15286 = vmatprep.mubr.msk.bf16.mxu1 %vm15764_vm4, %v23936_v59  ;;  %v9002_v50 = vcombine.low %v25081_v2, %v25080_v38  ;;  %v7433_v4 = vadd.f32 %v7269_v9, %v25082_v7  ;;  %v25086_v42 = vld [vmem:[#allocation302_spill] sm:$0xff] }
 0x2c8   : > { %15365 = vmatmul.mubr.msk.bf16.gmra.mxu0 %vm3919_vm2, %v25079_v15  ;;  %v6708_v19 = vpop.f32.mrf.mxu0  ;;  %v15101_v44 = vpop.f32.mrf.mxu1  ;;  %v9001_v15 = vcombine.low %v20537_v11, %v9000_v49  ;;  %v9027_v9 = vcombine.low %v25086_v42, %v25085_v17 }
 0x2c9   : > { %15368 = vmatprep.mubr.msk.bf16.mxu0 %vm15764_vm4, %v23936_v59  ;;  %v9009_v43 = vrot.slane %v9002_v50, %v15871_v8  ;;  %v25089_v44 = vld [vmem:[#allocation102_spill] sm:$0xff] }
 0x2ca   : > { %v15095_v54 = vpop.f32.mrf.mxu0  ;;  %v7274_v32 = vpop.f32.mrf.mxu1  ;;  %v9034_v19 = vrot.slane %v9027_v9, %v15871_v8  ;;  %v25096_v9 = vld [vmem:[#allocation104_spill] sm:$0xff] }
 0x2cb   : > { %v7434_v6 = vadd.f32 %v7274_v32, %v20334_v13  ;;  %v9011_v13 = vcombine.low %v9009_v43, %v24914_v52  ;;  %v25090_v32 = vld [vmem:[#allocation182_spill] sm:$0xff] }
 0x2cc   : > { %v8651_v58 = vpop.f32.mrf.mxu0  ;;  %v15104_v29 = vpop.f32.mrf.mxu1  ;;  %v25091_v49 = vcombine.low %v20537_v11, %v25090_v32 }
 0x2cd   : > { %v21050_v18 = vadd.f32 %v8651_v58, %v7432_v21  ;;  %v9025_v7 = vrot.slane %v9011_v13, %v15871_v8  ;;  %v9036_v29 = vcombine.low %v24929_v14, %v9034_v19  ;;  %v25095_v13 = vld [vmem:[#allocation139_spill] sm:$0xff] }
 0x2ce   : > { %15287 = vmatmul.mubr.msk.bf16.gmra.mxu1 %vm3919_vm2, %v8976_v37  ;;  %v15186_v10 = vpop.f32.mrf.mxu0  ;;  %v7277_v56 = vpop.f32.mrf.mxu1  ;;  %v25087_v37 = vld [vmem:[#allocation101_spill] sm:$0xff] }
 0x2cf   : > { %15290 = vmatprep.mubr.msk.bf16.mxu1 %vm15764_vm4, %v23936_v59  ;;  %v7435_v1 = vadd.f32 %v7277_v56, %v25087_v37  ;;  %v25093_v10 = vld [vmem:[#allocation364_spill] sm:$0xff]  ;;  %v25094_v56 = vld [vmem:[#allocation339_spill] sm:$0xff] }
 0x2d0   : > { %15369 = vmatmul.mubr.msk.bf16.gmra.mxu0 %vm3919_vm2, %v25084_v31  ;;  %v8654_v30 = vpop.f32.mrf.mxu0  ;;  %v15105_v38 = vpop.f32.mrf.mxu1  ;;  %v9026_v31 = vcombine.low %v20568_v51, %v9025_v7 }
 0x2d1   : > { %15372 = vmatprep.mubr.msk.bf16.mxu0 %vm15764_vm4, %v23936_v59  ;;  %v21059_v2 = vadd.f32 %v8654_v30, %v7433_v4  ;;  %v25099_v38 = vld [vmem:[#allocation108_spill] sm:$0xff] }
 0x2d2   : > { %v15187_v21 = vpop.f32.mrf.mxu0 }
 0x2d3   : > { %25088 = vst [vmem:[#allocation346_spill] sm:$0xff] %v21059_v2  ;;  %v7282_v50 = vpop.f32.mrf.mxu1  ;;  %v25100_v21 = vld [vmem:[#allocation146_spill] sm:$0xff] }
 0x2d4   : > { %v7436_v54 = vadd.f32 %v7282_v50, %v25089_v44  ;;  %v25101_v50 = vcombine.low %v25099_v38, %v25100_v21  ;;  %v25109_v38 = vld [vmem:[#allocation148_spill] sm:$0xff] }
 0x2d5   : > { %v15108_v4 = vpop.f32.mrf.mxu1 }
 0x2d6   : > { %15291 = vmatmul.mubr.msk.bf16.gmra.mxu1 %vm3919_vm2, %v9001_v15  ;;  %v8659_v52 = vpop.f32.mrf.mxu0  ;;  %v9052_v15 = vcombine.low %v25094_v56, %v25093_v10  ;;  %v21090_v7 = vrot.slane %v25101_v50, %v15871_v8  ;;  %v25103_v4 = vld [vmem:[#allocation140_spill] sm:$0xff] }
 0x2d7   : > { %15294 = vmatprep.mubr.msk.bf16.mxu1 %vm15764_vm4, %v23936_v59  ;;  %v21071_v43 = vadd.f32 %v8659_v52, %v7434_v6  ;;  %v7285_v63 = vpop.f32.mrf.mxu1  ;;  %v25097_v6 = vld [vmem:[#allocation105_spill] sm:$0xff]  ;;  %v9050_v52 = vrot.slane %v9036_v29, %v15871_v8 }
 0x2d8   : > { %15373 = vmatmul.mubr.msk.bf16.gmra.mxu0 %vm3919_vm2, %v25091_v49  ;;  %v15190_v58 = vpop.f32.mrf.mxu0  ;;  %v7437_v17 = vadd.f32 %v7285_v63, %v25095_v13  ;;  %v25098_v37 = vcombine.low %v25096_v9, %v25097_v6  ;;  %v9059_v32 = vrot.slane %v9052_v15, %v15871_v8  ;;  %v25135_v49 = vld [vmem:[#allocation391_spill] sm:$0xff] }
 0x2d9   : > { %25092 = vst [vmem:[#allocation347_spill] sm:$0xff] %v21071_v43  ;;  %15376 = vmatprep.mubr.msk.bf16.mxu0 %vm15764_vm4, %v23936_v59  ;;  %v15109_v42 = vpop.f32.mrf.mxu1  ;;  %v9051_v13 = vcombine.low %v20599_v20, %v9050_v52  ;;  %v25114_v52 = vld [vmem:[#allocation387_spill] sm:$0xff]  ;;  %v25166_v43 = vld [vmem:[#allocation228_spill] sm:$0xff] }
 0x2da   : > { %v8662_v11 = vpop.f32.mrf.mxu0  ;;  %v21084_v30 = vrot.slane %v25098_v37, %v15871_v8  ;;  %v25107_v42 = vld [vmem:[#allocation141_spill] sm:$0xff] }
 0x2db   : > { %v21092_v14 = vadd.f32 %v8662_v11, %v7435_v1  ;;  %v25104_v1 = vld [vmem:[#allocation185_spill] sm:$0xff]  ;;  %v9061_v11 = vcombine.low %v24941_v48, %v9059_v32 }
 0x2dc   : > { %v15191_v19 = vpop.f32.mrf.mxu0  ;;  %v25105_v10 = vcombine.low %v20568_v51, %v25104_v1  ;;  %v25108_v51 = vld [vmem:[#allocation147_spill] sm:$0xff]  ;;  %v25117_v1 = vld [vmem:[#allocation173_spill] sm:$0xff] }
 0x2dd   : > { %25102 = vst [vmem:[#allocation348_spill] sm:$0xff] %v21092_v14  ;;  %v25110_v21 = vcombine.low %v25108_v51, %v25109_v38  ;;  %v25112_v19 = vld [vmem:[#allocation188_spill] sm:$0xff]  ;;  %v9075_v51 = vrot.slane %v9061_v11, %v15871_v8 }
 0x2de   : > { %v7290_v44 = vpop.f32.mrf.mxu1  ;;  %15295 = vmatmul.mubr.msk.bf16.gmra.mxu1 %vm3919_vm2, %v9026_v31  ;;  %v8667_v63 = vpop.f32.mrf.mxu0 }
 0x2df   : > { %v7438_v58 = vadd.f32 %v7290_v44, %v25103_v4  ;;  %15298 = vmatprep.mubr.msk.bf16.mxu1 %vm15764_vm4, %v23936_v59  ;;  %v21106_v31 = vadd.f32 %v8667_v63, %v7436_v54  ;;  %v21117_v50 = vrot.slane %v25110_v21, %v15871_v8  ;;  %v25111_v54 = vld [vmem:[#allocation150_spill] sm:$0xff]  ;;  %v25115_v63 = vld [vmem:[#allocation388_spill] sm:$0xff] }
 0x2e0   : > { %15377 = vmatmul.mubr.msk.bf16.gmra.mxu0 %vm3919_vm2, %v25105_v10  ;;  %v15112_v56 = vpop.f32.mrf.mxu1  ;;  %v15194_v29 = vpop.f32.mrf.mxu0  ;;  %v25113_v44 = vcombine.low %v25111_v54, %v25112_v19  ;;  %v25116_v48 = vcombine.low %v25114_v52, %v25115_v63  ;;  %v25118_v10 = vld [vmem:[#allocation133_spill] sm:$0xff]  ;;  %v25121_v54 = vld [vmem:[#allocation142_spill] sm:$0xff] }
 0x2e1   : > { %25106 = vst [vmem:[#allocation349_spill] sm:$0xff] %v21106_v31  ;;  %15380 = vmatprep.mubr.msk.bf16.mxu0 %vm15764_vm4, %v23936_v59  ;;  %v25119_v56 = vcombine.low %v25117_v1, %v25118_v10  ;;  %v25125_v1 = vld [vmem:[#allocation13_spill] sm:$0xff]  ;;  %v25126_v10 = vld [vmem:[#allocation20_spill] sm:$0xff] }
 0x2e2   : > { %v7293_v15 = vpop.f32.mrf.mxu1  ;;  %v8670_v6 = vpop.f32.mrf.mxu0  ;;  %v21123_v4 = vrot.slane %v25113_v44, %v15871_v8  ;;  %v21129_v32 = vrot.slane %v25116_v48, %v15871_v8  ;;  %v9076_v48 = vcombine.low %v20628_v33, %v9075_v51  ;;  %v25134_v51 = vld [vmem:[#allocation135_spill] sm:$0xff] }
 0x2e3   : > { %v7439_v9 = vadd.f32 %v7293_v15, %v25107_v42  ;;  %v21135_v29 = vrot.slane %v25119_v56, %v15871_v8  ;;  %v21137_v15 = vadd.f32 %v8670_v6, %v7437_v17  ;;  %v25122_v17 = vld [vmem:[#allocation222_spill] sm:$0xff]  ;;  %v9094_v56 = vcombine.low %v25126_v10, %v25125_v1 }
 0x2e4   : > { %v15113_v37 = vpop.f32.mrf.mxu1  ;;  %v15195_v42 = vpop.f32.mrf.mxu0  ;;  %v25123_v6 = vcombine.low %v20599_v20, %v25122_v17  ;;  %v25128_v20 = vld [vmem:[#allocation189_spill] sm:$0xff]  ;;  %v25129_v17 = vld [vmem:[#allocation190_spill] sm:$0xff]  ;;  %v25136_v1 = vcombine.low %v25134_v51, %v25135_v49 }
 0x2e5   : > { %25120 = vst [vmem:[#allocation365_spill] sm:$0xff] %v21137_v15  ;;  %v25127_v42 = vld [vmem:[#allocation143_spill] sm:$0xff] }
 0x2e6   : > { %v7298_v37 = vpop.f32.mrf.mxu1  ;;  %15299 = vmatmul.mubr.msk.bf16.gmra.mxu1 %vm3919_vm2, %v9051_v13  ;;  %v21176_v10 = vrot.slane %v25136_v1, %v15871_v8 }
 0x2e7   : > { %v7440_v19 = vadd.f32 %v7298_v37, %v25121_v54  ;;  %15302 = vmatprep.mubr.msk.bf16.mxu1 %vm15764_vm4, %v23936_v59  ;;  %v8675_v44 = vpop.f32.mrf.mxu0 }
 0x2e8   : > { %15381 = vmatmul.mubr.msk.bf16.gmra.mxu0 %vm3919_vm2, %v25123_v6  ;;  %v15116_v13 = vpop.f32.mrf.mxu1  ;;  %v21152_v52 = vadd.f32 %v8675_v44, %v7438_v58  ;;  %v25130_v6 = vcombine.low %v25128_v20, %v25129_v17  ;;  %v25131_v44 = vld [vmem:[#allocation193_spill] sm:$0xff] }
 0x2e9   : > { %15384 = vmatprep.mubr.msk.bf16.mxu0 %vm15764_vm4, %v23936_v59  ;;  %v15198_v11 = vpop.f32.mrf.mxu0  ;;  %v25132_v13 = vld [vmem:[#allocation230_spill] sm:$0xff] }
 0x2ea   : > { %25124 = vst [vmem:[#allocation366_spill] sm:$0xff] %v21152_v52  ;;  %v7301_v63 = vpop.f32.mrf.mxu1  ;;  %v21164_v58 = vrot.slane %v25130_v6, %v15871_v8  ;;  %v25133_v11 = vcombine.low %v25131_v44, %v25132_v13  ;;  %v9101_v44 = vrot.slane %v9094_v56, %v15871_v8  ;;  %v25148_v13 = vld [vmem:[#allocation180_spill] sm:$0xff] }
 0x2eb   : > { %v7441_v37 = vadd.f32 %v7301_v63, %v25127_v42  ;;  %v8678_v54 = vpop.f32.mrf.mxu0  ;;  %v25138_v63 = vld [vmem:[#allocation218_spill] sm:$0xff] }
 0x2ec   : > { %v15117_v21 = vpop.f32.mrf.mxu1  ;;  %v21170_v38 = vrot.slane %v25133_v11, %v15871_v8  ;;  %v21184_v20 = vadd.f32 %v8678_v54, %v7439_v9  ;;  %v25141_v11 = vld [vmem:[#allocation144_spill] sm:$0xff] }
 0x2ed   : > { %v25137_v21 = vld [vmem:[#allocation392_spill] sm:$0xff]  ;;  %v15199_v17 = vpop.f32.mrf.mxu0 }
 0x2ee   : > { %v25139_v42 = vcombine.low %v25137_v21, %v25138_v63  ;;  %25140 = vst [vmem:[#allocation367_spill] sm:$0xff] %v21184_v20  ;;  %v7306_v6 = vpop.f32.mrf.mxu1  ;;  %15303 = vmatmul.mubr.msk.bf16.gmra.mxu1 %vm3919_vm2, %v9076_v48  ;;  %v25142_v9 = vld [vmem:[#allocation224_spill] sm:$0xff] }
 0x2ef   : > { %v7442_v51 = vadd.f32 %v7306_v6, %v25141_v11  ;;  %15306 = vmatprep.mubr.msk.bf16.mxu1 %vm15764_vm4, %v23936_v59  ;;  %v8683_v1 = vpop.f32.mrf.mxu0  ;;  %v25143_v54 = vcombine.low %v20628_v33, %v25142_v9  ;;  %v25146_v6 = vld [vmem:[#allocation43_spill] sm:$0xff]  ;;  %v25147_v11 = vld [vmem:[#allocation36_spill] sm:$0xff] }
 0x2f0   : > { %v21182_v52 = vrot.slane %v25139_v42, %v15871_v8  ;;  %v15120_v48 = vpop.f32.mrf.mxu1  ;;  %v21199_v21 = vadd.f32 %v8683_v1, %v7440_v19  ;;  %v25145_v42 = vld [vmem:[#allocation12_spill] sm:$0xff]  ;;  %v9119_v49 = vcombine.low %v25147_v11, %v25146_v6  ;;  %v25149_v33 = vld [vmem:[#allocation231_spill] sm:$0xff] }
 0x2f1   : > { %15385 = vmatmul.mubr.msk.bf16.gmra.mxu0 %vm3919_vm2, %v25143_v54  ;;  %v15202_v56 = vpop.f32.mrf.mxu0  ;;  %v9102_v17 = vcombine.low %v9101_v44, %v25145_v42  ;;  %v25150_v9 = vld [vmem:[#allocation232_spill] sm:$0xff]  ;;  %v25153_v1 = vld [vmem:[#allocation235_spill] sm:$0xff]  ;;  %v25154_v48 = vld [vmem:[#allocation270_spill] sm:$0xff] }
 0x2f2   : > { %25144 = vst [vmem:[#allocation368_spill] sm:$0xff] %v21199_v21  ;;  %15388 = vmatprep.mubr.msk.bf16.mxu0 %vm15764_vm4, %v23936_v59  ;;  %v7309_v63 = vpop.f32.mrf.mxu1  ;;  %v25151_v54 = vcombine.low %v25149_v33, %v25150_v9  ;;  %v25155_v56 = vcombine.low %v25153_v1, %v25154_v48  ;;  %v25157_v44 = vld [vmem:[#allocation217_spill] sm:$0xff]  ;;  %v25158_v42 = vld [vmem:[#allocation170_spill] sm:$0xff]  ;;  %v9126_v48 = vrot.slane %v9119_v49, %v15871_v8 }
 0x2f3   : > { %v7443_v20 = vadd.f32 %v7309_v63, %v25148_v13  ;;  %v8686_v15 = vpop.f32.mrf.mxu0  ;;  %v25159_v6 = vcombine.low %v25157_v44, %v25158_v42  ;;  %v25162_v13 = vld [vmem:[#allocation220_spill] sm:$0xff]  ;;  %v9110_v1 = vrot.slane %v9102_v17, %v15871_v8  ;;  %v25167_v42 = vld [vmem:[#allocation181_spill] sm:$0xff] }
 0x2f4   : > { %v15121_v31 = vpop.f32.mrf.mxu1  ;;  %v21211_v19 = vrot.slane %v25151_v54, %v15871_v8  ;;  %v21217_v21 = vrot.slane %v25155_v56, %v15871_v8  ;;  %v21231_v33 = vadd.f32 %v8686_v15, %v7441_v37 }
 0x2f5   : > { %v21223_v11 = vrot.slane %v25159_v6, %v15871_v8  ;;  %v25161_v31 = vld [vmem:[#allocation393_spill] sm:$0xff]  ;;  %v15203_v9 = vpop.f32.mrf.mxu0 }
 0x2f6   : > { %25152 = vst [vmem:[#allocation23_spill] sm:$0xff] %v21211_v19  ;;  %25156 = vst [vmem:[#allocation22_spill] sm:$0xff] %v21217_v21  ;;  %v25163_v63 = vcombine.low %v25161_v31, %v25162_v13  ;;  %v7314_v54 = vpop.f32.mrf.mxu1  ;;  %15307 = vmatmul.mubr.msk.bf16.gmra.mxu1 %vm3919_vm2, %v25166_v43  ;;  %v25169_v13 = vld [vmem:[#allocation262_spill] sm:$0xff]  ;;  %v25170_v9 = vld [vmem:[#allocation44_spill] sm:$0xff] }
 0x2f7   : > { %25160 = vst [vmem:[#allocation24_spill] sm:$0xff] %v21223_v11  ;;  %25165 = vst [vmem:[#allocation26_spill] sm:$0xff] %v21231_v33  ;;  %v7444_v6 = vadd.f32 %v7314_v54, %v25167_v42  ;;  %15310 = vmatprep.mubr.msk.bf16.mxu1 %vm15764_vm4, %v23936_v59  ;;  %v8691_v15 = vpop.f32.mrf.mxu0  ;;  %v9127_v44 = vcombine.low %v9126_v48, %v25170_v9  ;;  %v25171_v54 = vld [vmem:[#allocation75_spill] sm:$0xff]  ;;  %v25172_v42 = vld [vmem:[#allocation78_spill] sm:$0xff] }
 0x2f8   : > { %v21229_v14 = vrot.slane %v25163_v63, %v15871_v8  ;;  %v15124_v37 = vpop.f32.mrf.mxu1  ;;  %v21246_v31 = vadd.f32 %v8691_v15, %v7442_v51  ;;  %v9118_v63 = vcombine.low %v9110_v1, %v25169_v13  ;;  %v9144_v56 = vcombine.low %v25172_v42, %v25171_v54  ;;  %v25173_v33 = vld [vmem:[#allocation183_spill] sm:$0xff]  ;;  %v25175_v51 = vld [vmem:[#allocation272_spill] sm:$0xff] }
 0x2f9   : > { %15389 = vmatmul.mubr.msk.bf16.gmra.mxu0 %vm3919_vm2, %v25166_v43  ;;  %v15206_v49 = vpop.f32.mrf.mxu0  ;;  %v25174_v43 = vld [vmem:[#allocation271_spill] sm:$0xff]  ;;  %v25183_v9 = vld [vmem:[#allocation396_spill] sm:$0xff] }
 0x2fa   : > { %25164 = vst [vmem:[#allocation25_spill] sm:$0xff] %v21229_v14  ;;  %25168 = vst [vmem:[#allocation27_spill] sm:$0xff] %v21246_v31  ;;  %15392 = vmatprep.mubr.msk.bf16.mxu0 %vm15764_vm4, %v23936_v59  ;;  %v7317_v17 = vpop.f32.mrf.mxu1  ;;  %v25176_v15 = vcombine.low %v25174_v43, %v25175_v51  ;;  %v25178_v49 = vld [vmem:[#allocation274_spill] sm:$0xff]  ;;  %v25179_v31 = vld [vmem:[#allocation311_spill] sm:$0xff] }
 0x2fb   : > { %v7445_v14 = vadd.f32 %v7317_v17, %v25173_v33  ;;  %v8694_v11 = vpop.f32.mrf.mxu0  ;;  %v25180_v19 = vcombine.low %v25178_v49, %v25179_v31  ;;  %v25182_v48 = vld [vmem:[#allocation395_spill] sm:$0xff]  ;;  %v9151_v31 = vrot.slane %v9144_v56, %v15871_v8 }
 0x2fc   : > { %v15125_v21 = vpop.f32.mrf.mxu1  ;;  %v21259_v37 = vrot.slane %v25176_v15, %v15871_v8  ;;  %v25184_v54 = vcombine.low %v25182_v48, %v25183_v9  ;;  %v25187_v33 = vld [vmem:[#allocation299_spill] sm:$0xff]  ;;  %v21279_v43 = vadd.f32 %v8694_v11, %v7443_v20  ;;  %v25191_v9 = vld [vmem:[#allocation184_spill] sm:$0xff] }
 0x2fd   : > { %v21265_v1 = vrot.slane %v25180_v19, %v15871_v8  ;;  %v25186_v21 = vld [vmem:[#allocation397_spill] sm:$0xff]  ;;  %v15207_v51 = vpop.f32.mrf.mxu0  ;;  %v9135_v19 = vrot.slane %v9127_v44, %v15871_v8  ;;  %v25192_v11 = vld [vmem:[#allocation263_spill] sm:$0xff] }
 0x2fe   : > { %25177 = vst [vmem:[#allocation28_spill] sm:$0xff] %v21259_v37  ;;  %v21271_v42 = vrot.slane %v25184_v54, %v15871_v8  ;;  %v25188_v17 = vcombine.low %v25186_v21, %v25187_v33  ;;  %25190 = vst [vmem:[#allocation48_spill] sm:$0xff] %v21279_v43  ;;  %v7322_v15 = vpop.f32.mrf.mxu1  ;;  %15311 = vmatmul.mubr.msk.bf16.gmra.mxu1 %vm3919_vm2, %v9118_v63  ;;  %v25193_v21 = vcombine.low %v25192_v11, %v25169_v13  ;;  %v25197_v48 = vld [vmem:[#allocation115_spill] sm:$0xff] }
 0x2ff   : > { %25181 = vst [vmem:[#allocation45_spill] sm:$0xff] %v21265_v1  ;;  %v7446_v54 = vadd.f32 %v7322_v15, %v25191_v9  ;;  %15314 = vmatprep.mubr.msk.bf16.mxu1 %vm15764_vm4, %v23936_v59  ;;  %v8699_v20 = vpop.f32.mrf.mxu0  ;;  %v25196_v15 = vld [vmem:[#allocation71_spill] sm:$0xff] }
 0x300   : > { %25185 = vst [vmem:[#allocation46_spill] sm:$0xff] %v21271_v42  ;;  %v21277_v2 = vrot.slane %v25188_v17, %v15871_v8  ;;  %v15128_v44 = vpop.f32.mrf.mxu1  ;;  %v21295_v63 = vadd.f32 %v8699_v20, %v7444_v6  ;;  %v25195_v17 = vld [vmem:[#allocation266_spill] sm:$0xff]  ;;  %v9152_v9 = vcombine.low %v25196_v15, %v9151_v31  ;;  %v25198_v49 = vld [vmem:[#allocation107_spill] sm:$0xff]  ;;  %v25201_v6 = vld [vmem:[#allocation313_spill] sm:$0xff] }
 0x301   : > { %15393 = vmatmul.mubr.msk.bf16.gmra.mxu0 %vm3919_vm2, %v25193_v21  ;;  %v15210_v56 = vpop.f32.mrf.mxu0  ;;  %v9143_v51 = vcombine.low %v9135_v19, %v25195_v17  ;;  %v9169_v43 = vcombine.low %v25198_v49, %v25197_v48  ;;  %v25200_v21 = vld [vmem:[#allocation312_spill] sm:$0xff]  ;;  %v25206_v31 = vld [vmem:[#allocation301_spill] sm:$0xff] }
 0x302   : > { %25189 = vst [vmem:[#allocation47_spill] sm:$0xff] %v21277_v2  ;;  %25194 = vst [vmem:[#allocation49_spill] sm:$0xff] %v21295_v63  ;;  %15396 = vmatprep.mubr.msk.bf16.mxu0 %vm15764_vm4, %v23936_v59  ;;  %v7325_v33 = vpop.f32.mrf.mxu1  ;;  %v25199_v2 = vld [vmem:[#allocation186_spill] sm:$0xff]  ;;  %v25202_v20 = vcombine.low %v25200_v21, %v25201_v6  ;;  %v25203_v56 = vld [vmem:[#allocation315_spill] sm:$0xff] }
 0x303   : > { %v7447_v42 = vadd.f32 %v7325_v33, %v25199_v2  ;;  %v8702_v13 = vpop.f32.mrf.mxu0  ;;  %v25204_v63 = vld [vmem:[#allocation350_spill] sm:$0xff]  ;;  %v25207_v15 = vld [vmem:[#allocation253_spill] sm:$0xff]  ;;  %v25211_v33 = vld [vmem:[#allocation403_spill] sm:$0xff] }
 0x304   : > { %v15129_v11 = vpop.f32.mrf.mxu1  ;;  %v21308_v44 = vrot.slane %v25202_v20, %v15871_v8  ;;  %v25205_v1 = vcombine.low %v25203_v56, %v25204_v63  ;;  %v25208_v49 = vcombine.low %v25206_v31, %v25207_v15  ;;  %v25210_v2 = vld [vmem:[#allocation258_spill] sm:$0xff]  ;;  %v21328_v21 = vadd.f32 %v8702_v13, %v7445_v14  ;;  %v25215_v15 = vld [vmem:[#allocation187_spill] sm:$0xff] }
 0x305   : > { %v25212_v11 = vcombine.low %v25210_v2, %v25211_v33  ;;  %v15211_v6 = vpop.f32.mrf.mxu0  ;;  %v9176_v63 = vrot.slane %v9169_v43, %v15871_v8  ;;  %v25216_v13 = vld [vmem:[#allocation267_spill] sm:$0xff] }
 0x306   : > { %v21314_v19 = vrot.slane %v25205_v1, %v15871_v8  ;;  %v21320_v48 = vrot.slane %v25208_v49, %v15871_v8  ;;  %25214 = vst [vmem:[#allocation52_spill] sm:$0xff] %v21328_v21  ;;  %v7330_v20 = vpop.f32.mrf.mxu1  ;;  %15315 = vmatmul.mubr.msk.bf16.gmra.mxu1 %vm3919_vm2, %v9143_v51  ;;  %v9160_v1 = vrot.slane %v9152_v9, %v15871_v8  ;;  %v25221_v56 = vld [vmem:[#allocation223_spill] sm:$0xff] }
 0x307   : > { %v21326_v37 = vrot.slane %v25212_v11, %v15871_v8  ;;  %v7448_v49 = vadd.f32 %v7330_v20, %v25215_v15  ;;  %15318 = vmatprep.mubr.msk.bf16.mxu1 %vm15764_vm4, %v23936_v59  ;;  %v8707_v14 = vpop.f32.mrf.mxu0  ;;  %v25217_v2 = vcombine.low %v25216_v13, %v25195_v17  ;;  %v9177_v6 = vcombine.low %v25023_v25, %v9176_v63  ;;  %v25219_v20 = vld [vmem:[#allocation156_spill] sm:$0xff]  ;;  %v25220_v15 = vld [vmem:[#allocation158_spill] sm:$0xff]  ;;  %v25230_v63 = vld [vmem:[#allocation405_spill] sm:$0xff] }
 0x308   : > { %25209 = vst [vmem:[#allocation50_spill] sm:$0xff] %v21320_v48  ;;  %v15132_v51 = vpop.f32.mrf.mxu1  ;;  %v21344_v9 = vadd.f32 %v8707_v14, %v7446_v54  ;;  %v9168_v11 = vcombine.low %v9160_v1, %v20769_v5  ;;  %v9194_v31 = vcombine.low %v25220_v15, %v25219_v20  ;;  %v25223_v54 = vld [vmem:[#allocation352_spill] sm:$0xff] }
 0x309   : > { %25213 = vst [vmem:[#allocation51_spill] sm:$0xff] %v21326_v37  ;;  %15397 = vmatmul.mubr.msk.bf16.gmra.mxu0 %vm3919_vm2, %v25217_v2  ;;  %v15214_v43 = vpop.f32.mrf.mxu0  ;;  %v25222_v2 = vld [vmem:[#allocation351_spill] sm:$0xff]  ;;  %v25229_v25 = vld [vmem:[#allocation404_spill] sm:$0xff] }
 0x30a   : > { %25218 = vst [vmem:[#allocation80_spill] sm:$0xff] %v21344_v9  ;;  %15400 = vmatprep.mubr.msk.bf16.mxu0 %vm15764_vm4, %v23936_v59  ;;  %v7333_v33 = vpop.f32.mrf.mxu1  ;;  %v25224_v14 = vcombine.low %v25222_v2, %v25223_v54  ;;  %v25225_v43 = vld [vmem:[#allocation354_spill] sm:$0xff]  ;;  %v25226_v9 = vld [vmem:[#allocation371_spill] sm:$0xff]  ;;  %v25231_v20 = vcombine.low %v25229_v25, %v25230_v63  ;;  %v25238_v63 = vld [vmem:[#allocation225_spill] sm:$0xff] }
 0x30b   : > { %v7449_v21 = vadd.f32 %v7333_v33, %v25221_v56  ;;  %v8710_v17 = vpop.f32.mrf.mxu0  ;;  %v25227_v37 = vcombine.low %v25225_v43, %v25226_v9  ;;  %v25233_v56 = vld [vmem:[#allocation406_spill] sm:$0xff]  ;;  %v9201_v9 = vrot.slane %v9194_v31, %v15871_v8  ;;  %v25243_v25 = vld [vmem:[#allocation200_spill] sm:$0xff] }
 0x30c   : > { %v15133_v13 = vpop.f32.mrf.mxu1  ;;  %v21357_v51 = vrot.slane %v25224_v14, %v15871_v8  ;;  %v21369_v15 = vrot.slane %v25231_v20, %v15871_v8  ;;  %v25234_v33 = vld [vmem:[#allocation342_spill] sm:$0xff]  ;;  %v21377_v2 = vadd.f32 %v8710_v17, %v7447_v42  ;;  %v25239_v42 = vld [vmem:[#allocation29_spill] sm:$0xff] }
 0x30d   : > { %v21363_v1 = vrot.slane %v25227_v37, %v15871_v8  ;;  %v25235_v13 = vcombine.low %v25233_v56, %v25234_v33  ;;  %v15215_v54 = vpop.f32.mrf.mxu0  ;;  %v9185_v37 = vrot.slane %v9177_v6, %v15871_v8  ;;  %v25240_v17 = vld [vmem:[#allocation374_spill] sm:$0xff] }
 0x30e   : > { %25232 = vst [vmem:[#allocation82_spill] sm:$0xff] %v21369_v15  ;;  %25237 = vst [vmem:[#allocation84_spill] sm:$0xff] %v21377_v2  ;;  %v7338_v14 = vpop.f32.mrf.mxu1  ;;  %15319 = vmatmul.mubr.msk.bf16.gmra.mxu1 %vm3919_vm2, %v9168_v11  ;;  %v10495_v56 = vcombine.low %v25240_v17, %v25239_v42  ;;  %v25241_v11 = vcombine.low %v20772_v60, %v20769_v5  ;;  %v25244_v42 = vld [vmem:[#allocation194_spill] sm:$0xff] }
 0x30f   : > { %25228 = vst [vmem:[#allocation81_spill] sm:$0xff] %v21363_v1  ;;  %v21375_v48 = vrot.slane %v25235_v13, %v15871_v8  ;;  %v7450_v20 = vadd.f32 %v7338_v14, %v25238_v63  ;;  %15322 = vmatprep.mubr.msk.bf16.mxu1 %vm15764_vm4, %v23936_v59  ;;  %v8715_v33 = vpop.f32.mrf.mxu0  ;;  %v9193_v14 = vcombine.low %v9185_v37, %v20838_v24  ;;  %v25245_v43 = vld [vmem:[#allocation226_spill] sm:$0xff]  ;;  %v25251_v37 = vld [vmem:[#allocation411_spill] sm:$0xff] }
 0x310   : > { %v15136_v31 = vpop.f32.mrf.mxu1  ;;  %v21395_v6 = vadd.f32 %v8715_v33, %v7448_v49  ;;  %v9203_v63 = vcombine.low %v9201_v9, %v25037_v28  ;;  %v9219_v17 = vcombine.low %v25244_v42, %v25243_v25  ;;  %v25247_v49 = vld [vmem:[#allocation373_spill] sm:$0xff] }
 0x311   : > { %25236 = vst [vmem:[#allocation83_spill] sm:$0xff] %v21375_v48  ;;  %15401 = vmatmul.mubr.msk.bf16.gmra.mxu0 %vm3919_vm2, %v25241_v11  ;;  %v15218_v13 = vpop.f32.mrf.mxu0  ;;  %v25246_v11 = vld [vmem:[#allocation372_spill] sm:$0xff]  ;;  %v25255_v25 = vld [vmem:[#allocation413_spill] sm:$0xff] }
 0x312   : > { %25242 = vst [vmem:[#allocation85_spill] sm:$0xff] %v21395_v6  ;;  %15404 = vmatprep.mubr.msk.bf16.mxu0 %vm15764_vm4, %v23936_v59  ;;  %v7341_v54 = vpop.f32.mrf.mxu1  ;;  %v25248_v33 = vcombine.low %v25246_v11, %v25247_v49  ;;  %v21411_v13 = vrot.slane %v10495_v56, %v15871_v8  ;;  %v25252_v6 = vld [vmem:[#allocation412_spill] sm:$0xff]  ;;  %v9217_v56 = vrot.slane %v9203_v63, %v15871_v8  ;;  %v25358_v48 = vld [vmem:[#allocation33_spill] sm:$0xff] }
 0x313   : > { %v7451_v2 = vadd.f32 %v7341_v54, %v25245_v43  ;;  %v8718_v60 = vpop.f32.mrf.mxu0  ;;  %v25253_v28 = vcombine.low %v25251_v37, %v25252_v6  ;;  %v25256_v43 = vld [vmem:[#allocation414_spill] sm:$0xff]  ;;  %v25265_v6 = vld [vmem:[#allocation229_spill] sm:$0xff] }
 0x314   : > { %v15137_v5 = vpop.f32.mrf.mxu1  ;;  %v21408_v31 = vrot.slane %v25248_v33, %v15871_v8  ;;  %25250 = vst [vmem:[#allocation87_spill] sm:$0xff] %v21411_v13  ;;  %v25257_v54 = vcombine.low %v25255_v25, %v25256_v43  ;;  %v9226_v33 = vrot.slane %v9219_v17, %v15871_v8 }
 0x315   : > { %v21417_v9 = vrot.slane %v25253_v28, %v15871_v8  ;;  %v21425_v5 = vadd.f32 %v8718_v60, %v7449_v21  ;;  %v15219_v11 = vpop.f32.mrf.mxu0  ;;  %v25260_v28 = vld [vmem:[#allocation227_spill] sm:$0xff]  ;;  %v25261_v60 = vcombine.low %v20841_v22, %v20838_v24 }
 0x316   : > { %25249 = vst [vmem:[#allocation86_spill] sm:$0xff] %v21408_v31  ;;  %v21423_v42 = vrot.slane %v25257_v54, %v15871_v8  ;;  %v7346_v49 = vpop.f32.mrf.mxu1  ;;  %15323 = vmatmul.mubr.msk.bf16.gmra.mxu1 %vm3919_vm2, %v9193_v14  ;;  %v9218_v54 = vcombine.low %v20877_v27, %v9217_v56  ;;  %v9228_v11 = vcombine.low %v9226_v33, %v25047_v35  ;;  %v25274_v35 = vld [vmem:[#allocation415_spill] sm:$0xff]  ;;  %v25275_v33 = vld [vmem:[#allocation417_spill] sm:$0xff] }
 0x317   : > { %25254 = vst [vmem:[#allocation117_spill] sm:$0xff] %v21417_v9  ;;  %25259 = vst [vmem:[#allocation119_spill] sm:$0xff] %v21425_v5  ;;  %v7452_v25 = vadd.f32 %v7346_v49, %v25260_v28  ;;  %15326 = vmatprep.mubr.msk.bf16.mxu1 %vm15764_vm4, %v23936_v59  ;;  %v8723_v21 = vpop.f32.mrf.mxu0  ;;  %v25263_v49 = vld [vmem:[#allocation275_spill] sm:$0xff]  ;;  %v25264_v28 = vld [vmem:[#allocation240_spill] sm:$0xff] }
 0x318   : > { %25258 = vst [vmem:[#allocation118_spill] sm:$0xff] %v21423_v42  ;;  %v15140_v14 = vpop.f32.mrf.mxu1  ;;  %v21441_v63 = vadd.f32 %v8723_v21, %v7450_v20  ;;  %v9244_v37 = vcombine.low %v25264_v28, %v25263_v49  ;;  %v25267_v20 = vld [vmem:[#allocation31_spill] sm:$0xff]  ;;  %v25276_v49 = vcombine.low %v25274_v35, %v25275_v33  ;;  %v25283_v33 = vld [vmem:[#allocation264_spill] sm:$0xff] }
 0x319   : > { %15405 = vmatmul.mubr.msk.bf16.gmra.mxu0 %vm3919_vm2, %v25261_v60  ;;  %v15222_v17 = vpop.f32.mrf.mxu0  ;;  %v25266_v60 = vld [vmem:[#allocation30_spill] sm:$0xff]  ;;  %v25352_v31 = vld [vmem:[#allocation167_spill] sm:$0xff] }
 0x31a   : > { %25262 = vst [vmem:[#allocation120_spill] sm:$0xff] %v21441_v63  ;;  %15408 = vmatprep.mubr.msk.bf16.mxu0 %vm15764_vm4, %v23936_v59  ;;  %v7349_v43 = vpop.f32.mrf.mxu1  ;;  %v25268_v21 = vcombine.low %v25266_v60, %v25267_v20  ;;  %v25270_v17 = vld [vmem:[#allocation32_spill] sm:$0xff]  ;;  %v25271_v63 = vld [vmem:[#allocation53_spill] sm:$0xff]  ;;  %v21466_v28 = vrot.slane %v25276_v49, %v15871_v8 }
 0x31b   : > { %v7453_v5 = vadd.f32 %v7349_v43, %v25265_v6  ;;  %v8726_v24 = vpop.f32.mrf.mxu0  ;;  %v25272_v42 = vcombine.low %v25270_v17, %v25271_v63  ;;  %v25278_v6 = vld [vmem:[#allocation418_spill] sm:$0xff]  ;;  %v9251_v63 = vrot.slane %v9244_v37, %v15871_v8  ;;  %v25289_v17 = vld [vmem:[#allocation265_spill] sm:$0xff] }
 0x31c   : > { %v15141_v22 = vpop.f32.mrf.mxu1  ;;  %v21454_v14 = vrot.slane %v25268_v21, %v15871_v8  ;;  %25277 = vst [vmem:[#allocation123_spill] sm:$0xff] %v21466_v28  ;;  %v25279_v43 = vld [vmem:[#allocation18_spill] sm:$0xff]  ;;  %v21474_v60 = vadd.f32 %v8726_v24, %v7451_v2  ;;  %v25285_v24 = vld [vmem:[#allocation279_spill] sm:$0xff] }
 0x31d   : > { %v21460_v56 = vrot.slane %v25272_v42, %v15871_v8  ;;  %v25280_v22 = vcombine.low %v25278_v6, %v25279_v43  ;;  %v15223_v20 = vpop.f32.mrf.mxu0  ;;  %v9242_v42 = vrot.slane %v9228_v11, %v15871_v8  ;;  %v25284_v2 = vld [vmem:[#allocation322_spill] sm:$0xff] }
 0x31e   : > { %25269 = vst [vmem:[#allocation121_spill] sm:$0xff] %v21454_v14  ;;  %25282 = vst [vmem:[#allocation159_spill] sm:$0xff] %v21474_v60  ;;  %v7354_v21 = vpop.f32.mrf.mxu1  ;;  %15327 = vmatmul.mubr.msk.bf16.gmra.mxu1 %vm3919_vm2, %v9218_v54  ;;  %v9269_v6 = vcombine.low %v25285_v24, %v25284_v2  ;;  %v25286_v54 = vcombine.low %v20877_v27, %v20880_v55  ;;  %v25290_v24 = vld [vmem:[#allocation278_spill] sm:$0xff] }
 0x31f   : > { %25273 = vst [vmem:[#allocation122_spill] sm:$0xff] %v21460_v56  ;;  %v21472_v9 = vrot.slane %v25280_v22, %v15871_v8  ;;  %v7454_v49 = vadd.f32 %v7354_v21, %v25283_v33  ;;  %15330 = vmatprep.mubr.msk.bf16.mxu1 %vm15764_vm4, %v23936_v59  ;;  %v8731_v43 = vpop.f32.mrf.mxu0  ;;  %v9243_v21 = vcombine.low %v20922_v3, %v9242_v42  ;;  %v25288_v33 = vld [vmem:[#allocation238_spill] sm:$0xff]  ;;  %v25295_v42 = vld [vmem:[#allocation56_spill] sm:$0xff] }
 0x320   : > { %v15144_v37 = vpop.f32.mrf.mxu1  ;;  %v21492_v11 = vadd.f32 %v8731_v43, %v7452_v25  ;;  %v9253_v35 = vcombine.low %v25288_v33, %v9251_v63  ;;  %v9875_v60 = vcombine.low %v25288_v33, %v25290_v24  ;;  %v9276_v27 = vrot.slane %v9269_v6, %v15871_v8  ;;  %v25291_v43 = vld [vmem:[#allocation54_spill] sm:$0xff]  ;;  %v25303_v6 = vld [vmem:[#allocation421_spill] sm:$0xff] }
 0x321   : > { %25281 = vst [vmem:[#allocation124_spill] sm:$0xff] %v21472_v9  ;;  %15409 = vmatmul.mubr.msk.bf16.gmra.mxu0 %vm3919_vm2, %v25286_v54  ;;  %v15226_v22 = vpop.f32.mrf.mxu0  ;;  %v25292_v54 = vld [vmem:[#allocation55_spill] sm:$0xff] }
 0x322   : > { %25287 = vst [vmem:[#allocation160_spill] sm:$0xff] %v21492_v11  ;;  %15412 = vmatprep.mubr.msk.bf16.mxu0 %vm15764_vm4, %v23936_v59  ;;  %v7357_v20 = vpop.f32.mrf.mxu1  ;;  %v25293_v37 = vcombine.low %v25291_v43, %v25292_v54  ;;  %v25296_v11 = vld [vmem:[#allocation88_spill] sm:$0xff] }
 0x323   : > { %v7455_v2 = vadd.f32 %v7357_v20, %v25289_v17  ;;  %v8734_v55 = vpop.f32.mrf.mxu0  ;;  %v25297_v63 = vcombine.low %v25295_v42, %v25296_v11  ;;  %v25299_v17 = vld [vmem:[#allocation19_spill] sm:$0xff]  ;;  %v25300_v20 = vld [vmem:[#allocation420_spill] sm:$0xff]  ;;  %v25308_v11 = vld [vmem:[#allocation234_spill] sm:$0xff] }
 0x324   : > { %v15145_v25 = vpop.f32.mrf.mxu1  ;;  %v21506_v22 = vrot.slane %v25293_v37, %v15871_v8  ;;  %v25301_v33 = vcombine.low %v25299_v17, %v25300_v20  ;;  %v21526_v43 = vadd.f32 %v8734_v55, %v7453_v5  ;;  %v25309_v42 = vld [vmem:[#allocation239_spill] sm:$0xff]  ;;  %v9267_v17 = vrot.slane %v9253_v35, %v15871_v8  ;;  %v25311_v5 = vld [vmem:[#allocation268_spill] sm:$0xff] }
 0x325   : > { %v21512_v9 = vrot.slane %v25297_v63, %v15871_v8  ;;  %v25304_v25 = vld [vmem:[#allocation35_spill] sm:$0xff]  ;;  %v15227_v54 = vpop.f32.mrf.mxu0  ;;  %v25310_v63 = vcombine.low %v25308_v11, %v25309_v42  ;;  %v25314_v11 = vld [vmem:[#allocation444_spill] sm:$0xff] }
 0x326   : > { %25294 = vst [vmem:[#allocation161_spill] sm:$0xff] %v21506_v22  ;;  %v21518_v24 = vrot.slane %v25301_v33, %v15871_v8  ;;  %v25305_v28 = vcombine.low %v25303_v6, %v25304_v25  ;;  %25307 = vst [vmem:[#allocation165_spill] sm:$0xff] %v21526_v43  ;;  %v7362_v37 = vpop.f32.mrf.mxu1  ;;  %15331 = vmatmul.mubr.msk.bf16.gmra.mxu1 %vm3919_vm2, %v9243_v21  ;;  %v14554_v33 = vld.sshfl [vmem:[%s15868_s7 + $0xe4] sm:$0x33 pattern:$0x75316420]  ;;  %v9882_v21 = vrot.slane %v9875_v60, %v15871_v8 }
 0x327   : > { %25298 = vst [vmem:[#allocation162_spill] sm:$0xff] %v21512_v9  ;;  %v9260_v14 = vrot.slane %v25310_v63, %v15871_v8  ;;  %v7456_v55 = vadd.f32 %v7362_v37, %v25311_v5  ;;  %15334 = vmatprep.mubr.msk.bf16.mxu1 %vm15764_vm4, %v23936_v59  ;;  %v25312_v6 = vld [vmem:[#allocation442_spill] sm:$0xff]  ;;  %v25313_v25 = vld [vmem:[#allocation441_spill] sm:$0xff]  ;;  %v9278_v42 = vcombine.low %v25314_v11, %v9276_v27  ;;  %v8739_v35 = vpop.f32.mrf.mxu0  ;;  %v25317_v37 = vld [vmem:[#allocation316_spill] sm:$0xff] }
 0x328   : > { %25302 = vst [vmem:[#allocation163_spill] sm:$0xff] %v21518_v24  ;;  %v21524_v56 = vrot.slane %v25305_v28, %v15871_v8  ;;  %v9277_v54 = vcombine.low %v25313_v25, %v25312_v6  ;;  %v25315_v63 = vcombine.low %v20922_v3, %v20925_v0  ;;  %v15148_v28 = vpop.f32.mrf.mxu1  ;;  %v21550_v20 = vadd.f32 %v8739_v35, %v7454_v49  ;;  %v25318_v27 = vld [vmem:[#allocation269_spill] sm:$0xff] }
 0x329   : > { %v9884_v60 = vcombine.low %v25314_v11, %v25317_v37  ;;  %v9692_v5 = vcombine.high %v14554_v33, %v14554_v33  ;;  %v15230_v43 = vpop.f32.mrf.mxu0  ;;  %v9268_v25 = vcombine.low %v9260_v14, %v9267_v17  ;;  %v9883_v24 = vcombine.low %v9260_v14, %v9882_v21  ;;  %v25319_v35 = vld [vmem:[#allocation89_spill] sm:$0xff]  ;;  %v25327_v14 = vld [vmem:[#allocation424_spill] sm:$0xff] }
 0x32a   : > { %25306 = vst [vmem:[#allocation164_spill] sm:$0xff] %v21524_v56  ;;  %15413 = vmatmul.mubr.msk.bf16.gmra.mxu0 %vm3919_vm2, %v25315_v63  ;;  %25316 = vst [vmem:[#allocation166_spill] sm:$0xff] %v21550_v20  ;;  %v7365_v6 = vpop.f32.mrf.mxu1  ;;  %v21558_v3 = vrot.slane %v9277_v54, %v15871_v8  ;;  %v9292_v0 = vrot.slane %v9278_v42, %v15871_v8  ;;  %v25320_v63 = vld [vmem:[#allocation90_spill] sm:$0xff]  ;;  %v25323_v43 = vld [vmem:[#allocation93_spill] sm:$0xff] }
 0x32b   : > { %15416 = vmatprep.mubr.msk.bf16.mxu0 %vm15764_vm4, %v23936_v59  ;;  %v7457_v56 = vadd.f32 %v7365_v6, %v25318_v27  ;;  %v8742_v49 = vpop.f32.mrf.mxu0  ;;  %v25321_v20 = vcombine.low %v25319_v35, %v25320_v63  ;;  %v25324_v11 = vld [vmem:[#allocation125_spill] sm:$0xff]  ;;  %v25331_v42 = vld [vmem:[#allocation427_spill] sm:$0xff]  ;;  %v25332_v27 = vld [vmem:[#allocation428_spill] sm:$0xff]  ;;  %v9891_v35 = vrot.slane %v9884_v60, %v15871_v8 }
 0x32c   : > { %v15149_v28 = vpop.f32.mrf.mxu1  ;;  %v25325_v17 = vcombine.low %v25323_v43, %v25324_v11  ;;  %v25328_v21 = vld [vmem:[#allocation425_spill] sm:$0xff]  ;;  %v25336_v11 = vld [vmem:[#allocation319_spill] sm:$0xff]  ;;  %v25341_v60 = vld [vmem:[#allocation358_spill] sm:$0xff] }
 0x32d   : > { %v21565_v9 = vrot.slane %v25321_v20, %v15871_v8  ;;  %v25329_v54 = vcombine.low %v25327_v14, %v25328_v21  ;;  %v25333_v28 = vcombine.low %v25331_v42, %v25332_v27  ;;  %v21585_v20 = vadd.f32 %v8742_v49, %v7455_v2  ;;  %v15231_v63 = vpop.f32.mrf.mxu0  ;;  %v25338_v21 = vld [vmem:[#allocation448_spill] sm:$0xff]  ;;  %v25340_v49 = vld [vmem:[#allocation306_spill] sm:$0xff]  ;;  %v25346_v42 = vld [vmem:[#allocation99_spill] sm:$0xff] }
 0x32e   : > { %v21571_v37 = vrot.slane %v25325_v17, %v15871_v8  ;;  %v7370_v43 = vpop.f32.mrf.mxu1  ;;  %15335 = vmatmul.mubr.msk.bf16.gmra.mxu1 %vm3919_vm2, %v9268_v25  ;;  %v25337_v17 = vld [vmem:[#allocation321_spill] sm:$0xff]  ;;  %v21603_v63 = vrot.slane %v14554_v33, %v15871_v8  ;;  %v14555_v2 = vld.sshfl [vmem:[%s15868_s7 + $0xe8] sm:$0x33 pattern:$0x75316420] }
 0x32f   : > { %25322 = vst [vmem:[#allocation201_spill] sm:$0xff] %v21565_v9  ;;  %v21577_v6 = vrot.slane %v25329_v54, %v15871_v8  ;;  %v21583_v22 = vrot.slane %v25333_v28, %v15871_v8  ;;  %25335 = vst [vmem:[#allocation205_spill] sm:$0xff] %v21585_v20  ;;  %v9294_v14 = vcombine.low %v25337_v17, %v25336_v11  ;;  %v25339_v54 = vld [vmem:[#allocation447_spill] sm:$0xff]  ;;  %15338 = vmatprep.mubr.msk.bf16.mxu1 %vm15764_vm4, %v23936_v59  ;;  %v8747_v17 = vpop.f32.mrf.mxu0  ;;  %v25345_v33 = vld [vmem:[#allocation100_spill] sm:$0xff] }
 0x330   : > { %25326 = vst [vmem:[#allocation202_spill] sm:$0xff] %v21571_v37  ;;  %v9295_v13 = vcombine.low %v25339_v54, %v25338_v21  ;;  %v7458_v27 = vadd.f32 %v7370_v43, %v25340_v49  ;;  %v25342_v28 = vld [vmem:[#allocation355_spill] sm:$0xff]  ;;  %v21606_v11 = vrot.slane %v9692_v5, %v15871_v8  ;;  %v15152_v21 = vpop.f32.mrf.mxu1  ;;  %v9293_v54 = vcombine.low %v21558_v3, %v9292_v0  ;;  %v25344_v49 = vld [vmem:[#allocation356_spill] sm:$0xff] }
 0x331   : > { %25330 = vst [vmem:[#allocation203_spill] sm:$0xff] %v21577_v6  ;;  %25334 = vst [vmem:[#allocation204_spill] sm:$0xff] %v21583_v22  ;;  %v9311_v25 = vcombine.low %v25342_v28, %v25341_v60  ;;  %v21611_v43 = vadd.f32 %v8747_v17, %v7456_v55  ;;  %v14531_v28 = vcombine.high %v25344_v49, %v25341_v60  ;;  %v15234_v22 = vpop.f32.mrf.mxu0 }
 0x332   : > { %15417 = vmatmul.mubr.msk.bf16.gmra.mxu0 %vm3919_vm2, %v9883_v24  ;;  %v9313_v20 = vcombine.low %v25346_v42, %v25345_v33  ;;  %v14532_v5 = vcombine.high %v25346_v42, %v25345_v33  ;;  %v7373_v24 = vpop.f32.mrf.mxu1  ;;  %v9892_v21 = vcombine.low %v21558_v3, %v9891_v35  ;;  %v9302_v0 = vrot.slane %v9294_v14, %v15871_v8  ;;  %v25348_v33 = vld [vmem:[#allocation126_spill] sm:$0xff]  ;;  %v25349_v3 = vld [vmem:[#allocation127_spill] sm:$0xff] }
 0x333   : > { %25343 = vst [vmem:[#allocation206_spill] sm:$0xff] %v21611_v43  ;;  %15420 = vmatprep.mubr.msk.bf16.mxu0 %vm15764_vm4, %v23936_v59  ;;  %v9309_v55 = vrot.slane %v9295_v13, %v15871_v8  ;;  %v9893_v17 = vcombine.low %v25344_v49, %v25341_v60  ;;  %v7459_v43 = vadd.f32 %v7373_v24, %v20828_v40  ;;  %v8750_v42 = vpop.f32.mrf.mxu0  ;;  %v25351_v13 = vld [vmem:[#allocation131_spill] sm:$0xff] }
 0x334   : > { %v9321_v6 = vrot.slane %v9311_v25, %v15871_v8  ;;  %v9716_v37 = vcombine.high %v14555_v2, %v14555_v2  ;;  %v21629_v9 = vrot.slane %v14555_v2, %v15871_v8  ;;  %v15153_v22 = vpop.f32.mrf.mxu1  ;;  %v25350_v35 = vcombine.low %v25348_v33, %v25349_v3  ;;  %v25354_v40 = vld [vmem:[#allocation79_spill] sm:$0xff]  ;;  %v25355_v25 = vld [vmem:[#allocation429_spill] sm:$0xff] }
 0x335   : > { %v25353_v60 = vcombine.low %v25351_v13, %v25352_v31  ;;  %v25356_v24 = vcombine.low %v25354_v40, %v25355_v25  ;;  %v25357_v22 = vld [vmem:[#allocation431_spill] sm:$0xff]  ;;  %v21655_v33 = vadd.f32 %v8750_v42, %v7457_v56  ;;  %v9328_v3 = vrot.slane %v14531_v28, %v15871_v8  ;;  %v15235_v13 = vpop.f32.mrf.mxu0 }
 0x336   : > { %25347 = vst [vmem:[#allocation207_spill] sm:$0xff] %v21629_v9  ;;  %v21635_v14 = vrot.slane %v25350_v35, %v15871_v8  ;;  %v25359_v15 = vcombine.low %v25357_v22, %v25358_v48  ;;  %v9335_v31 = vrot.slane %v9313_v20, %v15871_v8  ;;  %v9342_v35 = vrot.slane %v14532_v5, %v15871_v8 }
 0x337   : > { %v21641_v49 = vrot.slane %v25353_v60, %v15871_v8  ;;  %v21647_v2 = vrot.slane %v25356_v24, %v15871_v8  ;;  %25360 = vst [vmem:[#allocation208_spill] sm:$0xff] %v21655_v33  ;;  %v7378_v60 = vpop.f32.mrf.mxu1  ;;  %15339 = vmatmul.mubr.msk.bf16.gmra.mxu1 %vm3919_vm2, %v9293_v54  ;;  %v9900_v40 = vrot.slane %v9893_v17, %v15871_v8  ;;  %v8755_v5 = vpop.f32.mrf.mxu0 }
 0x338   : > { %v21653_v1 = vrot.slane %v25359_v15, %v15871_v8  ;;  %v21664_v25 = vcombine.high %v21603_v63, %v21603_v63  ;;  %v7460_v56 = vadd.f32 %v7378_v60, %v20863_v57  ;;  %15342 = vmatprep.mubr.msk.bf16.mxu1 %vm15764_vm4, %v23936_v59  ;;  %v21675_v20 = vcombine.high %v21606_v11, %v21606_v11 }
 0x339   : > { %v21678_v54 = vrot.slane %v9716_v37, %v15871_v8  ;;  %v21682_v28 = vcombine.high %v21629_v9, %v21629_v9  ;;  %v15156_v17 = vpop.f32.mrf.mxu1  ;;  %v21685_v42 = vadd.f32 %v8755_v5, %v7458_v27  ;;  %v9343_v57 = vcombine.low %v9321_v6, %v9328_v3  ;;  %v15238_v22 = vpop.f32.mrf.mxu0 }
 0x33a   : > { %25361 = vst [vmem:[#allocation242_spill] sm:$0xff] %v21664_v25  ;;  %25362 = vst [vmem:[#allocation243_spill] sm:$0xff] %v21675_v20  ;;  %15421 = vmatmul.mubr.msk.bf16.gmra.mxu0 %vm3919_vm2, %v9892_v21  ;;  %v9344_v24 = vcombine.low %v9335_v31, %v9342_v35  ;;  %v9310_v60 = vcombine.low %v9302_v0, %v9309_v55  ;;  %v9910_v37 = vcombine.low %v20378_v36, %v21603_v63  ;;  %v25365_v35 = vld [vmem:[#allocation168_spill] sm:$0xff]  ;;  %v25366_v0 = vld [vmem:[#allocation169_spill] sm:$0xff] }
 0x33b   : > { %25363 = vst [vmem:[#allocation244_spill] sm:$0xff] %v21682_v28  ;;  %25364 = vst [vmem:[#allocation245_spill] sm:$0xff] %v21685_v42  ;;  %15424 = vmatprep.mubr.msk.bf16.mxu0 %vm15764_vm4, %v23936_v59  ;;  %v7381_v13 = vpop.f32.mrf.mxu1  ;;  %v9911_v15 = vcombine.low %v21606_v11, %v21664_v25  ;;  %v9901_v21 = vcombine.low %v9900_v40, %v9328_v3  ;;  %v9912_v27 = vcombine.low %v21675_v20, %v21629_v9  ;;  %v8758_v6 = vpop.f32.mrf.mxu0  ;;  %v25368_v22 = vld [vmem:[#allocation171_spill] sm:$0xff]  ;;  %v25369_v42 = vld [vmem:[#allocation209_spill] sm:$0xff] }
 0x33c   : > { %v7461_v48 = vadd.f32 %v7381_v13, %v20882_v46  ;;  %v9913_v5 = vcombine.low %v21678_v54, %v21682_v28  ;;  %v25367_v55 = vcombine.low %v25365_v35, %v25366_v0  ;;  %v25370_v33 = vcombine.low %v25368_v22, %v25369_v42  ;;  %v25371_v3 = vld [vmem:[#allocation34_spill] sm:$0xff]  ;;  %v25372_v40 = vld [vmem:[#allocation112_spill] sm:$0xff]  ;;  %v25375_v28 = vld [vmem:[#allocation157_spill] sm:$0xff] }
 0x33d   : > { %v15157_v31 = vpop.f32.mrf.mxu1  ;;  %v25373_v13 = vcombine.low %v25371_v3, %v25372_v40  ;;  %v21722_v35 = vadd.f32 %v8758_v6, %v7459_v43  ;;  %v9351_v0 = vrot.slane %v9343_v57, %v15871_v8  ;;  %v9358_v42 = vrot.slane %v9344_v24, %v15871_v8 }
 0x33e   : > { %v21702_v17 = vrot.slane %v25367_v55, %v15871_v8  ;;  %v21708_v46 = vrot.slane %v25370_v33, %v15871_v8  ;;  %v25374_v31 = vld [vmem:[#allocation195_spill] sm:$0xff]  ;;  %v15239_v33 = vpop.f32.mrf.mxu0  ;;  %v9920_v22 = vrot.slane %v9910_v37, %v15871_v8  ;;  %v9927_v3 = vrot.slane %v9911_v15, %v15871_v8 }
 0x33f   : > { %v21714_v9 = vrot.slane %v25373_v13, %v15871_v8  ;;  %v25376_v20 = vcombine.low %v25374_v31, %v25375_v28  ;;  %25377 = vst [vmem:[#allocation246_spill] sm:$0xff] %v21722_v35  ;;  %v7386_v55 = vpop.f32.mrf.mxu1  ;;  %15343 = vmatmul.mubr.msk.bf16.gmra.mxu1 %vm3919_vm2, %v9310_v60  ;;  %v9908_v28 = vrot.slane %v9901_v21, %v15871_v8 }
 0x340   : > { %v7462_v43 = vadd.f32 %v7386_v55, %v20903_v45  ;;  %15346 = vmatprep.mubr.msk.bf16.mxu1 %vm15764_vm4, %v23936_v59  ;;  %v9934_v57 = vrot.slane %v9912_v27, %v15871_v8  ;;  %v9941_v24 = vrot.slane %v9913_v5, %v15871_v8  ;;  %v8763_v37 = vpop.f32.mrf.mxu0  ;;  %v9359_v31 = vcombine.low %v9351_v0, %v9358_v42  ;;  %v25382_v0 = vld [vmem:[#allocation214_spill] sm:$0xff] }
 0x341   : > { %v21720_v25 = vrot.slane %v25376_v20, %v15871_v8  ;;  %v15160_v15 = vpop.f32.mrf.mxu1  ;;  %v21740_v6 = vadd.f32 %v8763_v37, %v7460_v56  ;;  %v9360_v21 = vcombine.low %v20378_v36, %v20868_v26  ;;  %v9942_v33 = vcombine.low %v9920_v22, %v9927_v3  ;;  %v25379_v56 = vld [vmem:[#allocation210_spill] sm:$0xff]  ;;  %v25380_v37 = vld [vmem:[#allocation211_spill] sm:$0xff] }
 0x342   : > { %15425 = vmatmul.mubr.msk.bf16.gmra.mxu0 %vm3919_vm2, %v9310_v60  ;;  %v15242_v45 = vpop.f32.mrf.mxu0  ;;  %v9909_v5 = vcombine.low %v9908_v28, %v9358_v42  ;;  %v9943_v55 = vcombine.low %v9934_v57, %v9941_v24  ;;  %v21748_v60 = vld.sshfl [vmem:[%s15868_s7 + $0xec] sm:$0x11 pattern:$0x75316420]  ;;  %v25381_v15 = vcombine.low %v25379_v56, %v25380_v37  ;;  %v25386_v42 = vld [vmem:[#allocation435_spill] sm:$0xff]  ;;  %s15615_s7 = smul.u32 432, %s15854_s29 }
 0x343   : > { %25378 = vst [vmem:[#allocation247_spill] sm:$0xff] %v21740_v6  ;;  %15428 = vmatprep.mubr.msk.bf16.mxu0 %vm15764_vm4, %v23936_v59  ;;  %v7389_v13 = vpop.f32.mrf.mxu1  ;;  %v25383_v45 = vld [vmem:[#allocation250_spill] sm:$0xff]  ;;  %v25389_v28 = vld [vmem:[#allocation191_spill] sm:$0xff] }
 0x344   : > { %v7463_v27 = vadd.f32 %v7389_v13, %v20927_v39  ;;  %v8766_v20 = vpop.f32.mrf.mxu0  ;;  %v21754_v6 = vrot.slane %v25381_v15, %v15871_v8  ;;  %v25384_v35 = vcombine.low %v25382_v0, %v25383_v45  ;;  %v25385_v39 = vld [vmem:[#allocation433_spill] sm:$0xff]  ;;  %v9950_v15 = vrot.slane %v9942_v33, %v15871_v8  ;;  %v25396_v45 = vld [vmem:[#allocation255_spill] sm:$0xff]  ;;  %s22441_s10 = scalar_lea.vmem %s23176_s2, %s15615_s7  ;;  %s15771_s7 = smov [#allocation2]  }
 0x345   : > { %v15161_v40 = vpop.f32.mrf.mxu1  ;;  %v25387_v22 = vcombine.low %v25385_v39, %v25386_v42  ;;  %v21774_v13 = vadd.f32 %v8766_v20, %v7461_v48  ;;  %v9957_v48 = vrot.slane %v9943_v55, %v15871_v8  ;;  %v21789_v20 = vcombine.high %v21678_v54, %v21678_v54  ;;  %s15674_s29 = sshll.u32 %s15771_s7, 4  ;;  %s15675_s29 = int_to_ptr.vmem [resolvable:$false] %s15674_s29 }
 0x346   : > { %v21760_v36 = vrot.slane %v25384_v35, %v15871_v8  ;;  %v25388_v40 = vld [vmem:[#allocation436_spill] sm:$0xff]  ;;  %v15243_v56 = vpop.f32.mrf.mxu0  ;;  %v9367_v35 = vrot.slane %v9360_v21, %v15871_v8  ;;  %s15676_s9 = scalar_lea.vmem %s15675_s29, 32  ;;  %p15677_p0 = scmp.lt.s32.totalorder %s23102_s14, %s15675_s29 }
 0x347   : > { %v21766_v3 = vrot.slane %v25387_v22, %v15871_v8  ;;  %v25390_v57 = vcombine.low %v25388_v40, %v25389_v28  ;;  %v7394_v37 = vpop.f32.mrf.mxu1  ;;  %15347 = vmatmul.mubr.msk.bf16.gmra.mxu1 %vm3919_vm2, %v9359_v31  ;;  %v21793_v31 = vrot.slane %v21748_v60, %v15871_v8  ;;  %v9958_v28 = vcombine.low %v9950_v15, %v9957_v48  ;;  %p15678_p1 = scmp.lt.s32.totalorder %s15676_s9, %s15670_s8 }
 0x348   : > { %v7464_v39 = vadd.f32 %v7394_v37, %v20938_v47  ;;  %15350 = vmatprep.mubr.msk.bf16.mxu1 %vm15764_vm4, %v23936_v59  ;;  %v8771_v21 = vpop.f32.mrf.mxu0  ;;  %v9374_v55 = vrot.slane %v9367_v35, %v15871_v8  ;;  %v25400_v35 = vld [vmem:[#allocation198_spill] sm:$0xff] }
 0x349   : > { %v21772_v24 = vrot.slane %v25390_v57, %v15871_v8  ;;  %25391 = vst [vmem:[#allocation248_spill] sm:$0xff] %v21793_v31  ;;  %v15164_v33 = vpop.f32.mrf.mxu1  ;;  %v21796_v42 = vadd.f32 %v8771_v21, %v7462_v43  ;;  %v9959_v57 = vcombine.low %v21789_v20, %v21793_v31  ;;  %p15679_p2 = por %p15678_p1, %p15677_p0 }
 0x34a   : > { %15429 = vmatmul.mubr.msk.bf16.gmra.mxu0 %vm3919_vm2, %v9909_v5  ;;  %v15246_v47 = vpop.f32.mrf.mxu0  ;;  %v25393_v5 = vld [vmem:[#allocation251_spill] sm:$0xff]  ;;  %v25394_v33 = vld [vmem:[#allocation252_spill] sm:$0xff] }
 0x34b   : > { %25392 = vst [vmem:[#allocation249_spill] sm:$0xff] %v21796_v42  ;;  %15432 = vmatprep.mubr.msk.bf16.mxu0 %vm15764_vm4, %v23936_v59  ;;  %v7397_v22 = vpop.f32.mrf.mxu1  ;;  %v25395_v43 = vcombine.low %v25393_v5, %v25394_v33  ;;  %v25397_v47 = vld [vmem:[#allocation291_spill] sm:$0xff]  ;;  %p15680_p3 = pnand %p15679_p2, %p15673_p13 }
 0x34c   : > { %v7465_v40 = vadd.f32 %v7397_v22, %v20951_v16  ;;  %v8774_v56 = vpop.f32.mrf.mxu0  ;;  %v25398_v0 = vcombine.low %v25396_v45, %v25397_v47  ;;  %v25399_v16 = vld [vmem:[#allocation196_spill] sm:$0xff]  ;;  %v25402_v22 = vld [vmem:[#allocation437_spill] sm:$0xff] }
 0x34d   : > { %v15165_v37 = vpop.f32.mrf.mxu1  ;;  %v21808_v21 = vrot.slane %v25395_v43, %v15871_v8  ;;  %v25401_v15 = vcombine.low %v25399_v16, %v25400_v35  ;;  %v21828_v5 = vadd.f32 %v8774_v56, %v7463_v27  ;;  %v9966_v27 = vrot.slane %v9959_v57, %v15871_v8  ;;  %v25411_v57 = vld [vmem:[#allocation332_spill] sm:$0xff] }
 0x34e   : > { %v21814_v42 = vrot.slane %v25398_v0, %v15871_v8  ;;  %v25403_v37 = vld [vmem:[#allocation439_spill] sm:$0xff]  ;;  %v15247_v33 = vpop.f32.mrf.mxu0 }
 0x34f   : > { %v21820_v48 = vrot.slane %v25401_v15, %v15871_v8  ;;  %v25404_v26 = vcombine.low %v25402_v22, %v25403_v37  ;;  %25405 = vst [vmem:[#allocation283_spill] sm:$0xff] %v21828_v5  ;;  %v7402_v43 = vpop.f32.mrf.mxu1  ;;  %15351 = vmatmul.mubr.msk.bf16.gmra.mxu1 %vm3919_vm2, %v9374_v55  ;;  %v9973_v37 = vrot.slane %v9966_v27, %v15871_v8  ;;  %v25407_v33 = vld [vmem:[#allocation292_spill] sm:$0xff] }
 0x350   : > { %v7466_v47 = vadd.f32 %v7402_v43, %v20963_v23  ;;  %15442 = vmatprep.mubr.msk.bf16.mxu1 %vm15764_vm4, %v23936_v59  ;;  %v8779_v16 = vpop.f32.mrf.mxu0  ;;  %v25408_v43 = vld [vmem:[#allocation293_spill] sm:$0xff] }
 0x351   : > { %v21826_v31 = vrot.slane %v25404_v26, %v15871_v8  ;;  %v15168_v26 = vpop.f32.mrf.mxu1  ;;  %v21840_v56 = vadd.f32 %v8779_v16, %v7464_v39  ;;  %v25410_v39 = vld [vmem:[#allocation296_spill] sm:$0xff] }
 0x352   : > { %15433 = vmatmul.mubr.msk.bf16.gmra.mxu0 %vm3919_vm2, %v9958_v28  ;;  %v15250_v55 = vpop.f32.mrf.mxu0  ;;  %v25409_v28 = vcombine.low %v25407_v33, %v25408_v43  ;;  %v25412_v16 = vcombine.low %v25410_v39, %v25411_v57 }
 0x353   : > { %25406 = vst [vmem:[#allocation369_spill] sm:$0xff] %v21840_v56  ;;  %15436 = vmatprep.mubr.msk.bf16.mxu0 %vm15764_vm4, %v23936_v59  ;;  %v7405_v35 = vpop.f32.mrf.mxu1 }
 0x354   : > { %v7467_v15 = vadd.f32 %v7405_v35, %v20975_v12  ;;  %v8782_v22 = vpop.f32.mrf.mxu0  ;;  %v21850_v26 = vrot.slane %v25409_v28, %v15871_v8  ;;  %v21856_v45 = vrot.slane %v25412_v16, %v15871_v8  ;;  %v25414_v35 = vld [vmem:[#allocation74_spill] sm:$0xff] }
 0x355   : > { %v15169_v23 = vpop.f32.mrf.mxu1  ;;  %v21858_v55 = vadd.f32 %v8782_v22, %v7465_v40 }
 0x356   : > { %v15251_v0 = vpop.f32.mrf.mxu0  ;;  %v25415_v23 = vld [vmem:[#allocation110_spill] sm:$0xff] }
 0x357   : > { %25413 = vst [vmem:[#allocation284_spill] sm:$0xff] %v21858_v55  ;;  %v7410_v12 = vpop.f32.mrf.mxu1  ;;  %v25416_v56 = vcombine.low %v25414_v35, %v25415_v23  ;;  %v25418_v0 = vld [vmem:[#allocation336_spill] sm:$0xff]  ;;  %v25422_v35 = vld [vmem:[#allocation307_spill] sm:$0xff] }
 0x358   : > { %v7468_v33 = vadd.f32 %v7410_v12, %v20988_v41  ;;  %v8787_v43 = vpop.f32.mrf.mxu0  ;;  %v25421_v12 = vld [vmem:[#allocation308_spill] sm:$0xff] }
 0x359   : > { %15443 = vmatmul.mubr.msk.bf16.vlgmr.msra.gmra.mxu1 %vm3919_vm2, %v25416_v56  ;;  %v15172_v40 = vpop.f32.mrf.mxu1  ;;  %v21870_v22 = vadd.f32 %v8787_v43, %v7466_v47  ;;  %v25419_v56 = vld [vmem:[#allocation361_spill] sm:$0xff]  ;;  %v10665_v23 = vcombine.low %v25422_v35, %v25421_v12  ;;  %v25424_v43 = vld [vmem:[#allocation334_spill] sm:$0xff] }
 0x35a   : > { %15446 = vmatprep.mubr.msk.bf16.mxu1 %vm15764_vm4, %v23936_v59  ;;  %15437 = vmatmul.mubr.msk.bf16.gmra.mxu0 %vm3919_vm2, %v9973_v37  ;;  %v25420_v28 = vcombine.low %v25418_v0, %v25419_v56  ;;  %v15254_v57 = vpop.f32.mrf.mxu0  ;;  %v25423_v47 = vld [vmem:[#allocation333_spill] sm:$0xff]  ;;  %v25426_v0 = vld [vmem:[#allocation362_spill] sm:$0xff]  ;;  %v25427_v56 = vld [vmem:[#allocation363_spill] sm:$0xff] }
 0x35b   : > { %25417 = vst [vmem:[#allocation285_spill] sm:$0xff] %v21870_v22  ;;  %15528 = vmatprep.mubr.msk.bf16.mxu0 %vm15764_vm4, %v23936_v59  ;;  %v7413_v41 = vpop.f32.mrf.mxu1  ;;  %v25425_v27 = vcombine.low %v25423_v47, %v25424_v43  ;;  %v25430_v35 = vld [vmem:[#allocation310_spill] sm:$0xff]  ;;  %v25432_v47 = vld [vmem:[#allocation128_spill] sm:$0xff] }
 0x35c   : > { %v21878_v39 = vrot.slane %v25420_v28, %v15871_v8  ;;  %v7469_v16 = vadd.f32 %v7413_v41, %v20997_v53  ;;  %v8790_v37 = vpop.f32.mrf.mxu0  ;;  %v25428_v28 = vcombine.low %v25426_v0, %v25427_v56  ;;  %v25429_v41 = vcombine.low %v21084_v30, %v21090_v7  ;;  %v25435_v56 = vld [vmem:[#allocation103_spill] sm:$0xff] }
 0x35d   : > { %v15173_v40 = vpop.f32.mrf.mxu1  ;;  %v21887_v22 = vrot.slane %v25425_v27, %v15871_v8  ;;  %v21889_v55 = vadd.f32 %v8790_v37, %v7467_v15  ;;  %v25431_v27 = vld [vmem:[#allocation309_spill] sm:$0xff]  ;;  %v10681_v7 = vrot.slane %v10665_v23, %v15871_v8 }
 0x35e   : > { %v10674_v57 = vrot.slane %v25428_v28, %v15871_v8  ;;  %v15255_v5 = vpop.f32.mrf.mxu0  ;;  %v10666_v40 = vcombine.low %v25431_v27, %v25430_v35  ;;  %v25436_v28 = vld [vmem:[#allocation138_spill] sm:$0xff] }
 0x35f   : > { %v7418_v53 = vpop.f32.mrf.mxu1  ;;  %v25433_v5 = vld [vmem:[#allocation386_spill] sm:$0xff] }
 0x360   : > { %v7470_v15 = vadd.f32 %v7418_v53, %v21009_v61  ;;  %v8795_v37 = vpop.f32.mrf.mxu0  ;;  %v25434_v43 = vcombine.low %v25432_v47, %v25433_v5  ;;  %v10688_v0 = vrot.slane %v10666_v40, %v15871_v8  ;;  %v10696_v47 = vcombine.low %v10674_v57, %v10681_v7 }
 0x361   : > { %15447 = vmatmul.mubr.msk.bf16.gmra.mxu1 %vm3919_vm2, %v25429_v41  ;;  %v15176_v30 = vpop.f32.mrf.mxu1  ;;  %v25437_v41 = vcombine.low %v25435_v56, %v25436_v28  ;;  %v21916_v61 = vadd.f32 %v8795_v37, %v7468_v33  ;;  %v25438_v28 = vcombine.low %v21117_v50, %v21123_v4 }
 0x362   : > { %15450 = vmatprep.mubr.msk.bf16.mxu1 %vm15764_vm4, %v23936_v59  ;;  %15529 = vmatmul.mubr.msk.bf16.vlgmr.msra.gmra.mxu0 %vm3919_vm2, %v25434_v43  ;;  %v15258_v53 = vpop.f32.mrf.mxu0  ;;  %v21922_v40 = vrot.slane %v10696_v47, %v15871_v8 }
 0x363   : > { %v10695_v35 = vrot.slane %v25437_v41, %v15871_v8  ;;  %15532 = vmatprep.mubr.msk.bf16.mxu0 %vm15764_vm4, %v23936_v59  ;;  %v7421_v27 = vpop.f32.mrf.mxu1 }
 0x364   : > { %v7471_v43 = vadd.f32 %v7421_v27, %v21018_v34  ;;  %v8798_v30 = vpop.f32.mrf.mxu0 }
 0x365   : > { %v10697_v5 = vcombine.low %v10688_v0, %v10695_v35  ;;  %v15177_v23 = vpop.f32.mrf.mxu1  ;;  %v21927_v56 = vadd.f32 %v8798_v30, %v7469_v16  ;;  %v25439_v16 = vcombine.low %v21129_v32, %v21135_v29 }
 0x366   : > { %v15259_v33 = vpop.f32.mrf.mxu0  ;;  %v25442_v23 = vld [vmem:[#allocation346_spill] sm:$0xff] }
 0x367   : > { %v21925_v12 = vrot.slane %v10697_v5, %v15871_v8  ;;  %v7426_v37 = vpop.f32.mrf.mxu1  ;;  %v25440_v5 = vcombine.low %v21164_v58, %v21170_v38 }
 0x368   : > { %v7472_v57 = vadd.f32 %v7426_v37, %v21031_v62  ;;  %v8803_v7 = vpop.f32.mrf.mxu0 }
 0x369   : > { %15451 = vmatmul.mubr.msk.bf16.gmra.mxu1 %vm3919_vm2, %v25438_v28  ;;  %v15180_v0 = vpop.f32.mrf.mxu1  ;;  %v21942_v41 = vadd.f32 %v8803_v7, %v7470_v15  ;;  %v25441_v15 = vcombine.low %v21176_v10, %v21182_v52  ;;  %v25446_v52 = vld [vmem:[#allocation347_spill] sm:$0xff] }
 0x36a   : > { %15454 = vmatprep.mubr.msk.bf16.mxu1 %vm15764_vm4, %v23936_v59  ;;  %15533 = vmatmul.mubr.msk.bf16.gmra.mxu0 %vm3919_vm2, %v25439_v16  ;;  %v15262_v50 = vpop.f32.mrf.mxu0  ;;  %v25443_v16 = vld [vmem:[#allocation23_spill] sm:$0xff]  ;;  %v25444_v0 = vld [vmem:[#allocation22_spill] sm:$0xff] }
 0x36b   : > { %15536 = vmatprep.mubr.msk.bf16.mxu0 %vm15764_vm4, %v23936_v59  ;;  %v7429_v4 = vpop.f32.mrf.mxu1  ;;  %v25445_v50 = vcombine.low %v25443_v16, %v25444_v0 }
 0x36c   : > { %v8806_v35 = vpop.f32.mrf.mxu0  ;;  %v25447_v4 = vld [vmem:[#allocation24_spill] sm:$0xff] }
 0x36d   : > { %v15181_v53 = vpop.f32.mrf.mxu1  ;;  %v21946_v62 = vadd.f32 %v8806_v35, %v7471_v43  ;;  %v25448_v35 = vld [vmem:[#allocation25_spill] sm:$0xff] }
 0x36e   : > { %v15263_v27 = vpop.f32.mrf.mxu0  ;;  %v25449_v53 = vcombine.low %v25447_v4, %v25448_v35 }
 0x36f   : > { %v9475_v47 = vpop.f32.mrf.mxu1 }
 0x370   : > { %v9641_v32 = vadd.f32 %v9475_v47, %v21050_v18  ;;  %v8811_v29 = vpop.f32.mrf.mxu0 }
 0x371   : > { %15455 = vmatmul.mubr.msk.bf16.gmra.mxu1 %vm3919_vm2, %v25440_v5  ;;  %v15272_v43 = vpop.f32.mrf.mxu1  ;;  %v21959_v30 = vadd.f32 %v8811_v29, %v7472_v57 }
 0x372   : > { %15458 = vmatprep.mubr.msk.bf16.mxu1 %vm15764_vm4, %v23936_v59  ;;  %15537 = vmatmul.mubr.msk.bf16.gmra.mxu0 %vm3919_vm2, %v25441_v15  ;;  %v15266_v38 = vpop.f32.mrf.mxu0  ;;  %v25450_v15 = vld [vmem:[#allocation348_spill] sm:$0xff] }
 0x373   : > { %15540 = vmatprep.mubr.msk.bf16.mxu0 %vm15764_vm4, %v23936_v59  ;;  %v9478_v58 = vpop.f32.mrf.mxu1 }
 0x374   : > { %v9642_v33 = vadd.f32 %v9478_v58, %v25442_v23  ;;  %v8814_v18 = vpop.f32.mrf.mxu0 }
 0x375   : > { %v15273_v37 = vpop.f32.mrf.mxu1 }
 0x376   : > { %v15267_v28 = vpop.f32.mrf.mxu0 }
 0x377   : > { %v9483_v7 = vpop.f32.mrf.mxu1  ;;  %v25451_v28 = vld [vmem:[#allocation28_spill] sm:$0xff] }
 0x378   : > { %v9643_v10 = vadd.f32 %v9483_v7, %v25446_v52  ;;  %v10068_v57 = vpop.f32.mrf.mxu0  ;;  %v25452_v7 = vld [vmem:[#allocation45_spill] sm:$0xff]  ;;  %v25455_v52 = vld [vmem:[#allocation46_spill] sm:$0xff] }
 0x379   : > { %15459 = vmatmul.mubr.msk.bf16.gmra.mxu1 %vm3919_vm2, %v25445_v50  ;;  %v15276_v27 = vpop.f32.mrf.mxu1  ;;  %v21975_v47 = vadd.f32 %v10068_v57, %v9641_v32  ;;  %v25453_v16 = vcombine.low %v25451_v28, %v25452_v7  ;;  %v25454_v32 = vld [vmem:[#allocation349_spill] sm:$0xff]  ;;  %v25456_v57 = vld [vmem:[#allocation47_spill] sm:$0xff]  ;;  %v25459_v28 = vcombine.low %v21308_v44, %v21314_v19 }
 0x37a   : > { %15462 = vmatprep.mubr.msk.bf16.mxu1 %vm15764_vm4, %v23936_v59  ;;  %15541 = vmatmul.mubr.msk.bf16.gmra.mxu0 %vm3919_vm2, %v25449_v53  ;;  %v15358_v5 = vpop.f32.mrf.mxu0  ;;  %v25457_v4 = vcombine.low %v25455_v52, %v25456_v57 }
 0x37b   : > { %15544 = vmatprep.mubr.msk.bf16.mxu0 %vm15764_vm4, %v23936_v59  ;;  %v9486_v29 = vpop.f32.mrf.mxu1  ;;  %v25458_v5 = vld [vmem:[#allocation365_spill] sm:$0xff] }
 0x37c   : > { %v9644_v43 = vadd.f32 %v9486_v29, %v25450_v15  ;;  %v10071_v38 = vpop.f32.mrf.mxu0 }
 0x37d   : > { %v15277_v58 = vpop.f32.mrf.mxu1  ;;  %v21980_v23 = vadd.f32 %v10071_v38, %v9642_v33 }
 0x37e   : > { %v15359_v18 = vpop.f32.mrf.mxu0 }
 0x37f   : > { %v9491_v37 = vpop.f32.mrf.mxu1 }
 0x380   : > { %v9645_v0 = vadd.f32 %v9491_v37, %v25454_v32  ;;  %v10076_v50 = vpop.f32.mrf.mxu0  ;;  %v25461_v32 = vld [vmem:[#allocation50_spill] sm:$0xff] }
 0x381   : > { %15463 = vmatmul.mubr.msk.bf16.gmra.mxu1 %vm3919_vm2, %v25453_v16  ;;  %v15280_v33 = vpop.f32.mrf.mxu1  ;;  %v21993_v35 = vadd.f32 %v10076_v50, %v9643_v10  ;;  %v25460_v10 = vld [vmem:[#allocation366_spill] sm:$0xff]  ;;  %v25462_v50 = vld [vmem:[#allocation51_spill] sm:$0xff] }
 0x382   : > { %15466 = vmatprep.mubr.msk.bf16.mxu1 %vm15764_vm4, %v23936_v59  ;;  %15545 = vmatmul.mubr.msk.bf16.gmra.mxu0 %vm3919_vm2, %v25457_v4  ;;  %v15362_v53 = vpop.f32.mrf.mxu0  ;;  %v25463_v52 = vcombine.low %v25461_v32, %v25462_v50  ;;  %v25464_v4 = vld [vmem:[#allocation367_spill] sm:$0xff] }
 0x383   : > { %15548 = vmatprep.mubr.msk.bf16.mxu0 %vm15764_vm4, %v23936_v59  ;;  %v9494_v27 = vpop.f32.mrf.mxu1  ;;  %v25469_v32 = vld [vmem:[#allocation83_spill] sm:$0xff] }
 0x384   : > { %v9646_v29 = vadd.f32 %v9494_v27, %v25458_v5  ;;  %v10079_v15 = vpop.f32.mrf.mxu0 }
 0x385   : > { %v15281_v38 = vpop.f32.mrf.mxu1  ;;  %v21998_v58 = vadd.f32 %v10079_v15, %v9644_v43 }
 0x386   : > { %v15363_v18 = vpop.f32.mrf.mxu0 }
 0x387   : > { %v9499_v37 = vpop.f32.mrf.mxu1  ;;  %v25465_v18 = vld [vmem:[#allocation81_spill] sm:$0xff] }
 0x388   : > { %v9647_v7 = vadd.f32 %v9499_v37, %v25460_v10  ;;  %v10084_v16 = vpop.f32.mrf.mxu0  ;;  %v25466_v37 = vcombine.low %v21357_v51, %v25465_v18  ;;  %v25472_v18 = vld [vmem:[#allocation86_spill] sm:$0xff] }
 0x389   : > { %15467 = vmatmul.mubr.msk.bf16.gmra.mxu1 %vm3919_vm2, %v25459_v28  ;;  %v15284_v43 = vpop.f32.mrf.mxu1  ;;  %v22011_v57 = vadd.f32 %v10084_v16, %v9645_v0  ;;  %v25467_v0 = vld [vmem:[#allocation368_spill] sm:$0xff]  ;;  %v25468_v16 = vld [vmem:[#allocation82_spill] sm:$0xff] }
 0x38a   : > { %15470 = vmatprep.mubr.msk.bf16.mxu1 %vm15764_vm4, %v23936_v59  ;;  %15549 = vmatmul.mubr.msk.bf16.gmra.mxu0 %vm3919_vm2, %v25463_v52  ;;  %v15366_v44 = vpop.f32.mrf.mxu0  ;;  %v25470_v50 = vcombine.low %v25468_v16, %v25469_v32  ;;  %v25476_v32 = vld [vmem:[#allocation117_spill] sm:$0xff] }
 0x38b   : > { %15552 = vmatprep.mubr.msk.bf16.mxu0 %vm15764_vm4, %v23936_v59  ;;  %v9502_v19 = vpop.f32.mrf.mxu1  ;;  %v25471_v44 = vld [vmem:[#allocation26_spill] sm:$0xff] }
 0x38c   : > { %v9648_v33 = vadd.f32 %v9502_v19, %v25464_v4  ;;  %v10087_v53 = vpop.f32.mrf.mxu0 }
 0x38d   : > { %v15285_v27 = vpop.f32.mrf.mxu1  ;;  %v22016_v5 = vadd.f32 %v10087_v53, %v9646_v29 }
 0x38e   : > { %v15367_v15 = vpop.f32.mrf.mxu0 }
 0x38f   : > { %v9507_v38 = vpop.f32.mrf.mxu1 }
 0x390   : > { %v9649_v28 = vadd.f32 %v9507_v38, %v25467_v0  ;;  %v10092_v10 = vpop.f32.mrf.mxu0 }
 0x391   : > { %15471 = vmatmul.mubr.msk.bf16.gmra.mxu1 %vm3919_vm2, %v25466_v37  ;;  %v15288_v29 = vpop.f32.mrf.mxu1  ;;  %v22029_v52 = vadd.f32 %v10092_v10, %v9647_v7  ;;  %v25473_v37 = vld [vmem:[#allocation87_spill] sm:$0xff] }
 0x392   : > { %15474 = vmatprep.mubr.msk.bf16.mxu1 %vm15764_vm4, %v23936_v59  ;;  %15553 = vmatmul.mubr.msk.bf16.gmra.mxu0 %vm3919_vm2, %v25470_v50  ;;  %v15370_v51 = vpop.f32.mrf.mxu0  ;;  %v25474_v0 = vcombine.low %v25472_v18, %v25473_v37  ;;  %v25475_v7 = vld [vmem:[#allocation27_spill] sm:$0xff]  ;;  %v25477_v50 = vld [vmem:[#allocation118_spill] sm:$0xff] }
 0x393   : > { %15556 = vmatprep.mubr.msk.bf16.mxu0 %vm15764_vm4, %v23936_v59  ;;  %v9510_v43 = vpop.f32.mrf.mxu1  ;;  %v25478_v29 = vcombine.low %v25476_v32, %v25477_v50  ;;  %v25483_v32 = vld [vmem:[#allocation122_spill] sm:$0xff] }
 0x394   : > { %v9650_v19 = vadd.f32 %v9510_v43, %v25471_v44  ;;  %v10095_v4 = vpop.f32.mrf.mxu0 }
 0x395   : > { %v15289_v53 = vpop.f32.mrf.mxu1  ;;  %v22034_v27 = vadd.f32 %v10095_v4, %v9648_v33  ;;  %v25480_v4 = vld [vmem:[#allocation48_spill] sm:$0xff] }
 0x396   : > { %v15371_v15 = vpop.f32.mrf.mxu0 }
 0x397   : > { %v9515_v38 = vpop.f32.mrf.mxu1 }
 0x398   : > { %v9651_v10 = vadd.f32 %v9515_v38, %v25475_v7  ;;  %v10100_v16 = vpop.f32.mrf.mxu0  ;;  %v25482_v7 = vld [vmem:[#allocation121_spill] sm:$0xff] }
 0x399   : > { %15475 = vmatmul.mubr.msk.bf16.gmra.mxu1 %vm3919_vm2, %v25474_v0  ;;  %v15292_v33 = vpop.f32.mrf.mxu1  ;;  %v22047_v51 = vadd.f32 %v10100_v16, %v9649_v28  ;;  %v25484_v50 = vcombine.low %v25482_v7, %v25483_v32  ;;  %v25485_v28 = vld [vmem:[#allocation49_spill] sm:$0xff] }
 0x39a   : > { %15478 = vmatprep.mubr.msk.bf16.mxu1 %vm15764_vm4, %v23936_v59  ;;  %15557 = vmatmul.mubr.msk.bf16.gmra.mxu0 %vm3919_vm2, %v25478_v29  ;;  %v15374_v43 = vpop.f32.mrf.mxu0  ;;  %v25486_v33 = vld [vmem:[#allocation123_spill] sm:$0xff] }
 0x39b   : > { %25479 = vst [vmem:[#allocation286_spill] sm:$0xff] %v22047_v51  ;;  %15560 = vmatprep.mubr.msk.bf16.mxu0 %vm15764_vm4, %v23936_v59  ;;  %v9518_v44 = vpop.f32.mrf.mxu1  ;;  %v25487_v43 = vld [vmem:[#allocation124_spill] sm:$0xff]  ;;  %v25548_v51 = vcombine.low %v21850_v26, %v21856_v45 }
 0x39c   : > { %v9652_v53 = vadd.f32 %v9518_v44, %v25480_v4  ;;  %v10103_v15 = vpop.f32.mrf.mxu0  ;;  %v25488_v44 = vcombine.low %v25486_v33, %v25487_v43  ;;  %v25493_v33 = vld [vmem:[#allocation162_spill] sm:$0xff] }
 0x39d   : > { %v15293_v38 = vpop.f32.mrf.mxu1  ;;  %v22052_v18 = vadd.f32 %v10103_v15, %v9650_v19 }
 0x39e   : > { %v15375_v37 = vpop.f32.mrf.mxu0 }
 0x39f   : > { %25481 = vst [vmem:[#allocation287_spill] sm:$0xff] %v22052_v18  ;;  %v9523_v0 = vpop.f32.mrf.mxu1  ;;  %v25490_v37 = vld [vmem:[#allocation52_spill] sm:$0xff]  ;;  %v25492_v18 = vld [vmem:[#allocation161_spill] sm:$0xff] }
 0x3a0   : > { %v9653_v16 = vadd.f32 %v9523_v0, %v25485_v28  ;;  %v10108_v29 = vpop.f32.mrf.mxu0  ;;  %v25494_v43 = vcombine.low %v25492_v18, %v25493_v33 }
 0x3a1   : > { %15479 = vmatmul.mubr.msk.bf16.gmra.mxu1 %vm3919_vm2, %v25484_v50  ;;  %v15296_v19 = vpop.f32.mrf.mxu1  ;;  %v22065_v4 = vadd.f32 %v10108_v29, %v9651_v10  ;;  %v25495_v10 = vld [vmem:[#allocation80_spill] sm:$0xff] }
 0x3a2   : > { %15482 = vmatprep.mubr.msk.bf16.mxu1 %vm15764_vm4, %v23936_v59  ;;  %15561 = vmatmul.mubr.msk.bf16.gmra.mxu0 %vm3919_vm2, %v25488_v44  ;;  %v15378_v15 = vpop.f32.mrf.mxu0  ;;  %v25496_v19 = vld [vmem:[#allocation163_spill] sm:$0xff] }
 0x3a3   : > { %25489 = vst [vmem:[#allocation288_spill] sm:$0xff] %v22065_v4  ;;  %15564 = vmatprep.mubr.msk.bf16.mxu0 %vm15764_vm4, %v23936_v59  ;;  %v9526_v38 = vpop.f32.mrf.mxu1  ;;  %v25497_v15 = vld [vmem:[#allocation164_spill] sm:$0xff]  ;;  %v25502_v4 = vld [vmem:[#allocation201_spill] sm:$0xff] }
 0x3a4   : > { %v9654_v7 = vadd.f32 %v9526_v38, %v25490_v37  ;;  %v10111_v0 = vpop.f32.mrf.mxu0  ;;  %v25498_v38 = vcombine.low %v25496_v19, %v25497_v15  ;;  %v25503_v19 = vld [vmem:[#allocation202_spill] sm:$0xff] }
 0x3a5   : > { %v15297_v32 = vpop.f32.mrf.mxu1  ;;  %v22070_v50 = vadd.f32 %v10111_v0, %v9652_v53  ;;  %v25504_v15 = vcombine.low %v25502_v4, %v25503_v19 }
 0x3a6   : > { %v15379_v28 = vpop.f32.mrf.mxu0  ;;  %v25500_v32 = vld [vmem:[#allocation84_spill] sm:$0xff] }
 0x3a7   : > { %25491 = vst [vmem:[#allocation289_spill] sm:$0xff] %v22070_v50  ;;  %v9531_v34 = vpop.f32.mrf.mxu1 }
 0x3a8   : > { %v9655_v29 = vadd.f32 %v9531_v34, %v25495_v10  ;;  %v10116_v44 = vpop.f32.mrf.mxu0 }
 0x3a9   : > { %15483 = vmatmul.mubr.msk.bf16.gmra.mxu1 %vm3919_vm2, %v25494_v43  ;;  %v15300_v53 = vpop.f32.mrf.mxu1  ;;  %v22083_v37 = vadd.f32 %v10116_v44, %v9653_v16  ;;  %v25505_v16 = vld [vmem:[#allocation85_spill] sm:$0xff] }
 0x3aa   : > { %15486 = vmatprep.mubr.msk.bf16.mxu1 %vm15764_vm4, %v23936_v59  ;;  %15565 = vmatmul.mubr.msk.bf16.gmra.mxu0 %vm3919_vm2, %v25498_v38  ;;  %v15382_v18 = vpop.f32.mrf.mxu0  ;;  %v25506_v53 = vld [vmem:[#allocation203_spill] sm:$0xff] }
 0x3ab   : > { %25499 = vst [vmem:[#allocation290_spill] sm:$0xff] %v22083_v37  ;;  %15568 = vmatprep.mubr.msk.bf16.mxu0 %vm15764_vm4, %v23936_v59  ;;  %v9534_v0 = vpop.f32.mrf.mxu1  ;;  %v25507_v18 = vld [vmem:[#allocation204_spill] sm:$0xff] }
 0x3ac   : > { %v9656_v28 = vadd.f32 %v9534_v0, %v25500_v32  ;;  %v10119_v34 = vpop.f32.mrf.mxu0  ;;  %v25508_v0 = vcombine.low %v25506_v53, %v25507_v18  ;;  %v25512_v53 = vcombine.low %v21635_v14, %v21641_v49 }
 0x3ad   : > { %v15301_v33 = vpop.f32.mrf.mxu1  ;;  %v22088_v43 = vadd.f32 %v10119_v34, %v9654_v7 }
 0x3ae   : > { %v15383_v10 = vpop.f32.mrf.mxu0  ;;  %v25510_v33 = vld [vmem:[#allocation119_spill] sm:$0xff] }
 0x3af   : > { %25501 = vst [vmem:[#allocation325_spill] sm:$0xff] %v22088_v43  ;;  %v9539_v50 = vpop.f32.mrf.mxu1 }
 0x3b0   : > { %v9657_v44 = vadd.f32 %v9539_v50, %v25505_v16 }
 0x3b1   : > { %15487 = vmatmul.mubr.msk.bf16.gmra.mxu1 %vm3919_vm2, %v25504_v15  ;;  %v10124_v38 = vpop.f32.mrf.mxu0  ;;  %v15304_v7 = vpop.f32.mrf.mxu1 }
 0x3b2   : > { %15490 = vmatprep.mubr.msk.bf16.mxu1 %vm15764_vm4, %v23936_v59  ;;  %15569 = vmatmul.mubr.msk.bf16.gmra.mxu0 %vm3919_vm2, %v25508_v0  ;;  %v22101_v32 = vadd.f32 %v10124_v38, %v9655_v29  ;;  %v25513_v29 = vld [vmem:[#allocation120_spill] sm:$0xff]  ;;  %v25514_v0 = vcombine.low %v21647_v2, %v21653_v1  ;;  %v25518_v1 = vcombine.low %v21702_v17, %v21708_v46 }
 0x3b3   : > { %15572 = vmatprep.mubr.msk.bf16.mxu0 %vm15764_vm4, %v23936_v59  ;;  %v15386_v4 = vpop.f32.mrf.mxu0  ;;  %v9542_v34 = vpop.f32.mrf.mxu1  ;;  %v25519_v2 = vld [vmem:[#allocation160_spill] sm:$0xff] }
 0x3b4   : > { %25509 = vst [vmem:[#allocation375_spill] sm:$0xff] %v22101_v32  ;;  %v9658_v10 = vadd.f32 %v9542_v34, %v25510_v33  ;;  %v25516_v4 = vld [vmem:[#allocation159_spill] sm:$0xff] }
 0x3b5   : > { %v10127_v50 = vpop.f32.mrf.mxu0  ;;  %v15305_v19 = vpop.f32.mrf.mxu1 }
 0x3b6   : > { %v22106_v15 = vadd.f32 %v10127_v50, %v9656_v28 }
 0x3b7   : > { %v15387_v16 = vpop.f32.mrf.mxu0  ;;  %v9547_v43 = vpop.f32.mrf.mxu1 }
 0x3b8   : > { %25511 = vst [vmem:[#allocation331_spill] sm:$0xff] %v22106_v15  ;;  %v9659_v38 = vadd.f32 %v9547_v43, %v25513_v29  ;;  %v25520_v29 = vcombine.low %v21714_v9, %v21720_v25  ;;  %v25524_v9 = vcombine.low %v21754_v6, %v21760_v36  ;;  %v25525_v25 = vld [vmem:[#allocation166_spill] sm:$0xff] }
 0x3b9   : > { %15491 = vmatmul.mubr.msk.bf16.gmra.mxu1 %vm3919_vm2, %v25512_v53  ;;  %v10132_v18 = vpop.f32.mrf.mxu0  ;;  %v15308_v28 = vpop.f32.mrf.mxu1 }
 0x3ba   : > { %15494 = vmatprep.mubr.msk.bf16.mxu1 %vm15764_vm4, %v23936_v59  ;;  %15573 = vmatmul.mubr.msk.bf16.gmra.mxu0 %vm3919_vm2, %v25514_v0  ;;  %v22119_v7 = vadd.f32 %v10132_v18, %v9657_v44  ;;  %v25522_v0 = vld [vmem:[#allocation165_spill] sm:$0xff] }
 0x3bb   : > { %15576 = vmatprep.mubr.msk.bf16.mxu0 %vm15764_vm4, %v23936_v59  ;;  %v15390_v14 = vpop.f32.mrf.mxu0  ;;  %v9550_v49 = vpop.f32.mrf.mxu1 }
 0x3bc   : > { %25515 = vst [vmem:[#allocation357_spill] sm:$0xff] %v22119_v7  ;;  %v9660_v34 = vadd.f32 %v9550_v49, %v25516_v4 }
 0x3bd   : > { %v10135_v43 = vpop.f32.mrf.mxu0  ;;  %v15309_v33 = vpop.f32.mrf.mxu1 }
 0x3be   : > { %v22124_v50 = vadd.f32 %v10135_v43, %v9658_v10 }
 0x3bf   : > { %v15391_v19 = vpop.f32.mrf.mxu0  ;;  %v9555_v16 = vpop.f32.mrf.mxu1 }
 0x3c0   : > { %25517 = vst [vmem:[#allocation324_spill] sm:$0xff] %v22124_v50  ;;  %v9661_v44 = vadd.f32 %v9555_v16, %v25519_v2  ;;  %v25526_v16 = vcombine.low %v21766_v3, %v21772_v24  ;;  %v25528_v2 = vld [vmem:[#allocation205_spill] sm:$0xff]  ;;  %v25546_v50 = vld [vmem:[#allocation323_spill] sm:$0xff] }
 0x3c1   : > { %15495 = vmatmul.mubr.msk.bf16.gmra.mxu1 %vm3919_vm2, %v25518_v1  ;;  %v10140_v53 = vpop.f32.mrf.mxu0  ;;  %v15312_v10 = vpop.f32.mrf.mxu1 }
 0x3c2   : > { %15498 = vmatprep.mubr.msk.bf16.mxu1 %vm15764_vm4, %v23936_v59  ;;  %15577 = vmatmul.mubr.msk.bf16.gmra.mxu0 %vm3919_vm2, %v25520_v29  ;;  %v22137_v18 = vadd.f32 %v10140_v53, %v9659_v38 }
 0x3c3   : > { %15580 = vmatprep.mubr.msk.bf16.mxu0 %vm15764_vm4, %v23936_v59  ;;  %v15394_v17 = vpop.f32.mrf.mxu0  ;;  %v9558_v46 = vpop.f32.mrf.mxu1 }
 0x3c4   : > { %25521 = vst [vmem:[#allocation326_spill] sm:$0xff] %v22137_v18  ;;  %v9662_v28 = vadd.f32 %v9558_v46, %v25522_v0  ;;  %v25529_v17 = vld [vmem:[#allocation318_spill] sm:$0xff]  ;;  %v25530_v46 = vld [vmem:[#allocation445_spill] sm:$0xff] }
 0x3c5   : > { %v10143_v14 = vpop.f32.mrf.mxu0  ;;  %v15313_v49 = vpop.f32.mrf.mxu1  ;;  %v11341_v0 = vcombine.low %v25530_v46, %v25529_v17  ;;  %v25545_v18 = vld [vmem:[#allocation21_spill] sm:$0xff] }
 0x3c6   : > { %v22142_v4 = vadd.f32 %v10143_v14, %v9660_v34  ;;  %v25531_v14 = vld [vmem:[#allocation276_spill] sm:$0xff]  ;;  %v25532_v49 = vld [vmem:[#allocation446_spill] sm:$0xff]  ;;  %v11359_v7 = vcombine.low %v25546_v50, %v25545_v18  ;;  %v25549_v18 = vld [vmem:[#allocation245_spill] sm:$0xff] }
 0x3c7   : > { %v15395_v43 = vpop.f32.mrf.mxu0  ;;  %v9563_v33 = vpop.f32.mrf.mxu1  ;;  %v11342_v3 = vcombine.low %v25532_v49, %v25531_v14  ;;  %v25539_v14 = vld [vmem:[#allocation243_spill] sm:$0xff] }
 0x3c8   : > { %25523 = vst [vmem:[#allocation327_spill] sm:$0xff] %v22142_v4  ;;  %v9663_v38 = vadd.f32 %v9563_v33, %v25525_v25  ;;  %v25534_v33 = vcombine.low %v21808_v21, %v21814_v42  ;;  %v10289_v25 = vshll.u32 %v21606_v11, 16  ;;  %v11349_v21 = vrot.slane %v11341_v0, %v15871_v8  ;;  %v25540_v0 = vld [vmem:[#allocation207_spill] sm:$0xff]  ;;  %v25544_v4 = vld [vmem:[#allocation280_spill] sm:$0xff] }
 0x3c9   : > { %15499 = vmatmul.mubr.msk.bf16.gmra.mxu1 %vm3919_vm2, %v25524_v9  ;;  %v10148_v19 = vpop.f32.mrf.mxu0  ;;  %v15316_v34 = vpop.f32.mrf.mxu1  ;;  %v10284_v9 = vshrl.u32 %v21603_v63, 16 }
 0x3ca   : > { %15502 = vmatprep.mubr.msk.bf16.mxu1 %vm15764_vm4, %v23936_v59  ;;  %15581 = vmatmul.mubr.msk.bf16.gmra.mxu0 %vm3919_vm2, %v25526_v16  ;;  %v22155_v1 = vadd.f32 %v10148_v19, %v9661_v44  ;;  %v25535_v19 = vld [vmem:[#allocation206_spill] sm:$0xff]  ;;  %v10337_v34 = vshll.u32 %v21789_v20, 16 }
 0x3cb   : > { %15584 = vmatprep.mubr.msk.bf16.mxu0 %vm15764_vm4, %v23936_v59  ;;  %v15398_v6 = vpop.f32.mrf.mxu0  ;;  %v9566_v36 = vpop.f32.mrf.mxu1 }
 0x3cc   : > { %25527 = vst [vmem:[#allocation328_spill] sm:$0xff] %v22155_v1  ;;  %v9664_v53 = vadd.f32 %v9566_v36, %v25528_v2  ;;  %v25536_v6 = vcombine.low %v21820_v48, %v21826_v31  ;;  %v11356_v36 = vrot.slane %v11342_v3, %v15871_v8  ;;  %v10292_v2 = vshrl.u32 %v21606_v11, 16  ;;  %v25543_v1 = vld [vmem:[#allocation282_spill] sm:$0xff] }
 0x3cd   : > { %v10151_v29 = vpop.f32.mrf.mxu0  ;;  %v15317_v10 = vpop.f32.mrf.mxu1  ;;  %v10305_v31 = vshll.u32 %v25539_v14, 16  ;;  %v10316_v3 = vshrl.u32 %v25540_v0, 16 }
 0x3ce   : > { %v22164_v24 = vadd.f32 %v10151_v29, %v9662_v28  ;;  %v25538_v10 = vld [vmem:[#allocation242_spill] sm:$0xff] }
 0x3cf   : > { %v15399_v43 = vpop.f32.mrf.mxu0  ;;  %v9571_v44 = vpop.f32.mrf.mxu1  ;;  %v10297_v17 = vshll.u32 %v25538_v10, 16  ;;  %v10300_v46 = vshrl.u32 %v25538_v10, 16 }
 0x3d0   : > { %25533 = vst [vmem:[#allocation329_spill] sm:$0xff] %v22164_v24  ;;  %v9665_v16 = vadd.f32 %v9571_v44, %v25535_v19  ;;  %v10308_v43 = vshrl.u32 %v25539_v14, 16  ;;  %v10313_v44 = vshll.u32 %v25540_v0, 16  ;;  %v11358_v14 = vcombine.low %v25544_v4, %v25543_v1 }
 0x3d1   : > { %15503 = vmatmul.mubr.msk.bf16.gmra.mxu1 %vm3919_vm2, %v25534_v33  ;;  %v10156_v28 = vpop.f32.mrf.mxu0  ;;  %v15320_v42 = vpop.f32.mrf.mxu1  ;;  %v25541_v33 = vld [vmem:[#allocation208_spill] sm:$0xff]  ;;  %v10307_v4 = vsel %vm15915_vm1, %v10300_v46, %v10305_v31 }
 0x3d2   : > { %15506 = vmatprep.mubr.msk.bf16.mxu1 %vm15764_vm4, %v23936_v59  ;;  %15585 = vmatmul.mubr.msk.bf16.gmra.mxu0 %vm3919_vm2, %v25536_v6  ;;  %v22183_v29 = vadd.f32 %v10156_v28, %v9663_v38  ;;  %v10321_v38 = vshll.u32 %v21678_v54, 16  ;;  %v10324_v28 = vshrl.u32 %v21678_v54, 16  ;;  %v25542_v6 = vld [vmem:[#allocation244_spill] sm:$0xff]  ;;  %v10315_v50 = vsel %vm15915_vm1, %v10308_v43, %v10313_v44 }
 0x3d3   : > { %15588 = vmatprep.mubr.msk.bf16.mxu0 %vm15764_vm4, %v23936_v59  ;;  %v15402_v48 = vpop.f32.mrf.mxu0  ;;  %v9574_v49 = vpop.f32.mrf.mxu1  ;;  %v10329_v42 = vshll.u32 %v25542_v6, 16  ;;  %v10332_v10 = vshrl.u32 %v25542_v6, 16  ;;  %v25553_v46 = vld [vmem:[#allocation452_spill] sm:$0xff] }
 0x3d4   : > { %25537 = vst [vmem:[#allocation330_spill] sm:$0xff] %v22183_v29  ;;  %v9666_v19 = vadd.f32 %v9574_v49, %v25541_v33  ;;  %v11357_v48 = vcombine.low %v11349_v21, %v11356_v36  ;;  %v10291_v49 = vsel %vm15915_vm1, %v10284_v9, %v10289_v25  ;;  %v11366_v25 = vrot.slane %v11358_v14, %v15871_v8  ;;  %v25550_v36 = vld [vmem:[#allocation450_spill] sm:$0xff] }
 0x3d5   : > { %v10159_v29 = vpop.f32.mrf.mxu0  ;;  %v15321_v24 = vpop.f32.mrf.mxu1  ;;  %v10331_v45 = vsel %vm15915_vm1, %v10324_v28, %v10329_v42  ;;  %v10339_v26 = vsel %vm15915_vm1, %v10332_v10, %v10337_v34  ;;  %v25554_v34 = vld [vmem:[#allocation345_spill] sm:$0xff]  ;;  %v25555_v42 = vld [vmem:[#allocation246_spill] sm:$0xff] }
 0x3d6   : > { %v22202_v15 = vadd.f32 %v10159_v29, %v9664_v53  ;;  %v10299_v24 = vsel %vm15915_vm1, %v10292_v2, %v10297_v17  ;;  %v10323_v53 = vsel %vm15915_vm1, %v10316_v3, %v10321_v38  ;;  %v25551_v2 = vld [vmem:[#allocation449_spill] sm:$0xff]  ;;  %v25552_v17 = vld [vmem:[#allocation62_spill] sm:$0xff]  ;;  %v10713_v43 = vcombine.low %v25554_v34, %v10291_v49 }
 0x3d7   : > { %v15403_v33 = vpop.f32.mrf.mxu0  ;;  %v9579_v37 = vpop.f32.mrf.mxu1  ;;  %v11375_v29 = vcombine.low %v25551_v2, %v25550_v36  ;;  %v11376_v31 = vcombine.low %v25553_v46, %v25552_v17  ;;  %v10714_v38 = vcombine.low %v10299_v24, %v10307_v4  ;;  %v10715_v28 = vcombine.low %v10315_v50, %v10323_v53  ;;  %v25557_v53 = vld [vmem:[#allocation247_spill] sm:$0xff]  ;;  %v25558_v36 = vld [vmem:[#allocation304_spill] sm:$0xff] }
 0x3d8   : > { %v9667_v1 = vadd.f32 %v9579_v37, %v25549_v18  ;;  %v11373_v37 = vrot.slane %v11359_v7, %v15871_v8  ;;  %v10716_v6 = vcombine.low %v10331_v45, %v10339_v26  ;;  %v25556_v24 = vcombine.low %v21887_v22, %v21878_v39  ;;  %v25559_v2 = vld [vmem:[#allocation303_spill] sm:$0xff] }
 0x3d9   : > { %15507 = vmatmul.mubr.msk.bf16.gmra.mxu1 %vm3919_vm2, %v25548_v51  ;;  %v10164_v51 = vpop.f32.mrf.mxu0  ;;  %v15324_v9 = vpop.f32.mrf.mxu1  ;;  %v11383_v18 = vrot.slane %v11375_v29, %v15871_v8  ;;  %v10723_v4 = vrot.slane %v10713_v43, %v15871_v8  ;;  %v10737_v50 = vrot.slane %v10715_v28, %v15871_v8  ;;  %v11392_v29 = vcombine.low %v25559_v2, %v25558_v36  ;;  %v25560_v43 = vld [vmem:[#allocation344_spill] sm:$0xff] }
 0x3da   : > { %15510 = vmatprep.mubr.msk.bf16.mxu1 %vm15764_vm4, %v23936_v59  ;;  %15589 = vmatmul.mubr.msk.bf16.gmra.mxu0 %vm3919_vm2, %v11357_v48  ;;  %v22228_v21 = vadd.f32 %v10164_v51, %v9665_v16  ;;  %v10275_v16 = vcombine.high %v21748_v60, %v21748_v60  ;;  %v11374_v14 = vcombine.low %v11366_v25, %v11373_v37 }
 0x3db   : > { %15592 = vmatprep.mubr.msk.bf16.mxu0 %vm15764_vm4, %v23936_v59  ;;  %v15406_v44 = vpop.f32.mrf.mxu0  ;;  %v9582_v3 = vpop.f32.mrf.mxu1  ;;  %v11390_v51 = vrot.slane %v11376_v31, %v15871_v8  ;;  %v10730_v60 = vrot.slane %v10714_v38, %v15871_v8  ;;  %v10340_v38 = vshrl.u32 %v21789_v20, 16 }
 0x3dc   : > { %v9668_v7 = vadd.f32 %v9582_v3, %v25555_v42  ;;  %v22256_v26 = vrot.slane %v10275_v16, %v15871_v8  ;;  %v25561_v44 = vld [vmem:[#allocation305_spill] sm:$0xff] }
 0x3dd   : > { %v10167_v10 = vpop.f32.mrf.mxu0  ;;  %v15325_v48 = vpop.f32.mrf.mxu1  ;;  %v11391_v37 = vcombine.low %v11383_v18, %v11390_v51  ;;  %v10745_v31 = vcombine.low %v10723_v4, %v10730_v60  ;;  %v11393_v3 = vcombine.low %v25561_v44, %v25560_v43  ;;  %v14611_v51 = vcombine.high %v21603_v63, %v21606_v11 }
 0x3de   : > { %v22240_v33 = vadd.f32 %v10167_v10, %v9666_v19  ;;  %v10744_v19 = vrot.slane %v10716_v6, %v15871_v8  ;;  %v10353_v16 = vshll.u32 %v22256_v26, 16  ;;  %v25564_v4 = vcombine.low %v21922_v40, %v21925_v12 }
 0x3df   : > { %v15407_v49 = vpop.f32.mrf.mxu0  ;;  %v9587_v9 = vpop.f32.mrf.mxu1  ;;  %v10753_v60 = vrot.slane %v10745_v31, %v15871_v8  ;;  %v11400_v63 = vrot.slane %v11392_v29, %v15871_v8  ;;  %v25566_v31 = vld [vmem:[#allocation283_spill] sm:$0xff] }
 0x3e0   : > { %v9669_v45 = vadd.f32 %v9587_v9, %v25557_v53  ;;  %v10746_v34 = vcombine.low %v10737_v50, %v10744_v19  ;;  %v11411_v49 = vcombine.low %v25540_v0, %v21678_v54 }
 0x3e1   : > { %15511 = vmatmul.mubr.msk.bf16.gmra.mxu1 %vm3919_vm2, %v25556_v24  ;;  %v10172_v25 = vpop.f32.mrf.mxu0  ;;  %v15328_v22 = vpop.f32.mrf.mxu1 }
 0x3e2   : > { %15514 = vmatprep.mubr.msk.bf16.mxu1 %vm15764_vm4, %v23936_v59  ;;  %15593 = vmatmul.mubr.msk.bf16.gmra.mxu0 %vm3919_vm2, %v11374_v14  ;;  %v22259_v39 = vadd.f32 %v10172_v25, %v9667_v1  ;;  %v25562_v1 = vld [vmem:[#allocation248_spill] sm:$0xff]  ;;  %v25563_v14 = vld [vmem:[#allocation343_spill] sm:$0xff]  ;;  %v10760_v50 = vrot.slane %v10746_v34, %v15871_v8  ;;  %v11426_v25 = vrot.slane %v14611_v51, %v15871_v8 }
 0x3e3   : > { %15596 = vmatprep.mubr.msk.bf16.mxu0 %vm15764_vm4, %v23936_v59  ;;  %v15410_v17 = vpop.f32.mrf.mxu0  ;;  %v9590_v46 = vpop.f32.mrf.mxu1  ;;  %v10345_v6 = vshll.u32 %v25562_v1, 16  ;;  %v10348_v42 = vshrl.u32 %v25562_v1, 16  ;;  %v11409_v18 = vcombine.low %v25563_v14, %v21606_v11  ;;  %v25565_v11 = vld [vmem:[#allocation249_spill] sm:$0xff]  ;;  %v11433_v22 = vrot.slane %v11411_v49, %v15871_v8 }
 0x3e4   : > { %v9670_v28 = vadd.f32 %v9590_v46, %v21774_v13  ;;  %v14612_v13 = vcombine.high %v25540_v0, %v21678_v54  ;;  %v11407_v54 = vrot.slane %v11393_v3, %v15871_v8  ;;  %v10761_v17 = vcombine.low %v10753_v60, %v10760_v50 }
 0x3e5   : > { %v10175_v10 = vpop.f32.mrf.mxu0  ;;  %v15329_v48 = vpop.f32.mrf.mxu1  ;;  %v10347_v0 = vsel %vm15915_vm1, %v10340_v38, %v10345_v6  ;;  %v10355_v12 = vsel %vm15915_vm1, %v10348_v42, %v10353_v16  ;;  %v11419_v53 = vrot.slane %v11409_v18, %v15871_v8 }
 0x3e6   : > { %v22280_v20 = vadd.f32 %v10175_v10, %v9668_v7  ;;  %v11440_v36 = vrot.slane %v14612_v13, %v15871_v8  ;;  %v10762_v46 = vcombine.low %v10347_v0, %v10355_v12  ;;  %v11408_v44 = vcombine.low %v11400_v63, %v11407_v54  ;;  %v25567_v10 = vld [vmem:[#allocation369_spill] sm:$0xff] }
 0x3e7   : > { %v15411_v9 = vpop.f32.mrf.mxu0  ;;  %v9595_v24 = vpop.f32.mrf.mxu1  ;;  %v11441_v3 = vcombine.low %v11419_v53, %v11426_v25  ;;  %v11458_v54 = vcombine.low %v25562_v1, %v22256_v26 }
 0x3e8   : > { %v9671_v19 = vadd.f32 %v9595_v24, %v25565_v11  ;;  %v11442_v38 = vcombine.low %v11433_v22, %v11440_v36 }
 0x3e9   : > { %15515 = vmatmul.mubr.msk.bf16.gmra.mxu1 %vm3919_vm2, %v25564_v4  ;;  %v15332_v7 = vpop.f32.mrf.mxu1  ;;  %v11449_v51 = vrot.slane %v11441_v3, %v15871_v8  ;;  %v25568_v4 = vld [vmem:[#allocation284_spill] sm:$0xff]  ;;  %v11465_v22 = vrot.slane %v11458_v54, %v15871_v8 }
 0x3ea   : > { %15518 = vmatprep.mubr.msk.bf16.mxu1 %vm15764_vm4, %v23936_v59  ;;  %v10180_v40 = vpop.f32.mrf.mxu0  ;;  %15597 = vmatmul.mubr.msk.bf16.gmra.mxu0 %vm3919_vm2, %v11391_v37 }
 0x3eb   : > { %v22302_v2 = vadd.f32 %v10180_v40, %v9669_v45  ;;  %15600 = vmatprep.mubr.msk.bf16.mxu0 %vm15764_vm4, %v23936_v59  ;;  %v9598_v32 = vpop.f32.mrf.mxu1  ;;  %v10769_v45 = vrot.slane %v10762_v46, %v15871_v8  ;;  %v25569_v40 = vld [vmem:[#allocation285_spill] sm:$0xff]  ;;  %v11472_v46 = vrot.slane %v11465_v22, %v15871_v8 }
 0x3ec   : > { %v15414_v29 = vpop.f32.mrf.mxu0  ;;  %v9672_v37 = vadd.f32 %v9598_v32, %v25566_v31 }
 0x3ed   : > { %v15333_v43 = vpop.f32.mrf.mxu1  ;;  %v10776_v24 = vrot.slane %v10769_v45, %v15871_v8 }
 0x3ee   : > { %v10183_v34 = vpop.f32.mrf.mxu0 }
 0x3ef   : > { %v22307_v6 = vadd.f32 %v10183_v34, %v9670_v28  ;;  %v9603_v16 = vpop.f32.mrf.mxu1  ;;  %v11456_v28 = vrot.slane %v11442_v38, %v15871_v8 }
 0x3f0   : > { %v15415_v42 = vpop.f32.mrf.mxu0  ;;  %v9673_v48 = vadd.f32 %v9603_v16, %v25567_v10 }
 0x3f1   : > { %15519 = vmatmul.mubr.msk.bf16.gmra.mxu1 %vm3919_vm2, %v10761_v17  ;;  %v15336_v18 = vpop.f32.mrf.mxu1  ;;  %v11457_v11 = vcombine.low %v11449_v51, %v11456_v28  ;;  %v15766_v28 = vmov 842150450  }
 0x3f2   : > { %15522 = vmatprep.mubr.msk.bf16.mxu1 %vm15764_vm4, %v23936_v59  ;;  %v10188_v14 = vpop.f32.mrf.mxu0  ;;  %15601 = vmatmul.mubr.msk.bf16.gmra.mxu0 %vm3919_vm2, %v11408_v44  ;;  %v15765_v18 = vmov 269488144  }
 0x3f3   : > { %v22317_v49 = vadd.f32 %v10188_v14, %v9671_v19  ;;  %15604 = vmatprep.mubr.msk.bf16.mxu0 %vm15764_vm4, %v23936_v59  ;;  %v9606_v9 = vpop.f32.mrf.mxu1  ;;  %v13398_v51 = vunpack.c.l.s4 %v15765_v18 }
 0x3f4   : > { %v15418_v13 = vpop.f32.mrf.mxu0  ;;  %v9674_v60 = vadd.f32 %v9606_v9, %v25568_v4  ;;  %v15767_v9 = vmov 1414812756   ;;  %v15768_v4 = vmov 1987475062  }
 0x3f5   : > { %v15337_v63 = vpop.f32.mrf.mxu1 }
 0x3f6   : > { %v10191_v50 = vpop.f32.mrf.mxu0 }
 0x3f7   : > { %v22325_v0 = vadd.f32 %v10191_v50, %v9672_v37  ;;  %v9611_v19 = vpop.f32.mrf.mxu1 }
 0x3f8   : > { %v15419_v12 = vpop.f32.mrf.mxu0  ;;  %v9675_v7 = vadd.f32 %v9611_v19, %v25569_v40 }
 0x3f9   : > { %15523 = vmatmul.mubr.msk.bf16.gmra.mxu1 %vm3919_vm2, %v10776_v24  ;;  %v15340_v25 = vpop.f32.mrf.mxu1  ;;  %v13412_v24 = vunpack.c.l.s4 %v15767_v9  ;;  %v13399_v12 = vunpack.c.0.s8 %v13398_v51 }
 0x3fa   : > { %v10196_v53 = vpop.f32.mrf.mxu0  ;;  %15605 = vmatmul.mubr.msk.bf16.gmra.mxu0 %vm3919_vm2, %v11457_v11 }
 0x3fb   : > { %v22331_v36 = vadd.f32 %v10196_v53, %v9673_v48  ;;  %15608 = vmatprep.mubr.msk.bf16.mxu0 %vm15764_vm4, %v23936_v59  ;;  %v9614_v1 = vpop.f32.mrf.mxu1  ;;  %vm13301_vm4 = vcmask 64512  }
 0x3fc   : > { %v15422_v26 = vpop.f32.mrf.mxu0  ;;  %v9676_v29 = vadd.f32 %v9614_v1, %v21889_v55 }
 0x3fd   : > { %v15341_v17 = vpop.f32.mrf.mxu1  ;;  %v25570_v26 = vld [vmem:[#allocation8_spill] sm:$0xff] }
 0x3fe   : > { %v10199_v32 = vpop.f32.mrf.mxu0  ;;  %v15769_v17 = vmov 1983009808   ;;  %vm13361_vm0 = vcmp.ge.s32.totalorder %v25570_v26, 1 }
 0x3ff   : > { %v22337_v31 = vadd.f32 %v10199_v32, %v9674_v60  ;;  %v9619_v34 = vpop.f32.mrf.mxu1  ;;  %v13419_v60 = vunpack.c.l.s4 %v15768_v4 }
 0x400   : > { %v15423_v37 = vpop.f32.mrf.mxu0  ;;  %v9677_v43 = vadd.f32 %v9619_v34, %v21916_v61  ;;  %v13405_v61 = vunpack.c.l.s4 %v15766_v28 }
 0x401   : > { %v15344_v3 = vpop.f32.mrf.mxu1  ;;  %v13420_v53 = vunpack.c.0.s8 %v13419_v60  ;;  %v13402_v37 = vsub.s32 %v13399_v12, %v25570_v26 }
 0x402   : > { %v10204_v44 = vpop.f32.mrf.mxu0  ;;  %15609 = vmatmul.mubr.msk.bf16.gmra.mxu0 %vm3919_vm2, %v11472_v46  ;;  %v13406_v19 = vunpack.c.0.s8 %v13405_v61  ;;  %v11823_v46 = vunpack.c.l.s4 %v15769_v17 }
 0x403   : > { %v22341_v38 = vadd.f32 %v10204_v44, %v9675_v7  ;;  %v9622_v16 = vpop.f32.mrf.mxu1  ;;  %v13413_v7 = vunpack.c.0.s8 %v13412_v24  ;;  %v13423_v44 = vsub.s32 %v13420_v53, %v25570_v26 }
 0x404   : > { %v15426_v42 = vpop.f32.mrf.mxu0  ;;  %v9678_v55 = vadd.f32 %v9622_v16, %v21927_v56 }
 0x405   : > { %v15345_v10 = vpop.f32.mrf.mxu1  ;;  %v22372_v51 = vrot.slane %v23936_v59, %v13423_v44 }
 0x406   : > { %v10207_v45 = vpop.f32.mrf.mxu0 }
 0x407   : > { %v22344_v48 = vadd.f32 %v10207_v45, %v9676_v29  ;;  %v9627_v14 = vpop.f32.mrf.mxu1  ;;  %25573 = vst [vmem:[#allocation384_spill] sm:$0xff] %v22372_v51 }
 0x408   : > { %v15427_v8 = vpop.f32.mrf.mxu0  ;;  %v9679_v13 = vadd.f32 %v9627_v14, %v21942_v41  ;;  %v13360_v41 = vadd.s32 16, %v25570_v26  ;;  %v22363_v14 = vrot.slane %v23936_v59, %v13402_v37 }
 0x409   : > { %v15348_v63 = vpop.f32.mrf.mxu1  ;;  %v11824_v8 = vunpack.c.0.s8 %v11823_v46 }
 0x40a   : > { %v10212_v50 = vpop.f32.mrf.mxu0  ;;  %vm13372_vm3 = vcmp.le.s32.totalorder %v13360_v41, 16  ;;  %v15770_v63 = vmov 1.0  }
 0x40b   : > { %v22347_v11 = vadd.f32 %v10212_v50, %v9677_v43  ;;  %v9630_v54 = vpop.f32.mrf.mxu1  ;;  %v13416_v43 = vsub.s32 %v13413_v7, %v25570_v26  ;;  %v14635_v28 = vsel %vm13372_vm3, 1.0, %v23936_v59  ;;  %v13515_v53 = vrot.slane %v15770_v63, %v13423_v44 }
 0x40c   : > { %v15430_v56 = vpop.f32.mrf.mxu0  ;;  %v9680_v40 = vadd.f32 %v9630_v54, %v21946_v62  ;;  %v13409_v62 = vsub.s32 %v13406_v19, %v25570_v26 }
 0x40d   : > { %v15349_v22 = vpop.f32.mrf.mxu1  ;;  %v22369_v18 = vrot.slane %v23936_v59, %v13416_v43  ;;  %v13494_v56 = vrot.slane %v15770_v63, %v13402_v37  ;;  %v13508_v7 = vrot.slane %v15770_v63, %v13416_v43 }
 0x40e   : > { %v10215_v25 = vpop.f32.mrf.mxu0  ;;  %v13501_v19 = vrot.slane %v15770_v63, %v13409_v62  ;;  %v22380_v22 = vsub.s32 %v11824_v8, %v25570_v26 }
 0x40f   : > { %v22351_v1 = vadd.f32 %v10215_v25, %v9678_v55  ;;  %v9635_v32 = vpop.f32.mrf.mxu1  ;;  %v14634_v55 = vsel %vm13361_vm0, 1.0, %v23936_v59  ;;  %25572 = vst [vmem:[#allocation402_spill] sm:$0xff] %v22369_v18  ;;  %v22377_v25 = vrot.slane %v14635_v28, %v13402_v37 }
 0x410   : > { %v15431_v29 = vpop.f32.mrf.mxu0  ;;  %v9681_v34 = vadd.f32 %v9635_v32, %v21959_v30  ;;  %v22366_v30 = vrot.slane %v23936_v59, %v13409_v62  ;;  %v13466_v9 = vrot.slane %v14634_v55, %v13402_v37  ;;  %v13473_v24 = vrot.slane %v14634_v55, %v13409_v62 }
 0x411   : > { %v15352_v42 = vpop.f32.mrf.mxu1  ;;  %v13480_v60 = vrot.slane %v14634_v55, %v13416_v43  ;;  %v13487_v50 = vrot.slane %v14634_v55, %v13423_v44  ;;  %25574 = vst [vmem:[#allocation383_spill] sm:$0xff] %v22377_v25  ;;  %v13575_v44 = vcombine.low %v13501_v19, %v13508_v7  ;;  %v13591_v26 = vcombine.low %v13515_v53, %v22377_v25 }
 0x412   : > { %v10220_v3 = vpop.f32.mrf.mxu0  ;;  %25571 = vst [vmem:[#allocation335_spill] sm:$0xff] %v22366_v30  ;;  %v13523_v59 = vcombine.low %v22363_v14, %v22366_v30  ;;  %v13557_v17 = vcombine.low %v22363_v14, %v13466_v9  ;;  %v13609_v28 = vcombine.low %v13494_v56, %v13501_v19  ;;  %v13626_v63 = vcombine.low %v22377_v25, %v13466_v9 }
 0x413   : > { %v22359_v16 = vadd.f32 %v10220_v3, %v9679_v13  ;;  %v9638_v10 = vpop.f32.mrf.mxu1  ;;  %v13558_v46 = vcombine.low %v13473_v24, %v13480_v60  ;;  %v13574_v37 = vcombine.low %v13487_v50, %v13494_v56  ;;  %v13592_v3 = vcombine.low %v13466_v9, %v13473_v24 }
 0x414   : > { %v15434_v45 = vpop.f32.mrf.mxu0  ;;  %v13531_v42 = vrot.slane %v13523_v59, %v22380_v22  ;;  %v13608_v8 = vcombine.low %v13480_v60, %v13487_v50 }
 0x415   : > { %v15353_v13 = vpop.f32.mrf.mxu1  ;;  %v13582_v24 = vrot.slane %v13574_v37, %v22380_v22  ;;  %v13606_v59 = vrot.slane %v13592_v3, %v22380_v22 }
 0x416   : > { %v10223_v61 = vpop.f32.mrf.mxu0  ;;  %v13625_v13 = vcombine.low %v13508_v7, %v13515_v53  ;;  %v13623_v7 = vrot.slane %v13609_v28, %v22380_v22 }
 0x417   : > { %v22375_v4 = vadd.f32 %v10223_v61, %v9680_v40  ;;  %v13524_v40 = vcombine.low %v22369_v18, %v22372_v51  ;;  %v13572_v61 = vrot.slane %v13558_v46, %v22380_v22  ;;  %v13640_v46 = vrot.slane %v13626_v63, %v22380_v22 }
 0x418   : > { %v15435_v54 = vpop.f32.mrf.mxu0  ;;  %v13633_v53 = vrot.slane %v13625_v13, %v22380_v22 }
 0x419   : > { %v10877_v12 = vpop.f32.mrf.mxu1  ;;  %v13538_v55 = vrot.slane %v13524_v40, %v22380_v22  ;;  %v13599_v40 = vrot.slane %v13591_v26, %v22380_v22 }
 0x41a   : > { %v10228_v41 = vpop.f32.mrf.mxu0  ;;  %v11043_v60 = vadd.f32 %v10877_v12, %v21975_v47  ;;  %v22408_v47 = vcombine.low %v13572_v61, %v13582_v24 }
 0x41b   : > { %v15444_v29 = vpop.f32.mrf.mxu1  ;;  %v22386_v32 = vadd.f32 %v10228_v41, %v9681_v34  ;;  %v13565_v34 = vrot.slane %v13557_v17, %v22380_v22  ;;  %v13539_v50 = vcombine.low %v13531_v42, %v13538_v55  ;;  %v13616_v17 = vrot.slane %v13608_v8, %v22380_v22 }
 0x41c   : > { %v15438_v62 = vpop.f32.mrf.mxu0  ;;  %v13589_v29 = vrot.slane %v13575_v44, %v22380_v22  ;;  %v22410_v12 = vcombine.low %v13599_v40, %v13606_v59 }
 0x41d   : > { %v10880_v43 = vpop.f32.mrf.mxu1  ;;  %v22404_v44 = vcombine.low %v13565_v34, %v13572_v61  ;;  %v22414_v13 = vcombine.low %v13616_v17, %v13623_v7  ;;  %v22416_v63 = vcombine.low %v13606_v59, %v13616_v17  ;;  %v22418_v34 = vcombine.low %v13623_v7, %v13633_v53 }
 0x41e   : > { %v10231_v45 = vpop.f32.mrf.mxu0  ;;  %v22406_v3 = vcombine.low %v13582_v24, %v13589_v29 }
 0x41f   : > { %v15445_v10 = vpop.f32.mrf.mxu1 }
 0x420   : > { %v15439_v54 = vpop.f32.mrf.mxu0  ;;  %v11044_v10 = vadd.f32 %v10880_v43, %v21980_v23 }
 0x421   : > { %v10885_v41 = vpop.f32.mrf.mxu1 }
 0x422   : > { %v11573_v56 = vpop.f32.mrf.mxu0 }
 0x423   : > { %v15448_v19 = vpop.f32.mrf.mxu1  ;;  %v11739_v9 = vadd.f32 %v11573_v56, %v11043_v60  ;;  %v22421_v56 = vcombine.low %v13633_v53, %v13640_v46 }
 0x424   : > { %v15530_v62 = vpop.f32.mrf.mxu0  ;;  %v11045_v19 = vadd.f32 %v10885_v41, %v21993_v35 }
 0x425   : > { %v10888_v37 = vpop.f32.mrf.mxu1  ;;  %v11821_v26 = vcombine.high %v11739_v9, %v11739_v9  ;;  %v11828_v42 = vrot.slane %v11739_v9, %v22380_v22  ;;  %v13704_v55 = vmul.f32 %v13539_v50, %v11739_v9  ;;  %v13835_v45 = vmul.f32 %v11739_v9, %v11739_v9 }
 0x426   : > { %v11576_v8 = vpop.f32.mrf.mxu0  ;;  %v22424_v62 = vcombine.low %v13589_v29, %v13599_v40 }
 0x427   : > { %v15449_v28 = vpop.f32.mrf.mxu1  ;;  %v11835_v54 = vrot.slane %v11821_v26, %v22380_v22  ;;  %v11836_v24 = vcombine.high %v11828_v42, %v11828_v42  ;;  %v13876_v60 = vmul.f32 %v13835_v45, %v13539_v50  ;;  %v11740_v9 = vadd.f32 %v11576_v8, %v11044_v10 }
 0x428   : > { %v15531_v23 = vpop.f32.mrf.mxu0  ;;  %v22426_v28 = vcombine.low %v13640_v46, %v13572_v61  ;;  %v13745_v7 = vsel %vm13301_vm4, %v13704_v55, 0.0  ;;  %v11046_v26 = vadd.f32 %v10888_v37, %v21998_v58 }
 0x429   : > { %v10893_v43 = vpop.f32.mrf.mxu1  ;;  %v11837_v59 = vcombine.high %v11835_v54, %v11835_v54  ;;  %v12509_v17 = vcombine.low %v11828_v42, %v11836_v24  ;;  %v11838_v45 = vcombine.high %v11740_v9, %v11740_v9  ;;  %v11845_v53 = vrot.slane %v11740_v9, %v22380_v22 }
 0x42a   : > { %v13705_v51 = vmul.f32 %v13539_v50, %v11740_v9  ;;  %v13836_v30 = vmul.f32 %v11740_v9, %v11740_v9  ;;  %v11581_v35 = vpop.f32.mrf.mxu0  ;;  %v13917_v61 = vsel %vm13301_vm4, %v13876_v60, 0.0 }
 0x42b   : > { %v15452_v41 = vpop.f32.mrf.mxu1  ;;  %v12510_v10 = vcombine.low %v11835_v54, %v11837_v59  ;;  %v12517_v29 = vrot.slane %v12509_v17, %v22380_v22  ;;  %v11741_v40 = vadd.f32 %v11581_v35, %v11045_v19  ;;  %v11852_v46 = vrot.slane %v11838_v45, %v22380_v22 }
 0x42c   : > { %v11853_v42 = vcombine.high %v11845_v53, %v11845_v53  ;;  %v13746_v55 = vsel %vm13301_vm4, %v13705_v51, 0.0  ;;  %v13877_v58 = vmul.f32 %v13836_v30, %v13539_v50  ;;  %v15534_v37 = vpop.f32.mrf.mxu0 }
 0x42d   : > { %v10896_v8 = vpop.f32.mrf.mxu1  ;;  %v12524_v24 = vrot.slane %v12510_v10, %v22380_v22  ;;  %v13747_v23 = vadd.f32 %v13746_v55, %v13745_v7  ;;  %v11855_v9 = vcombine.high %v11741_v40, %v11741_v40  ;;  %v11862_v41 = vrot.slane %v11741_v40, %v22380_v22 }
 0x42e   : > { %v11854_v54 = vcombine.high %v11852_v46, %v11852_v46  ;;  %v12526_v60 = vcombine.low %v11845_v53, %v11853_v42  ;;  %v13918_v19 = vsel %vm13301_vm4, %v13877_v58, 0.0  ;;  %v13706_v30 = vmul.f32 %v22404_v44, %v11741_v40  ;;  %v11584_v51 = vpop.f32.mrf.mxu0 }
 0x42f   : > { %v15453_v50 = vpop.f32.mrf.mxu1  ;;  %v12525_v59 = vcombine.low %v12517_v29, %v12524_v24  ;;  %v13919_v17 = vadd.f32 %v13918_v19, %v13917_v61  ;;  %v11869_v7 = vrot.slane %v11855_v9, %v22380_v22  ;;  %v11870_v45 = vcombine.high %v11862_v41, %v11862_v41 }
 0x430   : > { %v12527_v35 = vcombine.low %v11852_v46, %v11854_v54  ;;  %v11047_v10 = vadd.f32 %v10893_v43, %v22011_v57  ;;  %v12549_v55 = vrot.slane %v11862_v41, %v22380_v22  ;;  %v13748_v37 = vsel %vm13301_vm4, %v13706_v30, 0.0  ;;  %v15535_v53 = vpop.f32.mrf.mxu0 }
 0x431   : > { %v10901_v42 = vpop.f32.mrf.mxu1  ;;  %13302 = vst.msk [vmem:[%s22441_s10] sm:$0xff] %vm13301_vm4, %v12525_v59  ;;  %v12534_v58 = vrot.slane %v12526_v60, %v22380_v22  ;;  %v12550_v50 = vcombine.low %v11870_v45, %v11869_v7  ;;  %v13749_v29 = vadd.f32 %v13748_v37, %v13747_v23  ;;  %v13837_v24 = vmul.f32 %v11741_v40, %v11741_v40 }
 0x432   : > { %v12541_v61 = vrot.slane %v12527_v35, %v22380_v22  ;;  %13305 = vst.msk [vmem:[%s22441_s10 + $0x10] sm:$0x3] %vm13304_vm5, %v12549_v55  ;;  %v11048_v46 = vadd.f32 %v10896_v8, %v22016_v5  ;;  %v11742_v57 = vadd.f32 %v11584_v51, %v11046_v26  ;;  %v11871_v43 = vcombine.high %v11869_v7, %v11869_v7  ;;  %v11589_v9 = vpop.f32.mrf.mxu0 }
 0x433   : > { %v15456_v41 = vpop.f32.mrf.mxu1  ;;  %v12558_v54 = vrot.slane %v12550_v50, %v22380_v22  ;;  %v13878_v19 = vmul.f32 %v13837_v24, %v22404_v44  ;;  %v11049_v60 = vadd.f32 %v10901_v42, %v22029_v52  ;;  %v11743_v30 = vadd.f32 %v11589_v9, %v11047_v10 }
 0x434   : > { %v12542_v23 = vcombine.low %v12534_v58, %v12541_v61  ;;  %v11872_v40 = vcombine.high %v11742_v57, %v11742_v57  ;;  %v11879_v59 = vrot.slane %v11742_v57, %v22380_v22  ;;  %v13707_v45 = vmul.f32 %v22406_v3, %v11742_v57  ;;  %v15538_v35 = vpop.f32.mrf.mxu0 }
 0x435   : > { %v10904_v5 = vpop.f32.mrf.mxu1  ;;  %v13920_v26 = vsel %vm13301_vm4, %v13878_v19, 0.0  ;;  %v13838_v8 = vmul.f32 %v11742_v57, %v11742_v57  ;;  %v11889_v51 = vcombine.high %v11743_v30, %v11743_v30  ;;  %v11896_v7 = vrot.slane %v11743_v30, %v22380_v22 }
 0x436   : > { %13303 = vst.msk [vmem:[%s22441_s10 + $0x8] sm:$0xff] %vm13301_vm4, %v12542_v23  ;;  %v13921_v44 = vadd.f32 %v13920_v26, %v13919_v17  ;;  %v11886_v52 = vrot.slane %v11872_v40, %v22380_v22  ;;  %v11887_v10 = vcombine.high %v11879_v59, %v11879_v59  ;;  %v12551_v55 = vcombine.low %v11871_v43, %v11879_v59  ;;  %v11592_v37 = vpop.f32.mrf.mxu0 }
 0x437   : > { %v15457_v53 = vpop.f32.mrf.mxu1  ;;  %v13750_v42 = vsel %vm13301_vm4, %v13707_v45, 0.0  ;;  %v13879_v58 = vmul.f32 %v13838_v8, %v22406_v3  ;;  %v11903_v50 = vrot.slane %v11889_v51, %v22380_v22  ;;  %v11904_v24 = vcombine.high %v11896_v7, %v11896_v7 }
 0x438   : > { %v12565_v61 = vrot.slane %v12551_v55, %v22380_v22  ;;  %v12567_v57 = vcombine.low %v11887_v10, %v11886_v52  ;;  %v13751_v9 = vadd.f32 %v13750_v42, %v13749_v29  ;;  %v11888_v41 = vcombine.high %v11886_v52, %v11886_v52  ;;  %v15539_v17 = vpop.f32.mrf.mxu0 }
 0x439   : > { %v10909_v19 = vpop.f32.mrf.mxu1  ;;  %v13922_v43 = vsel %vm13301_vm4, %v13879_v58, 0.0  ;;  %v11905_v23 = vcombine.high %v11903_v50, %v11903_v50  ;;  %v12590_v40 = vrot.slane %v11904_v24, %v22380_v22  ;;  %v13708_v59 = vmul.f32 %v22410_v12, %v11743_v30  ;;  %v25575_v24 = vld [vmem:[#allocation286_spill] sm:$0xff] }
 0x43a   : > { %v12566_v45 = vcombine.low %v12558_v54, %v12565_v61  ;;  %v12575_v35 = vrot.slane %v12567_v57, %v22380_v22  ;;  %v13923_v26 = vadd.f32 %v13922_v43, %v13921_v44  ;;  %v12568_v8 = vcombine.low %v11888_v41, %v11896_v7  ;;  %v11597_v51 = vpop.f32.mrf.mxu0 }
 0x43b   : > { %v15460_v10 = vpop.f32.mrf.mxu1  ;;  %v12591_v55 = vcombine.low %v11903_v50, %v11905_v23  ;;  %13308 = vst.msk [vmem:[%s22441_s10 + $0x28] sm:$0x3] %vm13304_vm5, %v12590_v40  ;;  %v13752_v29 = vsel %vm13301_vm4, %v13708_v59, 0.0  ;;  %v13839_v52 = vmul.f32 %v11743_v30, %v11743_v30  ;;  %v11050_v53 = vadd.f32 %v10904_v5, %v22034_v27  ;;  %v25576_v30 = vld [vmem:[#allocation287_spill] sm:$0xff] }
 0x43c   : > { %13306 = vst.msk [vmem:[%s22441_s10 + $0x18] sm:$0xff] %vm13301_vm4, %v12566_v45  ;;  %v12582_v42 = vrot.slane %v12568_v8, %v22380_v22  ;;  %v13753_v58 = vadd.f32 %v13752_v29, %v13751_v9  ;;  %v11744_v54 = vadd.f32 %v11592_v37, %v11048_v46  ;;  %v22482_v61 = vadd.f32 %v10909_v19, %v25575_v24  ;;  %v15542_v7 = vpop.f32.mrf.mxu0 }
 0x43d   : > { %v10912_v44 = vpop.f32.mrf.mxu1  ;;  %v12599_v50 = vrot.slane %v12591_v55, %v22380_v22  ;;  %v13880_v57 = vmul.f32 %v13839_v52, %v22410_v12  ;;  %v11745_v41 = vadd.f32 %v11597_v51, %v11049_v60 }
 0x43e   : > { %v22487_v17 = vadd.f32 %v10912_v44, %v25576_v30  ;;  %v12583_v27 = vcombine.low %v12575_v35, %v12582_v42  ;;  %v11906_v5 = vcombine.high %v11744_v54, %v11744_v54  ;;  %v11913_v43 = vrot.slane %v11744_v54, %v22380_v22  ;;  %v11600_v37 = vpop.f32.mrf.mxu0 }
 0x43f   : > { %v13709_v46 = vmul.f32 %v22414_v13, %v11744_v54  ;;  %v15461_v9 = vpop.f32.mrf.mxu1  ;;  %v13924_v19 = vsel %vm13301_vm4, %v13880_v57, 0.0  ;;  %v13840_v23 = vmul.f32 %v11744_v54, %v11744_v54  ;;  %v11923_v40 = vcombine.high %v11745_v41, %v11745_v41 }
 0x440   : > { %v11930_v59 = vrot.slane %v11745_v41, %v22380_v22  ;;  %13307 = vst.msk [vmem:[%s22441_s10 + $0x20] sm:$0xff] %vm13301_vm4, %v12583_v27  ;;  %v13925_v60 = vadd.f32 %v13924_v19, %v13923_v26  ;;  %v11920_v45 = vrot.slane %v11906_v5, %v22380_v22  ;;  %v11921_v8 = vcombine.high %v11913_v43, %v11913_v43  ;;  %v15543_v51 = vpop.f32.mrf.mxu0 }
 0x441   : > { %v13754_v35 = vsel %vm13301_vm4, %v13709_v46, 0.0  ;;  %v10917_v10 = vpop.f32.mrf.mxu1  ;;  %v13881_v29 = vmul.f32 %v13840_v23, %v22414_v13  ;;  %v11937_v52 = vrot.slane %v11923_v40, %v22380_v22  ;;  %v13710_v7 = vmul.f32 %v22421_v56, %v11745_v41 }
 0x442   : > { %v13755_v55 = vadd.f32 %v13754_v35, %v13753_v58  ;;  %v11938_v42 = vcombine.high %v11930_v59, %v11930_v59  ;;  %v11922_v54 = vcombine.high %v11920_v45, %v11920_v45  ;;  %v12592_v24 = vcombine.low %v11913_v43, %v11921_v8  ;;  %v11605_v26 = vpop.f32.mrf.mxu0 }
 0x443   : > { %v13841_v44 = vmul.f32 %v11745_v41, %v11745_v41  ;;  %v15464_v57 = vpop.f32.mrf.mxu1  ;;  %v13926_v30 = vsel %vm13301_vm4, %v13881_v29, 0.0  ;;  %v12631_v5 = vrot.slane %v11937_v52, %v22380_v22  ;;  %v11746_v46 = vadd.f32 %v11600_v37, %v11050_v53 }
 0x444   : > { %v12609_v27 = vcombine.low %v11930_v59, %v11938_v42  ;;  %v12606_v58 = vrot.slane %v12592_v24, %v22380_v22  ;;  %v12608_v9 = vcombine.low %v11920_v45, %v11922_v54  ;;  %v13927_v19 = vadd.f32 %v13926_v30, %v13925_v60  ;;  %v15546_v40 = vpop.f32.mrf.mxu0 }
 0x445   : > { %v13756_v23 = vsel %vm13301_vm4, %v13710_v7, 0.0  ;;  %v10920_v43 = vpop.f32.mrf.mxu1  ;;  %13311 = vst.msk [vmem:[%s22441_s10 + $0x40] sm:$0x3] %vm13304_vm5, %v12631_v5  ;;  %v13882_v35 = vmul.f32 %v13841_v44, %v22421_v56  ;;  %v11939_v59 = vcombine.high %v11937_v52, %v11937_v52  ;;  %v11940_v37 = vcombine.high %v11746_v46, %v11746_v46  ;;  %v25577_v7 = vld [vmem:[#allocation288_spill] sm:$0xff] }
 0x446   : > { %v12623_v8 = vrot.slane %v12609_v27, %v22380_v22  ;;  %v13757_v41 = vadd.f32 %v13756_v23, %v13755_v55  ;;  %v12607_v51 = vcombine.low %v12599_v50, %v12606_v58  ;;  %v12616_v53 = vrot.slane %v12608_v9, %v22380_v22  ;;  %v11608_v60 = vpop.f32.mrf.mxu0 }
 0x447   : > { %v11947_v45 = vrot.slane %v11746_v46, %v22380_v22  ;;  %v15465_v29 = vpop.f32.mrf.mxu1  ;;  %v13928_v42 = vsel %vm13301_vm4, %v13882_v35, 0.0  ;;  %v13711_v54 = vmul.f32 %v22408_v47, %v11746_v46  ;;  %v13842_v24 = vmul.f32 %v11746_v46, %v11746_v46  ;;  %v25578_v35 = vld [vmem:[#allocation289_spill] sm:$0xff] }
 0x448   : > { %v11053_v57 = vadd.f32 %v10917_v10, %v25577_v7  ;;  %13309 = vst.msk [vmem:[%s22441_s10 + $0x30] sm:$0xff] %vm13301_vm4, %v12607_v51  ;;  %v12624_v55 = vcombine.low %v12616_v53, %v12623_v8  ;;  %v13929_v52 = vadd.f32 %v13928_v42, %v13927_v19  ;;  %v11954_v50 = vrot.slane %v11940_v37, %v22380_v22  ;;  %v15547_v30 = vpop.f32.mrf.mxu0 }
 0x449   : > { %v11955_v44 = vcombine.high %v11947_v45, %v11947_v45  ;;  %v10925_v27 = vpop.f32.mrf.mxu1  ;;  %v12632_v5 = vcombine.low %v11939_v59, %v11947_v45  ;;  %v13758_v58 = vsel %vm13301_vm4, %v13711_v54, 0.0  ;;  %v13883_v9 = vmul.f32 %v13842_v24, %v22408_v47 }
 0x44a   : > { %v11747_v23 = vadd.f32 %v11605_v26, %v22482_v61  ;;  %13310 = vst.msk [vmem:[%s22441_s10 + $0x38] sm:$0xff] %vm13301_vm4, %v12624_v55  ;;  %v13759_v10 = vadd.f32 %v13758_v58, %v13757_v41  ;;  %v11956_v40 = vcombine.high %v11954_v50, %v11954_v50  ;;  %v11054_v8 = vadd.f32 %v10920_v43, %v25578_v35  ;;  %v11613_v19 = vpop.f32.mrf.mxu0 }
 0x44b   : > { %v12633_v46 = vcombine.low %v11955_v44, %v11954_v50  ;;  %v15468_v51 = vpop.f32.mrf.mxu1  ;;  %v12640_v53 = vrot.slane %v12632_v5, %v22380_v22  ;;  %v13930_v37 = vsel %vm13301_vm4, %v13883_v9, 0.0  ;;  %v11748_v55 = vadd.f32 %v11608_v60, %v22487_v17  ;;  %v25579_v5 = vld [vmem:[#allocation290_spill] sm:$0xff] }
 0x44c   : > { %v11957_v59 = vcombine.high %v11747_v23, %v11747_v23  ;;  %v11964_v45 = vrot.slane %v11747_v23, %v22380_v22  ;;  %v13931_v42 = vadd.f32 %v13930_v37, %v13929_v52  ;;  %v13712_v61 = vmul.f32 %v22424_v62, %v11747_v23  ;;  %v15550_v54 = vpop.f32.mrf.mxu0 }
 0x44d   : > { %v12647_v29 = vrot.slane %v12633_v46, %v22380_v22  ;;  %v13843_v26 = vmul.f32 %v11747_v23, %v11747_v23  ;;  %v10928_v41 = vpop.f32.mrf.mxu1  ;;  %v22532_v58 = vadd.f32 %v10925_v27, %v25579_v5  ;;  %v11974_v17 = vcombine.high %v11748_v55, %v11748_v55  ;;  %v25580_v5 = vld [vmem:[#allocation325_spill] sm:$0xff] }
 0x44e   : > { %v11971_v43 = vrot.slane %v11957_v59, %v22380_v22  ;;  %v11972_v24 = vcombine.high %v11964_v45, %v11964_v45  ;;  %v12649_v7 = vcombine.low %v11956_v40, %v11964_v45  ;;  %v13760_v44 = vsel %vm13301_vm4, %v13712_v61, 0.0  ;;  %v11616_v52 = vpop.f32.mrf.mxu0 }
 0x44f   : > { %v12648_v50 = vcombine.low %v12640_v53, %v12647_v29  ;;  %v13884_v30 = vmul.f32 %v13843_v26, %v22424_v62  ;;  %v15469_v9 = vpop.f32.mrf.mxu1  ;;  %v13761_v51 = vadd.f32 %v13760_v44, %v13759_v10  ;;  %v11981_v60 = vrot.slane %v11748_v55, %v22380_v22 }
 0x450   : > { %v11973_v23 = vcombine.high %v11971_v43, %v11971_v43  ;;  %v12650_v46 = vcombine.low %v11972_v24, %v11971_v43  ;;  %v12657_v35 = vrot.slane %v12649_v7, %v22380_v22  ;;  %v13713_v53 = vmul.f32 %v22416_v63, %v11748_v55  ;;  %v15551_v37 = vpop.f32.mrf.mxu0 }
 0x451   : > { %13312 = vst.msk [vmem:[%s22441_s10 + $0x48] sm:$0xff] %vm13301_vm4, %v12648_v50  ;;  %v13932_v40 = vsel %vm13301_vm4, %v13884_v30, 0.0  ;;  %v10933_v27 = vpop.f32.mrf.mxu1  ;;  %v13844_v61 = vmul.f32 %v11748_v55, %v11748_v55  ;;  %v11988_v10 = vrot.slane %v11974_v17, %v22380_v22  ;;  %v11989_v26 = vcombine.high %v11981_v60, %v11981_v60 }
 0x452   : > { %v12664_v59 = vrot.slane %v12650_v46, %v22380_v22  ;;  %v12672_v45 = vrot.slane %v11973_v23, %v22380_v22  ;;  %v13933_v29 = vadd.f32 %v13932_v40, %v13931_v42  ;;  %v13762_v54 = vsel %vm13301_vm4, %v13713_v53, 0.0  ;;  %v11621_v24 = vpop.f32.mrf.mxu0 }
 0x453   : > { %v11749_v43 = vadd.f32 %v11613_v19, %v11053_v57  ;;  %v15472_v7 = vpop.f32.mrf.mxu1  ;;  %v13763_v44 = vadd.f32 %v13762_v54, %v13761_v51  ;;  %v13885_v30 = vmul.f32 %v13844_v61, %v22416_v63  ;;  %v11056_v9 = vadd.f32 %v10928_v41, %v25580_v5 }
 0x454   : > { %v12665_v50 = vcombine.low %v12657_v35, %v12664_v59  ;;  %13314 = vst.msk [vmem:[%s22441_s10 + $0x58] sm:$0x3] %vm13304_vm5, %v12672_v45  ;;  %v11990_v23 = vcombine.high %v11988_v10, %v11988_v10  ;;  %v12673_v42 = vcombine.low %v11981_v60, %v11989_v26  ;;  %v15554_v40 = vpop.f32.mrf.mxu0  ;;  %v11750_v53 = vadd.f32 %v11616_v52, %v11054_v8 }
 0x455   : > { %v11991_v55 = vcombine.high %v11749_v43, %v11749_v43  ;;  %v11998_v46 = vrot.slane %v11749_v43, %v22380_v22  ;;  %v10936_v17 = vpop.f32.mrf.mxu1  ;;  %v13934_v57 = vsel %vm13301_vm4, %v13885_v30, 0.0  ;;  %v13714_v19 = vmul.f32 %v22418_v34, %v11749_v43 }
 0x456   : > { %13313 = vst.msk [vmem:[%s22441_s10 + $0x50] sm:$0xff] %vm13301_vm4, %v12665_v50  ;;  %v13845_v35 = vmul.f32 %v11749_v43, %v11749_v43  ;;  %v12674_v51 = vcombine.low %v11988_v10, %v11990_v23  ;;  %v12681_v37 = vrot.slane %v12673_v42, %v22380_v22  ;;  %v13935_v59 = vadd.f32 %v13934_v57, %v13933_v29  ;;  %v11624_v60 = vpop.f32.mrf.mxu0 }
 0x457   : > { %v12005_v41 = vrot.slane %v11991_v55, %v22380_v22  ;;  %v15473_v45 = vpop.f32.mrf.mxu1  ;;  %v12006_v61 = vcombine.high %v11998_v46, %v11998_v46  ;;  %v13764_v26 = vsel %vm13301_vm4, %v13714_v19, 0.0  ;;  %v12008_v7 = vcombine.high %v11750_v53, %v11750_v53 }
 0x458   : > { %v13886_v54 = vmul.f32 %v13845_v35, %v22418_v34  ;;  %v12688_v50 = vrot.slane %v12674_v51, %v22380_v22  ;;  %v13765_v5 = vadd.f32 %v13764_v26, %v13763_v44  ;;  %v12015_v8 = vrot.slane %v11750_v53, %v22380_v22  ;;  %v15555_v52 = vpop.f32.mrf.mxu0 }
 0x459   : > { %v12007_v30 = vcombine.high %v12005_v41, %v12005_v41  ;;  %v10941_v10 = vpop.f32.mrf.mxu1  ;;  %v12690_v29 = vcombine.low %v11998_v46, %v12006_v61  ;;  %v12022_v23 = vrot.slane %v12008_v7, %v22380_v22  ;;  %v13715_v42 = vmul.f32 %v22426_v28, %v11750_v53 }
 0x45a   : > { %v13936_v43 = vsel %vm13301_vm4, %v13886_v54, 0.0  ;;  %v12689_v55 = vcombine.low %v12681_v37, %v12688_v50  ;;  %v12023_v19 = vcombine.high %v12015_v8, %v12015_v8  ;;  %v22562_v35 = vpop.f32.mrf.mxu0  ;;  %v12713_v45 = vrot.slane %v12015_v8, %v22380_v22 }
 0x45b   : > { %v12691_v40 = vcombine.low %v12005_v41, %v12007_v30  ;;  %v13937_v57 = vadd.f32 %v13936_v43, %v13935_v59  ;;  %v15476_v44 = vpop.f32.mrf.mxu1  ;;  %v12698_v51 = vrot.slane %v12690_v29, %v22380_v22  ;;  %v13766_v46 = vsel %vm13301_vm4, %v13715_v42, 0.0  ;;  %v25581_v41 = vld [vmem:[#allocation375_spill] sm:$0xff] }
 0x45c   : > { %v13846_v61 = vmul.f32 %v11750_v53, %v11750_v53  ;;  %13315 = vst.msk [vmem:[%s22441_s10 + $0x60] sm:$0xff] %vm13301_vm4, %v12689_v55  ;;  %v12714_v54 = vcombine.low %v12023_v19, %v12022_v23  ;;  %v13767_v37 = vadd.f32 %v13766_v46, %v13765_v5  ;;  %v11057_v7 = vadd.f32 %v10933_v27, %v25581_v41  ;;  %v15558_v59 = vpop.f32.mrf.mxu0  ;;  %v25582_v29 = vld [vmem:[#allocation331_spill] sm:$0xff] }
 0x45d   : > { %v12705_v26 = vrot.slane %v12691_v40, %v22380_v22  ;;  %v10944_v50 = vpop.f32.mrf.mxu1  ;;  %13317 = vst.msk [vmem:[%s22441_s10 + $0x70] sm:$0x3] %vm13304_vm5, %v12713_v45  ;;  %v11751_v8 = vadd.f32 %v11621_v24, %v22532_v58  ;;  %v12024_v52 = vcombine.high %v12022_v23, %v12022_v23  ;;  %v11058_v53 = vadd.f32 %v10936_v17, %v25582_v29  ;;  %v25583_v40 = vld [vmem:[#allocation357_spill] sm:$0xff] }
 0x45e   : > { %v13887_v30 = vmul.f32 %v13846_v61, %v22426_v28  ;;  %v12722_v42 = vrot.slane %v12714_v54, %v22380_v22  ;;  %v11752_v55 = vadd.f32 %v11624_v60, %v11056_v9  ;;  %v22578_v5 = vadd.f32 %v10941_v10, %v25583_v40  ;;  %v11632_v27 = vpop.f32.mrf.mxu0 }
 0x45f   : > { %v12706_v43 = vcombine.low %v12698_v51, %v12705_v26  ;;  %v15477_v19 = vpop.f32.mrf.mxu1  ;;  %v12025_v46 = vcombine.high %v11751_v8, %v11751_v8  ;;  %v12032_v45 = vrot.slane %v11751_v8, %v22380_v22  ;;  %v13716_v61 = vmul.f32 %v22406_v3, %v11751_v8 }
 0x460   : > { %v13938_v44 = vsel %vm13301_vm4, %v13887_v30, 0.0  ;;  %v13847_v24 = vmul.f32 %v11751_v8, %v11751_v8  ;;  %v12042_v17 = vcombine.high %v11752_v55, %v11752_v55  ;;  %v12049_v23 = vrot.slane %v11752_v55, %v22380_v22  ;;  %v15559_v9 = vpop.f32.mrf.mxu0 }
 0x461   : > { %13316 = vst.msk [vmem:[%s22441_s10 + $0x68] sm:$0xff] %vm13301_vm4, %v12706_v43  ;;  %v13939_v58 = vadd.f32 %v13938_v44, %v13937_v57  ;;  %v22586_v60 = vpop.f32.mrf.mxu1  ;;  %v12039_v10 = vrot.slane %v12025_v46, %v22380_v22  ;;  %v12040_v51 = vcombine.high %v12032_v45, %v12032_v45  ;;  %v12715_v26 = vcombine.low %v12024_v52, %v12032_v45 }
 0x462   : > { %v13768_v54 = vsel %vm13301_vm4, %v13716_v61, 0.0  ;;  %v13888_v59 = vmul.f32 %v13847_v24, %v22406_v3  ;;  %v12056_v30 = vrot.slane %v12042_v17, %v22380_v22  ;;  %v12057_v29 = vcombine.high %v12049_v23, %v12049_v23  ;;  %v22592_v57 = vpop.f32.mrf.mxu0 }
 0x463   : > { %v13769_v41 = vadd.f32 %v13768_v54, %v13767_v37  ;;  %v15480_v8 = vpop.f32.mrf.mxu1  ;;  %v12729_v43 = vrot.slane %v12715_v26, %v22380_v22  ;;  %v12731_v40 = vcombine.low %v12040_v51, %v12039_v10  ;;  %v12041_v19 = vcombine.high %v12039_v10, %v12039_v10 }
 0x464   : > { %v13717_v44 = vmul.f32 %v22410_v12, %v11752_v55  ;;  %v13940_v52 = vsel %vm13301_vm4, %v13888_v59, 0.0  ;;  %v12058_v46 = vcombine.high %v12056_v30, %v12056_v30  ;;  %v12754_v37 = vrot.slane %v12057_v29, %v22380_v22  ;;  %v15562_v61 = vpop.f32.mrf.mxu0 }
 0x465   : > { %v13848_v45 = vmul.f32 %v11752_v55, %v11752_v55  ;;  %v22598_v24 = vpop.f32.mrf.mxu1  ;;  %v12730_v17 = vcombine.low %v12722_v42, %v12729_v43  ;;  %v12739_v9 = vrot.slane %v12731_v40, %v22380_v22  ;;  %v13941_v54 = vadd.f32 %v13940_v52, %v13939_v58  ;;  %v25584_v43 = vld [vmem:[#allocation324_spill] sm:$0xff] }
 0x466   : > { %v12732_v8 = vcombine.low %v12041_v19, %v12049_v23  ;;  %v12755_v26 = vcombine.low %v12056_v30, %v12058_v46  ;;  %13320 = vst.msk [vmem:[%s22441_s10 + $0x88] sm:$0x3] %vm13304_vm5, %v12754_v37  ;;  %v13770_v10 = vsel %vm13301_vm4, %v13717_v44, 0.0  ;;  %v11753_v59 = vadd.f32 %v22562_v35, %v11057_v7  ;;  %v11640_v18 = vpop.f32.mrf.mxu0 }
 0x467   : > { %v13889_v51 = vmul.f32 %v13848_v45, %v22410_v12  ;;  %v15481_v29 = vpop.f32.mrf.mxu1  ;;  %13318 = vst.msk [vmem:[%s22441_s10 + $0x78] sm:$0xff] %vm13301_vm4, %v12730_v17  ;;  %v13771_v42 = vadd.f32 %v13770_v10, %v13769_v41  ;;  %v11060_v40 = vadd.f32 %v10944_v50, %v25584_v43  ;;  %v11754_v58 = vadd.f32 %v11632_v27, %v11058_v53 }
 0x468   : > { %v12746_v55 = vrot.slane %v12732_v8, %v22380_v22  ;;  %v12763_v23 = vrot.slane %v12755_v26, %v22380_v22  ;;  %v12059_v19 = vcombine.high %v11753_v59, %v11753_v59  ;;  %v12066_v44 = vrot.slane %v11753_v59, %v22380_v22  ;;  %v15563_v52 = vpop.f32.mrf.mxu0 }
 0x469   : > { %v13942_v30 = vsel %vm13301_vm4, %v13889_v51, 0.0  ;;  %v22613_v35 = vpop.f32.mrf.mxu1  ;;  %v13718_v37 = vmul.f32 %v22414_v13, %v11753_v59  ;;  %v13849_v45 = vmul.f32 %v11753_v59, %v11753_v59  ;;  %v12076_v53 = vcombine.high %v11754_v58, %v11754_v58 }
 0x46a   : > { %v12747_v7 = vcombine.low %v12739_v9, %v12746_v55  ;;  %v13943_v46 = vadd.f32 %v13942_v30, %v13941_v54  ;;  %v12073_v41 = vrot.slane %v12059_v19, %v22380_v22  ;;  %v12074_v50 = vcombine.high %v12066_v44, %v12066_v44  ;;  %v22618_v61 = vpop.f32.mrf.mxu0 }
 0x46b   : > { %v12083_v27 = vrot.slane %v11754_v58, %v22380_v22  ;;  %v15484_v17 = vpop.f32.mrf.mxu1  ;;  %v13772_v8 = vsel %vm13301_vm4, %v13718_v37, 0.0  ;;  %v13890_v26 = vmul.f32 %v13849_v45, %v22414_v13  ;;  %v13719_v9 = vmul.f32 %v22421_v56, %v11754_v58 }
 0x46c   : > { %13319 = vst.msk [vmem:[%s22441_s10 + $0x80] sm:$0xff] %vm13301_vm4, %v12747_v7  ;;  %v13850_v54 = vmul.f32 %v11754_v58, %v11754_v58  ;;  %v12075_v10 = vcombine.high %v12073_v41, %v12073_v41  ;;  %v12756_v51 = vcombine.low %v12066_v44, %v12074_v50  ;;  %v13773_v59 = vadd.f32 %v13772_v8, %v13771_v42  ;;  %v15566_v55 = vpop.f32.mrf.mxu0 }
 0x46d   : > { %v12090_v29 = vrot.slane %v12076_v53, %v22380_v22  ;;  %v22626_v43 = vpop.f32.mrf.mxu1  ;;  %v13944_v30 = vsel %vm13301_vm4, %v13890_v26, 0.0  ;;  %v12091_v19 = vcombine.high %v12083_v27, %v12083_v27  ;;  %v13774_v52 = vsel %vm13301_vm4, %v13719_v9, 0.0  ;;  %v25585_v26 = vld [vmem:[#allocation326_spill] sm:$0xff] }
 0x46e   : > { %v13891_v7 = vmul.f32 %v13850_v54, %v22421_v56  ;;  %v12770_v37 = vrot.slane %v12756_v51, %v22380_v22  ;;  %v12772_v45 = vcombine.low %v12073_v41, %v12075_v10  ;;  %v13945_v58 = vadd.f32 %v13944_v30, %v13943_v46  ;;  %v22633_v42 = vpop.f32.mrf.mxu0 }
 0x46f   : > { %v12795_v44 = vrot.slane %v12090_v29, %v22380_v22  ;;  %v15485_v50 = vpop.f32.mrf.mxu1  ;;  %v12773_v53 = vcombine.low %v12083_v27, %v12091_v19  ;;  %v13775_v17 = vadd.f32 %v13774_v52, %v13773_v59  ;;  %v11061_v55 = vadd.f32 %v22586_v60, %v25585_v26  ;;  %v25586_v59 = vld [vmem:[#allocation327_spill] sm:$0xff] }
 0x470   : > { %v13946_v8 = vsel %vm13301_vm4, %v13891_v7, 0.0  ;;  %v12771_v9 = vcombine.low %v12763_v23, %v12770_v37  ;;  %v12780_v54 = vrot.slane %v12772_v45, %v22380_v22  ;;  %v11755_v46 = vadd.f32 %v22592_v57, %v22578_v5  ;;  %v15567_v10 = vpop.f32.mrf.mxu0 }
 0x471   : > { %13323 = vst.msk [vmem:[%s22441_s10 + $0xa0] sm:$0x3] %vm13304_vm5, %v12795_v44  ;;  %v13947_v41 = vadd.f32 %v13946_v8, %v13945_v58  ;;  %v10965_v51 = vpop.f32.mrf.mxu1  ;;  %v12787_v30 = vrot.slane %v12773_v53, %v22380_v22  ;;  %v12092_v27 = vcombine.high %v12090_v29, %v12090_v29  ;;  %v11062_v19 = vadd.f32 %v22598_v24, %v25586_v59 }
 0x472   : > { %v11756_v52 = vadd.f32 %v11640_v18, %v11060_v40  ;;  %13321 = vst.msk [vmem:[%s22441_s10 + $0x90] sm:$0xff] %vm13301_vm4, %v12771_v9  ;;  %v12093_v60 = vcombine.high %v11755_v46, %v11755_v46  ;;  %v12100_v23 = vrot.slane %v11755_v46, %v22380_v22  ;;  %v13720_v7 = vmul.f32 %v22408_v47, %v11755_v46  ;;  %v22650_v45 = vpop.f32.mrf.mxu0 }
 0x473   : > { %v13851_v37 = vmul.f32 %v11755_v46, %v11755_v46  ;;  %v15488_v5 = vpop.f32.mrf.mxu1  ;;  %v12788_v57 = vcombine.low %v12780_v54, %v12787_v30 }
 0x474   : > { %v12110_v58 = vcombine.high %v11756_v52, %v11756_v52  ;;  %v12117_v29 = vrot.slane %v11756_v52, %v22380_v22  ;;  %v13721_v44 = vmul.f32 %v22424_v62, %v11756_v52  ;;  %v12107_v18 = vrot.slane %v12093_v60, %v22380_v22  ;;  %v15570_v53 = vpop.f32.mrf.mxu0 }
 0x475   : > { %v12108_v24 = vcombine.high %v12100_v23, %v12100_v23  ;;  %v12796_v40 = vcombine.low %v12092_v27, %v12100_v23  ;;  %v13776_v50 = vsel %vm13301_vm4, %v13720_v7, 0.0  ;;  %v22656_v8 = vpop.f32.mrf.mxu1  ;;  %13322 = vst.msk [vmem:[%s22441_s10 + $0x98] sm:$0xff] %vm13301_vm4, %v12788_v57  ;;  %v13892_v9 = vmul.f32 %v13851_v37, %v22408_v47 }
 0x476   : > { %v13777_v26 = vadd.f32 %v13776_v50, %v13775_v17  ;;  %v12124_v54 = vrot.slane %v12110_v58, %v22380_v22  ;;  %v12125_v46 = vcombine.high %v12117_v29, %v12117_v29  ;;  %v12109_v59 = vcombine.high %v12107_v18, %v12107_v18  ;;  %v22664_v27 = vpop.f32.mrf.mxu0 }
 0x477   : > { %v12797_v10 = vcombine.low %v12108_v24, %v12107_v18  ;;  %v12804_v30 = vrot.slane %v12796_v40, %v22380_v22  ;;  %v13778_v60 = vsel %vm13301_vm4, %v13721_v44, 0.0  ;;  %v15489_v23 = vpop.f32.mrf.mxu1  ;;  %v13948_v7 = vsel %vm13301_vm4, %v13892_v9, 0.0  ;;  %v25587_v40 = vld [vmem:[#allocation328_spill] sm:$0xff] }
 0x478   : > { %v12126_v5 = vcombine.high %v12124_v54, %v12124_v54  ;;  %v12814_v53 = vcombine.low %v12125_v46, %v12124_v54  ;;  %v13779_v57 = vadd.f32 %v13778_v60, %v13777_v26  ;;  %v13949_v37 = vadd.f32 %v13948_v7, %v13947_v41  ;;  %v15571_v24 = vpop.f32.mrf.mxu0  ;;  %v25589_v7 = vld [vmem:[#allocation330_spill] sm:$0xff] }
 0x479   : > { %v12811_v17 = vrot.slane %v12797_v10, %v22380_v22  ;;  %v12813_v58 = vcombine.low %v12109_v59, %v12117_v29  ;;  %v13852_v50 = vmul.f32 %v11756_v52, %v11756_v52  ;;  %v22668_v25 = vpop.f32.mrf.mxu1  ;;  %v11063_v9 = vadd.f32 %v22613_v35, %v25587_v40  ;;  %v25588_v29 = vld [vmem:[#allocation329_spill] sm:$0xff] }
 0x47a   : > { %v12828_v44 = vrot.slane %v12814_v53, %v22380_v22  ;;  %v12836_v18 = vrot.slane %v12126_v5, %v22380_v22  ;;  %v11757_v54 = vadd.f32 %v22618_v61, %v11061_v55  ;;  %v22679_v52 = vadd.f32 %v22626_v43, %v25588_v29  ;;  %v22681_v10 = vpop.f32.mrf.mxu0 }
 0x47b   : > { %v12812_v26 = vcombine.low %v12804_v30, %v12811_v17  ;;  %v12821_v46 = vrot.slane %v12813_v58, %v22380_v22  ;;  %v13893_v41 = vmul.f32 %v13852_v50, %v22424_v62  ;;  %v15492_v59 = vpop.f32.mrf.mxu1  ;;  %v11758_v43 = vadd.f32 %v22633_v42, %v11062_v19 }
 0x47c   : > { %13326 = vst.msk [vmem:[%s22441_s10 + $0xb8] sm:$0x3] %vm13304_vm5, %v12836_v18  ;;  %v12127_v60 = vcombine.high %v11757_v54, %v11757_v54  ;;  %v12134_v35 = vrot.slane %v11757_v54, %v22380_v22  ;;  %v13722_v61 = vmul.f32 %v22416_v63, %v11757_v54  ;;  %v13853_v55 = vmul.f32 %v11757_v54, %v11757_v54  ;;  %v15574_v53 = vpop.f32.mrf.mxu0 }
 0x47d   : > { %13324 = vst.msk [vmem:[%s22441_s10 + $0xa8] sm:$0xff] %vm13301_vm4, %v12812_v26  ;;  %v12829_v30 = vcombine.low %v12821_v46, %v12828_v44  ;;  %v13950_v23 = vsel %vm13301_vm4, %v13893_v41, 0.0  ;;  %v22692_v5 = vadd.f32 %v10965_v51, %v25589_v7  ;;  %v22694_v17 = vpop.f32.mrf.mxu1  ;;  %v12144_v54 = vcombine.high %v11758_v43, %v11758_v43 }
 0x47e   : > { %v13951_v58 = vadd.f32 %v13950_v23, %v13949_v37  ;;  %v12141_v50 = vrot.slane %v12127_v60, %v22380_v22  ;;  %v12142_v24 = vcombine.high %v12134_v35, %v12134_v35  ;;  %v13780_v18 = vsel %vm13301_vm4, %v13722_v61, 0.0  ;;  %v22702_v19 = vpop.f32.mrf.mxu0 }
 0x47f   : > { %13325 = vst.msk [vmem:[%s22441_s10 + $0xb0] sm:$0xff] %vm13301_vm4, %v12829_v30  ;;  %v13781_v40 = vadd.f32 %v13780_v18, %v13779_v57  ;;  %v13894_v44 = vmul.f32 %v13853_v55, %v22416_v63  ;;  %v12151_v42 = vrot.slane %v11758_v43, %v22380_v22  ;;  %v15493_v51 = vpop.f32.mrf.mxu1  ;;  %v13723_v37 = vmul.f32 %v22418_v34, %v11758_v43 }
 0x480   : > { %v12143_v26 = vcombine.high %v12141_v50, %v12141_v50  ;;  %v12837_v46 = vcombine.low %v12134_v35, %v12142_v24  ;;  %v13854_v41 = vmul.f32 %v11758_v43, %v11758_v43  ;;  %v12158_v59 = vrot.slane %v12144_v54, %v22380_v22  ;;  %v15575_v61 = vpop.f32.mrf.mxu0 }
 0x481   : > { %v13952_v29 = vsel %vm13301_vm4, %v13894_v44, 0.0  ;;  %v12159_v60 = vcombine.high %v12151_v42, %v12151_v42  ;;  %v11759_v57 = vadd.f32 %v22650_v45, %v11063_v9  ;;  %v22708_v55 = vpop.f32.mrf.mxu1  ;;  %v13782_v53 = vsel %vm13301_vm4, %v13723_v37, 0.0 }
 0x482   : > { %v12838_v30 = vcombine.low %v12141_v50, %v12143_v26  ;;  %v12845_v23 = vrot.slane %v12837_v46, %v22380_v22  ;;  %v13953_v7 = vadd.f32 %v13952_v29, %v13951_v58  ;;  %v12160_v35 = vcombine.high %v12158_v59, %v12158_v59  ;;  %v22713_v44 = vpop.f32.mrf.mxu0 }
 0x483   : > { %v12854_v24 = vcombine.low %v12151_v42, %v12159_v60  ;;  %v13783_v18 = vadd.f32 %v13782_v53, %v13781_v40  ;;  %v13895_v43 = vmul.f32 %v13854_v41, %v22418_v34  ;;  %v15496_v54 = vpop.f32.mrf.mxu1  ;;  %v12161_v45 = vcombine.high %v11759_v57, %v11759_v57 }
 0x484   : > { %v12852_v51 = vrot.slane %v12838_v30, %v22380_v22  ;;  %v12168_v9 = vrot.slane %v11759_v57, %v22380_v22  ;;  %v13724_v50 = vmul.f32 %v22426_v28, %v11759_v57  ;;  %v12855_v26 = vcombine.low %v12158_v59, %v12160_v35  ;;  %v15578_v40 = vpop.f32.mrf.mxu0 }
 0x485   : > { %v12862_v58 = vrot.slane %v12854_v24, %v22380_v22  ;;  %v13954_v46 = vsel %vm13301_vm4, %v13895_v43, 0.0  ;;  %v13855_v42 = vmul.f32 %v11759_v57, %v11759_v57  ;;  %v22720_v37 = vpop.f32.mrf.mxu1  ;;  %v12175_v60 = vrot.slane %v12161_v45, %v22380_v22 }
 0x486   : > { %v12853_v41 = vcombine.low %v12845_v23, %v12852_v51  ;;  %v13955_v29 = vadd.f32 %v13954_v46, %v13953_v7  ;;  %v12176_v61 = vcombine.high %v12168_v9, %v12168_v9  ;;  %v12869_v30 = vrot.slane %v12855_v26, %v22380_v22  ;;  %v22727_v24 = vpop.f32.mrf.mxu0 }
 0x487   : > { %v12877_v53 = vrot.slane %v12168_v9, %v22380_v22  ;;  %v13784_v59 = vsel %vm13301_vm4, %v13724_v50, 0.0  ;;  %v13896_v35 = vmul.f32 %v13855_v42, %v22426_v28  ;;  %v15497_v57 = vpop.f32.mrf.mxu1  ;;  %v11066_v7 = vadd.f32 %v22656_v8, %v22202_v15 }
 0x488   : > { %13327 = vst.msk [vmem:[%s22441_s10 + $0xc0] sm:$0xff] %vm13301_vm4, %v12853_v41  ;;  %v12878_v23 = vcombine.low %v12176_v61, %v12175_v60  ;;  %v13785_v43 = vadd.f32 %v13784_v59, %v13783_v18  ;;  %v11760_v54 = vadd.f32 %v22664_v27, %v22679_v52  ;;  %v12870_v51 = vcombine.low %v12862_v58, %v12869_v30  ;;  %v15579_v26 = vpop.f32.mrf.mxu0 }
 0x489   : > { %13329 = vst.msk [vmem:[%s22441_s10 + $0xd0] sm:$0x3] %vm13304_vm5, %v12877_v53  ;;  %v13956_v45 = vsel %vm13301_vm4, %v13896_v35, 0.0  ;;  %v12177_v9 = vcombine.high %v12175_v60, %v12175_v60  ;;  %v22740_v50 = vadd.f32 %v22668_v25, %v22228_v21  ;;  %v22742_v46 = vpop.f32.mrf.mxu1  ;;  %v11761_v58 = vadd.f32 %v22681_v10, %v22692_v5 }
 0x48a   : > { %v12886_v18 = vrot.slane %v12878_v23, %v22380_v22  ;;  %v13957_v42 = vadd.f32 %v13956_v45, %v13955_v29  ;;  %v12178_v15 = vcombine.high %v11760_v54, %v11760_v54  ;;  %v12185_v8 = vrot.slane %v11760_v54, %v22380_v22  ;;  %13328 = vst.msk [vmem:[%s22441_s10 + $0xc8] sm:$0xff] %vm13301_vm4, %v12870_v51  ;;  %v22755_v25 = vpop.f32.mrf.mxu0 }
 0x48b   : > { %v13725_v27 = vmul.f32 %v22406_v3, %v11760_v54  ;;  %v13856_v52 = vmul.f32 %v11760_v54, %v11760_v54  ;;  %v22753_v21 = vadd.f32 %v22694_v17, %v22240_v33  ;;  %v15500_v40 = vpop.f32.mrf.mxu1  ;;  %v11762_v61 = vadd.f32 %v22702_v19, %v11066_v7 }
 0x48c   : > { %v12192_v41 = vrot.slane %v12178_v15, %v22380_v22  ;;  %v12193_v29 = vcombine.high %v12185_v8, %v12185_v8  ;;  %v12879_v60 = vcombine.low %v12177_v9, %v12185_v8  ;;  %v12195_v59 = vcombine.high %v11761_v58, %v11761_v58  ;;  %v15582_v5 = vpop.f32.mrf.mxu0 }
 0x48d   : > { %v13786_v30 = vsel %vm13301_vm4, %v13725_v27, 0.0  ;;  %v13897_v53 = vmul.f32 %v13856_v52, %v22406_v3  ;;  %v12202_v10 = vrot.slane %v11761_v58, %v22380_v22  ;;  %v22762_v35 = vpop.f32.mrf.mxu1  ;;  %v13726_v51 = vmul.f32 %v22410_v12, %v11761_v58 }
 0x48e   : > { %v12893_v33 = vrot.slane %v12879_v60, %v22380_v22  ;;  %v12895_v17 = vcombine.low %v12193_v29, %v12192_v41  ;;  %v13787_v57 = vadd.f32 %v13786_v30, %v13785_v43  ;;  %v12194_v23 = vcombine.high %v12192_v41, %v12192_v41  ;;  %v22768_v45 = vpop.f32.mrf.mxu0 }
 0x48f   : > { %v13958_v54 = vsel %vm13301_vm4, %v13897_v53, 0.0  ;;  %v12209_v19 = vrot.slane %v12195_v59, %v22380_v22  ;;  %v12210_v7 = vcombine.high %v12202_v10, %v12202_v10  ;;  %v15501_v9 = vpop.f32.mrf.mxu1  ;;  %v13788_v40 = vsel %vm13301_vm4, %v13726_v51, 0.0 }
 0x490   : > { %v12894_v26 = vcombine.low %v12886_v18, %v12893_v33  ;;  %v12903_v15 = vrot.slane %v12895_v17, %v22380_v22  ;;  %v13959_v8 = vadd.f32 %v13958_v54, %v13957_v42  ;;  %v12896_v27 = vcombine.low %v12194_v23, %v12202_v10  ;;  %v15583_v29 = vpop.f32.mrf.mxu0 }
 0x491   : > { %v12211_v52 = vcombine.high %v12209_v19, %v12209_v19  ;;  %v12918_v43 = vrot.slane %v12210_v7, %v22380_v22  ;;  %v13857_v41 = vmul.f32 %v11761_v58, %v11761_v58  ;;  %v22773_v60 = vpop.f32.mrf.mxu1  ;;  %v13789_v53 = vadd.f32 %v13788_v40, %v13787_v57 }
 0x492   : > { %13330 = vst.msk [vmem:[%s22441_s10 + $0xd8] sm:$0xff] %vm13301_vm4, %v12894_v26  ;;  %v12910_v30 = vrot.slane %v12896_v27, %v22380_v22  ;;  %v12212_v18 = vcombine.high %v11762_v61, %v11762_v61  ;;  %v12219_v59 = vrot.slane %v11762_v61, %v22380_v22  ;;  %v13727_v10 = vmul.f32 %v22414_v13, %v11762_v61  ;;  %v22783_v33 = vpop.f32.mrf.mxu0 }
 0x493   : > { %v12919_v5 = vcombine.low %v12209_v19, %v12211_v52  ;;  %13332 = vst.msk [vmem:[%s22441_s10 + $0xe8] sm:$0x3] %vm13304_vm5, %v12918_v43  ;;  %v13898_v42 = vmul.f32 %v13857_v41, %v22410_v12  ;;  %v13858_v58 = vmul.f32 %v11762_v61, %v11762_v61  ;;  %v15504_v17 = vpop.f32.mrf.mxu1  ;;  %v11069_v57 = vadd.f32 %v22708_v55, %v22259_v39 }
 0x494   : > { %v12911_v23 = vcombine.low %v12903_v15, %v12910_v30  ;;  %v12226_v54 = vrot.slane %v12212_v18, %v22380_v22  ;;  %v12227_v7 = vcombine.high %v12219_v59, %v12219_v59  ;;  %v13790_v9 = vsel %vm13301_vm4, %v13727_v10, 0.0  ;;  %v15586_v27 = vpop.f32.mrf.mxu0 }
 0x495   : > { %v12927_v19 = vrot.slane %v12919_v5, %v22380_v22  ;;  %v13960_v51 = vsel %vm13301_vm4, %v13898_v42, 0.0  ;;  %v13899_v26 = vmul.f32 %v13858_v58, %v22414_v13  ;;  %v22792_v61 = vpop.f32.mrf.mxu1  ;;  %v13791_v40 = vadd.f32 %v13790_v9, %v13789_v53 }
 0x496   : > { %13331 = vst.msk [vmem:[%s22441_s10 + $0xe0] sm:$0xff] %vm13301_vm4, %v12911_v23  ;;  %v13961_v15 = vadd.f32 %v13960_v51, %v13959_v8  ;;  %v12228_v52 = vcombine.high %v12226_v54, %v12226_v54  ;;  %v12920_v43 = vcombine.low %v12219_v59, %v12227_v7  ;;  %v11763_v39 = vadd.f32 %v22713_v44, %v22740_v50  ;;  %v22803_v30 = vpop.f32.mrf.mxu0 }
 0x497   : > { %v13962_v41 = vsel %vm13301_vm4, %v13899_v26, 0.0  ;;  %v11070_v55 = vadd.f32 %v22720_v37, %v22280_v20  ;;  %v11764_v29 = vadd.f32 %v22727_v24, %v22753_v21  ;;  %v15505_v18 = vpop.f32.mrf.mxu1  ;;  %v22808_v53 = vadd.f32 %v22742_v46, %v22302_v2 }
 0x498   : > { %v12934_v5 = vrot.slane %v12920_v43, %v22380_v22  ;;  %v12936_v8 = vcombine.low %v12226_v54, %v12228_v52  ;;  %v13963_v42 = vadd.f32 %v13962_v41, %v13961_v15  ;;  %v12229_v59 = vcombine.high %v11763_v39, %v11763_v39  ;;  %v15587_v50 = vpop.f32.mrf.mxu0 }
 0x499   : > { %v12236_v44 = vrot.slane %v11763_v39, %v22380_v22  ;;  %v13728_v20 = vmul.f32 %v22421_v56, %v11763_v39  ;;  %v13859_v37 = vmul.f32 %v11763_v39, %v11763_v39  ;;  %v22812_v24 = vpop.f32.mrf.mxu1  ;;  %v12246_v58 = vcombine.high %v11764_v29, %v11764_v29 }
 0x49a   : > { %v12935_v21 = vcombine.low %v12927_v19, %v12934_v5  ;;  %v12944_v10 = vrot.slane %v12936_v8, %v22380_v22  ;;  %v12253_v17 = vrot.slane %v11764_v29, %v22380_v22  ;;  %v12243_v23 = vrot.slane %v12229_v59, %v22380_v22  ;;  %v22819_v7 = vpop.f32.mrf.mxu0 }
 0x49b   : > { %v12244_v2 = vcombine.high %v12236_v44, %v12236_v44  ;;  %v13792_v46 = vsel %vm13301_vm4, %v13728_v20, 0.0  ;;  %v13900_v54 = vmul.f32 %v13859_v37, %v22421_v56  ;;  %v15508_v51 = vpop.f32.mrf.mxu1  ;;  %v12260_v19 = vrot.slane %v12246_v58, %v22380_v22 }
 0x49c   : > { %13333 = vst.msk [vmem:[%s22441_s10 + $0xf0] sm:$0xff] %vm13301_vm4, %v12935_v21  ;;  %v13793_v9 = vadd.f32 %v13792_v46, %v13791_v40  ;;  %v12261_v26 = vcombine.high %v12253_v17, %v12253_v17  ;;  %v13729_v27 = vmul.f32 %v22408_v47, %v11764_v29  ;;  %v12959_v52 = vrot.slane %v12243_v23, %v22380_v22  ;;  %v15590_v39 = vpop.f32.mrf.mxu0 }
 0x49d   : > { %v12937_v15 = vcombine.low %v12236_v44, %v12244_v2  ;;  %v13964_v43 = vsel %vm13301_vm4, %v13900_v54, 0.0  ;;  %v12245_v41 = vcombine.high %v12243_v23, %v12243_v23  ;;  %v22827_v18 = vpop.f32.mrf.mxu1  ;;  %v13860_v20 = vmul.f32 %v11764_v29, %v11764_v29 }
 0x49e   : > { %v13965_v5 = vadd.f32 %v13964_v43, %v13963_v42  ;;  %v12961_v8 = vcombine.low %v12261_v26, %v12260_v19  ;;  %v13794_v59 = vsel %vm13301_vm4, %v13729_v27, 0.0  ;;  %13335 = vst.msk [vmem:[%s22441_s10 + $0x100] sm:$0x3] %vm13304_vm5, %v12959_v52  ;;  %v11765_v44 = vadd.f32 %v22755_v25, %v11069_v57  ;;  %v22834_v21 = vpop.f32.mrf.mxu0 }
 0x49f   : > { %v12951_v40 = vrot.slane %v12937_v15, %v22380_v22  ;;  %v12960_v37 = vcombine.low %v12245_v41, %v12253_v17  ;;  %v13795_v50 = vadd.f32 %v13794_v59, %v13793_v9  ;;  %v15509_v58 = vpop.f32.mrf.mxu1  ;;  %v13901_v42 = vmul.f32 %v13860_v20, %v22408_v47 }
 0x4a0   : > { %v12975_v23 = vrot.slane %v12961_v8, %v22380_v22  ;;  %v12262_v2 = vcombine.high %v12260_v19, %v12260_v19  ;;  %v11072_v29 = vadd.f32 %v22762_v35, %v22307_v6  ;;  %v12263_v51 = vcombine.high %v11765_v44, %v11765_v44  ;;  %v15591_v9 = vpop.f32.mrf.mxu0 }
 0x4a1   : > { %v12952_v46 = vcombine.low %v12944_v10, %v12951_v40  ;;  %v12968_v54 = vrot.slane %v12960_v37, %v22380_v22  ;;  %v12270_v17 = vrot.slane %v11765_v44, %v22380_v22  ;;  %v22842_v25 = vpop.f32.mrf.mxu1  ;;  %v13966_v57 = vsel %vm13301_vm4, %v13901_v42, 0.0 }
 0x4a2   : > { %v13730_v26 = vmul.f32 %v22424_v62, %v11765_v44  ;;  %v13861_v27 = vmul.f32 %v11765_v44, %v11765_v44  ;;  %v11766_v19 = vadd.f32 %v22768_v45, %v11070_v55  ;;  %v13967_v35 = vadd.f32 %v13966_v57, %v13965_v5  ;;  %v22850_v52 = vpop.f32.mrf.mxu0 }
 0x4a3   : > { %13334 = vst.msk [vmem:[%s22441_s10 + $0xf8] sm:$0xff] %vm13301_vm4, %v12952_v46  ;;  %v12976_v6 = vcombine.low %v12968_v54, %v12975_v23  ;;  %v12277_v10 = vrot.slane %v12263_v51, %v22380_v22  ;;  %v12278_v15 = vcombine.high %v12270_v17, %v12270_v17  ;;  %v15512_v43 = vpop.f32.mrf.mxu1  ;;  %v12977_v41 = vcombine.low %v12262_v2, %v12270_v17 }
 0x4a4   : > { %v13796_v39 = vsel %vm13301_vm4, %v13730_v26, 0.0  ;;  %v13902_v8 = vmul.f32 %v13861_v27, %v22424_v62  ;;  %v12280_v59 = vcombine.high %v11766_v19, %v11766_v19  ;;  %v12287_v40 = vrot.slane %v11766_v19, %v22380_v22  ;;  %v15594_v5 = vpop.f32.mrf.mxu0 }
 0x4a5   : > { %13336 = vst.msk [vmem:[%s22441_s10 + $0x108] sm:$0xff] %vm13301_vm4, %v12976_v6  ;;  %v12279_v20 = vcombine.high %v12277_v10, %v12277_v10  ;;  %v12978_v45 = vcombine.low %v12278_v15, %v12277_v10  ;;  %v13797_v55 = vadd.f32 %v13796_v39, %v13795_v50  ;;  %v22857_v37 = vpop.f32.mrf.mxu1  ;;  %v12985_v44 = vrot.slane %v12977_v41, %v22380_v22 }
 0x4a6   : > { %v13968_v58 = vsel %vm13301_vm4, %v13902_v8, 0.0  ;;  %v12294_v23 = vrot.slane %v12280_v59, %v22380_v22  ;;  %v13731_v42 = vmul.f32 %v22416_v63, %v11766_v19  ;;  %v12295_v50 = vcombine.high %v12287_v40, %v12287_v40  ;;  %v22865_v51 = vpop.f32.mrf.mxu0 }
 0x4a7   : > { %v12992_v2 = vrot.slane %v12978_v45, %v22380_v22  ;;  %v13000_v46 = vrot.slane %v12279_v20, %v22380_v22  ;;  %v13969_v54 = vadd.f32 %v13968_v58, %v13967_v35  ;;  %v15513_v17 = vpop.f32.mrf.mxu1  ;;  %v13862_v26 = vmul.f32 %v11766_v19, %v11766_v19 }
 0x4a8   : > { %v12296_v9 = vcombine.high %v12294_v23, %v12294_v23  ;;  %v13798_v57 = vsel %vm13301_vm4, %v13731_v42, 0.0  ;;  %v11073_v27 = vadd.f32 %v22773_v60, %v22317_v49  ;;  %v13001_v10 = vcombine.low %v12287_v40, %v12295_v50  ;;  %v15595_v43 = vpop.f32.mrf.mxu0 }
 0x4a9   : > { %v12993_v6 = vcombine.low %v12985_v44, %v12992_v2  ;;  %13338 = vst.msk [vmem:[%s22441_s10 + $0x118] sm:$0x3] %vm13304_vm5, %v13000_v46  ;;  %v13799_v15 = vadd.f32 %v13798_v57, %v13797_v55  ;;  %v11767_v35 = vadd.f32 %v22783_v33, %v22808_v53  ;;  %v22874_v41 = vpop.f32.mrf.mxu1  ;;  %v13903_v8 = vmul.f32 %v13862_v26, %v22416_v63 }
 0x4aa   : > { %v13002_v39 = vcombine.low %v12294_v23, %v12296_v9  ;;  %v11074_v19 = vadd.f32 %v22792_v61, %v22325_v0  ;;  %v11768_v59 = vadd.f32 %v22803_v30, %v11072_v29  ;;  %v13009_v49 = vrot.slane %v13001_v10, %v22380_v22  ;;  %v22885_v53 = vpop.f32.mrf.mxu0 }
 0x4ab   : > { %13337 = vst.msk [vmem:[%s22441_s10 + $0x110] sm:$0xff] %vm13301_vm4, %v12993_v6  ;;  %v12297_v60 = vcombine.high %v11767_v35, %v11767_v35  ;;  %v12304_v20 = vrot.slane %v11767_v35, %v22380_v22  ;;  %v13732_v33 = vmul.f32 %v22418_v34, %v11767_v35  ;;  %v15516_v45 = vpop.f32.mrf.mxu1  ;;  %v13970_v40 = vsel %vm13301_vm4, %v13903_v8, 0.0 }
 0x4ac   : > { %v13016_v55 = vrot.slane %v13002_v39, %v22380_v22  ;;  %v13863_v5 = vmul.f32 %v11767_v35, %v11767_v35  ;;  %v12314_v0 = vcombine.high %v11768_v59, %v11768_v59  ;;  %v13971_v61 = vadd.f32 %v13970_v40, %v13969_v54  ;;  %v15598_v58 = vpop.f32.mrf.mxu0 }
 0x4ad   : > { %v12311_v30 = vrot.slane %v12297_v60, %v22380_v22  ;;  %v12312_v29 = vcombine.high %v12304_v20, %v12304_v20  ;;  %v13800_v44 = vsel %vm13301_vm4, %v13732_v33, 0.0  ;;  %v22891_v23 = vpop.f32.mrf.mxu1  ;;  %v12321_v50 = vrot.slane %v11768_v59, %v22380_v22 }
 0x4ae   : > { %v13017_v42 = vcombine.low %v13009_v49, %v13016_v55  ;;  %v13801_v2 = vadd.f32 %v13800_v44, %v13799_v15  ;;  %v13904_v46 = vmul.f32 %v13863_v5, %v22418_v34  ;;  %v12328_v57 = vrot.slane %v12314_v0, %v22380_v22  ;;  %v22897_v26 = vpop.f32.mrf.mxu0 }
 0x4af   : > { %v12313_v17 = vcombine.high %v12311_v30, %v12311_v30  ;;  %v13018_v9 = vcombine.low %v12304_v20, %v12312_v29  ;;  %v13733_v54 = vmul.f32 %v22426_v28, %v11768_v59  ;;  %v15517_v6 = vpop.f32.mrf.mxu1  ;;  %v12329_v35 = vcombine.high %v12321_v50, %v12321_v50 }
 0x4b0   : > { %13339 = vst.msk [vmem:[%s22441_s10 + $0x120] sm:$0xff] %vm13301_vm4, %v13017_v42  ;;  %v13972_v10 = vsel %vm13301_vm4, %v13904_v46, 0.0  ;;  %v13041_v15 = vrot.slane %v12321_v50, %v22380_v22  ;;  %v13864_v43 = vmul.f32 %v11768_v59, %v11768_v59  ;;  %v15599_v20 = vpop.f32.mrf.mxu0  ;;  %v11075_v5 = vadd.f32 %v22812_v24, %v22331_v36 }
 0x4b1   : > { %v13019_v39 = vcombine.low %v12311_v30, %v12313_v17  ;;  %v13026_v8 = vrot.slane %v13018_v9, %v22380_v22  ;;  %v13973_v49 = vadd.f32 %v13972_v10, %v13971_v61  ;;  %v13802_v60 = vsel %vm13301_vm4, %v13733_v54, 0.0  ;;  %v22905_v33 = vpop.f32.mrf.mxu1 }
 0x4b2   : > { %v13042_v45 = vcombine.low %v12329_v35, %v12328_v57  ;;  %13341 = vst.msk [vmem:[%s22441_s10 + $0x130] sm:$0x3] %vm13304_vm5, %v13041_v15  ;;  %v13803_v55 = vadd.f32 %v13802_v60, %v13801_v2  ;;  %v13905_v40 = vmul.f32 %v13864_v43, %v22426_v28  ;;  %v11769_v0 = vadd.f32 %v22819_v7, %v11073_v27  ;;  %v22916_v29 = vpop.f32.mrf.mxu0 }
 0x4b3   : > { %v13033_v59 = vrot.slane %v13019_v39, %v22380_v22  ;;  %v12330_v30 = vcombine.high %v12328_v57, %v12328_v57  ;;  %v11076_v61 = vadd.f32 %v22827_v18, %v22337_v31  ;;  %v15520_v44 = vpop.f32.mrf.mxu1  ;;  %v11770_v28 = vadd.f32 %v22834_v21, %v11074_v19 }
 0x4b4   : > { %v13050_v58 = vrot.slane %v13042_v45, %v22380_v22  ;;  %v13974_v42 = vsel %vm13301_vm4, %v13905_v40, 0.0  ;;  %v22923_v36 = vadd.f32 %v22842_v25, %v22341_v38  ;;  %v12331_v27 = vcombine.high %v11769_v0, %v11769_v0  ;;  %v15602_v31 = vpop.f32.mrf.mxu0 }
 0x4b5   : > { %v13034_v24 = vcombine.low %v13026_v8, %v13033_v59  ;;  %v13975_v7 = vadd.f32 %v13974_v42, %v13973_v49  ;;  %v12338_v2 = vrot.slane %v11769_v0, %v22380_v22  ;;  %v22926_v18 = vpop.f32.mrf.mxu1  ;;  %v13734_v46 = vmul.f32 %v22406_v3, %v11769_v0 }
 0x4b6   : > { %v13865_v50 = vmul.f32 %v11769_v0, %v11769_v0  ;;  %v12348_v17 = vcombine.high %v11770_v28, %v11770_v28  ;;  %v12355_v9 = vrot.slane %v11770_v28, %v22380_v22  ;;  %v12345_v21 = vrot.slane %v12331_v27, %v22380_v22  ;;  %v22934_v57 = vpop.f32.mrf.mxu0 }
 0x4b7   : > { %13340 = vst.msk [vmem:[%s22441_s10 + $0x128] sm:$0xff] %vm13301_vm4, %v13034_v24  ;;  %v12346_v38 = vcombine.high %v12338_v2, %v12338_v2  ;;  %v13043_v25 = vcombine.low %v12330_v30, %v12338_v2  ;;  %v13735_v19 = vmul.f32 %v22410_v12, %v11770_v28  ;;  %v15521_v54 = vpop.f32.mrf.mxu1  ;;  %v13804_v6 = vsel %vm13301_vm4, %v13734_v46, 0.0 }
 0x4b8   : > { %v13906_v10 = vmul.f32 %v13865_v50, %v22406_v3  ;;  %v12362_v35 = vrot.slane %v12348_v17, %v22380_v22  ;;  %v12363_v15 = vcombine.high %v12355_v9, %v12355_v9  ;;  %v13805_v8 = vadd.f32 %v13804_v6, %v13803_v55  ;;  %v15603_v60 = vpop.f32.mrf.mxu0 }
 0x4b9   : > { %v13057_v43 = vrot.slane %v13043_v25, %v22380_v22  ;;  %v13059_v39 = vcombine.low %v12346_v38, %v12345_v21  ;;  %v12347_v49 = vcombine.high %v12345_v21, %v12345_v21  ;;  %v22940_v20 = vpop.f32.mrf.mxu1  ;;  %v13806_v3 = vsel %vm13301_vm4, %v13735_v19, 0.0 }
 0x4ba   : > { %v13976_v45 = vsel %vm13301_vm4, %v13906_v10, 0.0  ;;  %v12364_v40 = vcombine.high %v12362_v35, %v12362_v35  ;;  %v13082_v59 = vrot.slane %v12363_v15, %v22380_v22  ;;  %v22946_v24 = vpop.f32.mrf.mxu0  ;;  %v13807_v2 = vadd.f32 %v13806_v3, %v13805_v8 }
 0x4bb   : > { %v13058_v0 = vcombine.low %v13050_v58, %v13057_v43  ;;  %v13067_v30 = vrot.slane %v13059_v39, %v22380_v22  ;;  %v13977_v44 = vadd.f32 %v13976_v45, %v13975_v7  ;;  %v13060_v42 = vcombine.low %v12347_v49, %v12355_v9  ;;  %v15524_v55 = vpop.f32.mrf.mxu1 }
 0x4bc   : > { %v13083_v27 = vcombine.low %v12362_v35, %v12364_v40  ;;  %13344 = vst.msk [vmem:[%s22441_s10 + $0x148] sm:$0x3] %vm13304_vm5, %v13082_v59  ;;  %v13866_v31 = vmul.f32 %v11770_v28, %v11770_v28  ;;  %v11771_v46 = vadd.f32 %v22850_v52, %v11075_v5  ;;  %v22956_v58 = vadd.f32 %v22857_v37, %v22344_v48  ;;  %v15606_v9 = vpop.f32.mrf.mxu0 }
 0x4bd   : > { %13342 = vst.msk [vmem:[%s22441_s10 + $0x138] sm:$0xff] %vm13301_vm4, %v13058_v0  ;;  %v13074_v50 = vrot.slane %v13060_v42, %v22380_v22  ;;  %v11772_v7 = vadd.f32 %v22865_v51, %v11076_v61  ;;  %v22961_v17 = vadd.f32 %v22874_v41, %v22347_v11  ;;  %v11040_v21 = vpop.f32.mrf.mxu1 }
 0x4be   : > { %v13091_v28 = vrot.slane %v13083_v27, %v22380_v22  ;;  %v13907_v52 = vmul.f32 %v13866_v31, %v22410_v12  ;;  %v12365_v5 = vcombine.high %v11771_v46, %v11771_v46  ;;  %v12372_v38 = vrot.slane %v11771_v46, %v22380_v22  ;;  %v22967_v51 = vpop.f32.mrf.mxu0 }
 0x4bf   : > { %v13075_v25 = vcombine.low %v13067_v30, %v13074_v50  ;;  %v13736_v48 = vmul.f32 %v22414_v13, %v11771_v46  ;;  %v13867_v37 = vmul.f32 %v11771_v46, %v11771_v46  ;;  %v12382_v19 = vcombine.high %v11772_v7, %v11772_v7  ;;  %v15525_v61 = vpop.f32.mrf.mxu1 }
 0x4c0   : > { %v13978_v11 = vsel %vm13301_vm4, %v13907_v52, 0.0  ;;  %v12379_v41 = vrot.slane %v12365_v5, %v22380_v22  ;;  %v12380_v54 = vcombine.high %v12372_v38, %v12372_v38  ;;  %v12389_v6 = vrot.slane %v11772_v7, %v22380_v22  ;;  %v15607_v43 = vpop.f32.mrf.mxu0 }
 0x4c1   : > { %13343 = vst.msk [vmem:[%s22441_s10 + $0x140] sm:$0xff] %vm13301_vm4, %v13075_v25  ;;  %v13979_v12 = vadd.f32 %v13978_v11, %v13977_v44  ;;  %v13808_v10 = vsel %vm13301_vm4, %v13736_v48, 0.0  ;;  %v13908_v35 = vmul.f32 %v13867_v37, %v22414_v13  ;;  %v12396_v15 = vrot.slane %v12382_v19, %v22380_v22 }
 0x4c2   : > { %v12381_v39 = vcombine.high %v12379_v41, %v12379_v41  ;;  %v13084_v8 = vcombine.low %v12372_v38, %v12380_v54  ;;  %v13809_v49 = vadd.f32 %v13808_v10, %v13807_v2  ;;  %v12397_v60 = vcombine.high %v12389_v6, %v12389_v6  ;;  %v22980_v0 = vpop.f32.mrf.mxu0 }
 0x4c3   : > { %v13980_v45 = vsel %vm13301_vm4, %v13908_v35, 0.0  ;;  %v13123_v40 = vrot.slane %v12396_v15, %v22380_v22  ;;  %v13737_v59 = vmul.f32 %v22421_v56, %v11772_v7  ;;  %v13868_v3 = vmul.f32 %v11772_v7, %v11772_v7 }
 0x4c4   : > { %v13098_v30 = vrot.slane %v13084_v8, %v22380_v22  ;;  %v13100_v13 = vcombine.low %v12379_v41, %v12381_v39  ;;  %v13981_v44 = vadd.f32 %v13980_v45, %v13979_v12  ;;  %v13101_v42 = vcombine.low %v12389_v6, %v12397_v60  ;;  %v15610_v46 = vpop.f32.mrf.mxu0 }
 0x4c5   : > { %13347 = vst.msk [vmem:[%s22441_s10 + $0x160] sm:$0x3] %vm13304_vm5, %v13123_v40  ;;  %v13810_v55 = vsel %vm13301_vm4, %v13737_v59, 0.0  ;;  %v13909_v27 = vmul.f32 %v13868_v3, %v22421_v56  ;;  %v11773_v2 = vadd.f32 %v22885_v53, %v22923_v36  ;;  %v12398_v31 = vcombine.high %v12396_v15, %v12396_v15 }
 0x4c6   : > { %v13099_v50 = vcombine.low %v13091_v28, %v13098_v30  ;;  %v13108_v7 = vrot.slane %v13100_v13, %v22380_v22  ;;  %v13115_v9 = vrot.slane %v13101_v42, %v22380_v22  ;;  %v13811_v21 = vadd.f32 %v13810_v55, %v13809_v49  ;;  %v11736_v56 = vpop.f32.mrf.mxu0 }
 0x4c7   : > { %v13982_v52 = vsel %vm13301_vm4, %v13909_v27, 0.0  ;;  %v12399_v5 = vcombine.high %v11773_v2, %v11773_v2  ;;  %v12406_v38 = vrot.slane %v11773_v2, %v22380_v22  ;;  %v13738_v25 = vmul.f32 %v22408_v47, %v11773_v2 }
 0x4c8   : > { %13345 = vst.msk [vmem:[%s22441_s10 + $0x150] sm:$0xff] %vm13301_vm4, %v13099_v50  ;;  %v13116_v53 = vcombine.low %v13108_v7, %v13115_v9  ;;  %v13983_v36 = vadd.f32 %v13982_v52, %v13981_v44  ;;  %v13869_v48 = vmul.f32 %v11773_v2, %v11773_v2  ;;  %v11080_v28 = vadd.f32 %v22891_v23, %v22351_v1  ;;  %v15611_v41 = vpop.f32.mrf.mxu0 }
 0x4c9   : > { %v12413_v37 = vrot.slane %v12399_v5, %v22380_v22  ;;  %v12414_v19 = vcombine.high %v12406_v38, %v12406_v38  ;;  %v13124_v61 = vcombine.low %v12398_v31, %v12406_v38  ;;  %v13812_v11 = vsel %vm13301_vm4, %v13738_v25, 0.0 }
 0x4ca   : > { %13346 = vst.msk [vmem:[%s22441_s10 + $0x158] sm:$0xff] %vm13301_vm4, %v13116_v53  ;;  %v13813_v54 = vadd.f32 %v13812_v11, %v13811_v21  ;;  %v13910_v6 = vmul.f32 %v13869_v48, %v22408_v47  ;;  %v11774_v12 = vadd.f32 %v22897_v26, %v22956_v58  ;;  %v11081_v10 = vadd.f32 %v22905_v33, %v22359_v16 }
 0x4cb   : > { %v13125_v35 = vcombine.low %v12414_v19, %v12413_v37  ;;  %v13132_v1 = vrot.slane %v13124_v61, %v22380_v22  ;;  %v12415_v23 = vcombine.high %v12413_v37, %v12413_v37  ;;  %v11775_v15 = vadd.f32 %v22916_v29, %v22961_v17 }
 0x4cc   : > { %v13984_v43 = vsel %vm13301_vm4, %v13910_v6, 0.0  ;;  %v12416_v39 = vcombine.high %v11774_v12, %v11774_v12  ;;  %v12423_v8 = vrot.slane %v11774_v12, %v22380_v22  ;;  %v13739_v47 = vmul.f32 %v22424_v62, %v11774_v12 }
 0x4cd   : > { %v13139_v49 = vrot.slane %v13125_v35, %v22380_v22  ;;  %v13985_v26 = vadd.f32 %v13984_v43, %v13983_v36  ;;  %v13870_v58 = vmul.f32 %v11774_v12, %v11774_v12  ;;  %v12433_v16 = vcombine.high %v11775_v15, %v11775_v15 }
 0x4ce   : > { %v12430_v33 = vrot.slane %v12416_v39, %v22380_v22  ;;  %v12431_v60 = vcombine.high %v12423_v8, %v12423_v8  ;;  %v13141_v45 = vcombine.low %v12415_v23, %v12423_v8  ;;  %v13814_v40 = vsel %vm13301_vm4, %v13739_v47, 0.0 }
 0x4cf   : > { %v13140_v29 = vcombine.low %v13132_v1, %v13139_v49  ;;  %v13815_v17 = vadd.f32 %v13814_v40, %v13813_v54  ;;  %v13911_v59 = vmul.f32 %v13870_v58, %v22424_v62  ;;  %v12440_v3 = vrot.slane %v11775_v15, %v22380_v22  ;;  %v25591_v49 = vld [vmem:[#allocation402_spill] sm:$0xff] }
 0x4d0   : > { %v12432_v30 = vcombine.high %v12430_v33, %v12430_v33  ;;  %v13142_v13 = vcombine.low %v12431_v60, %v12430_v33  ;;  %v13149_v44 = vrot.slane %v13141_v45, %v22380_v22  ;;  %v12447_v42 = vrot.slane %v12433_v16, %v22380_v22 }
 0x4d1   : > { %13348 = vst.msk [vmem:[%s22441_s10 + $0x168] sm:$0xff] %vm13301_vm4, %v13140_v29  ;;  %v13986_v55 = vsel %vm13301_vm4, %v13911_v59, 0.0  ;;  %v12448_v27 = vcombine.high %v12440_v3, %v12440_v3  ;;  %v13740_v2 = vmul.f32 %v22416_v63, %v11775_v15  ;;  %v13871_v31 = vmul.f32 %v11775_v15, %v11775_v15 }
 0x4d2   : > { %v13156_v46 = vrot.slane %v13142_v13, %v22380_v22  ;;  %v13164_v62 = vrot.slane %v12432_v30, %v22380_v22  ;;  %v13987_v50 = vadd.f32 %v13986_v55, %v13985_v26  ;;  %v12449_v7 = vcombine.high %v12447_v42, %v12447_v42  ;;  %v25592_v26 = vld [vmem:[#allocation335_spill] sm:$0xff]  ;;  %v25593_v30 = vld [vmem:[#allocation384_spill] sm:$0xff] }
 0x4d3   : > { %v13165_v9 = vcombine.low %v12440_v3, %v12448_v27  ;;  %v13816_v21 = vsel %vm13301_vm4, %v13740_v2, 0.0  ;;  %v13912_v52 = vmul.f32 %v13871_v31, %v22416_v63  ;;  %v11082_v5 = vadd.f32 %v22926_v18, %v22375_v4 }
 0x4d4   : > { %v13157_v38 = vcombine.low %v13149_v44, %v13156_v46  ;;  %13350 = vst.msk [vmem:[%s22441_s10 + $0x178] sm:$0x3] %vm13304_vm5, %v13164_v62  ;;  %v13166_v25 = vcombine.low %v12447_v42, %v12449_v7  ;;  %v13817_v56 = vadd.f32 %v13816_v21, %v13815_v17  ;;  %v11776_v53 = vadd.f32 %v22934_v57, %v11080_v28 }
 0x4d5   : > { %v13173_v36 = vrot.slane %v13165_v9, %v22380_v22  ;;  %v13988_v48 = vsel %vm13301_vm4, %v13912_v52, 0.0  ;;  %v11083_v37 = vadd.f32 %v22940_v20, %v22386_v32  ;;  %v11777_v19 = vadd.f32 %v22946_v24, %v11081_v10  ;;  %v25590_v24 = vld [vmem:[#allocation383_spill] sm:$0xff] }
 0x4d6   : > { %13349 = vst.msk [vmem:[%s22441_s10 + $0x170] sm:$0xff] %vm13301_vm4, %v13157_v38  ;;  %v13180_v4 = vrot.slane %v13166_v25, %v22380_v22  ;;  %v13989_v63 = vadd.f32 %v13988_v48, %v13987_v50  ;;  %v12450_v18 = vcombine.high %v11776_v53, %v11776_v53  ;;  %v12457_v61 = vrot.slane %v11776_v53, %v22380_v22 }
 0x4d7   : > { %v13741_v57 = vmul.f32 %v22418_v34, %v11776_v53  ;;  %v13872_v28 = vmul.f32 %v11776_v53, %v11776_v53  ;;  %v12467_v11 = vcombine.high %v11777_v19, %v11777_v19  ;;  %v12474_v41 = vrot.slane %v11777_v19, %v22380_v22 }
 0x4d8   : > { %v13181_v54 = vcombine.low %v13173_v36, %v13180_v4  ;;  %v12464_v32 = vrot.slane %v12450_v18, %v22380_v22  ;;  %v12465_v20 = vcombine.high %v12457_v61, %v12457_v61  ;;  %v13647_v6 = vcombine.low %v25590_v24, %v22363_v14 }
 0x4d9   : > { %v13818_v12 = vsel %vm13301_vm4, %v13741_v57, 0.0  ;;  %v13913_v10 = vmul.f32 %v13872_v28, %v22418_v34  ;;  %v12481_v35 = vrot.slane %v12467_v11, %v22380_v22  ;;  %v12482_v1 = vcombine.high %v12474_v41, %v12474_v41 }
 0x4da   : > { %13351 = vst.msk [vmem:[%s22441_s10 + $0x180] sm:$0xff] %vm13301_vm4, %v13181_v54  ;;  %v12466_v23 = vcombine.high %v12464_v32, %v12464_v32  ;;  %v13182_v15 = vcombine.low %v12457_v61, %v12465_v20  ;;  %v13819_v43 = vadd.f32 %v13818_v12, %v13817_v56  ;;  %v13205_v39 = vrot.slane %v12474_v41, %v22380_v22 }
 0x4db   : > { %v13990_v8 = vsel %vm13301_vm4, %v13913_v10, 0.0  ;;  %v13206_v47 = vcombine.low %v12482_v1, %v12481_v35  ;;  %v13648_v58 = vcombine.low %v25592_v26, %v25591_v49  ;;  %v13655_v16 = vrot.slane %v13647_v6, %v22380_v22 }
 0x4dc   : > { %v13183_v33 = vcombine.low %v12464_v32, %v12466_v23  ;;  %v13190_v34 = vrot.slane %v13182_v15, %v22380_v22  ;;  %v13991_v60 = vadd.f32 %v13990_v8, %v13989_v63  ;;  %13353 = vst.msk [vmem:[%s22441_s10 + $0x190] sm:$0x3] %vm13304_vm5, %v13205_v39  ;;  %v13873_v45 = vmul.f32 %v11777_v19, %v11777_v19 }
 0x4dd   : > { %v13214_v40 = vrot.slane %v13206_v47, %v22380_v22  ;;  %v13662_v29 = vrot.slane %v13648_v58, %v22380_v22  ;;  %v11778_v17 = vadd.f32 %v22967_v51, %v11082_v5  ;;  %v12483_v59 = vcombine.high %v12481_v35, %v12481_v35 }
 0x4de   : > { %v13197_v3 = vrot.slane %v13183_v33, %v22380_v22  ;;  %v13664_v13 = vcombine.low %v25593_v30, %v22363_v14  ;;  %v11779_v44 = vadd.f32 %v22980_v0, %v11083_v37 }
 0x4df   : > { %v13663_v42 = vcombine.low %v13655_v16, %v13662_v29  ;;  %v12484_v55 = vcombine.high %v11778_v17, %v11778_v17  ;;  %v12491_v27 = vrot.slane %v11778_v17, %v22380_v22  ;;  %v13874_v2 = vmul.f32 %v11778_v17, %v11778_v17 }
 0x4e0   : > { %v13198_v31 = vcombine.low %v13190_v34, %v13197_v3  ;;  %v13672_v46 = vrot.slane %v13664_v13, %v22380_v22  ;;  %v12507_v51 = vrot.slane %v11779_v44, %v22380_v22  ;;  %v13875_v62 = vmul.f32 %v11779_v44, %v11779_v44 }
 0x4e1   : > { %v13742_v50 = vmul.f32 %v13663_v42, %v11777_v19  ;;  %v13914_v7 = vmul.f32 %v13873_v45, %v13663_v42  ;;  %v12498_v9 = vrot.slane %v12484_v55, %v22380_v22  ;;  %v12499_v21 = vcombine.high %v12491_v27, %v12491_v27 }
 0x4e2   : > { %13352 = vst.msk [vmem:[%s22441_s10 + $0x188] sm:$0xff] %vm13301_vm4, %v13198_v31  ;;  %v13207_v14 = vcombine.low %v12483_v59, %v12491_v27  ;;  %v13680_v0 = vcombine.low %v13672_v46, %v13662_v29  ;;  %v12508_v52 = vcombine.high %v12507_v51, %v12507_v51  ;;  %v13744_v5 = vmul.f32 %v13672_v46, %v11779_v44 }
 0x4e3   : > { %v13820_v38 = vsel %vm13301_vm4, %v13742_v50, 0.0  ;;  %v13992_v25 = vsel %vm13301_vm4, %v13914_v7, 0.0  ;;  %v13223_v56 = vcombine.low %v12499_v21, %v12498_v9  ;;  %v12500_v53 = vcombine.high %v12498_v9, %v12498_v9 }
 0x4e4   : > { %v13821_v36 = vadd.f32 %v13820_v38, %v13819_v43  ;;  %v13993_v48 = vadd.f32 %v13992_v25, %v13991_v60  ;;  %v13221_v37 = vrot.slane %v13207_v14, %v22380_v22  ;;  %v13743_v19 = vmul.f32 %v13680_v0, %v11778_v17 }
 0x4e5   : > { %v13915_v4 = vmul.f32 %v13874_v2, %v13680_v0  ;;  %v13224_v63 = vcombine.low %v12500_v53, %v12507_v51  ;;  %v13246_v18 = vrot.slane %v12508_v52, %v22380_v22  ;;  %v13825_v28 = vsel %vm13824_vm6, %v13744_v5, 0.0 }
 0x4e6   : > { %v13222_v61 = vcombine.low %v13214_v40, %v13221_v37  ;;  %v13822_v57 = vsel %vm13301_vm4, %v13743_v19, 0.0  ;;  %v13916_v11 = vmul.f32 %v13875_v62, %v13672_v46  ;;  %v13231_v54 = vrot.slane %v13223_v56, %v22380_v22 }
 0x4e7   : > { %v13994_v41 = vsel %vm13301_vm4, %v13915_v4, 0.0  ;;  %v13238_v32 = vrot.slane %v13224_v63, %v22380_v22  ;;  %13356 = vst.msk [vmem:[%s22441_s10 + $0x1a8] sm:$0x3] %vm13304_vm5, %v13246_v18  ;;  %v13823_v20 = vadd.f32 %v13822_v57, %v13821_v36 }
 0x4e8   : > { %13354 = vst.msk [vmem:[%s22441_s10 + $0x198] sm:$0xff] %vm13301_vm4, %v13222_v61  ;;  %v13995_v24 = vadd.f32 %v13994_v41, %v13993_v48  ;;  %v13996_v6 = vsel %vm13824_vm6, %v13916_v11, 0.0 }
 0x4e9   : > { %v13239_v12 = vcombine.low %v13231_v54, %v13238_v32  ;;  %v13826_v10 = vadd.f32 %v13825_v28, %v13823_v20 }
 0x4ea   : > { %v13997_v35 = vadd.f32 %v13996_v6, %v13995_v24 }
 0x4eb   : > { %13355 = vst.msk [vmem:[%s22441_s10 + $0x1a0] sm:$0xff] %vm13301_vm4, %v13239_v12  ;;  %v13827_v1 = vrot.slane %v13826_v10, 4 }
 0x4ec   : > { %v13998_v23 = vrot.slane %v13997_v35, 4 }
 0x4ed   : > { %v13828_v22 = vadd.f32 %v13827_v1, %v13826_v10 }
 0x4ee   : > { %v13999_v15 = vadd.f32 %v13998_v23, %v13997_v35 }
 0x4ef   : > { %v13829_v43 = vrot.slane %v13828_v22, 2 }
 0x4f0   : > { %v14000_v39 = vrot.slane %v13999_v15, 2 }
 0x4f1   : > { %v13830_v8 = vadd.f32 %v13829_v43, %v13828_v22 }
 0x4f2   : > { %v14001_v47 = vadd.f32 %v14000_v39, %v13999_v15 }
 0x4f3   : > { %v13831_v49 = vrot.slane %v13830_v8, 1 }
 0x4f4   : > { %v14002_v26 = vrot.slane %v14001_v47, 1 }
 0x4f5   : > { %v13832_v58 = vadd.f32 %v13831_v49, %v13830_v8 }
 0x4f6   : > { %v14003_v16 = vadd.f32 %v14002_v26, %v14001_v47 }
 0x4f7   : > { %13834 = vst.msk [vmem:[%s200_s13] sm:$0x1] %vm13833_vm7, %v13832_v58 }
 0x4f8   : > { %15683 = shalt.err (!%p15680_p3)
}
 0x4f9   : > { %s15684_s10 = scalar_lea.hbm %s23100_s28, 16  ;;  %s15688_s23 = scalar_lea.hbm %s23177_s3, 32 }
 0x4fa   : > { %p15685_p4 = scmp.ne.s32.totalorder %s23100_s28, %s15684_s10  ;;  %p15689_p9 = scmp.lt.s32.totalorder %s23100_s28, %s23177_s3 }
 0x4fb   : > { %p15690_p10 = scmp.lt.s32.totalorder %s15688_s23, %s15684_s10 }
 0x4fc   : > { %p15686_p7 = pnand %p15685_p4, %p15836_p5 }
 0x4fd   : > { %p15691_p11 = por %p15690_p10, %p15689_p9 }
 0x4fe   : > { %p15687_p8 = pneg %p15686_p7 }
 0x500   : > { %p15692_p12 = pnand %p15691_p11, %p15687_p8 }
 0x502   : > { %15695 = shalt.err (!%p15692_p12)
}
 0x503   : > { %15616 = dma.vmem_to_hbm [thread:$0]  (%p15836_p5), %s23102_s14, 16, %s23100_s28, %s14011_s6   ;;  %14004 = vst.msk [vmem:[%s206_s20] sm:$0x1] %vm13833_vm7, %v14003_v16 }
 0x504   : > { %s14015_s30 = scalar_lea.sflag [#allocation5], %s23090_s11  ;;  %s15696_s8 = scalar_lea.vmem %s23109_s22, 16 }
 0x505   : > { %p15697_p13 = scmp.ne.s32.totalorder %s23109_s22, %s15696_s8  ;;  %s15772_s7 = smov [#allocation4]  }
 0x506   : > { %s15700_s29 = sshll.u32 %s15772_s7, 4  ;;  %s15701_s29 = int_to_ptr.vmem [resolvable:$false] %s15700_s29 }
 0x507   : > { %p15698_p0 = pnand %p15697_p13, %p15836_p5  ;;  %s15702_s9 = scalar_lea.vmem %s15701_s29, 32 }
 0x508   : > { %p15703_p2 = scmp.lt.s32.totalorder %s23109_s22, %s15701_s29  ;;  %p15704_p3 = scmp.lt.s32.totalorder %s15702_s9, %s15696_s8 }
 0x509   : > { %p15699_p1 = pneg %p15698_p0 }
 0x50a   : > { %p15705_p4 = por %p15704_p3, %p15703_p2 }
 0x50c   : > { %p15706_p7 = pnand %p15705_p4, %p15699_p1 }
 0x50e   : > { %15709 = shalt.err (!%p15706_p7)
}
 0x50f   : > { %s15710_s14 = scalar_lea.hbm %s23107_s5, 16  ;;  %s15714_s28 = scalar_lea.hbm %s23178_s4, 32 }
 0x510   : > { %p15711_p8 = scmp.ne.s32.totalorder %s23107_s5, %s15710_s14  ;;  %p15715_p11 = scmp.lt.s32.totalorder %s23107_s5, %s23178_s4 }
 0x511   : > { %p15716_p12 = scmp.lt.s32.totalorder %s15714_s28, %s15710_s14 }
 0x512   : > { %p15712_p9 = pnand %p15711_p8, %p15836_p5 }
 0x513   : > { %p15717_p13 = por %p15716_p12, %p15715_p11 }
 0x514   : > { %p15713_p10 = pneg %p15712_p9 }
 0x516   : > { %p15718_p0 = pnand %p15717_p13, %p15713_p10 }
 0x518   : > { %15721 = shalt.err (!%p15718_p0)
}
 0x519   : > { %15617 = dma.vmem_to_hbm [thread:$0]  (%p15836_p5), %s23109_s22, 16, %s23107_s5, %s14015_s30  }
 0x51a PF: > { %p15627_p1 = scmp.ge.s32.totalorder %s15760_s18, 2  ;;  %s14063_s12 = sand.u32 1, %s15748_s15  }
 0x51b   : > { %s14064_s13 = scalar_lea.sflag [#allocation3], %s14063_s12 }
 0x51c   : > { %p15621_p2 = pnand %p15627_p1, %p15840_p6 }
 0x51e   : > { %p15622_p3 = pneg %p15621_p2 }
 0x520   : > { %15739 = dma.done.wait (%p15622_p3), %s14064_s13, 16  }
 0x521   : > { %15741 = vsyncadd (%p15622_p3), %s14064_s13, 4294967280  ;;  %s14072_s23 = scalar_lea.sflag [#allocation5], %s14063_s12 }
 0x522   : > { %15743 = dma.done.wait (%p15622_p3), %s14072_s23, 16  }
 0x523   : > { %15745 = vsyncadd (%p15622_p3), %s14072_s23, 4294967280  ;;  %p18_p5 = scmp.ge.s32.totalorder %s15823_s21, 4   ;;  %s25594_s15 = smov %s15752_s16 }
 0x524   : > { %s25595_s16 = smov %s15756_s17  ;;  %s25596_s17 = smov %s15834_s24 }
 0x525   : > { %s25597_s18 = smov %s15823_s21  ;;  %20 = sbr.rel (!%p18_p5) target bundleno = 5 (0x5), region = 100 }
 0x52a   :  { %14076 = vsyncpa [#allocation3], 1 }
 0x52b   :  { %14078 = vsyncpa [#allocation3 + $0x1], 1 }
 0x52c   :  { %14079 = vsyncpa [#allocation5], 1 }
 0x52d   :  { %14081 = vsyncpa [#allocation5 + $0x1], 1 }

</bundles_post_ra>
